<compile_context>
chip_gen: v5e
topology: v5e:2x2
jax: 0.10.0
libtpu: 0.0.40
codegen_flags: <defaults>
</compile_context>

<pallas_src>
import jax
import jax.numpy as jnp
from jax.experimental import pallas as pl
from jax.experimental.pallas import tpu as pltpu

_BN_EPS = 1e-5
_LEAKY_SLOPE = 0.01          # torch nn.LeakyReLU() default
_LANE = 128                  # TPU lane width
_BF16_ROWS = 16              # bf16 sublane tile height


def _round_up(x, m):
    return (x + m - 1) // m * m


# ---------------------------------------------------------------------------
# conv1x1 folded into the trilinear x2 upsample (align_corners=True).
# ---------------------------------------------------------------------------
def _interp_matrix(n_in, n_out):
    if n_in == 1:
        return jnp.ones((n_out, 1), jnp.float32)
    src = jnp.arange(n_out, dtype=jnp.float32) * (n_in - 1) / (n_out - 1)
    lo = jnp.clip(jnp.floor(src).astype(jnp.int32), 0, n_in - 2)
    frac = src - lo.astype(jnp.float32)
    m = jnp.zeros((n_out, n_in), jnp.float32)
    idx = jnp.arange(n_out)
    m = m.at[idx, lo].add(1.0 - frac)
    m = m.at[idx, lo + 1].add(frac)
    return m


def conv1x1_upsample_trilinear_x2(x, w, b):
    """up(conv1x1(x)), up = trilinear x2 with align_corners=True.

    The 1x1x1 conv is a pointwise channel mix and commutes with the purely
    spatial interpolation (whose weights sum to 1), so the whole thing is one
    fused einsum -- the separate conv1x1 pallas_call of the previous version
    and its HBM round trip are gone.
    # TODO(synk): at production sizes the upsampled tensor still makes one HBM
    # pass before the fused conv kernel re-reads it; folding the 8-tap
    # trilinear weights into the conv kernel would remove that too.
    """
    n, cin, d, h, wsp = x.shape
    cout = w.shape[0]
    w2 = w.reshape(cout, cin).astype(jnp.float32)
    md = _interp_matrix(d, 2 * d)
    mh = _interp_matrix(h, 2 * h)
    mw = _interp_matrix(wsp, 2 * wsp)
    y = jnp.einsum('oc,ad,bh,ew,ncdhw->noabe', w2, md, mh, mw, x)
    return y + b[None, :, None, None, None]


# ---------------------------------------------------------------------------
# Weight / BN prep for the fused ConvBlock kernel.
# ---------------------------------------------------------------------------
def _stack_conv_weights(w, scale, n_taps_pad):
    """torch (cout, cin, 3, 3, 3) -> bf16 (cout, n_taps_pad*cin).

    K index = tap*cin + c with tap = dz*9 + dy*3 + dx; dummy taps are zero.
    BN scale is folded in (in f32) before the bf16 cast.
    """
    cout, cin = w.shape[0], w.shape[1]
    ws = jnp.transpose(w, (0, 2, 3, 4, 1)).reshape(cout, 27 * cin)
    ws = ws * scale[:, None]
    ws = jnp.pad(ws, ((0, 0), (0, (n_taps_pad - 27) * cin)))
    return ws.astype(jnp.bfloat16)


def _fold_bn(bias, bn, cout):
    """Fold conv bias + eval-mode BatchNorm into a per-channel scale/shift."""
    gamma, beta, mean, var = bn
    scale = gamma / jnp.sqrt(var + _BN_EPS)
    shift = bias * scale + beta - mean * scale
    return scale, shift.reshape(cout, 1).astype(jnp.float32)


# ---------------------------------------------------------------------------
# Fused ConvBlock: conv3x3+BN+LeakyReLU -> (dropout: identity) ->
# conv3x3+BN+LeakyReLU, on the (fused) channel concat [x2, x1].  One
# pallas_call; the intermediate lives only in VMEM.
# ---------------------------------------------------------------------------
def fused_convblock_pallas(x2, x1, wa, ba, bna, wb, bb, bnb,
                           negative_slope=_LEAKY_SLOPE):
    n, c2, d, h, w = x2.shape
    assert x1.shape == x2.shape, (x1.shape, x2.shape)
    cout = wa.shape[0]
    slope = float(negative_slope)

    # ---- flat-row geometry of the zero-padded (pad=1) volume ---------------
    s_h = w + 2
    s_d = (h + 2) * s_h
    p_frame = (d + 2) * s_d                    # rows of the padded frame
    p_out = _round_up(p_frame, _LANE)          # rows computed per conv (lane-dense)
    max_off = 2 * s_d + 2 * s_h + 2            # largest tap offset
    p_in = _round_up(p_out + max_off, _LANE)   # flat padded input length
    shift = s_d + s_h + 1                      # window origin -> its padded row
    h_base = _round_up(shift, _LANE)           # aligned base of conva rows in h scratch
    h_len = _round_up(h_base - shift + max_off + p_out, _LANE)

    offs = [dz * s_d + dy * s_h + dx
            for dz in range(3) for dy in range(3) for dx in range(3)]

    # taps-per-store so every K-stack store is a full 16-sublane bf16 tile.
    def _tpg(c):
        return _BF16_ROWS // c if _BF16_ROWS % c == 0 else 1

    tpg_a = _tpg(c2)
    tpg_b = _tpg(cout)
    ntap_a = _round_up(27, tpg_a)
    ntap_b = _round_up(27, tpg_b)
    offs_a = offs + [0] * (ntap_a - 27)        # dummy taps carry zero weights
    offs_b = [o + (h_base - shift) for o in offs] + [0] * (ntap_b - 27)
    k_a = 2 * ntap_a * c2                      # K of conva ([x2 | x1] blocks)
    k_b = ntap_b * cout                        # K of convb

    # ---- host-side prep (single tiny passes over the inputs) ---------------
    def _flat(x):
        xp = jnp.pad(x, ((0, 0), (0, 0), (1, 1), (1, 1), (1, 1)))
        xf = xp.reshape(n, c2, p_frame)
        xf = jnp.pad(xf, ((0, 0), (0, 0), (0, p_in - p_frame)))
        return xf.astype(jnp.bfloat16)

    x2_f = _flat(x2)
    x1_f = _flat(x1)

    scale_a, sa = _fold_bn(ba, bna, cout)
    scale_b, sb = _fold_bn(bb, bnb, cout)
    # torch.cat([x2, x1], dim=1) stays fused: each tensor consumes its own
    # K-block of the conva weights.
    wa_stk = jnp.concatenate(
        [_stack_conv_weights(wa[:, :c2], scale_a, ntap_a),
         _stack_conv_weights(wa[:, c2:], scale_a, ntap_a)], axis=1)   # (cout, k_a)
    wb_stk = _stack_conv_weights(wb, scale_b, ntap_b)                 # (cout, k_b)

    # 0/1 mask over window-origin rows: 1 iff the origin is a valid voxel.
    mz = jnp.arange(d + 2) < d
    my = jnp.arange(h + 2) < h
    mx = jnp.arange(w + 2) < w
    mask = (mz[:, None, None] & my[None, :, None] & mx[None, None, :]).reshape(-1)
    mask = jnp.pad(mask, (0, p_out - p_frame)).astype(jnp.float32).reshape(1, p_out)

    # ---- kernel -------------------------------------------------------------
    def kernel(x2_ref, x1_ref, wa_ref, sa_ref, wb_ref, sb_ref, m_ref,
               o_ref, stk_a, stk_b, h_ref):
        def fill(stk, src_ref, cin, offsets, tpg, base):
            # Each store is `tpg` taps x `cin` channels = one aligned 16-row
            # bf16 tile; values are consumed immediately (short live ranges).
            for g in range(len(offsets) // tpg):
                parts = [src_ref[:, o:o + p_out]
                         for o in offsets[g * tpg:(g + 1) * tpg]]
                blk = parts[0] if tpg == 1 else jnp.concatenate(parts, axis=0)
                r0 = base + g * tpg * cin
                stk[r0:r0 + tpg * cin, :] = blk

        # conva: K-stack [x2 taps | x1 taps] then ONE MXU matmul (K = k_a).
        fill(stk_a, x2_ref, c2, offs_a, tpg_a, 0)
        fill(stk_a, x1_ref, c2, offs_a, tpg_a, ntap_a * c2)
        ya = jnp.dot(wa_ref[...], stk_a[...], preferred_element_type=jnp.float32)
        ya = ya + sa_ref[...]                        # folded bias + BN shift (f32)
        ya = jnp.where(ya >= 0, ya, slope * ya)      # LeakyReLU (f32)
        # TODO(synk): Dropout between the convs is eval-mode identity here.

        # conva result goes straight into convb's padded-flat layout (VMEM
        # only): zero borders, mask invalid window origins, constant row shift.
        h_ref[...] = jnp.zeros_like(h_ref)
        h_ref[:, h_base:h_base + p_out] = (ya * m_ref[...]).astype(h_ref.dtype)

        # convb: K-stack the 27 taps of the VMEM-resident intermediate.
        fill(stk_b, h_ref, cout, offs_b, tpg_b, 0)
        yb = jnp.dot(wb_ref[...], stk_b[...], preferred_element_type=jnp.float32)
        yb = yb + sb_ref[...]
        yb = jnp.where(yb >= 0, yb, slope * yb)
        o_ref[...] = yb.astype(o_ref.dtype)

    # ---- VMEM budget / cost -------------------------------------------------
    scratch_bytes = (k_a + k_b) * p_out * 2 + cout * h_len * 2
    io_bytes = 2 * (2 * c2 * p_in * 2 + cout * p_out * 4)      # double-buffered
    const_bytes = (k_a + k_b) * cout * 2 + 2 * cout * 4 + p_out * 4
    vmem_limit = int(min(100 << 20,
                         scratch_bytes + io_bytes + 2 * const_bytes + (8 << 20)))
    flops = 2 * n * cout * p_out * (k_a + k_b)
    bytes_accessed = (2 * n * c2 * p_in * 2 + n * cout * p_out * 4
                      + (k_a + k_b) * cout * 2 + p_out * 4 + 2 * cout * 4)

    out = pl.pallas_call(
        kernel,
        out_shape=jax.ShapeDtypeStruct((n, cout, p_out), jnp.float32),
        grid_spec=pltpu.PrefetchScalarGridSpec(
            num_scalar_prefetch=0,
            # One sample per step; batch axis sharded across cores.
            # TODO(synk): for production decoder sizes add a halo'd D-slab
            # grid axis (second "parallel" axis) so the per-step footprint
            # stays under v7x's 64 MiB VMEM and both v7x TensorCores get work
            # when the batch is 1 or odd.
            grid=(n,),
            in_specs=[
                pl.BlockSpec((pl.Squeezed(), c2, p_in), lambda i: (i, 0, 0)),
                pl.BlockSpec((pl.Squeezed(), c2, p_in), lambda i: (i, 0, 0)),
                pl.BlockSpec((cout, k_a), lambda i: (0, 0)),   # VMEM-resident
                pl.BlockSpec((cout, 1), lambda i: (0, 0)),
                pl.BlockSpec((cout, k_b), lambda i: (0, 0)),
                pl.BlockSpec((cout, 1), lambda i: (0, 0)),
                pl.BlockSpec((1, p_out), lambda i: (0, 0)),
            ],
            out_specs=pl.BlockSpec((pl.Squeezed(), cout, p_out),
                                   lambda i: (i, 0, 0)),
            scratch_shapes=[
                pltpu.VMEM((k_a, p_out), jnp.bfloat16),   # conva K-stack
                pltpu.VMEM((k_b, p_out), jnp.bfloat16),   # convb K-stack
                pltpu.VMEM((cout, h_len), jnp.bfloat16),  # conva out, convb layout
            ]),
        compiler_params=pltpu.CompilerParams(
            dimension_semantics=("parallel",),
            vmem_limit_bytes=vmem_limit),
        cost_estimate=pl.CostEstimate(flops=int(flops), transcendentals=0,
                                      bytes_accessed=int(bytes_accessed)),
    )(x2_f, x1_f, wa_stk, sa, wb_stk, sb, mask)

    # Valid outputs live at window origins [:D, :H, :W] of the padded frame.
    out = out[:, :, :p_frame].reshape(n, cout, d + 2, h + 2, w + 2)
    return out[:, :, :d, :h, :w]


# ---------------------------------------------------------------------------
# Parameters (deterministic init) and UpBlock forward.
# ---------------------------------------------------------------------------
def _init_conv(key, cin, cout, k):
    wk, bk = jax.random.split(key)
    w = jax.random.normal(wk, (cout, cin, k, k, k), jnp.float32) * 0.1
    b = jax.random.normal(bk, (cout,), jnp.float32) * 0.1
    return w, b


def _init_bn(key, c):
    k1, k2, k3, k4 = jax.random.split(key, 4)
    gamma = 1.0 + 0.1 * jax.random.normal(k1, (c,), jnp.float32)
    beta = 0.1 * jax.random.normal(k2, (c,), jnp.float32)
    mean = 0.1 * jax.random.normal(k3, (c,), jnp.float32)
    var = 1.0 + 0.5 * jax.random.uniform(k4, (c,), jnp.float32)
    return gamma, beta, mean, var


def init_upblock_params(key, in_channels1, in_channels2, out_channels):
    ks = jax.random.split(key, 5)
    p = {}
    p['conv1x1_w'], p['conv1x1_b'] = _init_conv(ks[0], in_channels1,
                                                in_channels2, 1)
    p['conva_w'], p['conva_b'] = _init_conv(ks[1], in_channels2 * 2,
                                            out_channels, 3)
    p['bna'] = _init_bn(ks[2], out_channels)
    p['convb_w'], p['convb_b'] = _init_conv(ks[3], out_channels,
                                            out_channels, 3)
    p['bnb'] = _init_bn(ks[4], out_channels)
    return p


@jax.jit
def upblock_forward(params, x1_ncdhw, x2_ncdhw):
    # conv1x1 + trilinear x2 upsample (align_corners=True), fused in XLA.
    x1u = conv1x1_upsample_trilinear_x2(x1_ncdhw, params['conv1x1_w'],
                                        params['conv1x1_b'])
    # ConvBlock(cat([x2, up(x1)], dim=1)) in one fused Pallas kernel.
    return fused_convblock_pallas(
        x2_ncdhw, x1u,
        params['conva_w'], params['conva_b'], params['bna'],
        params['convb_w'], params['convb_b'], params['bnb'],
        _LEAKY_SLOPE)


if __name__ == "__main__":
    key = jax.random.PRNGKey(0)
    k_p, k_x1, k_x2 = jax.random.split(key, 3)

    in_channels1, in_channels2, out_channels = 8, 4, 8

    # high-level features: more channels, smaller spatial; low-level: 2x spatial
    x1 = jax.random.normal(k_x1, (2, in_channels1, 4, 4, 4), jnp.float32)
    x2 = jax.random.normal(k_x2, (2, in_channels2, 8, 8, 8), jnp.float32)

    params = init_upblock_params(k_p, in_channels1, in_channels2, out_channels)

    out = upblock_forward(params, x1, x2)
    jax.block_until_ready(out)
    assert out.shape == (2, out_channels, 8, 8, 8), out.shape
    print("KERNEL_OK")
</pallas_src>

<mosaic_0001>
module attributes {stable_mosaic.version = 11 : i64} {
  func.func @kernel(%arg0: i32, %arg1: memref<1x4x1280xbf16, #tpu.memory_space<vmem>>, %arg2: memref<1x4x1280xbf16, #tpu.memory_space<vmem>>, %arg3: memref<8x224xbf16, #tpu.memory_space<vmem>>, %arg4: memref<8x1xf32, #tpu.memory_space<vmem>>, %arg5: memref<8x224xbf16, #tpu.memory_space<vmem>>, %arg6: memref<8x1xf32, #tpu.memory_space<vmem>>, %arg7: memref<1x1024xf32, #tpu.memory_space<vmem>>, %arg8: memref<1x8x1024xf32, #tpu.memory_space<vmem>>, %arg9: memref<224x1024xbf16, #tpu.memory_space<vmem>>, %arg10: memref<224x1024xbf16, #tpu.memory_space<vmem>>, %arg11: memref<8x1280xbf16, #tpu.memory_space<vmem>>) attributes {dimension_semantics = [#tpu.dimension_semantics<parallel>], iteration_bounds = array<i64: 2>, scalar_prefetch = 0 : i64, scratch_operands = 3 : i64, tpu.core_type = #tpu.core_type<tc>, window_params = [{transform_indices = @transform_0, window_bounds = array<i64: 1, 4, 1280>}, {transform_indices = @transform_1, window_bounds = array<i64: 1, 4, 1280>}, {pipeline_mode = #tpu.pipeline_mode<synchronous>, transform_indices = @transform_2, window_bounds = array<i64: 8, 224>}, {pipeline_mode = #tpu.pipeline_mode<synchronous>, transform_indices = @transform_3, window_bounds = array<i64: 8, 1>}, {pipeline_mode = #tpu.pipeline_mode<synchronous>, transform_indices = @transform_4, window_bounds = array<i64: 8, 224>}, {pipeline_mode = #tpu.pipeline_mode<synchronous>, transform_indices = @transform_5, window_bounds = array<i64: 8, 1>}, {pipeline_mode = #tpu.pipeline_mode<synchronous>, transform_indices = @transform_6, window_bounds = array<i64: 1, 1024>}, {transform_indices = @transform_7, window_bounds = array<i64: 1, 8, 1024>}]} {
    %c0 = arith.constant 0 : index
    %c0_0 = arith.constant 0 : index
    %c0_1 = arith.constant 0 : index
    %0 = vector.load %arg1[%c0, %c0_0, %c0_1] : memref<1x4x1280xbf16, #tpu.memory_space<vmem>>, vector<1x4x1024xbf16>
    %1 = vector.shape_cast %0 : vector<1x4x1024xbf16> to vector<4x1024xbf16>
    %c0_2 = arith.constant 0 : index
    %c0_3 = arith.constant 0 : index
    %c1 = arith.constant 1 : index
    %2 = vector.load %arg1[%c0_2, %c0_3, %c1] : memref<1x4x1280xbf16, #tpu.memory_space<vmem>>, vector<1x4x1024xbf16>
    %3 = vector.shape_cast %2 : vector<1x4x1024xbf16> to vector<4x1024xbf16>
    %c0_4 = arith.constant 0 : index
    %c0_5 = arith.constant 0 : index
    %c2 = arith.constant 2 : index
    %4 = vector.load %arg1[%c0_4, %c0_5, %c2] : memref<1x4x1280xbf16, #tpu.memory_space<vmem>>, vector<1x4x1024xbf16>
    %5 = vector.shape_cast %4 : vector<1x4x1024xbf16> to vector<4x1024xbf16>
    %c0_6 = arith.constant 0 : index
    %c0_7 = arith.constant 0 : index
    %c10 = arith.constant 10 : index
    %6 = vector.load %arg1[%c0_6, %c0_7, %c10] : memref<1x4x1280xbf16, #tpu.memory_space<vmem>>, vector<1x4x1024xbf16>
    %7 = vector.shape_cast %6 : vector<1x4x1024xbf16> to vector<4x1024xbf16>
    %8 = tpu.concatenate %1, %3, %5, %7 in 0 : vector<4x1024xbf16>, vector<4x1024xbf16>, vector<4x1024xbf16>, vector<4x1024xbf16> -> vector<16x1024xbf16>
    %c0_8 = arith.constant 0 : index
    %c0_9 = arith.constant 0 : index
    %9 = vector.load %arg9[%c0_8, %c0_9] : memref<224x1024xbf16, #tpu.memory_space<vmem>>, vector<16x1024xbf16>
    tpu.vector_store %arg9[%c0_8, %c0_9], %8 {strides = array<i32>} : memref<224x1024xbf16, #tpu.memory_space<vmem>>, vector<16x1024xbf16>,
    %c0_10 = arith.constant 0 : index
    %c0_11 = arith.constant 0 : index
    %c11 = arith.constant 11 : index
    %10 = vector.load %arg1[%c0_10, %c0_11, %c11] : memref<1x4x1280xbf16, #tpu.memory_space<vmem>>, vector<1x4x1024xbf16>
    %11 = vector.shape_cast %10 : vector<1x4x1024xbf16> to vector<4x1024xbf16>
    %c0_12 = arith.constant 0 : index
    %c0_13 = arith.constant 0 : index
    %c12 = arith.constant 12 : index
    %12 = vector.load %arg1[%c0_12, %c0_13, %c12] : memref<1x4x1280xbf16, #tpu.memory_space<vmem>>, vector<1x4x1024xbf16>
    %13 = vector.shape_cast %12 : vector<1x4x1024xbf16> to vector<4x1024xbf16>
    %c0_14 = arith.constant 0 : index
    %c0_15 = arith.constant 0 : index
    %c20 = arith.constant 20 : index
    %14 = vector.load %arg1[%c0_14, %c0_15, %c20] : memref<1x4x1280xbf16, #tpu.memory_space<vmem>>, vector<1x4x1024xbf16>
    %15 = vector.shape_cast %14 : vector<1x4x1024xbf16> to vector<4x1024xbf16>
    %c0_16 = arith.constant 0 : index
    %c0_17 = arith.constant 0 : index
    %c21 = arith.constant 21 : index
    %16 = vector.load %arg1[%c0_16, %c0_17, %c21] : memref<1x4x1280xbf16, #tpu.memory_space<vmem>>, vector<1x4x1024xbf16>
    %17 = vector.shape_cast %16 : vector<1x4x1024xbf16> to vector<4x1024xbf16>
    %18 = tpu.concatenate %11, %13, %15, %17 in 0 : vector<4x1024xbf16>, vector<4x1024xbf16>, vector<4x1024xbf16>, vector<4x1024xbf16> -> vector<16x1024xbf16>
    %c16 = arith.constant 16 : index
    %c0_18 = arith.constant 0 : index
    %19 = vector.load %arg9[%c16, %c0_18] : memref<224x1024xbf16, #tpu.memory_space<vmem>>, vector<16x1024xbf16>
    tpu.vector_store %arg9[%c16, %c0_18], %18 {strides = array<i32>} : memref<224x1024xbf16, #tpu.memory_space<vmem>>, vector<16x1024xbf16>,
    %c0_19 = arith.constant 0 : index
    %c0_20 = arith.constant 0 : index
    %c22 = arith.constant 22 : index
    %20 = vector.load %arg1[%c0_19, %c0_20, %c22] : memref<1x4x1280xbf16, #tpu.memory_space<vmem>>, vector<1x4x1024xbf16>
    %21 = vector.shape_cast %20 : vector<1x4x1024xbf16> to vector<4x1024xbf16>
    %c0_21 = arith.constant 0 : index
    %c0_22 = arith.constant 0 : index
    %c100 = arith.constant 100 : index
    %22 = vector.load %arg1[%c0_21, %c0_22, %c100] : memref<1x4x1280xbf16, #tpu.memory_space<vmem>>, vector<1x4x1024xbf16>
    %23 = vector.shape_cast %22 : vector<1x4x1024xbf16> to vector<4x1024xbf16>
    %c0_23 = arith.constant 0 : index
    %c0_24 = arith.constant 0 : index
    %c101 = arith.constant 101 : index
    %24 = vector.load %arg1[%c0_23, %c0_24, %c101] : memref<1x4x1280xbf16, #tpu.memory_space<vmem>>, vector<1x4x1024xbf16>
    %25 = vector.shape_cast %24 : vector<1x4x1024xbf16> to vector<4x1024xbf16>
    %c0_25 = arith.constant 0 : index
    %c0_26 = arith.constant 0 : index
    %c102 = arith.constant 102 : index
    %26 = vector.load %arg1[%c0_25, %c0_26, %c102] : memref<1x4x1280xbf16, #tpu.memory_space<vmem>>, vector<1x4x1024xbf16>
    %27 = vector.shape_cast %26 : vector<1x4x1024xbf16> to vector<4x1024xbf16>
    %28 = tpu.concatenate %21, %23, %25, %27 in 0 : vector<4x1024xbf16>, vector<4x1024xbf16>, vector<4x1024xbf16>, vector<4x1024xbf16> -> vector<16x1024xbf16>
    %c32 = arith.constant 32 : index
    %c0_27 = arith.constant 0 : index
    %29 = vector.load %arg9[%c32, %c0_27] : memref<224x1024xbf16, #tpu.memory_space<vmem>>, vector<16x1024xbf16>
    tpu.vector_store %arg9[%c32, %c0_27], %28 {strides = array<i32>} : memref<224x1024xbf16, #tpu.memory_space<vmem>>, vector<16x1024xbf16>,
    %c0_28 = arith.constant 0 : index
    %c0_29 = arith.constant 0 : index
    %c110 = arith.constant 110 : index
    %30 = vector.load %arg1[%c0_28, %c0_29, %c110] : memref<1x4x1280xbf16, #tpu.memory_space<vmem>>, vector<1x4x1024xbf16>
    %31 = vector.shape_cast %30 : vector<1x4x1024xbf16> to vector<4x1024xbf16>
    %c0_30 = arith.constant 0 : index
    %c0_31 = arith.constant 0 : index
    %c111 = arith.constant 111 : index
    %32 = vector.load %arg1[%c0_30, %c0_31, %c111] : memref<1x4x1280xbf16, #tpu.memory_space<vmem>>, vector<1x4x1024xbf16>
    %33 = vector.shape_cast %32 : vector<1x4x1024xbf16> to vector<4x1024xbf16>
    %c0_32 = arith.constant 0 : index
    %c0_33 = arith.constant 0 : index
    %c112 = arith.constant 112 : index
    %34 = vector.load %arg1[%c0_32, %c0_33, %c112] : memref<1x4x1280xbf16, #tpu.memory_space<vmem>>, vector<1x4x1024xbf16>
    %35 = vector.shape_cast %34 : vector<1x4x1024xbf16> to vector<4x1024xbf16>
    %c0_34 = arith.constant 0 : index
    %c0_35 = arith.constant 0 : index
    %c120 = arith.constant 120 : index
    %36 = vector.load %arg1[%c0_34, %c0_35, %c120] : memref<1x4x1280xbf16, #tpu.memory_space<vmem>>, vector<1x4x1024xbf16>
    %37 = vector.shape_cast %36 : vector<1x4x1024xbf16> to vector<4x1024xbf16>
    %38 = tpu.concatenate %31, %33, %35, %37 in 0 : vector<4x1024xbf16>, vector<4x1024xbf16>, vector<4x1024xbf16>, vector<4x1024xbf16> -> vector<16x1024xbf16>
    %c48 = arith.constant 48 : index
    %c0_36 = arith.constant 0 : index
    %39 = vector.load %arg9[%c48, %c0_36] : memref<224x1024xbf16, #tpu.memory_space<vmem>>, vector<16x1024xbf16>
    tpu.vector_store %arg9[%c48, %c0_36], %38 {strides = array<i32>} : memref<224x1024xbf16, #tpu.memory_space<vmem>>, vector<16x1024xbf16>,
    %c0_37 = arith.constant 0 : index
    %c0_38 = arith.constant 0 : index
    %c121 = arith.constant 121 : index
    %40 = vector.load %arg1[%c0_37, %c0_38, %c121] : memref<1x4x1280xbf16, #tpu.memory_space<vmem>>, vector<1x4x1024xbf16>
    %41 = vector.shape_cast %40 : vector<1x4x1024xbf16> to vector<4x1024xbf16>
    %c0_39 = arith.constant 0 : index
    %c0_40 = arith.constant 0 : index
    %c122 = arith.constant 122 : index
    %42 = vector.load %arg1[%c0_39, %c0_40, %c122] : memref<1x4x1280xbf16, #tpu.memory_space<vmem>>, vector<1x4x1024xbf16>
    %43 = vector.shape_cast %42 : vector<1x4x1024xbf16> to vector<4x1024xbf16>
    %c0_41 = arith.constant 0 : index
    %c0_42 = arith.constant 0 : index
    %c200 = arith.constant 200 : index
    %44 = vector.load %arg1[%c0_41, %c0_42, %c200] : memref<1x4x1280xbf16, #tpu.memory_space<vmem>>, vector<1x4x1024xbf16>
    %45 = vector.shape_cast %44 : vector<1x4x1024xbf16> to vector<4x1024xbf16>
    %c0_43 = arith.constant 0 : index
    %c0_44 = arith.constant 0 : index
    %c201 = arith.constant 201 : index
    %46 = vector.load %arg1[%c0_43, %c0_44, %c201] : memref<1x4x1280xbf16, #tpu.memory_space<vmem>>, vector<1x4x1024xbf16>
    %47 = vector.shape_cast %46 : vector<1x4x1024xbf16> to vector<4x1024xbf16>
    %48 = tpu.concatenate %41, %43, %45, %47 in 0 : vector<4x1024xbf16>, vector<4x1024xbf16>, vector<4x1024xbf16>, vector<4x1024xbf16> -> vector<16x1024xbf16>
    %c64 = arith.constant 64 : index
    %c0_45 = arith.constant 0 : index
    %49 = vector.load %arg9[%c64, %c0_45] : memref<224x1024xbf16, #tpu.memory_space<vmem>>, vector<16x1024xbf16>
    tpu.vector_store %arg9[%c64, %c0_45], %48 {strides = array<i32>} : memref<224x1024xbf16, #tpu.memory_space<vmem>>, vector<16x1024xbf16>,
    %c0_46 = arith.constant 0 : index
    %c0_47 = arith.constant 0 : index
    %c202 = arith.constant 202 : index
    %50 = vector.load %arg1[%c0_46, %c0_47, %c202] : memref<1x4x1280xbf16, #tpu.memory_space<vmem>>, vector<1x4x1024xbf16>
    %51 = vector.shape_cast %50 : vector<1x4x1024xbf16> to vector<4x1024xbf16>
    %c0_48 = arith.constant 0 : index
    %c0_49 = arith.constant 0 : index
    %c210 = arith.constant 210 : index
    %52 = vector.load %arg1[%c0_48, %c0_49, %c210] : memref<1x4x1280xbf16, #tpu.memory_space<vmem>>, vector<1x4x1024xbf16>
    %53 = vector.shape_cast %52 : vector<1x4x1024xbf16> to vector<4x1024xbf16>
    %c0_50 = arith.constant 0 : index
    %c0_51 = arith.constant 0 : index
    %c211 = arith.constant 211 : index
    %54 = vector.load %arg1[%c0_50, %c0_51, %c211] : memref<1x4x1280xbf16, #tpu.memory_space<vmem>>, vector<1x4x1024xbf16>
    %55 = vector.shape_cast %54 : vector<1x4x1024xbf16> to vector<4x1024xbf16>
    %c0_52 = arith.constant 0 : index
    %c0_53 = arith.constant 0 : index
    %c212 = arith.constant 212 : index
    %56 = vector.load %arg1[%c0_52, %c0_53, %c212] : memref<1x4x1280xbf16, #tpu.memory_space<vmem>>, vector<1x4x1024xbf16>
    %57 = vector.shape_cast %56 : vector<1x4x1024xbf16> to vector<4x1024xbf16>
    %58 = tpu.concatenate %51, %53, %55, %57 in 0 : vector<4x1024xbf16>, vector<4x1024xbf16>, vector<4x1024xbf16>, vector<4x1024xbf16> -> vector<16x1024xbf16>
    %c80 = arith.constant 80 : index
    %c0_54 = arith.constant 0 : index
    %59 = vector.load %arg9[%c80, %c0_54] : memref<224x1024xbf16, #tpu.memory_space<vmem>>, vector<16x1024xbf16>
    tpu.vector_store %arg9[%c80, %c0_54], %58 {strides = array<i32>} : memref<224x1024xbf16, #tpu.memory_space<vmem>>, vector<16x1024xbf16>,
    %c0_55 = arith.constant 0 : index
    %c0_56 = arith.constant 0 : index
    %c220 = arith.constant 220 : index
    %60 = vector.load %arg1[%c0_55, %c0_56, %c220] : memref<1x4x1280xbf16, #tpu.memory_space<vmem>>, vector<1x4x1024xbf16>
    %61 = vector.shape_cast %60 : vector<1x4x1024xbf16> to vector<4x1024xbf16>
    %c0_57 = arith.constant 0 : index
    %c0_58 = arith.constant 0 : index
    %c221 = arith.constant 221 : index
    %62 = vector.load %arg1[%c0_57, %c0_58, %c221] : memref<1x4x1280xbf16, #tpu.memory_space<vmem>>, vector<1x4x1024xbf16>
    %63 = vector.shape_cast %62 : vector<1x4x1024xbf16> to vector<4x1024xbf16>
    %c0_59 = arith.constant 0 : index
    %c0_60 = arith.constant 0 : index
    %c222 = arith.constant 222 : index
    %64 = vector.load %arg1[%c0_59, %c0_60, %c222] : memref<1x4x1280xbf16, #tpu.memory_space<vmem>>, vector<1x4x1024xbf16>
    %65 = vector.shape_cast %64 : vector<1x4x1024xbf16> to vector<4x1024xbf16>
    %c0_61 = arith.constant 0 : index
    %c0_62 = arith.constant 0 : index
    %c0_63 = arith.constant 0 : index
    %66 = vector.load %arg1[%c0_61, %c0_62, %c0_63] : memref<1x4x1280xbf16, #tpu.memory_space<vmem>>, vector<1x4x1024xbf16>
    %67 = vector.shape_cast %66 : vector<1x4x1024xbf16> to vector<4x1024xbf16>
    %68 = tpu.concatenate %61, %63, %65, %67 in 0 : vector<4x1024xbf16>, vector<4x1024xbf16>, vector<4x1024xbf16>, vector<4x1024xbf16> -> vector<16x1024xbf16>
    %c96 = arith.constant 96 : index
    %c0_64 = arith.constant 0 : index
    %69 = vector.load %arg9[%c96, %c0_64] : memref<224x1024xbf16, #tpu.memory_space<vmem>>, vector<16x1024xbf16>
    tpu.vector_store %arg9[%c96, %c0_64], %68 {strides = array<i32>} : memref<224x1024xbf16, #tpu.memory_space<vmem>>, vector<16x1024xbf16>,
    %c0_65 = arith.constant 0 : index
    %c0_66 = arith.constant 0 : index
    %c0_67 = arith.constant 0 : index
    %70 = vector.load %arg2[%c0_65, %c0_66, %c0_67] : memref<1x4x1280xbf16, #tpu.memory_space<vmem>>, vector<1x4x1024xbf16>
    %71 = vector.shape_cast %70 : vector<1x4x1024xbf16> to vector<4x1024xbf16>
    %c0_68 = arith.constant 0 : index
    %c0_69 = arith.constant 0 : index
    %c1_70 = arith.constant 1 : index
    %72 = vector.load %arg2[%c0_68, %c0_69, %c1_70] : memref<1x4x1280xbf16, #tpu.memory_space<vmem>>, vector<1x4x1024xbf16>
    %73 = vector.shape_cast %72 : vector<1x4x1024xbf16> to vector<4x1024xbf16>
    %c0_71 = arith.constant 0 : index
    %c0_72 = arith.constant 0 : index
    %c2_73 = arith.constant 2 : index
    %74 = vector.load %arg2[%c0_71, %c0_72, %c2_73] : memref<1x4x1280xbf16, #tpu.memory_space<vmem>>, vector<1x4x1024xbf16>
    %75 = vector.shape_cast %74 : vector<1x4x1024xbf16> to vector<4x1024xbf16>
    %c0_74 = arith.constant 0 : index
    %c0_75 = arith.constant 0 : index
    %c10_76 = arith.constant 10 : index
    %76 = vector.load %arg2[%c0_74, %c0_75, %c10_76] : memref<1x4x1280xbf16, #tpu.memory_space<vmem>>, vector<1x4x1024xbf16>
    %77 = vector.shape_cast %76 : vector<1x4x1024xbf16> to vector<4x1024xbf16>
    %78 = tpu.concatenate %71, %73, %75, %77 in 0 : vector<4x1024xbf16>, vector<4x1024xbf16>, vector<4x1024xbf16>, vector<4x1024xbf16> -> vector<16x1024xbf16>
    %c112_77 = arith.constant 112 : index
    %c0_78 = arith.constant 0 : index
    %79 = vector.load %arg9[%c112_77, %c0_78] : memref<224x1024xbf16, #tpu.memory_space<vmem>>, vector<16x1024xbf16>
    tpu.vector_store %arg9[%c112_77, %c0_78], %78 {strides = array<i32>} : memref<224x1024xbf16, #tpu.memory_space<vmem>>, vector<16x1024xbf16>,
    %c0_79 = arith.constant 0 : index
    %c0_80 = arith.constant 0 : index
    %c11_81 = arith.constant 11 : index
    %80 = vector.load %arg2[%c0_79, %c0_80, %c11_81] : memref<1x4x1280xbf16, #tpu.memory_space<vmem>>, vector<1x4x1024xbf16>
    %81 = vector.shape_cast %80 : vector<1x4x1024xbf16> to vector<4x1024xbf16>
    %c0_82 = arith.constant 0 : index
    %c0_83 = arith.constant 0 : index
    %c12_84 = arith.constant 12 : index
    %82 = vector.load %arg2[%c0_82, %c0_83, %c12_84] : memref<1x4x1280xbf16, #tpu.memory_space<vmem>>, vector<1x4x1024xbf16>
    %83 = vector.shape_cast %82 : vector<1x4x1024xbf16> to vector<4x1024xbf16>
    %c0_85 = arith.constant 0 : index
    %c0_86 = arith.constant 0 : index
    %c20_87 = arith.constant 20 : index
    %84 = vector.load %arg2[%c0_85, %c0_86, %c20_87] : memref<1x4x1280xbf16, #tpu.memory_space<vmem>>, vector<1x4x1024xbf16>
    %85 = vector.shape_cast %84 : vector<1x4x1024xbf16> to vector<4x1024xbf16>
    %c0_88 = arith.constant 0 : index
    %c0_89 = arith.constant 0 : index
    %c21_90 = arith.constant 21 : index
    %86 = vector.load %arg2[%c0_88, %c0_89, %c21_90] : memref<1x4x1280xbf16, #tpu.memory_space<vmem>>, vector<1x4x1024xbf16>
    %87 = vector.shape_cast %86 : vector<1x4x1024xbf16> to vector<4x1024xbf16>
    %88 = tpu.concatenate %81, %83, %85, %87 in 0 : vector<4x1024xbf16>, vector<4x1024xbf16>, vector<4x1024xbf16>, vector<4x1024xbf16> -> vector<16x1024xbf16>
    %c128 = arith.constant 128 : index
    %c0_91 = arith.constant 0 : index
    %89 = vector.load %arg9[%c128, %c0_91] : memref<224x1024xbf16, #tpu.memory_space<vmem>>, vector<16x1024xbf16>
    tpu.vector_store %arg9[%c128, %c0_91], %88 {strides = array<i32>} : memref<224x1024xbf16, #tpu.memory_space<vmem>>, vector<16x1024xbf16>,
    %c0_92 = arith.constant 0 : index
    %c0_93 = arith.constant 0 : index
    %c22_94 = arith.constant 22 : index
    %90 = vector.load %arg2[%c0_92, %c0_93, %c22_94] : memref<1x4x1280xbf16, #tpu.memory_space<vmem>>, vector<1x4x1024xbf16>
    %91 = vector.shape_cast %90 : vector<1x4x1024xbf16> to vector<4x1024xbf16>
    %c0_95 = arith.constant 0 : index
    %c0_96 = arith.constant 0 : index
    %c100_97 = arith.constant 100 : index
    %92 = vector.load %arg2[%c0_95, %c0_96, %c100_97] : memref<1x4x1280xbf16, #tpu.memory_space<vmem>>, vector<1x4x1024xbf16>
    %93 = vector.shape_cast %92 : vector<1x4x1024xbf16> to vector<4x1024xbf16>
    %c0_98 = arith.constant 0 : index
    %c0_99 = arith.constant 0 : index
    %c101_100 = arith.constant 101 : index
    %94 = vector.load %arg2[%c0_98, %c0_99, %c101_100] : memref<1x4x1280xbf16, #tpu.memory_space<vmem>>, vector<1x4x1024xbf16>
    %95 = vector.shape_cast %94 : vector<1x4x1024xbf16> to vector<4x1024xbf16>
    %c0_101 = arith.constant 0 : index
    %c0_102 = arith.constant 0 : index
    %c102_103 = arith.constant 102 : index
    %96 = vector.load %arg2[%c0_101, %c0_102, %c102_103] : memref<1x4x1280xbf16, #tpu.memory_space<vmem>>, vector<1x4x1024xbf16>
    %97 = vector.shape_cast %96 : vector<1x4x1024xbf16> to vector<4x1024xbf16>
    %98 = tpu.concatenate %91, %93, %95, %97 in 0 : vector<4x1024xbf16>, vector<4x1024xbf16>, vector<4x1024xbf16>, vector<4x1024xbf16> -> vector<16x1024xbf16>
    %c144 = arith.constant 144 : index
    %c0_104 = arith.constant 0 : index
    %99 = vector.load %arg9[%c144, %c0_104] : memref<224x1024xbf16, #tpu.memory_space<vmem>>, vector<16x1024xbf16>
    tpu.vector_store %arg9[%c144, %c0_104], %98 {strides = array<i32>} : memref<224x1024xbf16, #tpu.memory_space<vmem>>, vector<16x1024xbf16>,
    %c0_105 = arith.constant 0 : index
    %c0_106 = arith.constant 0 : index
    %c110_107 = arith.constant 110 : index
    %100 = vector.load %arg2[%c0_105, %c0_106, %c110_107] : memref<1x4x1280xbf16, #tpu.memory_space<vmem>>, vector<1x4x1024xbf16>
    %101 = vector.shape_cast %100 : vector<1x4x1024xbf16> to vector<4x1024xbf16>
    %c0_108 = arith.constant 0 : index
    %c0_109 = arith.constant 0 : index
    %c111_110 = arith.constant 111 : index
    %102 = vector.load %arg2[%c0_108, %c0_109, %c111_110] : memref<1x4x1280xbf16, #tpu.memory_space<vmem>>, vector<1x4x1024xbf16>
    %103 = vector.shape_cast %102 : vector<1x4x1024xbf16> to vector<4x1024xbf16>
    %c0_111 = arith.constant 0 : index
    %c0_112 = arith.constant 0 : index
    %c112_113 = arith.constant 112 : index
    %104 = vector.load %arg2[%c0_111, %c0_112, %c112_113] : memref<1x4x1280xbf16, #tpu.memory_space<vmem>>, vector<1x4x1024xbf16>
    %105 = vector.shape_cast %104 : vector<1x4x1024xbf16> to vector<4x1024xbf16>
    %c0_114 = arith.constant 0 : index
    %c0_115 = arith.constant 0 : index
    %c120_116 = arith.constant 120 : index
    %106 = vector.load %arg2[%c0_114, %c0_115, %c120_116] : memref<1x4x1280xbf16, #tpu.memory_space<vmem>>, vector<1x4x1024xbf16>
    %107 = vector.shape_cast %106 : vector<1x4x1024xbf16> to vector<4x1024xbf16>
    %108 = tpu.concatenate %101, %103, %105, %107 in 0 : vector<4x1024xbf16>, vector<4x1024xbf16>, vector<4x1024xbf16>, vector<4x1024xbf16> -> vector<16x1024xbf16>
    %c160 = arith.constant 160 : index
    %c0_117 = arith.constant 0 : index
    %109 = vector.load %arg9[%c160, %c0_117] : memref<224x1024xbf16, #tpu.memory_space<vmem>>, vector<16x1024xbf16>
    tpu.vector_store %arg9[%c160, %c0_117], %108 {strides = array<i32>} : memref<224x1024xbf16, #tpu.memory_space<vmem>>, vector<16x1024xbf16>,
    %c0_118 = arith.constant 0 : index
    %c0_119 = arith.constant 0 : index
    %c121_120 = arith.constant 121 : index
    %110 = vector.load %arg2[%c0_118, %c0_119, %c121_120] : memref<1x4x1280xbf16, #tpu.memory_space<vmem>>, vector<1x4x1024xbf16>
    %111 = vector.shape_cast %110 : vector<1x4x1024xbf16> to vector<4x1024xbf16>
    %c0_121 = arith.constant 0 : index
    %c0_122 = arith.constant 0 : index
    %c122_123 = arith.constant 122 : index
    %112 = vector.load %arg2[%c0_121, %c0_122, %c122_123] : memref<1x4x1280xbf16, #tpu.memory_space<vmem>>, vector<1x4x1024xbf16>
    %113 = vector.shape_cast %112 : vector<1x4x1024xbf16> to vector<4x1024xbf16>
    %c0_124 = arith.constant 0 : index
    %c0_125 = arith.constant 0 : index
    %c200_126 = arith.constant 200 : index
    %114 = vector.load %arg2[%c0_124, %c0_125, %c200_126] : memref<1x4x1280xbf16, #tpu.memory_space<vmem>>, vector<1x4x1024xbf16>
    %115 = vector.shape_cast %114 : vector<1x4x1024xbf16> to vector<4x1024xbf16>
    %c0_127 = arith.constant 0 : index
    %c0_128 = arith.constant 0 : index
    %c201_129 = arith.constant 201 : index
    %116 = vector.load %arg2[%c0_127, %c0_128, %c201_129] : memref<1x4x1280xbf16, #tpu.memory_space<vmem>>, vector<1x4x1024xbf16>
    %117 = vector.shape_cast %116 : vector<1x4x1024xbf16> to vector<4x1024xbf16>
    %118 = tpu.concatenate %111, %113, %115, %117 in 0 : vector<4x1024xbf16>, vector<4x1024xbf16>, vector<4x1024xbf16>, vector<4x1024xbf16> -> vector<16x1024xbf16>
    %c176 = arith.constant 176 : index
    %c0_130 = arith.constant 0 : index
    %119 = vector.load %arg9[%c176, %c0_130] : memref<224x1024xbf16, #tpu.memory_space<vmem>>, vector<16x1024xbf16>
    tpu.vector_store %arg9[%c176, %c0_130], %118 {strides = array<i32>} : memref<224x1024xbf16, #tpu.memory_space<vmem>>, vector<16x1024xbf16>,
    %c0_131 = arith.constant 0 : index
    %c0_132 = arith.constant 0 : index
    %c202_133 = arith.constant 202 : index
    %120 = vector.load %arg2[%c0_131, %c0_132, %c202_133] : memref<1x4x1280xbf16, #tpu.memory_space<vmem>>, vector<1x4x1024xbf16>
    %121 = vector.shape_cast %120 : vector<1x4x1024xbf16> to vector<4x1024xbf16>
    %c0_134 = arith.constant 0 : index
    %c0_135 = arith.constant 0 : index
    %c210_136 = arith.constant 210 : index
    %122 = vector.load %arg2[%c0_134, %c0_135, %c210_136] : memref<1x4x1280xbf16, #tpu.memory_space<vmem>>, vector<1x4x1024xbf16>
    %123 = vector.shape_cast %122 : vector<1x4x1024xbf16> to vector<4x1024xbf16>
    %c0_137 = arith.constant 0 : index
    %c0_138 = arith.constant 0 : index
    %c211_139 = arith.constant 211 : index
    %124 = vector.load %arg2[%c0_137, %c0_138, %c211_139] : memref<1x4x1280xbf16, #tpu.memory_space<vmem>>, vector<1x4x1024xbf16>
    %125 = vector.shape_cast %124 : vector<1x4x1024xbf16> to vector<4x1024xbf16>
    %c0_140 = arith.constant 0 : index
    %c0_141 = arith.constant 0 : index
    %c212_142 = arith.constant 212 : index
    %126 = vector.load %arg2[%c0_140, %c0_141, %c212_142] : memref<1x4x1280xbf16, #tpu.memory_space<vmem>>, vector<1x4x1024xbf16>
    %127 = vector.shape_cast %126 : vector<1x4x1024xbf16> to vector<4x1024xbf16>
    %128 = tpu.concatenate %121, %123, %125, %127 in 0 : vector<4x1024xbf16>, vector<4x1024xbf16>, vector<4x1024xbf16>, vector<4x1024xbf16> -> vector<16x1024xbf16>
    %c192 = arith.constant 192 : index
    %c0_143 = arith.constant 0 : index
    %129 = vector.load %arg9[%c192, %c0_143] : memref<224x1024xbf16, #tpu.memory_space<vmem>>, vector<16x1024xbf16>
    tpu.vector_store %arg9[%c192, %c0_143], %128 {strides = array<i32>} : memref<224x1024xbf16, #tpu.memory_space<vmem>>, vector<16x1024xbf16>,
    %c0_144 = arith.constant 0 : index
    %c0_145 = arith.constant 0 : index
    %c220_146 = arith.constant 220 : index
    %130 = vector.load %arg2[%c0_144, %c0_145, %c220_146] : memref<1x4x1280xbf16, #tpu.memory_space<vmem>>, vector<1x4x1024xbf16>
    %131 = vector.shape_cast %130 : vector<1x4x1024xbf16> to vector<4x1024xbf16>
    %c0_147 = arith.constant 0 : index
    %c0_148 = arith.constant 0 : index
    %c221_149 = arith.constant 221 : index
    %132 = vector.load %arg2[%c0_147, %c0_148, %c221_149] : memref<1x4x1280xbf16, #tpu.memory_space<vmem>>, vector<1x4x1024xbf16>
    %133 = vector.shape_cast %132 : vector<1x4x1024xbf16> to vector<4x1024xbf16>
    %c0_150 = arith.constant 0 : index
    %c0_151 = arith.constant 0 : index
    %c222_152 = arith.constant 222 : index
    %134 = vector.load %arg2[%c0_150, %c0_151, %c222_152] : memref<1x4x1280xbf16, #tpu.memory_space<vmem>>, vector<1x4x1024xbf16>
    %135 = vector.shape_cast %134 : vector<1x4x1024xbf16> to vector<4x1024xbf16>
    %c0_153 = arith.constant 0 : index
    %c0_154 = arith.constant 0 : index
    %c0_155 = arith.constant 0 : index
    %136 = vector.load %arg2[%c0_153, %c0_154, %c0_155] : memref<1x4x1280xbf16, #tpu.memory_space<vmem>>, vector<1x4x1024xbf16>
    %137 = vector.shape_cast %136 : vector<1x4x1024xbf16> to vector<4x1024xbf16>
    %138 = tpu.concatenate %131, %133, %135, %137 in 0 : vector<4x1024xbf16>, vector<4x1024xbf16>, vector<4x1024xbf16>, vector<4x1024xbf16> -> vector<16x1024xbf16>
    %c208 = arith.constant 208 : index
    %c0_156 = arith.constant 0 : index
    %139 = vector.load %arg9[%c208, %c0_156] : memref<224x1024xbf16, #tpu.memory_space<vmem>>, vector<16x1024xbf16>
    tpu.vector_store %arg9[%c208, %c0_156], %138 {strides = array<i32>} : memref<224x1024xbf16, #tpu.memory_space<vmem>>, vector<16x1024xbf16>,
    %c0_157 = arith.constant 0 : index
    %c0_158 = arith.constant 0 : index
    %140 = vector.load %arg3[%c0_157, %c0_158] : memref<8x224xbf16, #tpu.memory_space<vmem>>, vector<8x224xbf16>
    %c0_159 = arith.constant 0 : index
    %c0_160 = arith.constant 0 : index
    %141 = vector.load %arg9[%c0_159, %c0_160] : memref<224x1024xbf16, #tpu.memory_space<vmem>>, vector<224x1024xbf16>
    %cst = arith.constant dense<0.000000e+00> : vector<8x1024xf32>
    %142 = tpu.matmul %140, %141, %cst {dimension_numbers = #tpu.dot_dimension_numbers<[1], [0], [0], [1], [0, 0, 1, 1], [], []>} : vector<8x224xbf16>, vector<224x1024xbf16>, vector<8x1024xf32> -> vector<8x1024xf32>
    %c0_161 = arith.constant 0 : index
    %c0_162 = arith.constant 0 : index
    %143 = vector.load %arg4[%c0_161, %c0_162] : memref<8x1xf32, #tpu.memory_space<vmem>>, vector<8x1xf32>
    %144 = vector.broadcast %143 : vector<8x1xf32> to vector<8x1024xf32>
    %145 = arith.addf %142, %144 : vector<8x1024xf32>
    %cst_163 = arith.constant 0.000000e+00 : f32
    %146 = vector.broadcast %cst_163 : f32 to vector<8x1024xf32>
    %147 = arith.cmpf oge, %145, %146 : vector<8x1024xf32>
    %cst_164 = arith.constant 0.00999999977 : f32
    %148 = vector.broadcast %cst_164 : f32 to vector<8x1024xf32>
    %149 = arith.mulf %148, %145 : vector<8x1024xf32>
    %150 = arith.select %147, %145, %149 : vector<8x1024xi1>, vector<8x1024xf32>
    %cst_165 = arith.constant 0.000000e+00 : bf16
    %151 = vector.broadcast %cst_165 : bf16 to vector<8x1280xbf16>
    %c0_166 = arith.constant 0 : index
    %c0_167 = arith.constant 0 : index
    %152 = vector.load %arg11[%c0_166, %c0_167] : memref<8x1280xbf16, #tpu.memory_space<vmem>>, vector<8x1280xbf16>
    tpu.vector_store %arg11[%c0_166, %c0_167], %151 {strides = array<i32>} : memref<8x1280xbf16, #tpu.memory_space<vmem>>, vector<8x1280xbf16>,
    %c0_168 = arith.constant 0 : index
    %c0_169 = arith.constant 0 : index
    %153 = vector.load %arg7[%c0_168, %c0_169] : memref<1x1024xf32, #tpu.memory_space<vmem>>, vector<1x1024xf32>
    %154 = vector.broadcast %153 : vector<1x1024xf32> to vector<8x1024xf32>
    %155 = arith.mulf %150, %154 : vector<8x1024xf32>
    %156 = arith.truncf %155 : vector<8x1024xf32> to vector<8x1024xbf16>
    %c0_170 = arith.constant 0 : index
    %c128_171 = arith.constant 128 : index
    %157 = vector.load %arg11[%c0_170, %c128_171] : memref<8x1280xbf16, #tpu.memory_space<vmem>>, vector<8x1024xbf16>
    tpu.vector_store %arg11[%c0_170, %c128_171], %156 {strides = array<i32>} : memref<8x1280xbf16, #tpu.memory_space<vmem>>, vector<8x1024xbf16>,
    %c0_172 = arith.constant 0 : index
    %c17 = arith.constant 17 : index
    %158 = vector.load %arg11[%c0_172, %c17] : memref<8x1280xbf16, #tpu.memory_space<vmem>>, vector<8x1024xbf16>
    %c0_173 = arith.constant 0 : index
    %c18 = arith.constant 18 : index
    %159 = vector.load %arg11[%c0_173, %c18] : memref<8x1280xbf16, #tpu.memory_space<vmem>>, vector<8x1024xbf16>
    %160 = tpu.concatenate %158, %159 in 0 : vector<8x1024xbf16>, vector<8x1024xbf16> -> vector<16x1024xbf16>
    %c0_174 = arith.constant 0 : index
    %c0_175 = arith.constant 0 : index
    %161 = vector.load %arg10[%c0_174, %c0_175] : memref<224x1024xbf16, #tpu.memory_space<vmem>>, vector<16x1024xbf16>
    tpu.vector_store %arg10[%c0_174, %c0_175], %160 {strides = array<i32>} : memref<224x1024xbf16, #tpu.memory_space<vmem>>, vector<16x1024xbf16>,
    %c0_176 = arith.constant 0 : index
    %c19 = arith.constant 19 : index
    %162 = vector.load %arg11[%c0_176, %c19] : memref<8x1280xbf16, #tpu.memory_space<vmem>>, vector<8x1024xbf16>
    %c0_177 = arith.constant 0 : index
    %c27 = arith.constant 27 : index
    %163 = vector.load %arg11[%c0_177, %c27] : memref<8x1280xbf16, #tpu.memory_space<vmem>>, vector<8x1024xbf16>
    %164 = tpu.concatenate %162, %163 in 0 : vector<8x1024xbf16>, vector<8x1024xbf16> -> vector<16x1024xbf16>
    %c16_178 = arith.constant 16 : index
    %c0_179 = arith.constant 0 : index
    %165 = vector.load %arg10[%c16_178, %c0_179] : memref<224x1024xbf16, #tpu.memory_space<vmem>>, vector<16x1024xbf16>
    tpu.vector_store %arg10[%c16_178, %c0_179], %164 {strides = array<i32>} : memref<224x1024xbf16, #tpu.memory_space<vmem>>, vector<16x1024xbf16>,
    %c0_180 = arith.constant 0 : index
    %c28 = arith.constant 28 : index
    %166 = vector.load %arg11[%c0_180, %c28] : memref<8x1280xbf16, #tpu.memory_space<vmem>>, vector<8x1024xbf16>
    %c0_181 = arith.constant 0 : index
    %c29 = arith.constant 29 : index
    %167 = vector.load %arg11[%c0_181, %c29] : memref<8x1280xbf16, #tpu.memory_space<vmem>>, vector<8x1024xbf16>
    %168 = tpu.concatenate %166, %167 in 0 : vector<8x1024xbf16>, vector<8x1024xbf16> -> vector<16x1024xbf16>
    %c32_182 = arith.constant 32 : index
    %c0_183 = arith.constant 0 : index
    %169 = vector.load %arg10[%c32_182, %c0_183] : memref<224x1024xbf16, #tpu.memory_space<vmem>>, vector<16x1024xbf16>
    tpu.vector_store %arg10[%c32_182, %c0_183], %168 {strides = array<i32>} : memref<224x1024xbf16, #tpu.memory_space<vmem>>, vector<16x1024xbf16>,
    %c0_184 = arith.constant 0 : index
    %c37 = arith.constant 37 : index
    %170 = vector.load %arg11[%c0_184, %c37] : memref<8x1280xbf16, #tpu.memory_space<vmem>>, vector<8x1024xbf16>
    %c0_185 = arith.constant 0 : index
    %c38 = arith.constant 38 : index
    %171 = vector.load %arg11[%c0_185, %c38] : memref<8x1280xbf16, #tpu.memory_space<vmem>>, vector<8x1024xbf16>
    %172 = tpu.concatenate %170, %171 in 0 : vector<8x1024xbf16>, vector<8x1024xbf16> -> vector<16x1024xbf16>
    %c48_186 = arith.constant 48 : index
    %c0_187 = arith.constant 0 : index
    %173 = vector.load %arg10[%c48_186, %c0_187] : memref<224x1024xbf16, #tpu.memory_space<vmem>>, vector<16x1024xbf16>
    tpu.vector_store %arg10[%c48_186, %c0_187], %172 {strides = array<i32>} : memref<224x1024xbf16, #tpu.memory_space<vmem>>, vector<16x1024xbf16>,
    %c0_188 = arith.constant 0 : index
    %c39 = arith.constant 39 : index
    %174 = vector.load %arg11[%c0_188, %c39] : memref<8x1280xbf16, #tpu.memory_space<vmem>>, vector<8x1024xbf16>
    %c0_189 = arith.constant 0 : index
    %c117 = arith.constant 117 : index
    %175 = vector.load %arg11[%c0_189, %c117] : memref<8x1280xbf16, #tpu.memory_space<vmem>>, vector<8x1024xbf16>
    %176 = tpu.concatenate %174, %175 in 0 : vector<8x1024xbf16>, vector<8x1024xbf16> -> vector<16x1024xbf16>
    %c64_190 = arith.constant 64 : index
    %c0_191 = arith.constant 0 : index
    %177 = vector.load %arg10[%c64_190, %c0_191] : memref<224x1024xbf16, #tpu.memory_space<vmem>>, vector<16x1024xbf16>
    tpu.vector_store %arg10[%c64_190, %c0_191], %176 {strides = array<i32>} : memref<224x1024xbf16, #tpu.memory_space<vmem>>, vector<16x1024xbf16>,
    %c0_192 = arith.constant 0 : index
    %c118 = arith.constant 118 : index
    %178 = vector.load %arg11[%c0_192, %c118] : memref<8x1280xbf16, #tpu.memory_space<vmem>>, vector<8x1024xbf16>
    %c0_193 = arith.constant 0 : index
    %c119 = arith.constant 119 : index
    %179 = vector.load %arg11[%c0_193, %c119] : memref<8x1280xbf16, #tpu.memory_space<vmem>>, vector<8x1024xbf16>
    %180 = tpu.concatenate %178, %179 in 0 : vector<8x1024xbf16>, vector<8x1024xbf16> -> vector<16x1024xbf16>
    %c80_194 = arith.constant 80 : index
    %c0_195 = arith.constant 0 : index
    %181 = vector.load %arg10[%c80_194, %c0_195] : memref<224x1024xbf16, #tpu.memory_space<vmem>>, vector<16x1024xbf16>
    tpu.vector_store %arg10[%c80_194, %c0_195], %180 {strides = array<i32>} : memref<224x1024xbf16, #tpu.memory_space<vmem>>, vector<16x1024xbf16>,
    %c0_196 = arith.constant 0 : index
    %c127 = arith.constant 127 : index
    %182 = vector.load %arg11[%c0_196, %c127] : memref<8x1280xbf16, #tpu.memory_space<vmem>>, vector<8x1024xbf16>
    %c0_197 = arith.constant 0 : index
    %c128_198 = arith.constant 128 : index
    %183 = vector.load %arg11[%c0_197, %c128_198] : memref<8x1280xbf16, #tpu.memory_space<vmem>>, vector<8x1024xbf16>
    %184 = tpu.concatenate %182, %183 in 0 : vector<8x1024xbf16>, vector<8x1024xbf16> -> vector<16x1024xbf16>
    %c96_199 = arith.constant 96 : index
    %c0_200 = arith.constant 0 : index
    %185 = vector.load %arg10[%c96_199, %c0_200] : memref<224x1024xbf16, #tpu.memory_space<vmem>>, vector<16x1024xbf16>
    tpu.vector_store %arg10[%c96_199, %c0_200], %184 {strides = array<i32>} : memref<224x1024xbf16, #tpu.memory_space<vmem>>, vector<16x1024xbf16>,
    %c0_201 = arith.constant 0 : index
    %c129 = arith.constant 129 : index
    %186 = vector.load %arg11[%c0_201, %c129] : memref<8x1280xbf16, #tpu.memory_space<vmem>>, vector<8x1024xbf16>
    %c0_202 = arith.constant 0 : index
    %c137 = arith.constant 137 : index
    %187 = vector.load %arg11[%c0_202, %c137] : memref<8x1280xbf16, #tpu.memory_space<vmem>>, vector<8x1024xbf16>
    %188 = tpu.concatenate %186, %187 in 0 : vector<8x1024xbf16>, vector<8x1024xbf16> -> vector<16x1024xbf16>
    %c112_203 = arith.constant 112 : index
    %c0_204 = arith.constant 0 : index
    %189 = vector.load %arg10[%c112_203, %c0_204] : memref<224x1024xbf16, #tpu.memory_space<vmem>>, vector<16x1024xbf16>
    tpu.vector_store %arg10[%c112_203, %c0_204], %188 {strides = array<i32>} : memref<224x1024xbf16, #tpu.memory_space<vmem>>, vector<16x1024xbf16>,
    %c0_205 = arith.constant 0 : index
    %c138 = arith.constant 138 : index
    %190 = vector.load %arg11[%c0_205, %c138] : memref<8x1280xbf16, #tpu.memory_space<vmem>>, vector<8x1024xbf16>
    %c0_206 = arith.constant 0 : index
    %c139 = arith.constant 139 : index
    %191 = vector.load %arg11[%c0_206, %c139] : memref<8x1280xbf16, #tpu.memory_space<vmem>>, vector<8x1024xbf16>
    %192 = tpu.concatenate %190, %191 in 0 : vector<8x1024xbf16>, vector<8x1024xbf16> -> vector<16x1024xbf16>
    %c128_207 = arith.constant 128 : index
    %c0_208 = arith.constant 0 : index
    %193 = vector.load %arg10[%c128_207, %c0_208] : memref<224x1024xbf16, #tpu.memory_space<vmem>>, vector<16x1024xbf16>
    tpu.vector_store %arg10[%c128_207, %c0_208], %192 {strides = array<i32>} : memref<224x1024xbf16, #tpu.memory_space<vmem>>, vector<16x1024xbf16>,
    %c0_209 = arith.constant 0 : index
    %c217 = arith.constant 217 : index
    %194 = vector.load %arg11[%c0_209, %c217] : memref<8x1280xbf16, #tpu.memory_space<vmem>>, vector<8x1024xbf16>
    %c0_210 = arith.constant 0 : index
    %c218 = arith.constant 218 : index
    %195 = vector.load %arg11[%c0_210, %c218] : memref<8x1280xbf16, #tpu.memory_space<vmem>>, vector<8x1024xbf16>
    %196 = tpu.concatenate %194, %195 in 0 : vector<8x1024xbf16>, vector<8x1024xbf16> -> vector<16x1024xbf16>
    %c144_211 = arith.constant 144 : index
    %c0_212 = arith.constant 0 : index
    %197 = vector.load %arg10[%c144_211, %c0_212] : memref<224x1024xbf16, #tpu.memory_space<vmem>>, vector<16x1024xbf16>
    tpu.vector_store %arg10[%c144_211, %c0_212], %196 {strides = array<i32>} : memref<224x1024xbf16, #tpu.memory_space<vmem>>, vector<16x1024xbf16>,
    %c0_213 = arith.constant 0 : index
    %c219 = arith.constant 219 : index
    %198 = vector.load %arg11[%c0_213, %c219] : memref<8x1280xbf16, #tpu.memory_space<vmem>>, vector<8x1024xbf16>
    %c0_214 = arith.constant 0 : index
    %c227 = arith.constant 227 : index
    %199 = vector.load %arg11[%c0_214, %c227] : memref<8x1280xbf16, #tpu.memory_space<vmem>>, vector<8x1024xbf16>
    %200 = tpu.concatenate %198, %199 in 0 : vector<8x1024xbf16>, vector<8x1024xbf16> -> vector<16x1024xbf16>
    %c160_215 = arith.constant 160 : index
    %c0_216 = arith.constant 0 : index
    %201 = vector.load %arg10[%c160_215, %c0_216] : memref<224x1024xbf16, #tpu.memory_space<vmem>>, vector<16x1024xbf16>
    tpu.vector_store %arg10[%c160_215, %c0_216], %200 {strides = array<i32>} : memref<224x1024xbf16, #tpu.memory_space<vmem>>, vector<16x1024xbf16>,
    %c0_217 = arith.constant 0 : index
    %c228 = arith.constant 228 : index
    %202 = vector.load %arg11[%c0_217, %c228] : memref<8x1280xbf16, #tpu.memory_space<vmem>>, vector<8x1024xbf16>
    %c0_218 = arith.constant 0 : index
    %c229 = arith.constant 229 : index
    %203 = vector.load %arg11[%c0_218, %c229] : memref<8x1280xbf16, #tpu.memory_space<vmem>>, vector<8x1024xbf16>
    %204 = tpu.concatenate %202, %203 in 0 : vector<8x1024xbf16>, vector<8x1024xbf16> -> vector<16x1024xbf16>
    %c176_219 = arith.constant 176 : index
    %c0_220 = arith.constant 0 : index
    %205 = vector.load %arg10[%c176_219, %c0_220] : memref<224x1024xbf16, #tpu.memory_space<vmem>>, vector<16x1024xbf16>
    tpu.vector_store %arg10[%c176_219, %c0_220], %204 {strides = array<i32>} : memref<224x1024xbf16, #tpu.memory_space<vmem>>, vector<16x1024xbf16>,
    %c0_221 = arith.constant 0 : index
    %c237 = arith.constant 237 : index
    %206 = vector.load %arg11[%c0_221, %c237] : memref<8x1280xbf16, #tpu.memory_space<vmem>>, vector<8x1024xbf16>
    %c0_222 = arith.constant 0 : index
    %c238 = arith.constant 238 : index
    %207 = vector.load %arg11[%c0_222, %c238] : memref<8x1280xbf16, #tpu.memory_space<vmem>>, vector<8x1024xbf16>
    %208 = tpu.concatenate %206, %207 in 0 : vector<8x1024xbf16>, vector<8x1024xbf16> -> vector<16x1024xbf16>
    %c192_223 = arith.constant 192 : index
    %c0_224 = arith.constant 0 : index
    %209 = vector.load %arg10[%c192_223, %c0_224] : memref<224x1024xbf16, #tpu.memory_space<vmem>>, vector<16x1024xbf16>
    tpu.vector_store %arg10[%c192_223, %c0_224], %208 {strides = array<i32>} : memref<224x1024xbf16, #tpu.memory_space<vmem>>, vector<16x1024xbf16>,
    %c0_225 = arith.constant 0 : index
    %c239 = arith.constant 239 : index
    %210 = vector.load %arg11[%c0_225, %c239] : memref<8x1280xbf16, #tpu.memory_space<vmem>>, vector<8x1024xbf16>
    %c0_226 = arith.constant 0 : index
    %c0_227 = arith.constant 0 : index
    %211 = vector.load %arg11[%c0_226, %c0_227] : memref<8x1280xbf16, #tpu.memory_space<vmem>>, vector<8x1024xbf16>
    %212 = tpu.concatenate %210, %211 in 0 : vector<8x1024xbf16>, vector<8x1024xbf16> -> vector<16x1024xbf16>
    %c208_228 = arith.constant 208 : index
    %c0_229 = arith.constant 0 : index
    %213 = vector.load %arg10[%c208_228, %c0_229] : memref<224x1024xbf16, #tpu.memory_space<vmem>>, vector<16x1024xbf16>
    tpu.vector_store %arg10[%c208_228, %c0_229], %212 {strides = array<i32>} : memref<224x1024xbf16, #tpu.memory_space<vmem>>, vector<16x1024xbf16>,
    %c0_230 = arith.constant 0 : index
    %c0_231 = arith.constant 0 : index
    %214 = vector.load %arg5[%c0_230, %c0_231] : memref<8x224xbf16, #tpu.memory_space<vmem>>, vector<8x224xbf16>
    %c0_232 = arith.constant 0 : index
    %c0_233 = arith.constant 0 : index
    %215 = vector.load %arg10[%c0_232, %c0_233] : memref<224x1024xbf16, #tpu.memory_space<vmem>>, vector<224x1024xbf16>
    %cst_234 = arith.constant dense<0.000000e+00> : vector<8x1024xf32>
    %216 = tpu.matmul %214, %215, %cst_234 {dimension_numbers = #tpu.dot_dimension_numbers<[1], [0], [0], [1], [0, 0, 1, 1], [], []>} : vector<8x224xbf16>, vector<224x1024xbf16>, vector<8x1024xf32> -> vector<8x1024xf32>
    %c0_235 = arith.constant 0 : index
    %c0_236 = arith.constant 0 : index
    %217 = vector.load %arg6[%c0_235, %c0_236] : memref<8x1xf32, #tpu.memory_space<vmem>>, vector<8x1xf32>
    %218 = vector.broadcast %217 : vector<8x1xf32> to vector<8x1024xf32>
    %219 = arith.addf %216, %218 : vector<8x1024xf32>
    %cst_237 = arith.constant 0.000000e+00 : f32
    %220 = vector.broadcast %cst_237 : f32 to vector<8x1024xf32>
    %221 = arith.cmpf oge, %219, %220 : vector<8x1024xf32>
    %cst_238 = arith.constant 0.00999999977 : f32
    %222 = vector.broadcast %cst_238 : f32 to vector<8x1024xf32>
    %223 = arith.mulf %222, %219 : vector<8x1024xf32>
    %224 = arith.select %221, %219, %223 : vector<8x1024xi1>, vector<8x1024xf32>
    %c0_239 = arith.constant 0 : index
    %c0_240 = arith.constant 0 : index
    %c0_241 = arith.constant 0 : index
    %225 = vector.load %arg8[%c0_239, %c0_240, %c0_241] : memref<1x8x1024xf32, #tpu.memory_space<vmem>>, vector<1x8x1024xf32>
    %226 = vector.shape_cast %225 : vector<1x8x1024xf32> to vector<8x1024xf32>
    %227 = vector.shape_cast %224 : vector<8x1024xf32> to vector<1x8x1024xf32>
    tpu.vector_store %arg8[%c0_239, %c0_240, %c0_241], %227 {strides = array<i32>} : memref<1x8x1024xf32, #tpu.memory_space<vmem>>, vector<1x8x1024xf32>,
    return
  }
  func.func @transform_0(%arg0: i32) -> (i32, i32, i32) {
    %c0_i32 = arith.constant 0 : i32
    %c0_i32_0 = arith.constant 0 : i32
    %c0_i32_1 = arith.constant 0 : i32
    return %arg0, %c0_i32, %c0_i32_0 : i32, i32, i32
  }
  func.func @transform_1(%arg0: i32) -> (i32, i32, i32) {
    %c0_i32 = arith.constant 0 : i32
    %c0_i32_0 = arith.constant 0 : i32
    %c0_i32_1 = arith.constant 0 : i32
    return %arg0, %c0_i32, %c0_i32_0 : i32, i32, i32
  }
  func.func @transform_2(%arg0: i32) -> (i32, i32) {
    %c0_i32 = arith.constant 0 : i32
    %c0_i32_0 = arith.constant 0 : i32
    %c0_i32_1 = arith.constant 0 : i32
    return %c0_i32, %c0_i32_0 : i32, i32
  }
  func.func @transform_3(%arg0: i32) -> (i32, i32) {
    %c0_i32 = arith.constant 0 : i32
    %c0_i32_0 = arith.constant 0 : i32
    %c0_i32_1 = arith.constant 0 : i32
    return %c0_i32, %c0_i32_0 : i32, i32
  }
  func.func @transform_4(%arg0: i32) -> (i32, i32) {
    %c0_i32 = arith.constant 0 : i32
    %c0_i32_0 = arith.constant 0 : i32
    %c0_i32_1 = arith.constant 0 : i32
    return %c0_i32, %c0_i32_0 : i32, i32
  }
  func.func @transform_5(%arg0: i32) -> (i32, i32) {
    %c0_i32 = arith.constant 0 : i32
    %c0_i32_0 = arith.constant 0 : i32
    %c0_i32_1 = arith.constant 0 : i32
    return %c0_i32, %c0_i32_0 : i32, i32
  }
  func.func @transform_6(%arg0: i32) -> (i32, i32) {
    %c0_i32 = arith.constant 0 : i32
    %c0_i32_0 = arith.constant 0 : i32
    %c0_i32_1 = arith.constant 0 : i32
    return %c0_i32, %c0_i32_0 : i32, i32
  }
  func.func @transform_7(%arg0: i32) -> (i32, i32, i32) {
    %c0_i32 = arith.constant 0 : i32
    %c0_i32_0 = arith.constant 0 : i32
    %c0_i32_1 = arith.constant 0 : i32
    return %arg0, %c0_i32, %c0_i32_0 : i32, i32, i32
  }
}

</mosaic_0001>

<bundles_post_ra>
// kernel: upblock_forward.1
= control target key start
LH: loop header
LB: loop body
LE: loop exit
PB: predicated region body
PF: predicated region fallthrough
CT: control target
= control target key end

     0   :  { %s10468_s24 = smov 0   ;;  %s14830_s0 = inlined_call_operand.vmem [shape: bf16[2,4,1280], index: 0, kind: input, shape index: {}]   ;;  %s14831_s1 = inlined_call_operand.vmem [shape: bf16[2,4,1280], index: 1, kind: input, shape index: {}]   ;;  %s14832_s2 = inlined_call_operand.vmem [shape: bf16[8,224], index: 2, kind: input, shape index: {}]   ;;  %s14833_s3 = inlined_call_operand.vmem [shape: f32[8,1], index: 3, kind: input, shape index: {}]   ;;  %s14834_s4 = inlined_call_operand.vmem [shape: bf16[8,224], index: 4, kind: input, shape index: {}]   ;;  %s14835_s5 = inlined_call_operand.vmem [shape: f32[8,1], index: 5, kind: input, shape index: {}]   ;;  %s14836_s6 = inlined_call_operand.vmem [shape: f32[1,1024], index: 6, kind: input, shape index: {}]   ;;  %s14837_s7 = inlined_call_operand.vmem [shape: f32[2,8,1024], index: 7, kind: output, shape index: {}]  }
   0x1 LB: > { %s9204_s25 = sadd.s32 4294967295, %s10398_s24   ;;  %p9208_p0 = scmp.ge.s32.totalorder %s10398_s24, 1  ;;  %s10398_s24 = sphi %s10468_s24, %s17_s24  }
   0x2   : > { %p247_p1 = scmp.lt.s32.totalorder %s10398_s24, 3 }
   0x4   : > { %p248_p2 = pnand %p9208_p0, %p247_p1 }
   0x6   : > { %251 = sbr.rel (%p248_p2) target bundleno = 4713 (0x1269), region = 48 }
   0xb   : > { %p284_p3 = scmp.lt.s32.totalorder %s9204_s25, 1  ;;  %s10400_s30 = smov 127   ;;  %vm358_vm0 = vcmask 1039360   ;;  %vm467_vm1 = vcmask 1041408   ;;  %vm408_vm2 = vcmask 1031168   ;;  %vm484_vm3 = vcmask 1043456  }
   0xc   : > { %s10401_s8 = smov 126   ;;  %s10402_s9 = smov 118   ;;  %vm458_vm4 = vcmask 965632   ;;  %vm501_vm5 = vcmask 1045504   ;;  %vm675_vm6 = vcmask 973824   ;;  %vm948_vm7 = vcmask 408576  }
   0xd   : > { %s14912_s25 = smov (!%p284_p3, %s9204_s25), 1  ;;  %s10403_s10 = smov 119   ;;  %vm1048_vm8 = vcmask 392192   ;;  %vm998_vm9 = vcmask 400384   ;;  %vm856_vm10 = vcmask 957440   ;;  %vm1179_vm11 = vcmask 867328  }
   0xe   : > { %s10352_s26 = smul.u32 20, %s14912_s25  ;;  %s10404_s11 = smov 50   ;;  %vm1499_vm12 = vcmask 146432   ;;  %vm1825_vm13 = vcmask 56320   ;;  %vm1917_vm14 = vcmask 982016   ;;  %vm14841_vm15 = vcmask 441344  }
   0xf   : > { %s10405_s12 = smov 49   ;;  %s10406_s13 = smov 48  }
  0x10   : > { %s10484_s29 = scalar_lea.vmem %s14830_s0, %s10352_s26  ;;  %s10407_s14 = smov 117  }
  0x11   : > { %v10487_v0 = vld [vmem:[%s10484_s29 + $0x8] sm:$0xff]  ;;  %v10491_v1 = vld [vmem:[%s10484_s29] sm:$0xff]  ;;  %v302_v14 = vld [vmem:[%s10484_s29 + $0x10] sm:$0x3]  ;;  %s10408_s15 = smov 106   ;;  %s10409_s16 = smov 18  }
  0x12   : > { %14843 = vst [vmem:[#allocation5_spill] sm:$0xff] %v10487_v0  ;;  %v568_v46 = vld [vmem:[%s10484_s29 + $0x10] sm:$0x3]  ;;  %s10410_s17 = smov 7   ;;  %s10411_s18 = smov 120  }
  0x13   : > { %307 = vst [vmem:[#allocation1 + $0x20] ss:$4 sm:$0xff] %v10487_v0  ;;  %s10412_s19 = smov 54   ;;  %s11847_s22 = scalar_lea.vmem %s14831_s1, %s10352_s26 }
  0x14   : > { %304 = vst [vmem:[#allocation1] ss:$4 sm:$0xff] %v10491_v1  ;;  %s10413_s23 = smov 92   ;;  %s10414_s26 = smov 36  }
  0x15   : > { %s10424_s20 = smov 19   ;;  %s10426_s21 = smov 37  }
  0x16   : > { %s10127_s28 = sshll.u32 %s14912_s25, 6 }
  0x1a   : > { %v10494_v2 = vld.sshfl [vmem:[#allocation1 + $0x20] sm:$0xff pattern:$0x73625140]  ;;  %v10496_v3 = vld.sshfl [vmem:[#allocation1 + $0x28] sm:$0xff pattern:$0x73625140] }
  0x1b   : > { %v10498_v4 = vld.sshfl [vmem:[#allocation1 + $0x30] sm:$0xff pattern:$0x73625140]  ;;  %v10500_v5 = vld.sshfl [vmem:[#allocation1 + $0x38] sm:$0xff pattern:$0x73625140] }
  0x1c   : > { %319 = vst [vmem:[#allocation1 + $0x21] ss:$4 sm:$0xff] %v10487_v0  ;;  %v10503_v6 = vld.sshfl [vmem:[#allocation1] sm:$0xff pattern:$0x73625140] }
  0x1d   : > { %v10505_v7 = vld.sshfl [vmem:[#allocation1 + $0x8] sm:$0xff pattern:$0x73625140]  ;;  %v10507_v8 = vld.sshfl [vmem:[#allocation1 + $0x10] sm:$0xff pattern:$0x73625140] }
  0x1e   : > { %v10509_v9 = vld.sshfl [vmem:[#allocation1 + $0x18] sm:$0xff pattern:$0x73625140] }
  0x1f   : > { %317 = vst [vmem:[#allocation1 + $0x1] ss:$4 sm:$0xff] %v10491_v1 }
  0x23   : > { %v328_v10 = vld.sshfl [vmem:[#allocation1 + $0x20] sm:$0xff pattern:$0x73625140]  ;;  %v330_v11 = vld.sshfl [vmem:[#allocation1 + $0x28] sm:$0xff pattern:$0x73625140] }
  0x24   : > { %348 = vrot.lane.b32.xlu2 %v328_v10, %s10400_s30  ;;  %v334_v12 = vld.sshfl [vmem:[#allocation1 + $0x38] sm:$0xff pattern:$0x73625140]  ;;  %v332_v13 = vld.sshfl [vmem:[#allocation1 + $0x30] sm:$0xff pattern:$0x73625140] }
  0x25   : > { %370 = vst [vmem:[#allocation1 + $0x22] ss:$4 sm:$0xff] %v10487_v0 }
  0x26   : > { %v320_v15 = vld.sshfl [vmem:[#allocation1] sm:$0xff pattern:$0x73625140]  ;;  %v322_v16 = vld.sshfl [vmem:[#allocation1 + $0x8] sm:$0xff pattern:$0x73625140] }
  0x27   : > { %v324_v17 = vld.sshfl [vmem:[#allocation1 + $0x10] sm:$0xff pattern:$0x73625140]  ;;  %v326_v18 = vld.sshfl [vmem:[#allocation1 + $0x18] sm:$0xff pattern:$0x73625140]  ;;  %340 = vrot.lane.b32.xlu0 %v320_v15, %s10400_s30 }
  0x28   : > { %337 = vst [vmem:[#allocation1 + $0x1] ss:$4 sm:$0xff] %v302_v14  ;;  %344 = vrot.lane.b32.xlu1 %v324_v17, %s10400_s30 }
  0x2c   : > { %350 = vrot.lane.b32.xlu2 %v330_v11, %s10400_s30  ;;  %v379_v19 = vld.sshfl [vmem:[#allocation1 + $0x20] sm:$0xff pattern:$0x73625140]  ;;  %v383_v20 = vld.sshfl [vmem:[#allocation1 + $0x30] sm:$0xff pattern:$0x73625140] }
  0x2d   : > { %v381_v21 = vld.sshfl [vmem:[#allocation1 + $0x28] sm:$0xff pattern:$0x73625140]  ;;  %v385_v22 = vld.sshfl [vmem:[#allocation1 + $0x38] sm:$0xff pattern:$0x73625140] }
  0x2e   : > { %420 = vst [vmem:[#allocation1 + $0x23] ss:$4 sm:$0xff] %v10487_v0 }
  0x2f   : > { %v338_v23 = vld.sshfl [vmem:[#allocation1] sm:$0xff pattern:$0x73625140]  ;;  %342 = vrot.lane.b32.xlu0 %v322_v16, %s10400_s30 }
  0x30   : > { %368 = vst [vmem:[#allocation1 + $0x2] ss:$4 sm:$0xff] %v10491_v1  ;;  %346 = vrot.lane.b32.xlu1 %v326_v18, %s10400_s30 }
  0x34   : > { %356 = vrot.lane.b32.xlu2 %v338_v23, %s10400_s30 }
  0x35   : > { %v431_v28 = vld.sshfl [vmem:[#allocation1 + $0x28] sm:$0xff pattern:$0x73625140]  ;;  %v429_v29 = vld.sshfl [vmem:[#allocation1 + $0x20] sm:$0xff pattern:$0x73625140] }
  0x36   : > { %v435_v30 = vld.sshfl [vmem:[#allocation1 + $0x38] sm:$0xff pattern:$0x73625140]  ;;  %v433_v31 = vld.sshfl [vmem:[#allocation1 + $0x30] sm:$0xff pattern:$0x73625140] }
  0x37   : > { %v371_v24 = vld.sshfl [vmem:[#allocation1] sm:$0xff pattern:$0x73625140]  ;;  %v373_v25 = vld.sshfl [vmem:[#allocation1 + $0x8] sm:$0xff pattern:$0x73625140]  ;;  %352 = vrot.lane.b32.xlu0 %v332_v13, %s10400_s30 }
  0x38   : > { %v375_v26 = vld.sshfl [vmem:[#allocation1 + $0x10] sm:$0xff pattern:$0x73625140]  ;;  %v377_v27 = vld.sshfl [vmem:[#allocation1 + $0x18] sm:$0xff pattern:$0x73625140]  ;;  %354 = vrot.lane.b32.xlu1 %v334_v12, %s10400_s30 }
  0x39   : > { %387 = vst [vmem:[#allocation1 + $0x2] ss:$4 sm:$0xff] %v302_v14 }
  0x3a   : > { %573 = vst [vmem:[#allocation1 + $0x20] ss:$4 sm:$0xff] %v10487_v0 }
  0x3c   : > { %400 = vrot.lane.b32.xlu2 %v381_v21, %s10401_s8 }
  0x3f   : > { %402 = vrot.lane.b32.xlu0 %v383_v20, %s10401_s8 }
  0x40   : > { %v388_v32 = vld.sshfl [vmem:[#allocation1] sm:$0xff pattern:$0x73625140]  ;;  %398 = vrot.lane.b32.xlu1 %v379_v19, %s10401_s8 }
  0x41   : > { %418 = vst [vmem:[#allocation1 + $0x3] ss:$4 sm:$0xff] %v10491_v1  ;;  %v10532_v33 = vld.sshfl [vmem:[#allocation1 + $0x20] sm:$0xff pattern:$0x73625140] }
  0x42   : > { %v10534_v34 = vld.sshfl [vmem:[#allocation1 + $0x28] sm:$0xff pattern:$0x73625140]  ;;  %v10537_v39 = vld.sshfl [vmem:[#allocation1 + $0x30] sm:$0xff pattern:$0x73625140] }
  0x43   : > { %14844 = vst [vmem:[#allocation6_spill] sm:$0xff] %v10537_v39  ;;  %v10539_v40 = vld.sshfl [vmem:[#allocation1 + $0x38] sm:$0xff pattern:$0x73625140] }
  0x44   : > { %394 = vrot.lane.b32.xlu2 %v375_v26, %s10401_s8  ;;  %14845 = vst [vmem:[#allocation7_spill] sm:$0xff] %v10539_v40 }
  0x45   : > { %588 = vst [vmem:[#allocation1 + $0x21] ss:$4 sm:$0xff] %v10487_v0 }
  0x47   : > { %390 = vrot.lane.b32.xlu0 %v371_v24, %s10401_s8 }
  0x48   : > { %v421_v35 = vld.sshfl [vmem:[#allocation1] sm:$0xff pattern:$0x73625140]  ;;  %v423_v36 = vld.sshfl [vmem:[#allocation1 + $0x8] sm:$0xff pattern:$0x73625140]  ;;  %404 = vrot.lane.b32.xlu1 %v385_v22, %s10401_s8 }
  0x49   : > { %v425_v37 = vld.sshfl [vmem:[#allocation1 + $0x10] sm:$0xff pattern:$0x73625140]  ;;  %v427_v38 = vld.sshfl [vmem:[#allocation1 + $0x18] sm:$0xff pattern:$0x73625140] }
  0x4a   : > { %437 = vst [vmem:[#allocation1 + $0x3] ss:$4 sm:$0xff] %v302_v14 }
  0x4c   : > { %450 = vrot.lane.b32.xlu2 %v431_v28, %s10402_s9  ;;  %v597_v42 = vld.sshfl [vmem:[#allocation1 + $0x20] sm:$0xff pattern:$0x73625140]  ;;  %v601_v43 = vld.sshfl [vmem:[#allocation1 + $0x30] sm:$0xff pattern:$0x73625140] }
  0x4d   : > { %v599_v44 = vld.sshfl [vmem:[#allocation1 + $0x28] sm:$0xff pattern:$0x73625140]  ;;  %v603_v45 = vld.sshfl [vmem:[#allocation1 + $0x38] sm:$0xff pattern:$0x73625140] }
  0x4e   : > { %637 = vst [vmem:[#allocation1 + $0x22] ss:$4 sm:$0xff] %v10487_v0 }
  0x4f   : > { %396 = vrot.lane.b32.xlu0 %v377_v27, %s10401_s8  ;;  %v10604_v27 = vld [vmem:[%s10484_s29 + $0x10] sm:$0x3] }
  0x50   : > { %392 = vrot.lane.b32.xlu1 %v373_v25, %s10401_s8 }
  0x51   : > { %v438_v41 = vld.sshfl [vmem:[#allocation1] sm:$0xff pattern:$0x73625140] }
  0x52   : > { %570 = vst [vmem:[#allocation1] ss:$4 sm:$0xff] %v10491_v1 }
  0x54   : > { %406 = vrot.lane.b32.xlu2 %v388_v32, %s10401_s8 }
  0x55   : > { %v648_v56 = vld.sshfl [vmem:[#allocation1 + $0x28] sm:$0xff pattern:$0x73625140]  ;;  %v646_v58 = vld.sshfl [vmem:[#allocation1 + $0x20] sm:$0xff pattern:$0x73625140] }
  0x56   : > { %v652_v59 = vld.sshfl [vmem:[#allocation1 + $0x38] sm:$0xff pattern:$0x73625140]  ;;  %v650_v60 = vld.sshfl [vmem:[#allocation1 + $0x30] sm:$0xff pattern:$0x73625140] }
  0x57   : > { %440 = vrot.lane.b32.xlu0 %v421_v35, %s10402_s9  ;;  %687 = vst [vmem:[#allocation1 + $0x23] ss:$4 sm:$0xff] %v10487_v0 }
  0x58   : > { %448 = vrot.lane.b32.xlu1 %v429_v29, %s10402_s9 }
  0x59   : > { %v10551_v47 = vld.sshfl [vmem:[#allocation1] sm:$0xff pattern:$0x73625140]  ;;  %v10553_v48 = vld.sshfl [vmem:[#allocation1 + $0x8] sm:$0xff pattern:$0x73625140] }
  0x5a   : > { %v10555_v49 = vld.sshfl [vmem:[#allocation1 + $0x10] sm:$0xff pattern:$0x73625140]  ;;  %v10557_v50 = vld.sshfl [vmem:[#allocation1 + $0x18] sm:$0xff pattern:$0x73625140] }
  0x5b   : > { %583 = vst [vmem:[#allocation1] ss:$4 sm:$0xff] %v568_v46 }
  0x5c   : > { %444 = vrot.lane.b32.xlu2 %v425_v37, %s10402_s9 }
  0x5e   : > { %v698_v18 = vld.sshfl [vmem:[#allocation1 + $0x28] sm:$0xff pattern:$0x73625140]  ;;  %v696_v19 = vld.sshfl [vmem:[#allocation1 + $0x20] sm:$0xff pattern:$0x73625140] }
  0x5f   : > { %446 = vrot.lane.b32.xlu0 %v427_v38, %s10402_s9  ;;  %v702_v20 = vld.sshfl [vmem:[#allocation1 + $0x38] sm:$0xff pattern:$0x73625140]  ;;  %v700_v21 = vld.sshfl [vmem:[#allocation1 + $0x30] sm:$0xff pattern:$0x73625140] }
  0x60   : > { %442 = vrot.lane.b32.xlu1 %v423_v36, %s10402_s9  ;;  %895 = vst [vmem:[#allocation1 + $0x20] ss:$4 sm:$0xff] %v10487_v0 }
  0x62   : > { %v10562_v51 = vld.sshfl [vmem:[#allocation1] sm:$0xff pattern:$0x73625140] }
  0x63   : > { %586 = vst [vmem:[#allocation1 + $0x1] ss:$4 sm:$0xff] %v10491_v1 }
  0x64   : > { %456 = vrot.lane.b32.xlu2 %v438_v41, %s10402_s9 }
  0x67   : > { %452 = vrot.lane.b32.xlu0 %v433_v31, %s10402_s9 }
  0x68   : > { %454 = vrot.lane.b32.xlu1 %v435_v30, %s10402_s9 }
  0x6a   : > { %v589_v52 = vld.sshfl [vmem:[#allocation1] sm:$0xff pattern:$0x73625140]  ;;  %v591_v53 = vld.sshfl [vmem:[#allocation1 + $0x8] sm:$0xff pattern:$0x73625140] }
  0x6b   : > { %v593_v54 = vld.sshfl [vmem:[#allocation1 + $0x10] sm:$0xff pattern:$0x73625140]  ;;  %v595_v55 = vld.sshfl [vmem:[#allocation1 + $0x18] sm:$0xff pattern:$0x73625140] }
  0x6c   : > { %605 = vst [vmem:[#allocation1 + $0x1] ss:$4 sm:$0xff] %v568_v46  ;;  %618 = vrot.lane.b32.xlu2 %v599_v44, %s10400_s30 }
  0x6f   : > { %620 = vrot.lane.b32.xlu0 %v601_v43, %s10400_s30 }
  0x70   : > { %616 = vrot.lane.b32.xlu1 %v597_v42, %s10400_s30 }
  0x73   : > { %v606_v57 = vld.sshfl [vmem:[#allocation1] sm:$0xff pattern:$0x73625140] }
  0x74   : > { %635 = vst [vmem:[#allocation1 + $0x2] ss:$4 sm:$0xff] %v10491_v1  ;;  %667 = vrot.lane.b32.xlu2 %v648_v56, %s10403_s10  ;;  %v10645_v56 = vld.sshfl [vmem:[#allocation1 + $0x28] sm:$0xff pattern:$0x73625140] }
  0x75   : > { %14846 = vst [vmem:[#allocation8_spill] sm:$0xff] %v10645_v56 }
  0x77   : > { %608 = vrot.lane.b32.xlu0 %v589_v52, %s10400_s30 }
  0x78   : > { %622 = vrot.lane.b32.xlu1 %v603_v45, %s10400_s30 }
  0x7b   : > { %v638_v61 = vld.sshfl [vmem:[#allocation1] sm:$0xff pattern:$0x73625140]  ;;  %v640_v62 = vld.sshfl [vmem:[#allocation1 + $0x8] sm:$0xff pattern:$0x73625140] }
  0x7c   : > { %v642_v63 = vld.sshfl [vmem:[#allocation1 + $0x10] sm:$0xff pattern:$0x73625140]  ;;  %v644_v10 = vld.sshfl [vmem:[#allocation1 + $0x18] sm:$0xff pattern:$0x73625140]  ;;  %612 = vrot.lane.b32.xlu2 %v593_v54, %s10400_s30 }
  0x7d   : > { %654 = vst [vmem:[#allocation1 + $0x2] ss:$4 sm:$0xff] %v568_v46 }
  0x7e   : > { %v10577_v11 = vpop.permute.xlu2 %348 }
  0x7f   : > { %614 = vrot.lane.b32.xlu0 %v595_v55, %s10400_s30  ;;  %v10642_v55 = vld.sshfl [vmem:[#allocation1 + $0x20] sm:$0xff pattern:$0x73625140] }
  0x80   : > { %610 = vrot.lane.b32.xlu1 %v591_v53, %s10400_s30 }
  0x84   : > { %v655_v12 = vld.sshfl [vmem:[#allocation1] sm:$0xff pattern:$0x73625140]  ;;  %624 = vrot.lane.b32.xlu2 %v606_v57, %s10400_s30 }
  0x85   : > { %685 = vst [vmem:[#allocation1 + $0x3] ss:$4 sm:$0xff] %v10491_v1 }
  0x86   : > { %v10584_v13 = vpop.permute.xlu2 %350 }
  0x87   : > { %657 = vrot.lane.b32.xlu0 %v638_v61, %s10403_s10 }
  0x88   : > { %665 = vrot.lane.b32.xlu1 %v646_v58, %s10403_s10 }
  0x8c   : > { %v688_v14 = vld.sshfl [vmem:[#allocation1] sm:$0xff pattern:$0x73625140]  ;;  %v690_v15 = vld.sshfl [vmem:[#allocation1 + $0x8] sm:$0xff pattern:$0x73625140]  ;;  %661 = vrot.lane.b32.xlu2 %v642_v63, %s10403_s10 }
  0x8d   : > { %v692_v16 = vld.sshfl [vmem:[#allocation1 + $0x10] sm:$0xff pattern:$0x73625140]  ;;  %v694_v17 = vld.sshfl [vmem:[#allocation1 + $0x18] sm:$0xff pattern:$0x73625140] }
  0x8e   : > { %704 = vst [vmem:[#allocation1 + $0x3] ss:$4 sm:$0xff] %v568_v46  ;;  %v10591_v22 = vpop.permute.xlu2 %356 }
  0x8f   : > { %663 = vrot.lane.b32.xlu0 %v644_v10, %s10403_s10 }
  0x90   : > { %659 = vrot.lane.b32.xlu1 %v640_v62, %s10403_s10 }
  0x94   : > { %673 = vrot.lane.b32.xlu2 %v655_v12, %s10403_s10 }
  0x95   : > { %v705_v23 = vld.sshfl [vmem:[#allocation1] sm:$0xff pattern:$0x73625140] }
  0x96   : > { %892 = vst [vmem:[#allocation1] ss:$4 sm:$0xff] %v10491_v1  ;;  %v10601_v26 = vpop.permute.xlu2 %400 }
  0x97   : > { %669 = vrot.lane.b32.xlu0 %v650_v60, %s10403_s10  ;;  %v10652_v60 = vld.sshfl [vmem:[#allocation1 + $0x38] sm:$0xff pattern:$0x73625140] }
  0x98   : > { %671 = vrot.lane.b32.xlu1 %v652_v59, %s10403_s10  ;;  %v10650_v59 = vld.sshfl [vmem:[#allocation1 + $0x30] sm:$0xff pattern:$0x73625140]  ;;  %14848 = vst [vmem:[#allocation10_spill] sm:$0xff] %v10652_v60 }
  0x99   : > { %v10597_v24 = vpop.permute.xlu0 %340  ;;  %14847 = vst [vmem:[#allocation9_spill] sm:$0xff] %v10650_v59 }
  0x9a   : > { %v10599_v25 = vpop.permute.xlu1 %344  ;;  %910 = vst [vmem:[#allocation1 + $0x21] ss:$4 sm:$0xff] %v10487_v0 }
  0x9c   : > { %711 = vrot.lane.b32.xlu2 %v692_v16, %s10402_s9 }
  0x9d   : > { %v10607_v28 = vld.sshfl [vmem:[#allocation1] sm:$0xff pattern:$0x73625140]  ;;  %v10609_v29 = vld.sshfl [vmem:[#allocation1 + $0x8] sm:$0xff pattern:$0x73625140] }
  0x9e   : > { %v10611_v30 = vld.sshfl [vmem:[#allocation1 + $0x10] sm:$0xff pattern:$0x73625140]  ;;  %v10613_v31 = vld.sshfl [vmem:[#allocation1 + $0x18] sm:$0xff pattern:$0x73625140]  ;;  %v10619_v36 = vpop.permute.xlu2 %394 }
  0x9f   : > { %905 = vst [vmem:[#allocation1] ss:$4 sm:$0xff] %v10604_v27  ;;  %707 = vrot.lane.b32.xlu0 %v688_v14, %s10402_s9 }
  0xa0   : > { %709 = vrot.lane.b32.xlu1 %v690_v15, %s10402_s9 }
  0xa1   : > { %v343_v32 = vpop.permute.xlu0 %342  ;;  %v921_v15 = vld.sshfl [vmem:[#allocation1 + $0x28] sm:$0xff pattern:$0x73625140] }
  0xa2   : > { %v347_v35 = vpop.permute.xlu1 %346 }
  0xa3   : > { %v362_v40 = vsel %vm358_vm0, %v347_v35, %v10577_v11 }
  0xa4   : > { %717 = vrot.lane.b32.xlu2 %v698_v18, %s10402_s9 }
  0xa6   : > { %v10621_v37 = vld.sshfl [vmem:[#allocation1] sm:$0xff pattern:$0x73625140]  ;;  %v10633_v46 = vpop.permute.xlu2 %450 }
  0xa7   : > { %908 = vst [vmem:[#allocation1 + $0x1] ss:$4 sm:$0xff] %v10491_v1  ;;  %713 = vrot.lane.b32.xlu0 %v694_v17, %s10402_s9 }
  0xa8   : > { %715 = vrot.lane.b32.xlu1 %v696_v19, %s10402_s9 }
  0xa9   : > { %v10626_v38 = vpop.permute.xlu0 %352 }
  0xaa   : > { %v10628_v41 = vpop.permute.xlu1 %354 }
  0xac   : > { %723 = vrot.lane.b32.xlu2 %v705_v23, %s10402_s9  ;;  %v359_v23 = vsel %vm358_vm0, %v10597_v24, %v343_v32 }
  0xae   : > { %v911_v42 = vld.sshfl [vmem:[#allocation1] sm:$0xff pattern:$0x73625140]  ;;  %v10631_v43 = vld.sshfl [vmem:[#allocation1 + $0x8] sm:$0xff pattern:$0x73625140]  ;;  %v10648_v57 = vpop.permute.xlu2 %406 }
  0xaf   : > { %v915_v44 = vld.sshfl [vmem:[#allocation1 + $0x10] sm:$0xff pattern:$0x73625140]  ;;  %v917_v45 = vld.sshfl [vmem:[#allocation1 + $0x18] sm:$0xff pattern:$0x73625140]  ;;  %719 = vrot.lane.b32.xlu0 %v700_v21, %s10402_s9 }
  0xb0   : > { %927 = vst [vmem:[#allocation1 + $0x1] ss:$4 sm:$0xff] %v10604_v27  ;;  %721 = vrot.lane.b32.xlu1 %v702_v20, %s10402_s9  ;;  %v363_v20 = vsel %vm358_vm0, %v10577_v11, %v10584_v13 }
  0xb1   : > { %v10638_v52 = vpop.permute.xlu0 %402 }
  0xb2   : > { %v399_v53 = vpop.permute.xlu1 %398 }
  0xb6   : > { %v445_v17 = vpop.permute.xlu2 %444 }
  0xb7   : > { %v10640_v54 = vld.sshfl [vmem:[#allocation1] sm:$0xff pattern:$0x73625140]  ;;  %940 = vrot.lane.b32.xlu0 %v921_v15, %s10404_s11  ;;  %v477_v15 = vsel %vm467_vm1, %v10494_v2, %v363_v20  ;;  %v413_v20 = vsel %vm408_vm2, %v399_v53, %v10601_v26 }
  0xb8   : > { %958 = vst [vmem:[#allocation1 + $0x2] ss:$4 sm:$0xff] %v10491_v1  ;;  %930 = vrot.lane.b32.xlu1 %v911_v42, %s10404_s11  ;;  %v361_v42 = vsel %vm358_vm0, %v10599_v25, %v347_v35 }
  0xb9   : > { %v391_v58 = vpop.permute.xlu0 %390  ;;  %v473_v2 = vsel %vm467_vm1, %v10507_v8, %v361_v42  ;;  %v364_v8 = vsel %vm358_vm0, %v10584_v13, %v10626_v38 }
  0xba   : > { %v10654_v61 = vpop.permute.xlu1 %404 }
  0xbe   : > { %v10685_v39 = vpop.permute.xlu2 %456 }
  0xbf   : > { %v10657_v62 = vld.sshfl [vmem:[#allocation1] sm:$0xff pattern:$0x73625140]  ;;  %v10659_v63 = vld.sshfl [vmem:[#allocation1 + $0x8] sm:$0xff pattern:$0x73625140]  ;;  %934 = vrot.lane.b32.xlu0 %v915_v44, %s10404_s11  ;;  %v469_v44 = vsel %vm467_vm1, %v10503_v6, %v359_v23 }
  0xc0   : > { %v10661_v10 = vld.sshfl [vmem:[#allocation1 + $0x10] sm:$0xff pattern:$0x73625140]  ;;  %v10663_v12 = vld.sshfl [vmem:[#allocation1 + $0x18] sm:$0xff pattern:$0x73625140]  ;;  %936 = vrot.lane.b32.xlu1 %v917_v45, %s10404_s11  ;;  %v360_v45 = vsel %vm358_vm0, %v343_v32, %v10599_v25 }
  0xc1   : > { %977 = vst [vmem:[#allocation1 + $0x2] ss:$4 sm:$0xff] %v10604_v27  ;;  %v397_v14 = vpop.permute.xlu0 %396  ;;  %v471_v11 = vsel %vm467_vm1, %v10505_v7, %v360_v45  ;;  %v365_v7 = vsel %vm358_vm0, %v10626_v38, %v10628_v41  ;;  %v10727_v45 = vld.sshfl [vmem:[#allocation1 + $0x38] sm:$0xff pattern:$0x73625140] }
  0xc2   : > { %v393_v16 = vpop.permute.xlu1 %392  ;;  %v411_v59 = vsel %vm408_vm2, %v10619_v36, %v397_v14  ;;  %v412_v25 = vsel %vm408_vm2, %v397_v14, %v399_v53  ;;  %v366_v14 = vsel %vm358_vm0, %v10628_v41, %v10591_v22 }
  0xc3   : > { %v409_v24 = vsel %vm408_vm2, %v391_v58, %v393_v16  ;;  %v410_v32 = vsel %vm408_vm2, %v393_v16, %v10619_v36  ;;  %v475_v58 = vsel %vm467_vm1, %v10509_v9, %v362_v40  ;;  %v490_v40 = vsel %vm484_vm3, %v473_v2, %v411_v59 }
  0xc4   : > { %v486_v9 = vsel %vm484_vm3, %v469_v44, %v409_v24  ;;  %v492_v22 = vsel %vm484_vm3, %v475_v58, %v412_v25  ;;  %v488_v13 = vsel %vm484_vm3, %v471_v11, %v410_v32  ;;  %v923_v32 = vld.sshfl [vmem:[#allocation1 + $0x30] sm:$0xff pattern:$0x73625140]  ;;  %v919_v58 = vld.sshfl [vmem:[#allocation1 + $0x20] sm:$0xff pattern:$0x73625140] }
  0xc5   : > { %938 = vrot.lane.b32.xlu2 %v919_v58, %s10404_s11  ;;  %960 = vst [vmem:[#allocation1 + $0x22] ss:$4 sm:$0xff] %v10487_v0 }
  0xc7   : > { %946 = vrot.lane.b32.xlu0 %v10640_v54, %s10404_s11 }
  0xc8   : > { %v10668_v18 = vld.sshfl [vmem:[#allocation1] sm:$0xff pattern:$0x73625140]  ;;  %942 = vrot.lane.b32.xlu1 %v923_v32, %s10404_s11 }
  0xc9   : > { %1008 = vst [vmem:[#allocation1 + $0x3] ss:$4 sm:$0xff] %v10491_v1  ;;  %v441_v19 = vpop.permute.xlu0 %440 }
  0xca   : > { %v449_v21 = vpop.permute.xlu1 %448 }
  0xcd   : > { %932 = vrot.lane.b32.xlu2 %v10631_v43, %s10404_s11 }
  0xcf   : > { %984 = vrot.lane.b32.xlu0 %v10661_v10, %s10405_s12 }
  0xd0   : > { %v10699_v35 = vld.sshfl [vmem:[#allocation1] sm:$0xff pattern:$0x73625140]  ;;  %v10701_v6 = vld.sshfl [vmem:[#allocation1 + $0x8] sm:$0xff pattern:$0x73625140]  ;;  %980 = vrot.lane.b32.xlu1 %v10657_v62, %s10405_s12 }
  0xd1   : > { %v10714_v36 = vld.sshfl [vmem:[#allocation1 + $0x10] sm:$0xff pattern:$0x73625140]  ;;  %v10716_v16 = vld.sshfl [vmem:[#allocation1 + $0x18] sm:$0xff pattern:$0x73625140]  ;;  %v447_v23 = vpop.permute.xlu0 %446 }
  0xd2   : > { %1027 = vst [vmem:[#allocation1 + $0x3] ss:$4 sm:$0xff] %v10604_v27  ;;  %v443_v38 = vpop.permute.xlu1 %442  ;;  %v461_v41 = vsel %vm458_vm4, %v445_v17, %v447_v23  ;;  %v462_v42 = vsel %vm458_vm4, %v447_v23, %v449_v21 }
  0xd3   : > { %v459_v53 = vsel %vm458_vm4, %v441_v19, %v443_v38  ;;  %v460_v59 = vsel %vm458_vm4, %v443_v38, %v445_v17  ;;  %v507_v44 = vsel %vm501_vm5, %v490_v40, %v461_v41  ;;  %v509_v27 = vsel %vm501_vm5, %v492_v22, %v462_v42  ;;  %v10748_v38 = vpop.permute.xlu2 %618 }
  0xd4   : > { %v503_v24 = vsel %vm501_vm5, %v486_v9, %v459_v53  ;;  %v505_v25 = vsel %vm501_vm5, %v488_v13, %v460_v59  ;;  %v528_v2 = vunpack.c.l.b16 %v507_v44  ;;  %v529_v11 = vunpack.c.l.b16 %v509_v27 }
  0xd5   : > { %v526_v23 = vunpack.c.l.b16 %v503_v24  ;;  %v527_v56 = vunpack.c.l.b16 %v505_v25  ;;  %v534_v60 = vunpack.c.h.b16 %v503_v24  ;;  %v535_v54 = vunpack.c.h.b16 %v505_v25  ;;  %944 = vrot.lane.b32.xlu2 %v10727_v45, %s10404_s11 }
  0xd6   : > { %v463_v17 = vsel %vm458_vm4, %v449_v21, %v10633_v46  ;;  %v536_v19 = vunpack.c.h.b16 %v507_v44  ;;  %v537_v9 = vunpack.c.h.b16 %v509_v27  ;;  %v543_v40 = vpack.c.b16 %v529_v11, %v528_v2 }
  0xd7   : > { %v414_v22 = vsel %vm408_vm2, %v10601_v26, %v10638_v52  ;;  %v415_v13 = vsel %vm408_vm2, %v10638_v52, %v10654_v61  ;;  %v542_v41 = vpack.c.b16 %v527_v56, %v526_v23  ;;  %v546_v42 = vpack.c.b16 %v535_v54, %v534_v60  ;;  %v971_v23 = vld.sshfl [vmem:[#allocation1 + $0x28] sm:$0xff pattern:$0x73625140]  ;;  %v10782_v54 = vld [vmem:[%s10484_s29 + $0x10] sm:$0x3] }
  0xd8   : > { %v494_v53 = vsel %vm484_vm3, %v477_v15, %v413_v20  ;;  %v416_v21 = vsel %vm408_vm2, %v10654_v61, %v10648_v57  ;;  %v547_v59 = vpack.c.b16 %v537_v9, %v536_v19  ;;  %559 = vst [vmem:[#allocation2 + $0x8] sm:$0xff] %v543_v40  ;;  %v483_v26 = vsel %vm467_vm1, %v10500_v5, %v366_v14 }
  0xd9   : > { %v10754_v44 = vld.sshfl [vmem:[#allocation1] sm:$0xff pattern:$0x73625140]  ;;  %v479_v52 = vsel %vm467_vm1, %v10496_v3, %v364_v8  ;;  %v481_v56 = vsel %vm467_vm1, %v10498_v4, %v365_v7  ;;  %v511_v60 = vsel %vm501_vm5, %v494_v53, %v463_v17  ;;  %558 = vst [vmem:[#allocation2] sm:$0xff] %v542_v41  ;;  %v453_v15 = vpop.permute.xlu0 %452  ;;  %v500_v3 = vsel %vm484_vm3, %v483_v26, %v416_v21 }
  0xda   : > { %1215 = vst [vmem:[#allocation1] ss:$4 sm:$0xff] %v10491_v1  ;;  %v496_v57 = vsel %vm484_vm3, %v479_v52, %v414_v22  ;;  %v498_v61 = vsel %vm484_vm3, %v481_v56, %v415_v13  ;;  %v455_v20 = vpop.permute.xlu1 %454  ;;  %v464_v5 = vsel %vm458_vm4, %v10633_v46, %v453_v15  ;;  %v530_v7 = vunpack.c.l.b16 %v511_v60  ;;  %990 = vrot.lane.b32.xlu0 %v971_v23, %s10405_s12  ;;  %v975_v26 = vld.sshfl [vmem:[#allocation1 + $0x38] sm:$0xff pattern:$0x73625140] }
  0xdb   : > { %562 = vst [vmem:[#allocation2 + $0x20] sm:$0xff] %v546_v42  ;;  %v466_v4 = vsel %vm458_vm4, %v455_v20, %v10685_v39  ;;  %v465_v14 = vsel %vm458_vm4, %v453_v15, %v455_v20  ;;  %v513_v8 = vsel %vm501_vm5, %v496_v57, %v464_v5  ;;  %v538_v58 = vunpack.c.h.b16 %v511_v60  ;;  %v10788_v40 = vpop.permute.xlu2 %667  ;;  %986 = vrot.lane.b32.xlu1 %v10663_v12, %s10405_s12  ;;  %v973_v56 = vld.sshfl [vmem:[#allocation1 + $0x30] sm:$0xff pattern:$0x73625140] }
  0xdc   : > { %563 = vst [vmem:[#allocation2 + $0x28] sm:$0xff] %v547_v59  ;;  %v517_v27 = vsel %vm501_vm5, %v500_v3, %v466_v4  ;;  %v515_v46 = vsel %vm501_vm5, %v498_v61, %v465_v14  ;;  %v531_v24 = vunpack.c.l.b16 %v513_v8  ;;  %v539_v2 = vunpack.c.h.b16 %v513_v8  ;;  %v969_v59 = vld.sshfl [vmem:[#allocation1 + $0x20] sm:$0xff pattern:$0x73625140] }
  0xdd   : > { %v533_v25 = vunpack.c.l.b16 %v517_v27  ;;  %v532_v10 = vunpack.c.l.b16 %v515_v46  ;;  %v541_v39 = vunpack.c.h.b16 %v517_v27  ;;  %v540_v11 = vunpack.c.h.b16 %v515_v46  ;;  %1010 = vst [vmem:[#allocation1 + $0x23] ss:$4 sm:$0xff] %v10487_v0  ;;  %982 = vrot.lane.b32.xlu2 %v10659_v63, %s10405_s12 }
  0xde   : > { %v544_v32 = vpack.c.b16 %v531_v24, %v530_v7  ;;  %v548_v22 = vpack.c.b16 %v539_v2, %v538_v58 }
  0xdf   : > { %v545_v17 = vpack.c.b16 %v533_v25, %v532_v10  ;;  %v549_v41 = vpack.c.b16 %v541_v39, %v540_v11 }
  0xe0   : > { %560 = vst [vmem:[#allocation2 + $0x10] sm:$0xff] %v544_v32 }
  0xe1   : > { %v10784_v19 = vld.sshfl [vmem:[#allocation1] sm:$0xff pattern:$0x73625140]  ;;  %v10786_v9 = vld.sshfl [vmem:[#allocation1 + $0x8] sm:$0xff pattern:$0x73625140]  ;;  %v10790_v62 = vpop.permute.xlu0 %620 }
  0xe2   : > { %14849 = vst [vmem:[#allocation11_spill] sm:$0xff] %v10784_v19  ;;  %v10792_v13 = vld.sshfl [vmem:[#allocation1 + $0x10] sm:$0xff pattern:$0x73625140]  ;;  %v617_v42 = vpop.permute.xlu1 %616  ;;  %996 = vrot.lane.b32.xlu0 %v10668_v18, %s10405_s12 }
  0xe3   : > { %14850 = vst [vmem:[#allocation12_spill] sm:$0xff] %v10786_v9  ;;  %v10794_v43 = vld.sshfl [vmem:[#allocation1 + $0x18] sm:$0xff pattern:$0x73625140]  ;;  %v10808_v52 = vpop.permute.xlu2 %612  ;;  %992 = vrot.lane.b32.xlu1 %v973_v56, %s10405_s12 }
  0xe4   : > { %14851 = vst [vmem:[#allocation13_spill] sm:$0xff] %v10792_v13  ;;  %v1021_v18 = vld.sshfl [vmem:[#allocation1 + $0x28] sm:$0xff pattern:$0x73625140] }
  0xe5   : > { %14852 = vst [vmem:[#allocation14_spill] sm:$0xff] %v10794_v43  ;;  %988 = vrot.lane.b32.xlu2 %v969_v59, %s10405_s12 }
  0xe6   : > { %1228 = vst [vmem:[#allocation1] ss:$4 sm:$0xff] %v10782_v54 }
  0xe7   : > { %561 = vst [vmem:[#allocation2 + $0x18] sm:$0xff] %v545_v17  ;;  %v630_v17 = vsel %vm358_vm0, %v617_v42, %v10748_v38 }
  0xe8   : > { %564 = vst [vmem:[#allocation2 + $0x30] sm:$0xff] %v548_v22 }
  0xe9   : > { %565 = vst [vmem:[#allocation2 + $0x38] sm:$0xff] %v549_v41  ;;  %v10802_v53 = vpop.permute.xlu0 %608 }
  0xea   : > { %v10804_v21 = vpop.permute.xlu1 %622  ;;  %1034 = vrot.lane.b32.xlu0 %v10714_v36, %s10406_s13 }
  0xeb   : > { %v10818_v60 = vpop.permute.xlu2 %624 }
  0xed   : > { %994 = vrot.lane.b32.xlu2 %v975_v26, %s10405_s12  ;;  %v631_v26 = vsel %vm358_vm0, %v10748_v38, %v10790_v62 }
  0xf1   : > { %v615_v12 = vpop.permute.xlu0 %614 }
  0xf2   : > { %v10814_v45 = vpop.permute.xlu1 %610  ;;  %1040 = vrot.lane.b32.xlu0 %v1021_v18, %s10406_s13  ;;  %v628_v7 = vsel %vm358_vm0, %v10808_v52, %v615_v12  ;;  %v629_v27 = vsel %vm358_vm0, %v615_v12, %v617_v42  ;;  %v742_v12 = vsel %vm467_vm1, %v10532_v33, %v630_v17 }
  0xf3   : > { %v10825_v63 = vpop.permute.xlu2 %661  ;;  %v738_v24 = vsel %vm467_vm1, %v10555_v49, %v628_v7  ;;  %v740_v10 = vsel %vm467_vm1, %v10557_v50, %v629_v27 }
  0xf9   : > { %v10821_v15 = vpop.permute.xlu0 %657 }
  0xfa   : > { %v666_v57 = vpop.permute.xlu1 %665  ;;  %1046 = vrot.lane.b32.xlu0 %v10754_v44, %s10406_s13 }
  0xfb   : > { %v10831_v36 = vpop.permute.xlu2 %673  ;;  %v680_v50 = vsel %vm675_vm6, %v666_v57, %v10788_v40 }
 0x101   : > { %v664_v61 = vpop.permute.xlu0 %663 }
 0x102   : > { %v10827_v20 = vpop.permute.xlu1 %659  ;;  %v678_v44 = vsel %vm675_vm6, %v10825_v63, %v664_v61  ;;  %v679_v46 = vsel %vm675_vm6, %v664_v61, %v666_v57  ;;  %v760_v61 = vsel %vm484_vm3, %v742_v12, %v680_v50  ;;  %v744_v57 = vsel %vm467_vm1, %v10534_v34, %v631_v26  ;;  %v1019_v34 = vld.sshfl [vmem:[#allocation1 + $0x20] sm:$0xff pattern:$0x73625140] }
 0x103   : > { %v10841_v8 = vpop.permute.xlu2 %711  ;;  %v756_v2 = vsel %vm484_vm3, %v738_v24, %v678_v44  ;;  %v758_v32 = vsel %vm484_vm3, %v740_v10, %v679_v46 }
 0x109   : > { %v10833_v5 = vpop.permute.xlu0 %669 }
 0x10a   : > { %v10835_v3 = vpop.permute.xlu1 %671  ;;  %v681_v42 = vsel %vm675_vm6, %v10788_v40, %v10833_v5 }
 0x10b   : > { %v718_v41 = vpop.permute.xlu2 %717  ;;  %v762_v38 = vsel %vm484_vm3, %v744_v57, %v681_v42 }
 0x111   : > { %v10837_v4 = vpop.permute.xlu0 %707 }
 0x112   : > { %v10839_v14 = vpop.permute.xlu1 %709 }
 0x113   : > { %v10902_v17 = vpop.permute.xlu2 %723 }
 0x119   : > { %v714_v25 = vpop.permute.xlu0 %713 }
 0x11a   : > { %v716_v39 = vpop.permute.xlu1 %715  ;;  %v727_v11 = vsel %vm458_vm4, %v10841_v8, %v714_v25 }
 0x11b   : > { %v728_v58 = vsel %vm458_vm4, %v714_v25, %v716_v39  ;;  %v774_v23 = vsel %vm501_vm5, %v756_v2, %v727_v11  ;;  %v729_v56 = vsel %vm458_vm4, %v716_v39, %v718_v41  ;;  %v1025_v39 = vld.sshfl [vmem:[#allocation1 + $0x38] sm:$0xff pattern:$0x73625140]  ;;  %v1023_v11 = vld.sshfl [vmem:[#allocation1 + $0x30] sm:$0xff pattern:$0x73625140] }
 0x11c   : > { %v776_v49 = vsel %vm501_vm5, %v758_v32, %v728_v58  ;;  %v807_v22 = vunpack.c.h.b16 %v774_v23  ;;  %v778_v7 = vsel %vm501_vm5, %v760_v61, %v729_v56  ;;  %v10894_v32 = vld.sshfl [vmem:[#allocation1] sm:$0xff pattern:$0x73625140] }
 0x11d   : > { %v808_v59 = vunpack.c.h.b16 %v776_v49  ;;  %v800_v46 = vunpack.c.l.b16 %v778_v7  ;;  %v809_v24 = vunpack.c.h.b16 %v778_v7  ;;  %14853 = vst [vmem:[#allocation15_spill] sm:$0xff] %v10894_v32  ;;  %v799_v58 = vunpack.c.l.b16 %v776_v49 }
 0x11e   : > { %1231 = vst [vmem:[#allocation1 + $0x1] ss:$4 sm:$0xff] %v10491_v1 }
 0x11f   : > { %v10873_v18 = vpack.c.b16 %v808_v59, %v807_v22  ;;  %v1212_v22 = vld [vmem:[%s10484_s29 + $0x8] sm:$0xff]  ;;  %v10929_v7 = vpop.permute.xlu2 %938 }
 0x120   : > { %1218 = vst [vmem:[#allocation1 + $0x20] ss:$4 sm:$0xff] %v1212_v22 }
 0x121   : > { %v10879_v27 = vpop.permute.xlu0 %719 }
 0x122   : > { %v730_v33 = vsel %vm458_vm4, %v718_v41, %v10879_v27 }
 0x123   : > { %v780_v44 = vsel %vm501_vm5, %v762_v38, %v730_v33  ;;  %v10931_v38 = vpop.permute.xlu1 %721 }
 0x124   : > { %v801_v40 = vunpack.c.l.b16 %v780_v44  ;;  %v810_v25 = vunpack.c.h.b16 %v780_v44 }
 0x125   : > { %v10905_v50 = vld.sshfl [vmem:[#allocation1 + $0x18] sm:$0xff pattern:$0x73625140]  ;;  %v10909_v26 = vld.sshfl [vmem:[#allocation1] sm:$0xff pattern:$0x73625140] }
 0x126   : > { %v816_v10 = vpack.c.b16 %v801_v40, %v800_v46  ;;  %v821_v2 = vpack.c.b16 %v810_v25, %v809_v24  ;;  %14854 = vst [vmem:[#allocation16_spill] sm:$0xff] %v10905_v50  ;;  %v10911_v56 = vld.sshfl [vmem:[#allocation1 + $0x8] sm:$0xff pattern:$0x73625140] }
 0x127   : > { %14855 = vst [vmem:[#allocation17_spill] sm:$0xff] %v10911_v56  ;;  %v10920_v12 = vld.sshfl [vmem:[#allocation1 + $0x20] sm:$0xff pattern:$0x73625140]  ;;  %v933_v24 = vpop.permute.xlu2 %932 }
 0x128   : > { %828 = vrot.lane.b32.xlu2 %v816_v10, %s10407_s14  ;;  %838 = vrot.lane.b32.xlu1 %v821_v2, %s10407_s14  ;;  %14856 = vst [vmem:[#allocation18_spill] sm:$0xff] %v10920_v12  ;;  %v10922_v42 = vld.sshfl [vmem:[#allocation1 + $0x28] sm:$0xff pattern:$0x73625140] }
 0x129   : > { %14857 = vst [vmem:[#allocation19_spill] sm:$0xff] %v10922_v42  ;;  %v10925_v61 = vld.sshfl [vmem:[#allocation1 + $0x30] sm:$0xff pattern:$0x73625140]  ;;  %v10940_v25 = vpop.permute.xlu0 %940 }
 0x12a   : > { %14858 = vst [vmem:[#allocation20_spill] sm:$0xff] %v10925_v61  ;;  %v10927_v57 = vld.sshfl [vmem:[#allocation1 + $0x38] sm:$0xff pattern:$0x73625140] }
 0x12b   : > { %14859 = vst [vmem:[#allocation21_spill] sm:$0xff] %v10927_v57  ;;  %v931_v10 = vpop.permute.xlu1 %930 }
 0x12c   : > { %1233 = vst [vmem:[#allocation1 + $0x21] ss:$4 sm:$0xff] %v1212_v22 }
 0x130   : > { %1032 = vrot.lane.b32.xlu2 %v10701_v6, %s10406_s13  ;;  %1030 = vrot.lane.b32.xlu1 %v10699_v35, %s10406_s13  ;;  %v798_v6 = vunpack.c.l.b16 %v774_v23  ;;  %v750_v35 = vsel %vm467_vm1, %v10562_v51, %v10818_v60 }
 0x131   : > { %v768_v41 = vsel %vm484_vm3, %v750_v35, %v10831_v36 }
 0x132   : > { %v815_v59 = vpack.c.b16 %v799_v58, %v798_v6  ;;  %v10915_v23 = vsel %vm501_vm5, %v768_v41, %v10902_v17 }
 0x133   : > { %v804_v51 = vunpack.c.l.b16 %v10915_v23  ;;  %v10934_v33 = vld.sshfl [vmem:[#allocation1 + $0x20] sm:$0xff pattern:$0x73625140]  ;;  %v1244_v44 = vld.sshfl [vmem:[#allocation1 + $0x28] sm:$0xff pattern:$0x73625140] }
 0x134   : > { %14860 = vst [vmem:[#allocation22_spill] sm:$0xff] %v10934_v33  ;;  %v10936_v46 = vld.sshfl [vmem:[#allocation1 + $0x30] sm:$0xff pattern:$0x73625140] }
 0x135   : > { %v818_v49 = vpack.c.b16 %v804_v51, %v804_v51  ;;  %14861 = vst [vmem:[#allocation23_spill] sm:$0xff] %v10936_v46  ;;  %v10938_v40 = vld.sshfl [vmem:[#allocation1 + $0x38] sm:$0xff pattern:$0x73625140] }
 0x136   : > { %14862 = vst [vmem:[#allocation24_spill] sm:$0xff] %v10938_v40 }
 0x137   : > { %1282 = vst [vmem:[#allocation1 + $0x22] ss:$4 sm:$0xff] %v1212_v22 }
 0x138   : > { %1038 = vrot.lane.b32.xlu2 %v1019_v34, %s10406_s13  ;;  %1036 = vrot.lane.b32.xlu1 %v10716_v16, %s10406_s13  ;;  %v1238_v16 = vld.sshfl [vmem:[#allocation1 + $0x10] sm:$0xff pattern:$0x73625140]  ;;  %v10944_v34 = vpop.permute.xlu2 %944 }
 0x139   : > { %1250 = vst [vmem:[#allocation1 + $0x1] ss:$4 sm:$0xff] %v10782_v54 }
 0x13e   : > { %v10963_v57 = vld.sshfl [vmem:[#allocation1 + $0x38] sm:$0xff pattern:$0x73625140] }
 0x13f   : > { %14868 = vst [vmem:[#allocation30_spill] sm:$0xff] %v10963_v57 }
 0x140   : > { %1044 = vrot.lane.b32.xlu2 %v1025_v39, %s10406_s13  ;;  %1042 = vrot.lane.b32.xlu1 %v1023_v11, %s10406_s13  ;;  %v1251_v2 = vld.sshfl [vmem:[#allocation1] sm:$0xff pattern:$0x73625140]  ;;  %v935_v39 = vpop.permute.xlu0 %934  ;;  %v937_v11 = vpop.permute.xlu1 %936 }
 0x141   : > { %1280 = vst [vmem:[#allocation1 + $0x2] ss:$4 sm:$0xff] %v10491_v1  ;;  %v983_v41 = vpop.permute.xlu2 %982  ;;  %v952_v50 = vsel %vm948_vm7, %v937_v11, %v10929_v7 }
 0x148   : > { %826 = vrot.lane.b32.xlu1 %v815_v59, %s10407_s14  ;;  %v1287_v6 = vld.sshfl [vmem:[#allocation1 + $0x10] sm:$0xff pattern:$0x73625140]  ;;  %v10947_v58 = vld.sshfl [vmem:[#allocation1 + $0x18] sm:$0xff pattern:$0x73625140]  ;;  %v10955_v59 = vpop.permute.xlu0 %946  ;;  %v10957_v51 = vpop.permute.xlu1 %942 }
 0x149   : > { %14863 = vst [vmem:[#allocation25_spill] sm:$0xff] %v10947_v58  ;;  %v10949_v35 = vld.sshfl [vmem:[#allocation1] sm:$0xff pattern:$0x73625140]  ;;  %v10966_v61 = vpop.permute.xlu2 %988 }
 0x14a   : > { %14864 = vst [vmem:[#allocation26_spill] sm:$0xff] %v10949_v35 }
 0x150   : > { %832 = vrot.lane.b32.xlu1 %v818_v49, %s10407_s14  ;;  %v10959_v49 = vld.sshfl [vmem:[#allocation1 + $0x20] sm:$0xff pattern:$0x73625140]  ;;  %v985_v12 = vpop.permute.xlu0 %984 }
 0x151   : > { %14866 = vst [vmem:[#allocation28_spill] sm:$0xff] %v10959_v49  ;;  %v10970_v32 = vpop.permute.xlu2 %994  ;;  %v950_v49 = vsel %vm948_vm7, %v933_v24, %v935_v39 }
 0x158   : > { %1257 = vrot.lane.b32.xlu1 %v1238_v16, %s10400_s30  ;;  %v10951_v16 = vld.sshfl [vmem:[#allocation1 + $0x8] sm:$0xff pattern:$0x73625140]  ;;  %v10972_v42 = vpop.permute.xlu0 %990 }
 0x159   : > { %14865 = vst [vmem:[#allocation27_spill] sm:$0xff] %v10951_v16  ;;  %v1000_v16 = vsel %vm998_vm9, %v983_v41, %v985_v12 }
 0x15a   : > { %1299 = vst [vmem:[#allocation1 + $0x2] ss:$4 sm:$0xff] %v10782_v54 }
 0x160   : > { %1263 = vrot.lane.b32.xlu1 %v1244_v44, %s10400_s30  ;;  %v1293_v44 = vld.sshfl [vmem:[#allocation1 + $0x28] sm:$0xff pattern:$0x73625140]  ;;  %v10976_v19 = vpop.permute.xlu0 %996 }
 0x161   : > { %v1300_v43 = vld.sshfl [vmem:[#allocation1] sm:$0xff pattern:$0x73625140] }
 0x162   : > { %1329 = vst [vmem:[#allocation1 + $0x3] ss:$4 sm:$0xff] %v10491_v1 }
 0x168   : > { %1269 = vrot.lane.b32.xlu1 %v1251_v2, %s10400_s30  ;;  %v10961_v2 = vld.sshfl [vmem:[#allocation1 + $0x30] sm:$0xff pattern:$0x73625140]  ;;  %v1035_v0 = vpop.permute.xlu0 %1034 }
 0x169   : > { %14867 = vst [vmem:[#allocation29_spill] sm:$0xff] %v10961_v2  ;;  %v1060_v2 = vsel %vm467_vm1, %v10609_v29, %v950_v49  ;;  %v951_v49 = vsel %vm948_vm7, %v935_v39, %v937_v11 }
 0x16a   : > { %1331 = vst [vmem:[#allocation1 + $0x23] ss:$4 sm:$0xff] %v1212_v22 }
 0x170   : > { %1306 = vrot.lane.b32.xlu1 %v1287_v6, %s10401_s8  ;;  %v981_v6 = vpop.permute.xlu1 %980 }
 0x171   : > { %v999_v35 = vsel %vm998_vm9, %v981_v6, %v983_v41 }
 0x178   : > { %1312 = vrot.lane.b32.xlu1 %v1293_v44, %s10401_s8  ;;  %v987_v13 = vpop.permute.xlu1 %986 }
 0x180   : > { %1318 = vrot.lane.b32.xlu1 %v1300_v43, %s10401_s8  ;;  %v10978_v22 = vpop.permute.xlu1 %992  ;;  %v949_v43 = vsel %vm948_vm7, %v931_v10, %v933_v24  ;;  %v10994_v10 = vpop.permute.xlu0 %1040 }
 0x181   : > { %v1058_v40 = vsel %vm467_vm1, %v10607_v28, %v949_v43 }
 0x182   : > { %v10974_v9 = vpop.permute.xlu2 %828  ;;  %v1076_v24 = vsel %vm484_vm3, %v1058_v40, %v999_v35  ;;  %v627_v40 = vsel %vm358_vm0, %v10814_v45, %v10808_v52  ;;  %v1001_v35 = vsel %vm998_vm9, %v985_v12, %v987_v13 }
 0x18a   : > { %v1033_v44 = vpop.permute.xlu2 %1032 }
 0x18b   : > { %v1050_v58 = vsel %vm1048_vm8, %v1033_v44, %v1035_v0 }
 0x192   : > { %v1039_v46 = vpop.permute.xlu2 %1038 }
 0x19a   : > { %v10980_v57 = vpop.permute.xlu1 %838 }
 0x19b   : > { %14869 = vst [vmem:[#allocation31_spill] sm:$0xff] %v10980_v57  ;;  %v1078_v57 = vsel %vm484_vm3, %v1060_v2, %v1000_v16 }
 0x19c   : > { %v1096_v33 = vsel %vm501_vm5, %v1078_v57, %v1050_v58  ;;  %v626_v57 = vsel %vm358_vm0, %v10802_v53, %v10814_v45  ;;  %v1062_v58 = vsel %vm467_vm1, %v10611_v30, %v951_v49  ;;  %v1002_v53 = vsel %vm998_vm9, %v987_v13, %v10966_v61 }
 0x19d   : > { %v1121_v16 = vunpack.c.l.b16 %v1096_v33  ;;  %v1130_v2 = vunpack.c.h.b16 %v1096_v33  ;;  %v1064_v33 = vsel %vm467_vm1, %v10613_v31, %v952_v50  ;;  %v11021_v52 = vsel %vm467_vm1, %v10551_v47, %v626_v57 }
 0x19e   : > { %v11025_v45 = vsel %vm467_vm1, %v10553_v48, %v627_v40  ;;  %v1074_v30 = vsel %vm467_vm1, %v10621_v37, %v10955_v59  ;;  %v956_v13 = vsel %vm948_vm7, %v10944_v34, %v10955_v59  ;;  %v954_v47 = vsel %vm948_vm7, %v10940_v25, %v10957_v51 }
 0x19f   : > { %v955_v48 = vsel %vm948_vm7, %v10957_v51, %v10944_v34  ;;  %v1080_v37 = vsel %vm484_vm3, %v1062_v58, %v1001_v35  ;;  %v1082_v12 = vsel %vm484_vm3, %v1064_v33, %v1002_v53  ;;  %v1003_v59 = vsel %vm998_vm9, %v10966_v61, %v10972_v42  ;;  %v1047_v51 = vpop.permute.xlu0 %1046  ;;  %v14872_v58 = vld [vmem:[#allocation9_spill] sm:$0xff] }
 0x1a0   : > { %v1006_v61 = vsel %vm998_vm9, %v10970_v32, %v10976_v19  ;;  %v1004_v57 = vsel %vm998_vm9, %v10972_v42, %v10978_v22  ;;  %v1070_v33 = vsel %vm467_vm1, %v14872_v58, %v955_v48  ;;  %v676_v42 = vsel %vm675_vm6, %v10821_v15, %v10827_v20  ;;  %v11098_v48 = vld.sshfl [vmem:[#allocation1] sm:$0xff pattern:$0x73625140] }
 0x1a1   : > { %v677_v53 = vsel %vm675_vm6, %v10827_v20, %v10825_v63  ;;  %v725_v15 = vsel %vm458_vm4, %v10837_v4, %v10839_v14 }
 0x1a2   : > { %v1031_v56 = vpop.permute.xlu1 %1030 }
 0x1a3   : > { %v1049_v29 = vsel %vm1048_vm8, %v1031_v56, %v1033_v44  ;;  %v953_v56 = vsel %vm948_vm7, %v10929_v7, %v10940_v25  ;;  %v1092_v25 = vsel %vm484_vm3, %v1074_v30, %v10976_v19  ;;  %v1045_v44 = vpop.permute.xlu2 %1044  ;;  %v1005_v19 = vsel %vm998_vm9, %v10978_v22, %v10970_v32  ;;  %v11088_v32 = vld.sshfl [vmem:[#allocation1 + $0x18] sm:$0xff pattern:$0x73625140] }
 0x1a4   : > { %v1094_v28 = vsel %vm501_vm5, %v1076_v24, %v1049_v29  ;;  %v1066_v31 = vsel %vm467_vm1, %v10642_v55, %v953_v56  ;;  %v1056_v40 = vsel %vm1048_vm8, %v1045_v44, %v1047_v51  ;;  %v726_v22 = vsel %vm458_vm4, %v10839_v14, %v10841_v8 }
 0x1a5   : > { %v1120_v41 = vunpack.c.l.b16 %v1094_v28  ;;  %v1129_v6 = vunpack.c.h.b16 %v1094_v28  ;;  %v1084_v35 = vsel %vm484_vm3, %v1066_v31, %v1003_v59  ;;  %v11086_v31 = vld.sshfl [vmem:[#allocation1 + $0x10] sm:$0xff pattern:$0x73625140] }
 0x1a7   : > { %v1138_v39 = vpack.c.b16 %v1121_v16, %v1120_v41  ;;  %v11010_v11 = vpack.c.b16 %v1130_v2, %v1129_v6  ;;  %v14871_v6 = vld [vmem:[#allocation8_spill] sm:$0xff]  ;;  %v1053_v2 = vsel %vm1048_vm8, %v1039_v46, %v10994_v10 }
 0x1a8   : > { %v1068_v16 = vsel %vm467_vm1, %v14871_v6, %v954_v47 }
 0x1a9   : > { %1148 = vrot.lane.b32.xlu1 %v1138_v39, %s10408_s15  ;;  %v1086_v63 = vsel %vm484_vm3, %v1068_v16, %v1004_v57 }
 0x1aa   : > { %v1037_v50 = vpop.permute.xlu1 %1036 }
 0x1ab   : > { %v1051_v7 = vsel %vm1048_vm8, %v1035_v0, %v1037_v50  ;;  %v1052_v55 = vsel %vm1048_vm8, %v1037_v50, %v1039_v46  ;;  %v14870_v0 = vld [vmem:[#allocation10_spill] sm:$0xff]  ;;  %v11075_v46 = vsel %vm501_vm5, %v1092_v25, %v1047_v51  ;;  %v11100_v50 = vld.sshfl [vmem:[#allocation1 + $0x8] sm:$0xff pattern:$0x73625140] }
 0x1ac   : > { %v1098_v43 = vsel %vm501_vm5, %v1080_v37, %v1051_v7  ;;  %v1100_v34 = vsel %vm501_vm5, %v1082_v12, %v1052_v55  ;;  %v1072_v41 = vsel %vm467_vm1, %v14870_v0, %v956_v13  ;;  %v1102_v13 = vsel %vm501_vm5, %v1084_v35, %v1053_v2  ;;  %1348 = vst [vmem:[#allocation1 + $0x3] ss:$4 sm:$0xff] %v10782_v54 }
 0x1ad   : > { %v1131_v24 = vunpack.c.h.b16 %v1098_v43  ;;  %v1132_v29 = vunpack.c.h.b16 %v1100_v34  ;;  %v1122_v49 = vunpack.c.l.b16 %v1098_v43  ;;  %v1123_v28 = vunpack.c.l.b16 %v1100_v34 }
 0x1ae   : > { %v1090_v30 = vsel %vm484_vm3, %v1072_v41, %v1006_v61  ;;  %v1088_v37 = vsel %vm484_vm3, %v1070_v33, %v1005_v19  ;;  %v1137_v7 = vunpack.c.h.b16 %v11075_v46  ;;  %v1133_v55 = vunpack.c.h.b16 %v1102_v13 }
 0x1af   : > { %v1144_v56 = vpack.c.b16 %v1132_v29, %v1131_v24  ;;  %v11066_v39 = vpack.c.b16 %v1123_v28, %v1122_v49  ;;  %v1108_v20 = vsel %vm501_vm5, %v1090_v30, %v1056_v40  ;;  %v1124_v59 = vunpack.c.l.b16 %v1102_v13 }
 0x1b0   : > { %v1136_v51 = vunpack.c.h.b16 %v1108_v20  ;;  %v752_v24 = vsel %vm484_vm3, %v11021_v52, %v676_v42  ;;  %v1147_v0 = vpack.c.b16 %v1137_v7, %v1137_v7  ;;  %v1127_v40 = vunpack.c.l.b16 %v1108_v20 }
 0x1b1   : > { %1160 = vrot.lane.b32.xlu1 %v1144_v56, %s10408_s15  ;;  %v632_v35 = vsel %vm358_vm0, %v10790_v62, %v10804_v21  ;;  %v633_v19 = vsel %vm358_vm0, %v10804_v21, %v10818_v60  ;;  %v682_v30 = vsel %vm675_vm6, %v10833_v5, %v10835_v3  ;;  %v732_v13 = vsel %vm458_vm4, %v10931_v38, %v10902_v17  ;;  %v14874_v60 = vld [vmem:[#allocation7_spill] sm:$0xff]  ;;  %v11162_v5 = vld [vmem:[%s10484_s29 + $0x10] sm:$0x3] }
 0x1b2   : > { %v1043_v47 = vpop.permute.xlu1 %1042  ;;  %v731_v62 = vsel %vm458_vm4, %v10879_v27, %v10931_v38 }
 0x1b3   : > { %v1054_v12 = vsel %vm1048_vm8, %v10994_v10, %v1043_v47  ;;  %v1055_v8 = vsel %vm1048_vm8, %v1043_v47, %v1045_v44  ;;  %v754_v10 = vsel %vm484_vm3, %v11025_v45, %v677_v53  ;;  %v770_v44 = vsel %vm501_vm5, %v752_v24, %v725_v15  ;;  %v1349_v33 = vld.sshfl [vmem:[#allocation1] sm:$0xff pattern:$0x73625140]  ;;  %v14878_v24 = vld [vmem:[#allocation22_spill] sm:$0xff] }
 0x1b4   : > { %v1104_v4 = vsel %vm501_vm5, %v1086_v63, %v1054_v12  ;;  %v1106_v14 = vsel %vm501_vm5, %v1088_v37, %v1055_v8  ;;  %v772_v28 = vsel %vm501_vm5, %v754_v10, %v726_v22  ;;  %v796_v41 = vunpack.c.l.b16 %v770_v44  ;;  %1538 = vst [vmem:[#allocation1] ss:$4 sm:$0xff] %v10491_v1  ;;  %v14873_v22 = vld [vmem:[#allocation6_spill] sm:$0xff] }
 0x1b5   : > { %v1134_v25 = vunpack.c.h.b16 %v1104_v4  ;;  %v1125_v43 = vunpack.c.l.b16 %v1104_v4  ;;  %v1135_v34 = vunpack.c.h.b16 %v1106_v14  ;;  %v846_v45 = vrot.slane %v10974_v9, 4  ;;  %v14879_v10 = vld [vmem:[#allocation26_spill] sm:$0xff] }
 0x1b6   : > { %v797_v16 = vunpack.c.l.b16 %v772_v28  ;;  %v1126_v61 = vunpack.c.l.b16 %v1106_v14  ;;  %v805_v42 = vunpack.c.h.b16 %v770_v44  ;;  %v806_v53 = vunpack.c.h.b16 %v772_v28  ;;  %v1342_v14 = vld.sshfl [vmem:[#allocation1 + $0x28] sm:$0xff pattern:$0x73625140] }
 0x1b7   : > { %v1145_v29 = vpack.c.b16 %v1134_v25, %v1133_v55  ;;  %v1140_v54 = vpack.c.b16 %v1125_v43, %v1124_v59  ;;  %v11115_v49 = vpack.c.b16 %v1136_v51, %v1135_v34  ;;  %v746_v21 = vsel %vm467_vm1, %v14873_v22, %v632_v35  ;;  %v14876_v34 = vld [vmem:[#allocation17_spill] sm:$0xff]  ;;  %v14877_v51 = vld [vmem:[#allocation23_spill] sm:$0xff]  ;;  %v1346_v35 = vld.sshfl [vmem:[#allocation1 + $0x38] sm:$0xff pattern:$0x73625140] }
 0x1b8   : > { %v814_v56 = vpack.c.b16 %v797_v16, %v796_v41  ;;  %v1141_v58 = vpack.c.b16 %v1127_v40, %v1126_v61  ;;  %v748_v15 = vsel %vm467_vm1, %v14874_v60, %v633_v19  ;;  %v764_v63 = vsel %vm484_vm3, %v746_v21, %v682_v30  ;;  %v14883_v41 = vld [vmem:[#allocation29_spill] sm:$0xff]  ;;  %v14884_v61 = vld [vmem:[#allocation28_spill] sm:$0xff] }
 0x1b9   : > { %1162 = vrot.lane.b32.xlu2 %v1145_v29, %s10408_s15  ;;  %1152 = vrot.lane.b32.xlu0 %v1140_v54, %s10408_s15  ;;  %v819_v20 = vpack.c.b16 %v806_v53, %v805_v42  ;;  %v782_v17 = vsel %vm501_vm5, %v764_v63, %v731_v62  ;;  %v813_v12 = vunpack.c.h.b16 %v10915_v23  ;;  %v14875_v23 = vld [vmem:[#allocation16_spill] sm:$0xff]  ;;  %v14881_v54 = vld [vmem:[#allocation25_spill] sm:$0xff]  ;;  %v1128_v40 = vunpack.c.l.b16 %v11075_v46  ;;  %v14887_v62 = vld [vmem:[#allocation31_spill] sm:$0xff] }
 0x1ba   : > { %1166 = vrot.lane.b32.xlu1 %v1147_v0, %s10408_s15  ;;  %v11121_v52 = vpop.permute.xlu1 %826  ;;  %v811_v8 = vunpack.c.h.b16 %v782_v17  ;;  %v14880_v29 = vld [vmem:[#allocation24_spill] sm:$0xff]  ;;  %v14882_v0 = vld [vmem:[#allocation27_spill] sm:$0xff]  ;;  %v14886_v19 = vld [vmem:[#allocation5_spill] sm:$0xff]  ;;  %v851_v22 = vrot.slane %v14887_v62, 4 }
 0x1bb   : > { %v845_v6 = vrot.slane %v11121_v52, 4  ;;  %v11169_v27 = vld.sshfl [vmem:[#allocation1] sm:$0xff pattern:$0x73625140] }
 0x1bc   : > { %v11171_v38 = vld.sshfl [vmem:[#allocation1 + $0x8] sm:$0xff pattern:$0x73625140]  ;;  %v11175_v47 = vld.sshfl [vmem:[#allocation1 + $0x10] sm:$0xff pattern:$0x73625140] }
 0x1bd   : > { %v858_v2 = vsel %vm484_vm3, %v845_v6, %v846_v45  ;;  %v11177_v37 = vld.sshfl [vmem:[#allocation1 + $0x18] sm:$0xff pattern:$0x73625140] }
 0x1be   : > { %v859_v57 = vsel %vm856_vm10, %v11121_v52, %v858_v2  ;;  %1551 = vst [vmem:[#allocation1] ss:$4 sm:$0xff] %v11162_v5 }
 0x1bf   : > { %881 = vst [vmem:[#allocation2 + $0x48] sm:$0xff] %v859_v57  ;;  %v14885_v57 = vld [vmem:[#allocation30_spill] sm:$0xff] }
 0x1c1   : > { %824 = vrot.lane.b32.xlu0 %v814_v56, %s10407_s14  ;;  %1253 = vrot.lane.b32.xlu2 %v10909_v26, %s10400_s30  ;;  %v683_v26 = vsel %vm675_vm6, %v10835_v3, %v10831_v36  ;;  %v1142_v56 = vpack.c.b16 %v1128_v40, %v1128_v40 }
 0x1c2   : > { %1154 = vrot.lane.b32.xlu1 %v1141_v58, %s10408_s15  ;;  %v766_v36 = vsel %vm484_vm3, %v748_v15, %v683_v26  ;;  %v11184_v59 = vpop.permute.xlu1 %832  ;;  %v1344_v58 = vld.sshfl [vmem:[#allocation1 + $0x30] sm:$0xff pattern:$0x73625140] }
 0x1c3   : > { %v784_v3 = vsel %vm501_vm5, %v766_v36, %v732_v13 }
 0x1c4   : > { %v812_v7 = vunpack.c.h.b16 %v784_v3  ;;  %v803_v55 = vunpack.c.l.b16 %v784_v3 }
 0x1c6   : > { %v822_v4 = vpack.c.b16 %v812_v7, %v811_v8 }
 0x1c9   : > { %836 = vrot.lane.b32.xlu0 %v10873_v18, %s10407_s14  ;;  %834 = vrot.lane.b32.xlu2 %v819_v20, %s10407_s14  ;;  %v823_v18 = vpack.c.b16 %v813_v12, %v813_v12 }
 0x1ca   : > { %1355 = vrot.lane.b32.xlu1 %v11086_v31, %s10402_s9  ;;  %v802_v31 = vunpack.c.l.b16 %v782_v17  ;;  %v11190_v43 = vpop.permute.xlu1 %1257 }
 0x1cc   : > { %v817_v25 = vpack.c.b16 %v803_v55, %v802_v31 }
 0x1d1   : > { %842 = vrot.lane.b32.xlu0 %v823_v18, %s10407_s14  ;;  %840 = vrot.lane.b32.xlu2 %v822_v4, %s10407_s14 }
 0x1d2   : > { %1361 = vrot.lane.b32.xlu1 %v1342_v14, %s10402_s9  ;;  %v11200_v44 = vpop.permute.xlu1 %1263 }
 0x1d9   : > { %830 = vrot.lane.b32.xlu0 %v817_v25, %s10407_s14  ;;  %1259 = vrot.lane.b32.xlu2 %v14875_v23, %s10400_s30 }
 0x1da   : > { %1367 = vrot.lane.b32.xlu1 %v1349_v33, %s10402_s9  ;;  %v11206_v28 = vpop.permute.xlu1 %1269  ;;  %v1340_v33 = vld.sshfl [vmem:[#allocation1 + $0x20] sm:$0xff pattern:$0x73625140] }
 0x1db   : > { %1541 = vst [vmem:[#allocation1 + $0x20] ss:$4 sm:$0xff] %v14886_v19 }
 0x1e1   : > { %1255 = vrot.lane.b32.xlu0 %v14876_v34, %s10400_s30  ;;  %1265 = vrot.lane.b32.xlu2 %v14877_v51, %s10400_s30 }
 0x1e2   : > { %v11212_v16 = vpop.permute.xlu1 %1306 }
 0x1e9   : > { %1261 = vrot.lane.b32.xlu0 %v14878_v24, %s10400_s30  ;;  %1302 = vrot.lane.b32.xlu2 %v14879_v10, %s10401_s8 }
 0x1ea   : > { %v11218_v2 = vpop.permute.xlu1 %1312 }
 0x1f1   : > { %1267 = vrot.lane.b32.xlu0 %v14880_v29, %s10400_s30  ;;  %1308 = vrot.lane.b32.xlu2 %v14881_v54, %s10401_s8 }
 0x1f9   : > { %1304 = vrot.lane.b32.xlu0 %v14882_v0, %s10401_s8  ;;  %1314 = vrot.lane.b32.xlu2 %v14883_v41, %s10401_s8 }
 0x201   : > { %1310 = vrot.lane.b32.xlu0 %v14884_v61, %s10401_s8  ;;  %1351 = vrot.lane.b32.xlu2 %v11098_v48, %s10402_s9  ;;  %v11228_v48 = vpop.permute.xlu1 %1318 }
 0x209   : > { %1316 = vrot.lane.b32.xlu0 %v14885_v57, %s10401_s8  ;;  %1150 = vrot.lane.b32.xlu2 %v11066_v39, %s10408_s15  ;;  %v848_v57 = vrot.slane %v11184_v59, 4 }
 0x211   : > { %1158 = vrot.lane.b32.xlu0 %v11010_v11, %s10408_s15  ;;  %1156 = vrot.lane.b32.xlu2 %v1142_v56, %s10408_s15 }
 0x213   : > { %v11231_v42 = vpop.permute.xlu2 %1162 }
 0x214   : > { %v1175_v26 = vrot.slane %v11231_v42, 4 }
 0x219   : > { %1164 = vrot.lane.b32.xlu0 %v11115_v49, %s10408_s15  ;;  %1357 = vrot.lane.b32.xlu2 %v11088_v32, %s10402_s9 }
 0x21b   : > { %v11237_v39 = vpop.permute.xlu2 %1253  ;;  %v11239_v46 = vpop.permute.xlu1 %1148 }
 0x221   : > { %1353 = vrot.lane.b32.xlu0 %v11100_v50, %s10402_s9  ;;  %1363 = vrot.lane.b32.xlu2 %v1344_v58, %s10402_s9 }
 0x223   : > { %v835_v11 = vpop.permute.xlu2 %834  ;;  %v11244_v53 = vpop.permute.xlu1 %1160 }
 0x224   : > { %v1174_v49 = vrot.slane %v11244_v53, 4  ;;  %v849_v25 = vrot.slane %v835_v11, 4 }
 0x226   : > { %v1189_v32 = vsel %vm484_vm3, %v1174_v49, %v1175_v26 }
 0x227   : > { %v1190_v30 = vsel %vm1179_vm11, %v11244_v53, %v1189_v32 }
 0x228   : > { %1208 = vst [vmem:[#allocation2 + $0xa8] sm:$0xff] %v1190_v30 }
 0x229   : > { %1359 = vrot.lane.b32.xlu0 %v1340_v33, %s10402_s9 }
 0x22b   : > { %v1153_v50 = vpop.permute.xlu0 %1152  ;;  %v841_v13 = vpop.permute.xlu2 %840 }
 0x22c   : > { %v852_v21 = vrot.slane %v841_v13, 4  ;;  %v11257_v60 = vpop.permute.xlu1 %1166  ;;  %v1170_v12 = vrot.slane %v1153_v50, 4 }
 0x22e   : > { %v868_v15 = vsel %vm484_vm3, %v851_v22, %v852_v21 }
 0x22f   : > { %v869_v36 = vsel %vm856_vm10, %v14887_v62, %v868_v15 }
 0x230   : > { %886 = vst [vmem:[#allocation2 + $0x70] sm:$0xff] %v869_v36  ;;  %v11303_v36 = vld.sshfl [vmem:[#allocation1] sm:$0xff pattern:$0x73625140] }
 0x231   : > { %1365 = vrot.lane.b32.xlu0 %v1346_v35, %s10402_s9  ;;  %1554 = vst [vmem:[#allocation1 + $0x1] ss:$4 sm:$0xff] %v10491_v1 }
 0x233   : > { %v825_v63 = vpop.permute.xlu0 %824  ;;  %v11263_v20 = vpop.permute.xlu2 %1259 }
 0x234   : > { %v844_v3 = vrot.slane %v825_v63, 4  ;;  %v1155_v17 = vpop.permute.xlu1 %1154 }
 0x235   : > { %v1171_v8 = vrot.slane %v1155_v17, 4 }
 0x236   : > { %v855_v7 = vsel %vm484_vm3, %v844_v3, %v845_v6 }
 0x237   : > { %v857_v18 = vsel %vm856_vm10, %v825_v63, %v855_v7  ;;  %v1183_v4 = vsel %vm484_vm3, %v1170_v12, %v1171_v8 }
 0x238   : > { %880 = vst [vmem:[#allocation2 + $0x40] sm:$0xff] %v857_v18  ;;  %v1184_v14 = vsel %vm1179_vm11, %v1153_v50, %v1183_v4 }
 0x239   : > { %1205 = vst [vmem:[#allocation2 + $0x90] sm:$0xff] %v1184_v14  ;;  %v11308_v14 = vld.sshfl [vmem:[#allocation1 + $0x20] sm:$0xff pattern:$0x73625140] }
 0x23b   : > { %v837_v31 = vpop.permute.xlu0 %836  ;;  %v11271_v55 = vpop.permute.xlu2 %1265 }
 0x23c   : > { %v850_v23 = vrot.slane %v837_v31, 4 }
 0x23e   : > { %v864_v34 = vsel %vm484_vm3, %v849_v25, %v850_v23  ;;  %v866_v51 = vsel %vm484_vm3, %v850_v23, %v851_v22  ;;  %v11314_v25 = vld.sshfl [vmem:[#allocation1 + $0x38] sm:$0xff pattern:$0x73625140] }
 0x23f   : > { %v865_v52 = vsel %vm856_vm10, %v835_v11, %v864_v34  ;;  %v867_v6 = vsel %vm856_vm10, %v837_v31, %v866_v51  ;;  %v1561_v31 = vld.sshfl [vmem:[#allocation1 + $0x10] sm:$0xff pattern:$0x73625140] }
 0x240   : > { %884 = vst [vmem:[#allocation2 + $0x60] sm:$0xff] %v865_v52  ;;  %1580 = vrot.lane.b32.xlu2 %v1561_v31, %s10400_s30 }
 0x241   : > { %885 = vst [vmem:[#allocation2 + $0x68] sm:$0xff] %v867_v6 }
 0x243   : > { %v843_v24 = vpop.permute.xlu0 %842  ;;  %v11277_v10 = vpop.permute.xlu2 %1302 }
 0x244   : > { %v853_v29 = vrot.slane %v843_v24, 4 }
 0x246   : > { %v870_v54 = vsel %vm484_vm3, %v852_v21, %v853_v29  ;;  %v1356_v29 = vpop.permute.xlu1 %1355 }
 0x247   : > { %v871_v0 = vsel %vm856_vm10, %v841_v13, %v870_v54 }
 0x248   : > { %887 = vst [vmem:[#allocation2 + $0x78] sm:$0xff] %v871_v0  ;;  %v1177_v0 = vrot.slane %v11257_v60, 4 }
 0x24b   : > { %v831_v41 = vpop.permute.xlu0 %830  ;;  %v11281_v61 = vpop.permute.xlu2 %1308 }
 0x24c   : > { %v847_v40 = vrot.slane %v831_v41, 4 }
 0x24e   : > { %v860_v56 = vsel %vm484_vm3, %v846_v45, %v847_v40  ;;  %v862_v58 = vsel %vm484_vm3, %v847_v40, %v848_v57  ;;  %v1168_v45 = vrot.slane %v11239_v46, 4 }
 0x24f   : > { %v861_v33 = vsel %vm856_vm10, %v10974_v9, %v860_v56  ;;  %v863_v35 = vsel %vm856_vm10, %v831_v41, %v862_v58 }
 0x250   : > { %882 = vst [vmem:[#allocation2 + $0x50] sm:$0xff] %v861_v33  ;;  %v11341_v33 = vld.sshfl [vmem:[#allocation1 + $0x8] sm:$0xff pattern:$0x73625140] }
 0x251   : > { %883 = vst [vmem:[#allocation2 + $0x58] sm:$0xff] %v863_v35  ;;  %v14888_v35 = vld [vmem:[#allocation11_spill] sm:$0xff] }
 0x253   : > { %v1256_v11 = vpop.permute.xlu0 %1255  ;;  %v11291_v32 = vpop.permute.xlu2 %1314 }
 0x254   : > { %v1271_v56 = vsel %vm358_vm0, %v11237_v39, %v1256_v11  ;;  %v1272_v58 = vsel %vm358_vm0, %v1256_v11, %v11190_v43 }
 0x255   : > { %v1378_v39 = vsel %vm467_vm1, %v14888_v35, %v1271_v56  ;;  %v14893_v56 = vld [vmem:[#allocation14_spill] sm:$0xff] }
 0x25b   : > { %v11293_v30 = vpop.permute.xlu0 %1261  ;;  %v1352_v59 = vpop.permute.xlu2 %1351 }
 0x263   : > { %v11295_v50 = vpop.permute.xlu0 %1267  ;;  %v1151_v13 = vpop.permute.xlu2 %1150 }
 0x264   : > { %v1169_v62 = vrot.slane %v1151_v13, 4 }
 0x266   : > { %v1178_v22 = vsel %vm484_vm3, %v1168_v45, %v1169_v62  ;;  %v1181_v9 = vsel %vm484_vm3, %v1169_v62, %v1170_v12  ;;  %v11310_v12 = vld.sshfl [vmem:[#allocation1 + $0x28] sm:$0xff pattern:$0x73625140]  ;;  %v11350_v62 = vld.sshfl [vmem:[#allocation1] sm:$0xff pattern:$0x73625140] }
 0x267   : > { %v1180_v21 = vsel %vm1179_vm11, %v11239_v46, %v1178_v22  ;;  %v1182_v15 = vsel %vm1179_vm11, %v1151_v13, %v1181_v9  ;;  %v11312_v46 = vld.sshfl [vmem:[#allocation1 + $0x30] sm:$0xff pattern:$0x73625140]  ;;  %v14889_v13 = vld [vmem:[#allocation12_spill] sm:$0xff] }
 0x268   : > { %1203 = vst [vmem:[#allocation2 + $0x80] sm:$0xff] %v1180_v21  ;;  %v1380_v11 = vsel %vm467_vm1, %v14889_v13, %v1272_v58 }
 0x269   : > { %1204 = vst [vmem:[#allocation2 + $0x88] sm:$0xff] %v1182_v15 }
 0x26a   : > { %1556 = vst [vmem:[#allocation1 + $0x21] ss:$4 sm:$0xff] %v14886_v19 }
 0x26b   : > { %v1305_v63 = vpop.permute.xlu0 %1304  ;;  %v1157_v3 = vpop.permute.xlu2 %1156 }
 0x26c   : > { %v1172_v7 = vrot.slane %v1157_v3, 4  ;;  %v1320_v60 = vsel %vm408_vm2, %v11277_v10, %v1305_v63  ;;  %v11352_v10 = vld.sshfl [vmem:[#allocation1 + $0x18] sm:$0xff pattern:$0x73625140]  ;;  %v1362_v3 = vpop.permute.xlu1 %1361 }
 0x26d   : > { %v1396_v22 = vsel %vm484_vm3, %v1378_v39, %v1320_v60  ;;  %1573 = vst [vmem:[#allocation1 + $0x1] ss:$4 sm:$0xff] %v11162_v5  ;;  %v14894_v60 = vld [vmem:[#allocation18_spill] sm:$0xff] }
 0x26e   : > { %v1185_v18 = vsel %vm484_vm3, %v1171_v8, %v1172_v7 }
 0x26f   : > { %v1186_v4 = vsel %vm1179_vm11, %v1155_v17, %v1185_v18 }
 0x270   : > { %1206 = vst [vmem:[#allocation2 + $0x98] sm:$0xff] %v1186_v4  ;;  %v1322_v4 = vsel %vm408_vm2, %v11212_v16, %v11281_v61 }
 0x271   : > { %v1567_v34 = vld.sshfl [vmem:[#allocation1 + $0x28] sm:$0xff pattern:$0x73625140] }
 0x272   : > { %1586 = vrot.lane.b32.xlu2 %v1567_v34, %s10400_s30  ;;  %v14890_v34 = vld [vmem:[#allocation13_spill] sm:$0xff] }
 0x273   : > { %v1311_v23 = vpop.permute.xlu0 %1310  ;;  %v1358_v24 = vpop.permute.xlu2 %1357 }
 0x27b   : > { %v11319_v8 = vpop.permute.xlu0 %1316  ;;  %v1364_v21 = vpop.permute.xlu2 %1363 }
 0x283   : > { %v1159_v17 = vpop.permute.xlu0 %1158 }
 0x284   : > { %v1173_v51 = vrot.slane %v1159_v17, 4 }
 0x286   : > { %v1187_v52 = vsel %vm484_vm3, %v1173_v51, %v1174_v49  ;;  %v1371_v51 = vsel %vm458_vm4, %v1356_v29, %v1358_v24 }
 0x287   : > { %v1188_v6 = vsel %vm1179_vm11, %v1159_v17, %v1187_v52  ;;  %v1374_v52 = vsel %vm458_vm4, %v1362_v3, %v1364_v21 }
 0x288   : > { %1207 = vst [vmem:[#allocation2 + $0xa0] sm:$0xff] %v1188_v6  ;;  %v14891_v6 = vld [vmem:[#allocation19_spill] sm:$0xff] }
 0x28b   : > { %v1165_v54 = vpop.permute.xlu0 %1164 }
 0x28c   : > { %v1176_v41 = vrot.slane %v1165_v54, 4 }
 0x28e   : > { %v1191_v57 = vsel %vm484_vm3, %v1175_v26, %v1176_v41  ;;  %v1193_v40 = vsel %vm484_vm3, %v1176_v41, %v1177_v0  ;;  %v1321_v26 = vsel %vm408_vm2, %v1305_v63, %v11212_v16  ;;  %v1276_v63 = vsel %vm358_vm0, %v11200_v44, %v11271_v55 }
 0x28f   : > { %v1192_v53 = vsel %vm1179_vm11, %v11231_v42, %v1191_v57  ;;  %v1194_v49 = vsel %vm1179_vm11, %v1165_v54, %v1193_v40  ;;  %v1273_v42 = vsel %vm358_vm0, %v11190_v43, %v11263_v20  ;;  %v1398_v9 = vsel %vm484_vm3, %v1380_v11, %v1321_v26 }
 0x290   : > { %1209 = vst [vmem:[#allocation2 + $0xb0] sm:$0xff] %v1192_v53  ;;  %v1382_v17 = vsel %vm467_vm1, %v14890_v34, %v1273_v42  ;;  %v1388_v54 = vsel %vm467_vm1, %v14891_v6, %v1276_v63  ;;  %v1274_v16 = vsel %vm358_vm0, %v11263_v20, %v11293_v30  ;;  %v1275_v0 = vsel %vm358_vm0, %v11293_v30, %v11200_v44  ;;  %v14892_v44 = vld [vmem:[#allocation15_spill] sm:$0xff] }
 0x291   : > { %1210 = vst [vmem:[#allocation2 + $0xb8] sm:$0xff] %v1194_v49  ;;  %v1400_v57 = vsel %vm484_vm3, %v1382_v17, %v1322_v4  ;;  %v1324_v53 = vsel %vm408_vm2, %v1311_v23, %v11218_v2  ;;  %v1394_v30 = vsel %vm467_vm1, %v14892_v44, %v11206_v28  ;;  %v1384_v58 = vsel %vm467_vm1, %v14893_v56, %v1274_v16  ;;  %v1368_v4 = vpop.permute.xlu1 %1367  ;;  %v1574_v44 = vld.sshfl [vmem:[#allocation1] sm:$0xff pattern:$0x73625140] }
 0x292   : > { %v11395_v49 = vsel %vm501_vm5, %v1400_v57, %v1371_v51  ;;  %v1412_v63 = vsel %vm484_vm3, %v1394_v30, %v11228_v48  ;;  %v1277_v34 = vsel %vm358_vm0, %v11271_v55, %v11295_v50  ;;  %v1278_v17 = vsel %vm358_vm0, %v11295_v50, %v11206_v28  ;;  %v11437_v55 = vld [vmem:[%s10484_s29 + $0xa] sm:$0xff] }
 0x293   : > { %v1354_v45 = vpop.permute.xlu0 %1353  ;;  %v1327_v6 = vsel %vm408_vm2, %v11319_v8, %v11228_v48  ;;  %v14896_v50 = vld [vmem:[#allocation21_spill] sm:$0xff]  ;;  %v1565_v48 = vld.sshfl [vmem:[#allocation1 + $0x20] sm:$0xff pattern:$0x73625140] }
 0x294   : > { %v1369_v15 = vsel %vm458_vm4, %v1352_v59, %v1354_v45  ;;  %v1370_v43 = vsel %vm458_vm4, %v1354_v45, %v1356_v29  ;;  %v1325_v59 = vsel %vm408_vm2, %v11218_v2, %v11291_v32  ;;  %v1323_v29 = vsel %vm408_vm2, %v11281_v61, %v1311_v23 }
 0x295   : > { %v11363_v7 = vsel %vm501_vm5, %v1396_v22, %v1369_v15  ;;  %v11366_v18 = vsel %vm501_vm5, %v1398_v9, %v1370_v43  ;;  %v1406_v40 = vsel %vm484_vm3, %v1388_v54, %v1325_v59  ;;  %v1386_v61 = vsel %vm467_vm1, %v14894_v60, %v1275_v0  ;;  %v11434_v0 = vld [vmem:[%s10484_s29 + $0x2] sm:$0xff] }
 0x296   : > { %v1440_v5 = vunpack.c.l.b16 %v11363_v7  ;;  %v1441_v31 = vunpack.c.l.b16 %v11366_v18  ;;  %v1424_v20 = vsel %vm501_vm5, %v1406_v40, %v1374_v52  ;;  %v1402_v2 = vsel %vm484_vm3, %v1384_v58, %v1323_v29  ;;  %1604 = vst [vmem:[#allocation1 + $0x2] ss:$4 sm:$0xff] %v11434_v0 }
 0x297   : > { %v1404_v23 = vsel %vm484_vm3, %v1386_v61, %v1324_v53  ;;  %v1454_v11 = vunpack.c.h.b16 %v1424_v20  ;;  %v1451_v45 = vunpack.c.h.b16 %v11395_v49  ;;  %v1445_v15 = vunpack.c.l.b16 %v1424_v20  ;;  %v1569_v20 = vld.sshfl [vmem:[#allocation1 + $0x30] sm:$0xff pattern:$0x73625140] }
 0x298   : > { %v1458_v41 = vpack.c.b16 %v1441_v31, %v1440_v5  ;;  %v1430_v5 = vsel %vm501_vm5, %v1412_v63, %v1368_v4  ;;  %v1326_v52 = vsel %vm408_vm2, %v11291_v32, %v11319_v8  ;;  %v1392_v57 = vsel %vm467_vm1, %v14896_v50, %v1278_v17  ;;  %v1571_v8 = vld.sshfl [vmem:[#allocation1 + $0x38] sm:$0xff pattern:$0x73625140] }
 0x299   : > { %v1457_v51 = vunpack.c.h.b16 %v1430_v5  ;;  %v1410_v40 = vsel %vm484_vm3, %v1392_v57, %v1327_v6  ;;  %1607 = vst [vmem:[#allocation1 + $0x22] ss:$4 sm:$0xff] %v11437_v55  ;;  %v1442_v61 = vunpack.c.l.b16 %v11395_v49 }
 0x29a   : > { %1468 = vrot.lane.b32.xlu2 %v1458_v41, %s10409_s16  ;;  %v14895_v41 = vld [vmem:[#allocation20_spill] sm:$0xff] }
 0x29b   : > { %v1360_v26 = vpop.permute.xlu0 %1359  ;;  %v1390_v28 = vsel %vm467_vm1, %v14895_v41, %v1277_v34  ;;  %v1467_v29 = vpack.c.b16 %v1457_v51, %v1457_v51 }
 0x29c   : > { %v1372_v42 = vsel %vm458_vm4, %v1358_v24, %v1360_v26  ;;  %v1373_v35 = vsel %vm458_vm4, %v1360_v26, %v1362_v3  ;;  %v1408_v32 = vsel %vm484_vm3, %v1390_v28, %v1326_v52 }
 0x29d   : > { %v1420_v39 = vsel %vm501_vm5, %v1402_v2, %v1372_v42  ;;  %v1422_v13 = vsel %vm501_vm5, %v1404_v23, %v1373_v35  ;;  %v1536_v35 = vld [vmem:[%s10484_s29 + $0x12] sm:$0x3] }
 0x29e   : > { %v1453_v22 = vunpack.c.h.b16 %v1422_v13  ;;  %v1444_v9 = vunpack.c.l.b16 %v1422_v13  ;;  %v1452_v43 = vunpack.c.h.b16 %v1420_v39  ;;  %v1443_v60 = vunpack.c.l.b16 %v1420_v39  ;;  %v1614_v13 = vld.sshfl [vmem:[#allocation1 + $0x18] sm:$0xff pattern:$0x73625140] }
 0x2a0   : > { %v1465_v59 = vpack.c.b16 %v1454_v11, %v1453_v22  ;;  %v1460_v24 = vpack.c.b16 %v1445_v15, %v1444_v9  ;;  %v1464_v3 = vpack.c.b16 %v1452_v43, %v1451_v45  ;;  %v1459_v2 = vpack.c.b16 %v1443_v60, %v1442_v61  ;;  %v1610_v11 = vld.sshfl [vmem:[#allocation1 + $0x8] sm:$0xff pattern:$0x73625140]  ;;  %v1612_v45 = vld.sshfl [vmem:[#allocation1 + $0x10] sm:$0xff pattern:$0x73625140] }
 0x2a1   : > { %v1616_v22 = vld.sshfl [vmem:[#allocation1 + $0x20] sm:$0xff pattern:$0x73625140]  ;;  %v1622_v9 = vld.sshfl [vmem:[#allocation1 + $0x38] sm:$0xff pattern:$0x73625140] }
 0x2a2   : > { %1482 = vrot.lane.b32.xlu0 %v1465_v59, %s10409_s16  ;;  %1472 = vrot.lane.b32.xlu1 %v1460_v24, %s10409_s16  ;;  %v1620_v15 = vld.sshfl [vmem:[#allocation1 + $0x30] sm:$0xff pattern:$0x73625140]  ;;  %v1618_v43 = vld.sshfl [vmem:[#allocation1 + $0x28] sm:$0xff pattern:$0x73625140] }
 0x2a3   : > { %1480 = vrot.lane.b32.xlu2 %v1464_v3, %s10409_s16  ;;  %v1366_v31 = vpop.permute.xlu0 %1365  ;;  %1657 = vst [vmem:[#allocation1 + $0x23] ss:$4 sm:$0xff] %v11437_v55  ;;  %v11479_v3 = vpop.permute.xlu2 %1580 }
 0x2a4   : > { %v1375_v54 = vsel %vm458_vm4, %v1364_v21, %v1366_v31  ;;  %v1376_v16 = vsel %vm458_vm4, %v1366_v31, %v1368_v4 }
 0x2a5   : > { %v1426_v21 = vsel %vm501_vm5, %v1408_v32, %v1375_v54  ;;  %v1428_v53 = vsel %vm501_vm5, %v1410_v40, %v1376_v16  ;;  %v11494_v54 = vld [vmem:[%s10484_s29 + $0x12] sm:$0x3] }
 0x2a6   : > { %v1446_v30 = vunpack.c.l.b16 %v1426_v21  ;;  %v1447_v56 = vunpack.c.l.b16 %v1428_v53  ;;  %v1455_v23 = vunpack.c.h.b16 %v1426_v21  ;;  %v1456_v42 = vunpack.c.h.b16 %v1428_v53 }
 0x2a8   : > { %v1461_v58 = vpack.c.b16 %v1447_v56, %v1446_v30 }
 0x2aa   : > { %1578 = vrot.lane.b32.xlu1 %v11341_v33, %s10400_s30  ;;  %1576 = vrot.lane.b32.xlu0 %v11350_v62, %s10400_s30  ;;  %v1449_v33 = vunpack.c.h.b16 %v11363_v7  ;;  %v1450_v62 = vunpack.c.h.b16 %v11366_v18  ;;  %v1608_v7 = vld.sshfl [vmem:[#allocation1] sm:$0xff pattern:$0x73625140]  ;;  %v1466_v18 = vpack.c.b16 %v1456_v42, %v1455_v23  ;;  %v1672_v31 = vld.sshfl [vmem:[#allocation1 + $0x38] sm:$0xff pattern:$0x73625140] }
 0x2ab   : > { %1486 = vrot.lane.b32.xlu2 %v1467_v29, %s10409_s16  ;;  %1625 = vst [vmem:[#allocation1 + $0x2] ss:$4 sm:$0xff] %v1536_v35  ;;  %v1670_v34 = vld.sshfl [vmem:[#allocation1 + $0x30] sm:$0xff pattern:$0x73625140] }
 0x2ac   : > { %v1463_v26 = vpack.c.b16 %v1450_v62, %v1449_v33  ;;  %v1668_v17 = vld.sshfl [vmem:[#allocation1 + $0x28] sm:$0xff pattern:$0x73625140] }
 0x2b2   : > { %1584 = vrot.lane.b32.xlu1 %v1565_v48, %s10400_s30  ;;  %1582 = vrot.lane.b32.xlu0 %v11352_v10, %s10400_s30  ;;  %v1448_v10 = vunpack.c.l.b16 %v1430_v5  ;;  %v1626_v49 = vld.sshfl [vmem:[#allocation1] sm:$0xff pattern:$0x73625140] }
 0x2b3   : > { %1474 = vrot.lane.b32.xlu2 %v1461_v58, %s10409_s16  ;;  %1655 = vst [vmem:[#allocation1 + $0x3] ss:$4 sm:$0xff] %v11434_v0  ;;  %v1666_v5 = vld.sshfl [vmem:[#allocation1 + $0x20] sm:$0xff pattern:$0x73625140] }
 0x2b4   : > { %v1462_v39 = vpack.c.b16 %v1448_v10, %v1448_v10  ;;  %1864 = vst [vmem:[#allocation1 + $0x20] ss:$4 sm:$0xff] %v11437_v55 }
 0x2ba   : > { %1478 = vrot.lane.b32.xlu1 %v1463_v26, %s10409_s16  ;;  %1470 = vrot.lane.b32.xlu0 %v1459_v2, %s10409_s16  ;;  %v1660_v63 = vld.sshfl [vmem:[#allocation1 + $0x8] sm:$0xff pattern:$0x73625140]  ;;  %v1658_v4 = vld.sshfl [vmem:[#allocation1] sm:$0xff pattern:$0x73625140] }
 0x2bb   : > { %1592 = vrot.lane.b32.xlu2 %v1574_v44, %s10400_s30  ;;  %v1664_v59 = vld.sshfl [vmem:[#allocation1 + $0x18] sm:$0xff pattern:$0x73625140]  ;;  %v1662_v24 = vld.sshfl [vmem:[#allocation1 + $0x10] sm:$0xff pattern:$0x73625140] }
 0x2bc   : > { %1674 = vst [vmem:[#allocation1 + $0x3] ss:$4 sm:$0xff] %v1536_v35 }
 0x2c2   : > { %1484 = vrot.lane.b32.xlu1 %v1466_v18, %s10409_s16  ;;  %1476 = vrot.lane.b32.xlu0 %v1462_v39, %s10409_s16 }
 0x2c3   : > { %1632 = vrot.lane.b32.xlu2 %v1612_v45, %s10405_s12  ;;  %v1675_v52 = vld.sshfl [vmem:[#allocation1] sm:$0xff pattern:$0x73625140] }
 0x2c4   : > { %1861 = vst [vmem:[#allocation1] ss:$4 sm:$0xff] %v11434_v0 }
 0x2ca   : > { %1590 = vrot.lane.b32.xlu1 %v1571_v8, %s10400_s30  ;;  %1588 = vrot.lane.b32.xlu0 %v1569_v20, %s10400_s30 }
 0x2cb   : > { %1638 = vrot.lane.b32.xlu2 %v1618_v43, %s10405_s12  ;;  %v11496_v16 = vld.sshfl [vmem:[#allocation1] sm:$0xff pattern:$0x73625140]  ;;  %v11498_v41 = vld.sshfl [vmem:[#allocation1 + $0x8] sm:$0xff pattern:$0x73625140] }
 0x2cc   : > { %v11487_v51 = vpop.permute.xlu2 %1586  ;;  %v11500_v28 = vld.sshfl [vmem:[#allocation1 + $0x10] sm:$0xff pattern:$0x73625140]  ;;  %v11502_v50 = vld.sshfl [vmem:[#allocation1 + $0x18] sm:$0xff pattern:$0x73625140] }
 0x2cd   : > { %1874 = vst [vmem:[#allocation1] ss:$4 sm:$0xff] %v11494_v54 }
 0x2d2   : > { %1630 = vrot.lane.b32.xlu1 %v1610_v11, %s10405_s12  ;;  %1628 = vrot.lane.b32.xlu0 %v1608_v7, %s10405_s12 }
 0x2d3   : > { %1644 = vrot.lane.b32.xlu2 %v1626_v49, %s10405_s12 }
 0x2da   : > { %1636 = vrot.lane.b32.xlu1 %v1616_v22, %s10405_s12  ;;  %1634 = vrot.lane.b32.xlu0 %v1614_v13, %s10405_s12 }
 0x2db   : > { %1681 = vrot.lane.b32.xlu2 %v1662_v24, %s10406_s13 }
 0x2e2   : > { %1642 = vrot.lane.b32.xlu1 %v1622_v9, %s10405_s12  ;;  %1640 = vrot.lane.b32.xlu0 %v1620_v15, %s10405_s12 }
 0x2e3   : > { %1687 = vrot.lane.b32.xlu2 %v1668_v17, %s10406_s13 }
 0x2ea   : > { %1679 = vrot.lane.b32.xlu1 %v1660_v63, %s10406_s13  ;;  %1677 = vrot.lane.b32.xlu0 %v1658_v4, %s10406_s13 }
 0x2eb   : > { %1693 = vrot.lane.b32.xlu2 %v1675_v52, %s10406_s13 }
 0x2f2   : > { %1685 = vrot.lane.b32.xlu1 %v1666_v5, %s10406_s13  ;;  %1683 = vrot.lane.b32.xlu0 %v1664_v59, %s10406_s13 }
 0x2f4   : > { %v1469_v6 = vpop.permute.xlu2 %1468 }
 0x2f5   : > { %v1488_v23 = vrot.slane %v1469_v6, 4 }
 0x2fa   : > { %1691 = vrot.lane.b32.xlu1 %v1672_v31, %s10406_s13  ;;  %1689 = vrot.lane.b32.xlu0 %v1670_v34, %s10406_s13 }
 0x2fd   : > { %v1481_v57 = vpop.permute.xlu2 %1480 }
 0x2fe   : > { %v1494_v8 = vrot.slane %v1481_v57, 4 }
 0x305   : > { %v1487_v32 = vpop.permute.xlu2 %1486 }
 0x306   : > { %v1497_v9 = vrot.slane %v1487_v32, 4 }
 0x30d   : > { %v1475_v40 = vpop.permute.xlu2 %1474 }
 0x30e   : > { %v1491_v21 = vrot.slane %v1475_v40, 4 }
 0x314   : > { %v1483_v29 = vpop.permute.xlu0 %1482  ;;  %v1473_v48 = vpop.permute.xlu1 %1472 }
 0x315   : > { %v1495_v53 = vrot.slane %v1483_v29, 4  ;;  %v1490_v20 = vrot.slane %v1473_v48, 4  ;;  %v11511_v35 = vpop.permute.xlu2 %1592 }
 0x317   : > { %v1509_v44 = vsel %vm484_vm3, %v1494_v8, %v1495_v53  ;;  %v1503_v30 = vsel %vm484_vm3, %v1490_v20, %v1491_v21 }
 0x318   : > { %v1510_v56 = vsel %vm1499_vm12, %v1481_v57, %v1509_v44  ;;  %v1504_v58 = vsel %vm1499_vm12, %v1473_v48, %v1503_v30 }
 0x319   : > { %1528 = vst [vmem:[#allocation2 + $0xe8] sm:$0xff] %v1510_v56 }
 0x31a   : > { %1525 = vst [vmem:[#allocation2 + $0xd0] sm:$0xff] %v1504_v58 }
 0x31c   : > { %v1579_v33 = vpop.permute.xlu1 %1578  ;;  %v1577_v62 = vpop.permute.xlu0 %1576 }
 0x31d   : > { %v1633_v24 = vpop.permute.xlu2 %1632 }
 0x324   : > { %v1585_v60 = vpop.permute.xlu1 %1584  ;;  %v1583_v61 = vpop.permute.xlu0 %1582 }
 0x32c   : > { %v1479_v26 = vpop.permute.xlu1 %1478  ;;  %v1471_v2 = vpop.permute.xlu0 %1470 }
 0x32d   : > { %v1493_v42 = vrot.slane %v1479_v26, 4  ;;  %v1489_v10 = vrot.slane %v1471_v2, 4 }
 0x32f   : > { %v1507_v13 = vsel %vm484_vm3, %v1493_v42, %v1494_v8  ;;  %v1498_v11 = vsel %vm484_vm3, %v1488_v23, %v1489_v10  ;;  %v1501_v7 = vsel %vm484_vm3, %v1489_v10, %v1490_v20 }
 0x330   : > { %v1508_v45 = vsel %vm1499_vm12, %v1479_v26, %v1507_v13  ;;  %v1500_v18 = vsel %vm1499_vm12, %v1469_v6, %v1498_v11  ;;  %v1502_v39 = vsel %vm1499_vm12, %v1471_v2, %v1501_v7  ;;  %v1639_v6 = vpop.permute.xlu2 %1638  ;;  %v1598_v11 = vsel %vm358_vm0, %v1585_v60, %v11487_v51 }
 0x331   : > { %1527 = vst [vmem:[#allocation2 + $0xe0] sm:$0xff] %v1508_v45  ;;  %v1597_v7 = vsel %vm358_vm0, %v1583_v61, %v1585_v60 }
 0x332   : > { %1523 = vst [vmem:[#allocation2 + $0xc0] sm:$0xff] %v1500_v18 }
 0x333   : > { %1524 = vst [vmem:[#allocation2 + $0xc8] sm:$0xff] %v1502_v39 }
 0x334   : > { %v1485_v49 = vpop.permute.xlu1 %1484  ;;  %v1477_v22 = vpop.permute.xlu0 %1476 }
 0x335   : > { %v1496_v15 = vrot.slane %v1485_v49, 4  ;;  %v1492_v43 = vrot.slane %v1477_v22, 4 }
 0x337   : > { %v1511_v63 = vsel %vm484_vm3, %v1495_v53, %v1496_v15  ;;  %v1513_v4 = vsel %vm484_vm3, %v1496_v15, %v1497_v9  ;;  %v1505_v59 = vsel %vm484_vm3, %v1491_v21, %v1492_v43 }
 0x338   : > { %v1512_v5 = vsel %vm1499_vm12, %v1483_v29, %v1511_v63  ;;  %v1514_v31 = vsel %vm1499_vm12, %v1485_v49, %v1513_v4  ;;  %v1506_v34 = vsel %vm1499_vm12, %v1475_v40, %v1505_v59  ;;  %v1645_v48 = vpop.permute.xlu2 %1644  ;;  %v1594_v29 = vsel %vm358_vm0, %v1577_v62, %v1579_v33  ;;  %v11554_v49 = vld.sshfl [vmem:[#allocation1] sm:$0xff pattern:$0x73625140] }
 0x339   : > { %1529 = vst [vmem:[#allocation2 + $0xf0] sm:$0xff] %v1512_v5  ;;  %v1595_v40 = vsel %vm358_vm0, %v1579_v33, %v11479_v3  ;;  %v1704_v56 = vsel %vm467_vm1, %v11169_v27, %v1594_v29  ;;  %v1596_v27 = vsel %vm358_vm0, %v11479_v3, %v1583_v61  ;;  %v1712_v4 = vsel %vm467_vm1, %v11308_v14, %v1598_v11  ;;  %v11610_v11 = vld.sshfl [vmem:[#allocation1 + $0x28] sm:$0xff pattern:$0x73625140] }
 0x33a   : > { %1530 = vst [vmem:[#allocation2 + $0xf8] sm:$0xff] %v1514_v31  ;;  %v1706_v58 = vsel %vm467_vm1, %v11171_v38, %v1595_v40  ;;  %v1708_v60 = vsel %vm467_vm1, %v11175_v47, %v1596_v27 }
 0x33b   : > { %1526 = vst [vmem:[#allocation2 + $0xd8] sm:$0xff] %v1506_v34 }
 0x33c   : > { %v11525_v17 = vpop.permute.xlu1 %1590  ;;  %v1589_v52 = vpop.permute.xlu0 %1588  ;;  %1877 = vst [vmem:[#allocation1 + $0x1] ss:$4 sm:$0xff] %v11434_v0 }
 0x33d   : > { %v1599_v45 = vsel %vm358_vm0, %v11487_v51, %v1589_v52  ;;  %v1710_v51 = vsel %vm467_vm1, %v11177_v37, %v1597_v7 }
 0x33e   : > { %v1714_v43 = vsel %vm467_vm1, %v11310_v12, %v1599_v45 }
 0x340   : > { %v1682_v44 = vpop.permute.xlu2 %1681 }
 0x344   : > { %v1631_v57 = vpop.permute.xlu1 %1630  ;;  %v1629_v32 = vpop.permute.xlu0 %1628 }
 0x345   : > { %v1646_v30 = vsel %vm998_vm9, %v1629_v32, %v1631_v57  ;;  %v1722_v26 = vsel %vm484_vm3, %v1704_v56, %v1629_v32  ;;  %v1647_v18 = vsel %vm998_vm9, %v1631_v57, %v1633_v24  ;;  %v1600_v56 = vsel %vm358_vm0, %v1589_v52, %v11525_v17 }
 0x346   : > { %v1724_v42 = vsel %vm484_vm3, %v1706_v58, %v1646_v30  ;;  %v1726_v63 = vsel %vm484_vm3, %v1708_v60, %v1647_v18  ;;  %v1720_v52 = vsel %vm467_vm1, %v11303_v36, %v11511_v35  ;;  %v11616_v18 = vld.sshfl [vmem:[#allocation1 + $0x30] sm:$0xff pattern:$0x73625140] }
 0x348   : > { %v1688_v39 = vpop.permute.xlu2 %1687 }
 0x34c   : > { %v1637_v8 = vpop.permute.xlu1 %1636  ;;  %v1635_v53 = vpop.permute.xlu0 %1634 }
 0x34d   : > { %v1650_v22 = vsel %vm998_vm9, %v1637_v8, %v1639_v6  ;;  %v1648_v9 = vsel %vm998_vm9, %v1633_v24, %v1635_v53  ;;  %v1649_v61 = vsel %vm998_vm9, %v1635_v53, %v1637_v8 }
 0x34e   : > { %v1732_v59 = vsel %vm484_vm3, %v1714_v43, %v1650_v22  ;;  %v1728_v47 = vsel %vm484_vm3, %v1710_v51, %v1648_v9  ;;  %v1730_v31 = vsel %vm484_vm3, %v1712_v4, %v1649_v61  ;;  %v11618_v22 = vld.sshfl [vmem:[#allocation1 + $0x38] sm:$0xff pattern:$0x73625140]  ;;  %v1880_v61 = vld.sshfl [vmem:[#allocation1] sm:$0xff pattern:$0x73625140] }
 0x34f   : > { %v1882_v51 = vld.sshfl [vmem:[#allocation1 + $0x8] sm:$0xff pattern:$0x73625140] }
 0x354   : > { %v1643_v21 = vpop.permute.xlu1 %1642  ;;  %v1641_v20 = vpop.permute.xlu0 %1640 }
 0x355   : > { %v1651_v58 = vsel %vm998_vm9, %v1639_v6, %v1641_v20 }
 0x35c   : > { %v1680_v2 = vpop.permute.xlu1 %1679  ;;  %v1678_v23 = vpop.permute.xlu0 %1677 }
 0x35d   : > { %v1695_v10 = vsel %vm1048_vm8, %v1678_v23, %v1680_v2  ;;  %v11539_v62 = vsel %vm501_vm5, %v1722_v26, %v1678_v23  ;;  %v1696_v3 = vsel %vm1048_vm8, %v1680_v2, %v1682_v44  ;;  %v1652_v26 = vsel %vm998_vm9, %v1641_v20, %v1643_v21 }
 0x35e   : > { %v11542_v33 = vsel %vm501_vm5, %v1724_v42, %v1695_v10  ;;  %v1766_v13 = vunpack.c.l.b16 %v11539_v62  ;;  %v11574_v24 = vsel %vm501_vm5, %v1726_v63, %v1696_v3  ;;  %v1653_v2 = vsel %vm998_vm9, %v1643_v21, %v1645_v48  ;;  %v1694_v10 = vpop.permute.xlu2 %1693 }
 0x35f   : > { %v1767_v38 = vunpack.c.l.b16 %v11542_v33  ;;  %v1768_v53 = vunpack.c.l.b16 %v11574_v24  ;;  %v1738_v48 = vsel %vm484_vm3, %v1720_v52, %v1653_v2  ;;  %v1775_v21 = vunpack.c.h.b16 %v11539_v62 }
 0x360   : > { %v1776_v36 = vunpack.c.h.b16 %v11542_v33 }
 0x361   : > { %v1784_v15 = vpack.c.b16 %v1767_v38, %v1766_v13  ;;  %v1716_v13 = vsel %vm467_vm1, %v11312_v46, %v1600_v56  ;;  %v1884_v38 = vld.sshfl [vmem:[#allocation1 + $0x10] sm:$0xff pattern:$0x73625140] }
 0x362   : > { %v1789_v43 = vpack.c.b16 %v1776_v36, %v1775_v21  ;;  %v11662_v21 = vld [vmem:[%s10484_s29 + $0x12] sm:$0x3] }
 0x363   : > { %1794 = vrot.lane.b32.xlu0 %v1784_v15, %s10410_s17  ;;  %v1886_v15 = vld.sshfl [vmem:[#allocation1 + $0x18] sm:$0xff pattern:$0x73625140] }
 0x364   : > { %v1686_v5 = vpop.permute.xlu1 %1685  ;;  %v1684_v37 = vpop.permute.xlu0 %1683  ;;  %1896 = vst [vmem:[#allocation1 + $0x1] ss:$4 sm:$0xff] %v11494_v54 }
 0x365   : > { %v1699_v12 = vsel %vm1048_vm8, %v1686_v5, %v1688_v39  ;;  %v1697_v34 = vsel %vm1048_vm8, %v1682_v44, %v1684_v37  ;;  %v1698_v57 = vsel %vm1048_vm8, %v1684_v37, %v1686_v5  ;;  %v1601_v44 = vsel %vm358_vm0, %v11525_v17, %v11511_v35 }
 0x366   : > { %v11581_v32 = vsel %vm501_vm5, %v1732_v59, %v1699_v12  ;;  %v1746_v14 = vsel %vm501_vm5, %v1728_v47, %v1697_v34  ;;  %v1748_v8 = vsel %vm501_vm5, %v1730_v31, %v1698_v57  ;;  %v1718_v27 = vsel %vm467_vm1, %v11314_v25, %v1601_v44  ;;  %v11608_v25 = vld.sshfl [vmem:[#allocation1 + $0x20] sm:$0xff pattern:$0x73625140] }
 0x367   : > { %v1771_v29 = vunpack.c.l.b16 %v11581_v32  ;;  %v1769_v40 = vunpack.c.l.b16 %v1746_v14  ;;  %v1770_v30 = vunpack.c.l.b16 %v1748_v8  ;;  %v1734_v17 = vsel %vm484_vm3, %v1716_v13, %v1651_v58  ;;  %1879 = vst [vmem:[#allocation1 + $0x21] ss:$4 sm:$0xff] %v11437_v55 }
 0x368   : > { %v1736_v6 = vsel %vm484_vm3, %v1718_v27, %v1652_v26  ;;  %v1778_v59 = vunpack.c.h.b16 %v1746_v14  ;;  %v1780_v37 = vunpack.c.h.b16 %v11581_v32  ;;  %v1779_v31 = vunpack.c.h.b16 %v1748_v8 }
 0x369   : > { %v1785_v23 = vpack.c.b16 %v1769_v40, %v1768_v53  ;;  %v1786_v42 = vpack.c.b16 %v1771_v29, %v1770_v30  ;;  %v1777_v12 = vunpack.c.h.b16 %v11574_v24 }
 0x36a   : > { %v1791_v29 = vpack.c.b16 %v1780_v37, %v1779_v31 }
 0x36b   : > { %1796 = vrot.lane.b32.xlu1 %v1785_v23, %s10410_s17  ;;  %1798 = vrot.lane.b32.xlu2 %v1786_v42, %s10410_s17  ;;  %v1897_v34 = vld.sshfl [vmem:[#allocation1] sm:$0xff pattern:$0x73625140]  ;;  %v1790_v57 = vpack.c.b16 %v1778_v59, %v1777_v12 }
 0x36c   : > { %v1692_v46 = vpop.permute.xlu1 %1691  ;;  %v1690_v20 = vpop.permute.xlu0 %1689  ;;  %1927 = vst [vmem:[#allocation1 + $0x2] ss:$4 sm:$0xff] %v11434_v0 }
 0x36d   : > { %v1700_v35 = vsel %vm1048_vm8, %v1688_v39, %v1690_v20  ;;  %v1701_v7 = vsel %vm1048_vm8, %v1690_v20, %v1692_v46  ;;  %v1702_v45 = vsel %vm1048_vm8, %v1692_v46, %v1694_v10 }
 0x36e   : > { %v1752_v62 = vsel %vm501_vm5, %v1734_v17, %v1700_v35  ;;  %v1754_v9 = vsel %vm501_vm5, %v1736_v6, %v1701_v7  ;;  %v1756_v3 = vsel %vm501_vm5, %v1738_v48, %v1702_v45  ;;  %v1888_v30 = vld.sshfl [vmem:[#allocation1 + $0x20] sm:$0xff pattern:$0x73625140]  ;;  %v1890_v32 = vld.sshfl [vmem:[#allocation1 + $0x28] sm:$0xff pattern:$0x73625140] }
 0x36f   : > { %v1772_v33 = vunpack.c.l.b16 %v1752_v62  ;;  %v1773_v60 = vunpack.c.l.b16 %v1754_v9  ;;  %v1774_v39 = vunpack.c.l.b16 %v1756_v3  ;;  %v1781_v47 = vunpack.c.h.b16 %v1752_v62  ;;  %v1892_v24 = vld.sshfl [vmem:[#allocation1 + $0x30] sm:$0xff pattern:$0x73625140]  ;;  %v1894_v8 = vld.sshfl [vmem:[#allocation1 + $0x38] sm:$0xff pattern:$0x73625140] }
 0x370   : > { %v1782_v5 = vunpack.c.h.b16 %v1754_v9  ;;  %v1783_v14 = vunpack.c.h.b16 %v1756_v3  ;;  %1929 = vst [vmem:[#allocation1 + $0x22] ss:$4 sm:$0xff] %v11437_v55 }
 0x371   : > { %v1787_v63 = vpack.c.b16 %v1773_v60, %v1772_v33  ;;  %v1788_v4 = vpack.c.b16 %v1774_v39, %v1774_v39 }
 0x372   : > { %v1792_v53 = vpack.c.b16 %v1782_v5, %v1781_v47  ;;  %v1793_v40 = vpack.c.b16 %v1783_v14, %v1783_v14 }
 0x373   : > { %1800 = vrot.lane.b32.xlu0 %v1787_v63, %s10410_s17  ;;  %1804 = vrot.lane.b32.xlu2 %v1789_v43, %s10410_s17  ;;  %v1934_v56 = vld.sshfl [vmem:[#allocation1 + $0x10] sm:$0xff pattern:$0x73625140]  ;;  %v1936_v44 = vld.sshfl [vmem:[#allocation1 + $0x18] sm:$0xff pattern:$0x73625140] }
 0x374   : > { %1802 = vrot.lane.b32.xlu1 %v1788_v4, %s10410_s17  ;;  %v1930_v58 = vld.sshfl [vmem:[#allocation1] sm:$0xff pattern:$0x73625140]  ;;  %v1932_v26 = vld.sshfl [vmem:[#allocation1 + $0x8] sm:$0xff pattern:$0x73625140] }
 0x375   : > { %1946 = vst [vmem:[#allocation1 + $0x2] ss:$4 sm:$0xff] %v11494_v54 }
 0x377   : > { %v1938_v23 = vld.sshfl [vmem:[#allocation1 + $0x20] sm:$0xff pattern:$0x73625140]  ;;  %v1940_v42 = vld.sshfl [vmem:[#allocation1 + $0x28] sm:$0xff pattern:$0x73625140] }
 0x378   : > { %v1942_v10 = vld.sshfl [vmem:[#allocation1 + $0x30] sm:$0xff pattern:$0x73625140]  ;;  %v1944_v13 = vld.sshfl [vmem:[#allocation1 + $0x38] sm:$0xff pattern:$0x73625140] }
 0x379   : > { %1978 = vst [vmem:[#allocation1 + $0x23] ss:$4 sm:$0xff] %v11437_v55 }
 0x37b   : > { %1806 = vrot.lane.b32.xlu0 %v1790_v57, %s10410_s17  ;;  %1810 = vrot.lane.b32.xlu2 %v1792_v53, %s10410_s17 }
 0x37c   : > { %1808 = vrot.lane.b32.xlu1 %v1791_v29, %s10410_s17  ;;  %v1947_v2 = vld.sshfl [vmem:[#allocation1] sm:$0xff pattern:$0x73625140] }
 0x37d   : > { %1976 = vst [vmem:[#allocation1 + $0x3] ss:$4 sm:$0xff] %v11434_v0 }
 0x380   : > { %v1989_v46 = vld.sshfl [vmem:[#allocation1 + $0x28] sm:$0xff pattern:$0x73625140]  ;;  %v1991_v20 = vld.sshfl [vmem:[#allocation1 + $0x30] sm:$0xff pattern:$0x73625140] }
 0x381   : > { %v1987_v36 = vld.sshfl [vmem:[#allocation1 + $0x20] sm:$0xff pattern:$0x73625140]  ;;  %v1993_v45 = vld.sshfl [vmem:[#allocation1 + $0x38] sm:$0xff pattern:$0x73625140] }
 0x382   : > { %2187 = vst [vmem:[#allocation1 + $0x20] ss:$4 sm:$0xff] %v11437_v55 }
 0x383   : > { %1812 = vrot.lane.b32.xlu0 %v1793_v40, %s10410_s17  ;;  %1901 = vrot.lane.b32.xlu2 %v1882_v51, %s10411_s18 }
 0x384   : > { %1899 = vrot.lane.b32.xlu1 %v1880_v61, %s10411_s18  ;;  %v1979_v27 = vld.sshfl [vmem:[#allocation1] sm:$0xff pattern:$0x73625140]  ;;  %v1983_v52 = vld.sshfl [vmem:[#allocation1 + $0x10] sm:$0xff pattern:$0x73625140] }
 0x385   : > { %v1985_v17 = vld.sshfl [vmem:[#allocation1 + $0x18] sm:$0xff pattern:$0x73625140]  ;;  %v1981_v6 = vld.sshfl [vmem:[#allocation1 + $0x8] sm:$0xff pattern:$0x73625140] }
 0x386   : > { %1995 = vst [vmem:[#allocation1 + $0x3] ss:$4 sm:$0xff] %v11494_v54 }
 0x38b   : > { %1903 = vrot.lane.b32.xlu0 %v1884_v38, %s10411_s18  ;;  %1907 = vrot.lane.b32.xlu2 %v1888_v30, %s10411_s18 }
 0x38c   : > { %1905 = vrot.lane.b32.xlu1 %v1886_v15, %s10411_s18 }
 0x38d   : > { %v1996_v48 = vld.sshfl [vmem:[#allocation1] sm:$0xff pattern:$0x73625140] }
 0x38e   : > { %2184 = vst [vmem:[#allocation1] ss:$4 sm:$0xff] %v11434_v0 }
 0x393   : > { %1909 = vrot.lane.b32.xlu0 %v1890_v32, %s10411_s18  ;;  %1913 = vrot.lane.b32.xlu2 %v1894_v8, %s10411_s18 }
 0x394   : > { %1911 = vrot.lane.b32.xlu1 %v1892_v24, %s10411_s18 }
 0x395   : > { %v11664_v54 = vld.sshfl [vmem:[#allocation1] sm:$0xff pattern:$0x73625140]  ;;  %v11666_v38 = vld.sshfl [vmem:[#allocation1 + $0x8] sm:$0xff pattern:$0x73625140] }
 0x396   : > { %v11668_v35 = vld.sshfl [vmem:[#allocation1 + $0x10] sm:$0xff pattern:$0x73625140]  ;;  %v11670_v7 = vld.sshfl [vmem:[#allocation1 + $0x18] sm:$0xff pattern:$0x73625140] }
 0x397   : > { %2197 = vst [vmem:[#allocation1] ss:$4 sm:$0xff] %v11662_v21 }
 0x39b   : > { %1915 = vrot.lane.b32.xlu0 %v1897_v34, %s10411_s18  ;;  %1951 = vrot.lane.b32.xlu2 %v1932_v26, %s10403_s10 }
 0x39c   : > { %1949 = vrot.lane.b32.xlu1 %v1930_v58, %s10403_s10 }
 0x3a3   : > { %1953 = vrot.lane.b32.xlu0 %v1934_v56, %s10403_s10  ;;  %1957 = vrot.lane.b32.xlu2 %v1938_v23, %s10403_s10 }
 0x3a4   : > { %1955 = vrot.lane.b32.xlu1 %v1936_v44, %s10403_s10 }
 0x3ab   : > { %1959 = vrot.lane.b32.xlu0 %v1940_v42, %s10403_s10  ;;  %1963 = vrot.lane.b32.xlu2 %v1944_v13, %s10403_s10 }
 0x3ac   : > { %1961 = vrot.lane.b32.xlu1 %v1942_v10, %s10403_s10 }
 0x3b3   : > { %1965 = vrot.lane.b32.xlu0 %v1947_v2, %s10403_s10  ;;  %2000 = vrot.lane.b32.xlu2 %v1981_v6, %s10402_s9 }
 0x3b4   : > { %1998 = vrot.lane.b32.xlu1 %v1979_v27, %s10402_s9 }
 0x3bb   : > { %2002 = vrot.lane.b32.xlu0 %v1983_v52, %s10402_s9  ;;  %2006 = vrot.lane.b32.xlu2 %v1987_v36, %s10402_s9 }
 0x3bc   : > { %2004 = vrot.lane.b32.xlu1 %v1985_v17, %s10402_s9 }
 0x3c3   : > { %2008 = vrot.lane.b32.xlu0 %v1989_v46, %s10402_s9  ;;  %2012 = vrot.lane.b32.xlu2 %v1993_v45, %s10402_s9 }
 0x3c4   : > { %2010 = vrot.lane.b32.xlu1 %v1991_v20, %s10402_s9 }
 0x3c5   : > { %v1799_v62 = vpop.permute.xlu2 %1798 }
 0x3c6   : > { %v1816_v33 = vrot.slane %v1799_v62, 4 }
 0x3cb   : > { %2014 = vrot.lane.b32.xlu0 %v1996_v48, %s10402_s9 }
 0x3cd   : > { %v1805_v9 = vpop.permute.xlu2 %1804 }
 0x3ce   : > { %v1819_v14 = vrot.slane %v1805_v9, 4 }
 0x3d5   : > { %v1795_v3 = vpop.permute.xlu0 %1794  ;;  %v1811_v39 = vpop.permute.xlu2 %1810 }
 0x3d6   : > { %v1814_v60 = vrot.slane %v1795_v3, 4  ;;  %v1822_v32 = vrot.slane %v1811_v39, 4 }
 0x3dd   : > { %v1797_v15 = vpop.permute.xlu1 %1796  ;;  %v1902_v37 = vpop.permute.xlu2 %1901 }
 0x3de   : > { %v1815_v61 = vrot.slane %v1797_v15, 4 }
 0x3e0   : > { %v1824_v51 = vsel %vm484_vm3, %v1814_v60, %v1815_v61  ;;  %v1827_v43 = vsel %vm484_vm3, %v1815_v61, %v1816_v33 }
 0x3e1   : > { %v1826_v63 = vsel %vm1825_vm13, %v1795_v3, %v1824_v51  ;;  %v1828_v4 = vsel %vm1825_vm13, %v1797_v15, %v1827_v43 }
 0x3e2   : > { %1849 = vst [vmem:[#allocation2 + $0x100] sm:$0xff] %v1826_v63 }
 0x3e3   : > { %1850 = vst [vmem:[#allocation2 + $0x108] sm:$0xff] %v1828_v4 }
 0x3e5   : > { %v1801_v59 = vpop.permute.xlu0 %1800  ;;  %v11690_v56 = vpop.permute.xlu2 %1907 }
 0x3e6   : > { %v1817_v47 = vrot.slane %v1801_v59, 4  ;;  %v1803_v5 = vpop.permute.xlu1 %1802 }
 0x3e7   : > { %v1818_v31 = vrot.slane %v1803_v5, 4 }
 0x3e8   : > { %v1829_v12 = vsel %vm484_vm3, %v1816_v33, %v1817_v47 }
 0x3e9   : > { %v1830_v34 = vsel %vm1825_vm13, %v1799_v62, %v1829_v12  ;;  %v1831_v57 = vsel %vm484_vm3, %v1817_v47, %v1818_v31 }
 0x3ea   : > { %1851 = vst [vmem:[#allocation2 + $0x110] sm:$0xff] %v1830_v34  ;;  %v1832_v53 = vsel %vm1825_vm13, %v1801_v59, %v1831_v57 }
 0x3eb   : > { %1852 = vst [vmem:[#allocation2 + $0x118] sm:$0xff] %v1832_v53 }
 0x3ed   : > { %v1807_v29 = vpop.permute.xlu0 %1806  ;;  %v11699_v17 = vpop.permute.xlu2 %1913 }
 0x3ee   : > { %v1820_v40 = vrot.slane %v1807_v29, 4  ;;  %v1809_v30 = vpop.permute.xlu1 %1808 }
 0x3ef   : > { %v1821_v24 = vrot.slane %v1809_v30, 4 }
 0x3f0   : > { %v1833_v8 = vsel %vm484_vm3, %v1819_v14, %v1820_v40 }
 0x3f1   : > { %v1834_v44 = vsel %vm1825_vm13, %v1805_v9, %v1833_v8  ;;  %v1835_v58 = vsel %vm484_vm3, %v1820_v40, %v1821_v24  ;;  %v1837_v26 = vsel %vm484_vm3, %v1821_v24, %v1822_v32 }
 0x3f2   : > { %1853 = vst [vmem:[#allocation2 + $0x120] sm:$0xff] %v1834_v44  ;;  %v1836_v2 = vsel %vm1825_vm13, %v1807_v29, %v1835_v58  ;;  %v1838_v23 = vsel %vm1825_vm13, %v1809_v30, %v1837_v26 }
 0x3f3   : > { %1854 = vst [vmem:[#allocation2 + $0x128] sm:$0xff] %v1836_v2 }
 0x3f4   : > { %1855 = vst [vmem:[#allocation2 + $0x130] sm:$0xff] %v1838_v23 }
 0x3f5   : > { %v1813_v42 = vpop.permute.xlu0 %1812  ;;  %v1952_v46 = vpop.permute.xlu2 %1951 }
 0x3f6   : > { %v1823_v10 = vrot.slane %v1813_v42, 4  ;;  %v1900_v13 = vpop.permute.xlu1 %1899 }
 0x3f7   : > { %v1918_v63 = vsel %vm1917_vm14, %v1900_v13, %v1902_v37 }
 0x3f8   : > { %v1839_v27 = vsel %vm484_vm3, %v1822_v32, %v1823_v10  ;;  %v2025_v31 = vsel %vm467_vm1, %v11496_v16, %v1918_v63 }
 0x3f9   : > { %v1840_v52 = vsel %vm1825_vm13, %v1811_v39, %v1839_v27 }
 0x3fa   : > { %1856 = vst [vmem:[#allocation2 + $0x138] sm:$0xff] %v1840_v52  ;;  %v11750_v52 = vld.sshfl [vmem:[#allocation1] sm:$0xff pattern:$0x73625140] }
 0x3fb   : > { %2200 = vst [vmem:[#allocation1 + $0x1] ss:$4 sm:$0xff] %v11434_v0 }
 0x3fd   : > { %v1904_v6 = vpop.permute.xlu0 %1903  ;;  %v1958_v9 = vpop.permute.xlu2 %1957 }
 0x3fe   : > { %v1906_v48 = vpop.permute.xlu1 %1905  ;;  %v1919_v59 = vsel %vm1917_vm14, %v1902_v37, %v1904_v6 }
 0x3ff   : > { %v1920_v47 = vsel %vm1917_vm14, %v1904_v6, %v1906_v48  ;;  %v1921_v12 = vsel %vm1917_vm14, %v1906_v48, %v11690_v56  ;;  %v2027_v37 = vsel %vm467_vm1, %v11498_v41, %v1919_v59 }
 0x400   : > { %v2029_v40 = vsel %vm467_vm1, %v11500_v28, %v1920_v47  ;;  %v2031_v32 = vsel %vm467_vm1, %v11502_v50, %v1921_v12 }
 0x405   : > { %v1910_v20 = vpop.permute.xlu0 %1909  ;;  %v11705_v33 = vpop.permute.xlu2 %1963 }
 0x406   : > { %v11701_v36 = vpop.permute.xlu1 %1911  ;;  %v1922_v6 = vsel %vm1917_vm14, %v11690_v56, %v1910_v20 }
 0x40d   : > { %v11703_v45 = vpop.permute.xlu0 %1915  ;;  %v2001_v39 = vpop.permute.xlu2 %2000 }
 0x40e   : > { %v1950_v62 = vpop.permute.xlu1 %1949 }
 0x40f   : > { %v1967_v4 = vsel %vm675_vm6, %v1950_v62, %v1952_v46 }
 0x410   : > { %v2043_v53 = vsel %vm484_vm3, %v2025_v31, %v1967_v4 }
 0x415   : > { %v1954_v3 = vpop.permute.xlu0 %1953  ;;  %v2007_v14 = vpop.permute.xlu2 %2006 }
 0x416   : > { %v1956_v15 = vpop.permute.xlu1 %1955  ;;  %v1968_v34 = vsel %vm675_vm6, %v1952_v46, %v1954_v3  ;;  %v1923_v46 = vsel %vm1917_vm14, %v1910_v20, %v11701_v36 }
 0x417   : > { %v1969_v57 = vsel %vm675_vm6, %v1954_v3, %v1956_v15  ;;  %v1970_v29 = vsel %vm675_vm6, %v1956_v15, %v1958_v9  ;;  %v2045_v24 = vsel %vm484_vm3, %v2027_v37, %v1968_v34  ;;  %v1925_v34 = vsel %vm1917_vm14, %v11699_v17, %v11703_v45 }
 0x418   : > { %v2047_v8 = vsel %vm484_vm3, %v2029_v40, %v1969_v57  ;;  %v2049_v26 = vsel %vm484_vm3, %v2031_v32, %v1970_v29  ;;  %v11782_v29 = vld.sshfl [vmem:[#allocation1 + $0x20] sm:$0xff pattern:$0x73625140]  ;;  %v11789_v40 = vld.sshfl [vmem:[#allocation1 + $0x28] sm:$0xff pattern:$0x73625140] }
 0x41d   : > { %v1960_v60 = vpop.permute.xlu0 %1959  ;;  %v2013_v59 = vpop.permute.xlu2 %2012 }
 0x41e   : > { %v1962_v61 = vpop.permute.xlu1 %1961  ;;  %v1971_v62 = vsel %vm675_vm6, %v1958_v9, %v1960_v60 }
 0x41f   : > { %v1972_v15 = vsel %vm675_vm6, %v1960_v60, %v1962_v61 }
 0x425   : > { %v11707_v51 = vpop.permute.xlu0 %1965 }
 0x426   : > { %v1999_v43 = vpop.permute.xlu1 %1998 }
 0x427   : > { %v2016_v5 = vsel %vm458_vm4, %v1999_v43, %v2001_v39  ;;  %v2035_v43 = vsel %vm467_vm1, %v11610_v11, %v1923_v46  ;;  %v1973_v11 = vsel %vm675_vm6, %v1962_v61, %v11705_v33  ;;  %v2205_v61 = vld.sshfl [vmem:[#allocation1 + $0x8] sm:$0xff pattern:$0x73625140] }
 0x428   : > { %v11727_v16 = vsel %vm501_vm5, %v2043_v53, %v2016_v5  ;;  %v2053_v4 = vsel %vm484_vm3, %v2035_v43, %v1972_v15  ;;  %v11780_v53 = vld.sshfl [vmem:[#allocation1 + $0x10] sm:$0xff pattern:$0x73625140] }
 0x429   : > { %v2087_v23 = vunpack.c.l.b16 %v11727_v16 }
 0x42d   : > { %v2003_v30 = vpop.permute.xlu0 %2002 }
 0x42e   : > { %v2017_v44 = vsel %vm458_vm4, %v2001_v39, %v2003_v30  ;;  %v2005_v58 = vpop.permute.xlu1 %2004  ;;  %v2033_v39 = vsel %vm467_vm1, %v11608_v25, %v1922_v6  ;;  %v1924_v25 = vsel %vm1917_vm14, %v11701_v36, %v11699_v17  ;;  %v2041_v17 = vsel %vm467_vm1, %v11554_v49, %v11703_v45 }
 0x42f   : > { %v11736_v41 = vsel %vm501_vm5, %v2045_v24, %v2017_v44  ;;  %v2018_v28 = vsel %vm458_vm4, %v2003_v30, %v2005_v58  ;;  %v2019_v2 = vsel %vm458_vm4, %v2005_v58, %v2007_v14  ;;  %v2051_v63 = vsel %vm484_vm3, %v2033_v39, %v1971_v62  ;;  %v11791_v30 = vld.sshfl [vmem:[#allocation1 + $0x30] sm:$0xff pattern:$0x73625140]  ;;  %v2203_v24 = vld.sshfl [vmem:[#allocation1] sm:$0xff pattern:$0x73625140] }
 0x430   : > { %v2088_v50 = vunpack.c.l.b16 %v11736_v41  ;;  %v11743_v42 = vsel %vm501_vm5, %v2047_v8, %v2018_v28  ;;  %v11746_v10 = vsel %vm501_vm5, %v2049_v26, %v2019_v2  ;;  %v2037_v36 = vsel %vm467_vm1, %v11616_v18, %v1924_v25  ;;  %v11797_v8 = vld.sshfl [vmem:[#allocation1 + $0x38] sm:$0xff pattern:$0x73625140] }
 0x431   : > { %v2089_v13 = vunpack.c.l.b16 %v11743_v42  ;;  %v2090_v27 = vunpack.c.l.b16 %v11746_v10  ;;  %v2055_v32 = vsel %vm484_vm3, %v2037_v36, %v1973_v11  ;;  %v2039_v18 = vsel %vm467_vm1, %v11618_v22, %v1925_v34  ;;  %2202 = vst [vmem:[#allocation1 + $0x21] ss:$4 sm:$0xff] %v11437_v55  ;;  %v2209_v26 = vld.sshfl [vmem:[#allocation1 + $0x18] sm:$0xff pattern:$0x73625140] }
 0x432   : > { %v2105_v48 = vpack.c.b16 %v2088_v50, %v2087_v23  ;;  %2219 = vst [vmem:[#allocation1 + $0x1] ss:$4 sm:$0xff] %v11662_v21  ;;  %v2097_v22 = vunpack.c.h.b16 %v11736_v41  ;;  %v2099_v43 = vunpack.c.h.b16 %v11746_v10 }
 0x433   : > { %v2106_v3 = vpack.c.b16 %v2090_v27, %v2089_v13  ;;  %v2096_v13 = vunpack.c.h.b16 %v11727_v16 }
 0x434   : > { %2115 = vrot.lane.b32.xlu1 %v2105_v48, %s10412_s19 }
 0x435   : > { %2117 = vrot.lane.b32.xlu2 %v2106_v3, %s10412_s19  ;;  %v2009_v56 = vpop.permute.xlu0 %2008  ;;  %v2110_v48 = vpack.c.b16 %v2097_v22, %v2096_v13 }
 0x436   : > { %v2020_v20 = vsel %vm458_vm4, %v2007_v14, %v2009_v56  ;;  %v2011_v9 = vpop.permute.xlu1 %2010  ;;  %v1974_v14 = vsel %vm675_vm6, %v11705_v33, %v11707_v51  ;;  %v2059_v33 = vsel %vm484_vm3, %v2041_v17, %v11707_v51 }
 0x437   : > { %v2069_v60 = vsel %vm501_vm5, %v2051_v63, %v2020_v20  ;;  %v2021_v47 = vsel %vm458_vm4, %v2009_v56, %v2011_v9  ;;  %v2022_v57 = vsel %vm458_vm4, %v2011_v9, %v2013_v59  ;;  %v2057_v49 = vsel %vm484_vm3, %v2039_v18, %v1974_v14 }
 0x438   : > { %v2091_v5 = vunpack.c.l.b16 %v2069_v60  ;;  %v2071_v31 = vsel %vm501_vm5, %v2053_v4, %v2021_v47  ;;  %v2073_v44 = vsel %vm501_vm5, %v2055_v32, %v2022_v57  ;;  %v2211_v46 = vld.sshfl [vmem:[#allocation1 + $0x20] sm:$0xff pattern:$0x73625140]  ;;  %v2213_v62 = vld.sshfl [vmem:[#allocation1 + $0x28] sm:$0xff pattern:$0x73625140]  ;;  %v2100_v3 = vunpack.c.h.b16 %v2069_v60 }
 0x439   : > { %v2092_v12 = vunpack.c.l.b16 %v2071_v31  ;;  %v2093_v23 = vunpack.c.l.b16 %v2073_v44  ;;  %v2101_v15 = vunpack.c.h.b16 %v2071_v31  ;;  %v2217_v41 = vld.sshfl [vmem:[#allocation1 + $0x38] sm:$0xff pattern:$0x73625140]  ;;  %v2215_v39 = vld.sshfl [vmem:[#allocation1 + $0x30] sm:$0xff pattern:$0x73625140]  ;;  %v2098_v56 = vunpack.c.h.b16 %v11743_v42 }
 0x43a   : > { %2251 = vst [vmem:[#allocation1 + $0x22] ss:$4 sm:$0xff] %v11437_v55  ;;  %v2220_v16 = vld.sshfl [vmem:[#allocation1] sm:$0xff pattern:$0x73625140]  ;;  %v2102_v20 = vunpack.c.h.b16 %v2073_v44 }
 0x43b   : > { %v2107_v37 = vpack.c.b16 %v2092_v12, %v2091_v5  ;;  %2249 = vst [vmem:[#allocation1 + $0x2] ss:$4 sm:$0xff] %v11434_v0  ;;  %v2112_v9 = vpack.c.b16 %v2101_v15, %v2100_v3  ;;  %v2111_v4 = vpack.c.b16 %v2099_v43, %v2098_v56 }
 0x43d   : > { %2119 = vrot.lane.b32.xlu0 %v2107_v37, %s10412_s19  ;;  %v2015_v58 = vpop.permute.xlu0 %2014 }
 0x43e   : > { %v2023_v45 = vsel %vm458_vm4, %v2013_v59, %v2015_v58  ;;  %v2077_v28 = vsel %vm501_vm5, %v2059_v33, %v2015_v58 }
 0x43f   : > { %v2075_v51 = vsel %vm501_vm5, %v2057_v49, %v2023_v45  ;;  %v2095_v2 = vunpack.c.l.b16 %v2077_v28  ;;  %v2104_v59 = vunpack.c.h.b16 %v2077_v28 }
 0x440   : > { %v2094_v50 = vunpack.c.l.b16 %v2075_v51  ;;  %v2103_v63 = vunpack.c.h.b16 %v2075_v51 }
 0x441   : > { %v2109_v27 = vpack.c.b16 %v2095_v2, %v2095_v2  ;;  %v2114_v42 = vpack.c.b16 %v2104_v59, %v2104_v59  ;;  %v2260_v25 = vld.sshfl [vmem:[#allocation1 + $0x20] sm:$0xff pattern:$0x73625140]  ;;  %v2262_v5 = vld.sshfl [vmem:[#allocation1 + $0x28] sm:$0xff pattern:$0x73625140] }
 0x442   : > { %v2108_v6 = vpack.c.b16 %v2094_v50, %v2093_v23  ;;  %v2113_v60 = vpack.c.b16 %v2103_v63, %v2102_v20  ;;  %v2256_v10 = vld.sshfl [vmem:[#allocation1 + $0x10] sm:$0xff pattern:$0x73625140]  ;;  %v2254_v55 = vld.sshfl [vmem:[#allocation1 + $0x8] sm:$0xff pattern:$0x73625140] }
 0x443   : > { %2123 = vrot.lane.b32.xlu2 %v2109_v27, %s10412_s19  ;;  %v2252_v0 = vld.sshfl [vmem:[#allocation1] sm:$0xff pattern:$0x73625140]  ;;  %v2258_v47 = vld.sshfl [vmem:[#allocation1 + $0x18] sm:$0xff pattern:$0x73625140] }
 0x444   : > { %2121 = vrot.lane.b32.xlu1 %v2108_v6, %s10412_s19  ;;  %2268 = vst [vmem:[#allocation1 + $0x2] ss:$4 sm:$0xff] %v11662_v21  ;;  %v2266_v31 = vld.sshfl [vmem:[#allocation1 + $0x38] sm:$0xff pattern:$0x73625140] }
 0x445   : > { %2125 = vrot.lane.b32.xlu0 %v2110_v48, %s10412_s19  ;;  %v2264_v11 = vld.sshfl [vmem:[#allocation1 + $0x30] sm:$0xff pattern:$0x73625140] }
 0x446   : > { %2302 = vst [vmem:[#allocation1 + $0x23] ss:$4 sm:$0xff] %v14886_v19 }
 0x44b   : > { %2129 = vrot.lane.b32.xlu2 %v2112_v9, %s10412_s19  ;;  %v2269_v12 = vld.sshfl [vmem:[#allocation1] sm:$0xff pattern:$0x73625140] }
 0x44c   : > { %2127 = vrot.lane.b32.xlu1 %v2111_v4, %s10412_s19  ;;  %2299 = vst [vmem:[#allocation1 + $0x3] ss:$4 sm:$0xff] %v10491_v1  ;;  %v11851_v1 = vld [vmem:[%s11847_s22] sm:$0xff] }
 0x44d   : > { %2131 = vrot.lane.b32.xlu0 %v2113_v60, %s10412_s19  ;;  %v2311_v36 = vld.sshfl [vmem:[#allocation1 + $0x20] sm:$0xff pattern:$0x73625140]  ;;  %v2313_v14 = vld.sshfl [vmem:[#allocation1 + $0x28] sm:$0xff pattern:$0x73625140] }
 0x44e   : > { %v2317_v37 = vld.sshfl [vmem:[#allocation1 + $0x38] sm:$0xff pattern:$0x73625140] }
 0x453   : > { %2222 = vrot.lane.b32.xlu2 %v2203_v24, %s10400_s30  ;;  %v2305_v19 = vld.sshfl [vmem:[#allocation1 + $0x8] sm:$0xff pattern:$0x73625140]  ;;  %v2303_v21 = vld.sshfl [vmem:[#allocation1] sm:$0xff pattern:$0x73625140] }
 0x454   : > { %2133 = vrot.lane.b32.xlu1 %v2114_v42, %s10412_s19  ;;  %v2307_v34 = vld.sshfl [vmem:[#allocation1 + $0x10] sm:$0xff pattern:$0x73625140]  ;;  %v2309_v57 = vld.sshfl [vmem:[#allocation1 + $0x18] sm:$0xff pattern:$0x73625140] }
 0x455   : > { %2224 = vrot.lane.b32.xlu0 %v2205_v61, %s10400_s30  ;;  %2501 = vst [vmem:[#allocation1] ss:$4 sm:$0xff] %v11851_v1  ;;  %v2315_v61 = vld.sshfl [vmem:[#allocation1 + $0x30] sm:$0xff pattern:$0x73625140] }
 0x45b   : > { %2228 = vrot.lane.b32.xlu2 %v2209_v26, %s10400_s30 }
 0x45c   : > { %2226 = vrot.lane.b32.xlu1 %v11780_v53, %s10400_s30  ;;  %v11860_v53 = vld [vmem:[%s11847_s22 + $0x8] sm:$0xff] }
 0x45d   : > { %2230 = vrot.lane.b32.xlu0 %v2211_v46, %s10400_s30  ;;  %2504 = vst [vmem:[#allocation1 + $0x20] ss:$4 sm:$0xff] %v11860_v53 }
 0x463   : > { %2234 = vrot.lane.b32.xlu2 %v2215_v39, %s10400_s30 }
 0x464   : > { %2232 = vrot.lane.b32.xlu1 %v2213_v62, %s10400_s30 }
 0x465   : > { %2236 = vrot.lane.b32.xlu0 %v2217_v41, %s10400_s30 }
 0x46b   : > { %2271 = vrot.lane.b32.xlu2 %v2252_v0, %s10401_s8 }
 0x46c   : > { %2238 = vrot.lane.b32.xlu1 %v2220_v16, %s10400_s30 }
 0x46d   : > { %2273 = vrot.lane.b32.xlu0 %v2254_v55, %s10401_s8 }
 0x473   : > { %2277 = vrot.lane.b32.xlu2 %v2258_v47, %s10401_s8 }
 0x474   : > { %2275 = vrot.lane.b32.xlu1 %v2256_v10, %s10401_s8 }
 0x475   : > { %2279 = vrot.lane.b32.xlu0 %v2260_v25, %s10401_s8 }
 0x47b   : > { %2283 = vrot.lane.b32.xlu2 %v2264_v11, %s10401_s8 }
 0x47c   : > { %2281 = vrot.lane.b32.xlu1 %v2262_v5, %s10401_s8 }
 0x47d   : > { %2285 = vrot.lane.b32.xlu0 %v2266_v31, %s10401_s8 }
 0x483   : > { %2319 = vrot.lane.b32.xlu2 %v2303_v21, %s10413_s23 }
 0x484   : > { %2287 = vrot.lane.b32.xlu1 %v2269_v12, %s10401_s8 }
 0x485   : > { %2321 = vrot.lane.b32.xlu0 %v2305_v19, %s10413_s23 }
 0x48b   : > { %2325 = vrot.lane.b32.xlu2 %v2309_v57, %s10413_s23 }
 0x48c   : > { %2323 = vrot.lane.b32.xlu1 %v2307_v34, %s10413_s23 }
 0x48d   : > { %2327 = vrot.lane.b32.xlu0 %v2311_v36, %s10413_s23 }
 0x48f   : > { %v2118_v17 = vpop.permute.xlu2 %2117 }
 0x490   : > { %v2136_v18 = vrot.slane %v2118_v17, 4 }
 0x493   : > { %2331 = vrot.lane.b32.xlu2 %v2315_v61, %s10413_s23 }
 0x494   : > { %2329 = vrot.lane.b32.xlu1 %v2313_v14, %s10413_s23 }
 0x495   : > { %2333 = vrot.lane.b32.xlu0 %v2317_v37, %s10413_s23 }
 0x49d   : > { %v2124_v32 = vpop.permute.xlu2 %2123 }
 0x49e   : > { %v2139_v23 = vrot.slane %v2124_v32, 4 }
 0x4a5   : > { %v2130_v26 = vpop.permute.xlu2 %2129 }
 0x4a6   : > { %v2116_v24 = vpop.permute.xlu1 %2115  ;;  %v2142_v3 = vrot.slane %v2130_v26, 4 }
 0x4a7   : > { %v2135_v33 = vrot.slane %v2116_v24, 4 }
 0x4a9   : > { %v2145_v44 = vsel %vm484_vm3, %v2135_v33, %v2136_v18 }
 0x4aa   : > { %v2147_v58 = vsel %vm14841_vm15, %v2116_v24, %v2145_v44 }
 0x4ab   : > { %2170 = vst [vmem:[#allocation2 + $0x140] sm:$0xff] %v2147_v58 }
 0x4ad   : > { %v2223_v51 = vpop.permute.xlu2 %2222 }
 0x4af   : > { %v2120_v49 = vpop.permute.xlu0 %2119 }
 0x4b0   : > { %v2137_v45 = vrot.slane %v2120_v49, 4 }
 0x4b2   : > { %v2148_v28 = vsel %vm484_vm3, %v2136_v18, %v2137_v45 }
 0x4b3   : > { %v2149_v22 = vsel %vm14841_vm15, %v2118_v17, %v2148_v28 }
 0x4b4   : > { %2171 = vst [vmem:[#allocation2 + $0x148] sm:$0xff] %v2149_v22 }
 0x4b5   : > { %v2229_v56 = vpop.permute.xlu2 %2228 }
 0x4b6   : > { %v2122_v2 = vpop.permute.xlu1 %2121 }
 0x4b7   : > { %v2138_v50 = vrot.slane %v2122_v2, 4  ;;  %v2126_v13 = vpop.permute.xlu0 %2125 }
 0x4b8   : > { %v2140_v15 = vrot.slane %v2126_v13, 4 }
 0x4b9   : > { %v2150_v27 = vsel %vm484_vm3, %v2137_v45, %v2138_v50  ;;  %v2152_v6 = vsel %vm484_vm3, %v2138_v50, %v2139_v23 }
 0x4ba   : > { %v2151_v48 = vsel %vm14841_vm15, %v2120_v49, %v2150_v27  ;;  %v2153_v46 = vsel %vm14841_vm15, %v2122_v2, %v2152_v6 }
 0x4bb   : > { %2172 = vst [vmem:[#allocation2 + $0x150] sm:$0xff] %v2151_v48 }
 0x4bc   : > { %2173 = vst [vmem:[#allocation2 + $0x158] sm:$0xff] %v2153_v46 }
 0x4bd   : > { %v2235_v0 = vpop.permute.xlu2 %2234 }
 0x4be   : > { %v2128_v62 = vpop.permute.xlu1 %2127 }
 0x4bf   : > { %v2141_v41 = vrot.slane %v2128_v62, 4  ;;  %v2132_v39 = vpop.permute.xlu0 %2131 }
 0x4c0   : > { %v2143_v43 = vrot.slane %v2132_v39, 4 }
 0x4c1   : > { %v2154_v16 = vsel %vm484_vm3, %v2140_v15, %v2141_v41  ;;  %v2156_v63 = vsel %vm484_vm3, %v2141_v41, %v2142_v3 }
 0x4c2   : > { %v2155_v20 = vsel %vm14841_vm15, %v2126_v13, %v2154_v16  ;;  %v2157_v9 = vsel %vm14841_vm15, %v2128_v62, %v2156_v63  ;;  %v2158_v4 = vsel %vm484_vm3, %v2142_v3, %v2143_v43  ;;  %v11921_v16 = vld.sshfl [vmem:[#allocation1] sm:$0xff pattern:$0x73625140]  ;;  %v11923_v63 = vld.sshfl [vmem:[#allocation1 + $0x8] sm:$0xff pattern:$0x73625140] }
 0x4c3   : > { %2174 = vst [vmem:[#allocation2 + $0x160] sm:$0xff] %v2155_v20  ;;  %v2159_v60 = vsel %vm14841_vm15, %v2130_v26, %v2158_v4  ;;  %v11931_v20 = vld.sshfl [vmem:[#allocation1 + $0x10] sm:$0xff pattern:$0x73625140] }
 0x4c4   : > { %2175 = vst [vmem:[#allocation2 + $0x168] sm:$0xff] %v2157_v9  ;;  %v11933_v9 = vld.sshfl [vmem:[#allocation1 + $0x18] sm:$0xff pattern:$0x73625140] }
 0x4c5   : > { %2176 = vst [vmem:[#allocation2 + $0x170] sm:$0xff] %v2159_v60  ;;  %v2272_v31 = vpop.permute.xlu2 %2271 }
 0x4c6   : > { %v2134_v59 = vpop.permute.xlu1 %2133  ;;  %2514 = vst [vmem:[#allocation1 + $0x1] ss:$4 sm:$0xff] %v11851_v1 }
 0x4c7   : > { %v2144_v42 = vrot.slane %v2134_v59, 4  ;;  %v2225_v10 = vpop.permute.xlu0 %2224 }
 0x4c8   : > { %v2240_v17 = vsel %vm358_vm0, %v2223_v51, %v2225_v10 }
 0x4c9   : > { %v2160_v55 = vsel %vm484_vm3, %v2143_v43, %v2144_v42  ;;  %v2344_v18 = vsel %vm467_vm1, %v11664_v54, %v2240_v17 }
 0x4ca   : > { %v2161_v47 = vsel %vm14841_vm15, %v2132_v39, %v2160_v55  ;;  %vm14842_vm15 = vcmask 752640  }
 0x4cb   : > { %2177 = vst [vmem:[#allocation2 + $0x178] sm:$0xff] %v2161_v47 }
 0x4cd   : > { %v2278_v19 = vpop.permute.xlu2 %2277 }
 0x4ce   : > { %v2227_v25 = vpop.permute.xlu1 %2226 }
 0x4cf   : > { %v2231_v5 = vpop.permute.xlu0 %2230  ;;  %v2241_v33 = vsel %vm358_vm0, %v2225_v10, %v2227_v25  ;;  %v2242_v13 = vsel %vm358_vm0, %v2227_v25, %v2229_v56 }
 0x4d0   : > { %v2346_v49 = vsel %vm467_vm1, %v11666_v38, %v2241_v33  ;;  %v2243_v38 = vsel %vm358_vm0, %v2229_v56, %v2231_v5  ;;  %v2348_v46 = vsel %vm467_vm1, %v11668_v35, %v2242_v13 }
 0x4d1   : > { %v2350_v62 = vsel %vm467_vm1, %v11670_v7, %v2243_v38  ;;  %v11979_v38 = vld.sshfl [vmem:[#allocation1 + $0x20] sm:$0xff pattern:$0x73625140] }
 0x4d5   : > { %v2284_v14 = vpop.permute.xlu2 %2283 }
 0x4d6   : > { %v2233_v11 = vpop.permute.xlu1 %2232 }
 0x4d7   : > { %v2237_v12 = vpop.permute.xlu0 %2236  ;;  %v2244_v4 = vsel %vm358_vm0, %v2231_v5, %v2233_v11  ;;  %v2245_v42 = vsel %vm358_vm0, %v2233_v11, %v2235_v0 }
 0x4d8   : > { %v2246_v10 = vsel %vm358_vm0, %v2235_v0, %v2237_v12  ;;  %v2354_v0 = vsel %vm467_vm1, %v11789_v40, %v2245_v42 }
 0x4dd   : > { %v2320_v24 = vpop.permute.xlu2 %2319 }
 0x4de   : > { %v11885_v21 = vpop.permute.xlu1 %2238 }
 0x4df   : > { %v2274_v34 = vpop.permute.xlu0 %2273  ;;  %v2247_v55 = vsel %vm358_vm0, %v2237_v12, %v11885_v21  ;;  %v2356_v12 = vsel %vm467_vm1, %v11791_v30, %v2246_v10  ;;  %v11966_v30 = vld [vmem:[%s11847_s22 + $0x10] sm:$0x3] }
 0x4e0   : > { %v2289_v32 = vsel %vm408_vm2, %v2272_v31, %v2274_v34 }
 0x4e1   : > { %v2362_v44 = vsel %vm484_vm3, %v2344_v18, %v2289_v32 }
 0x4e2   : > { %v11899_v45 = vsel %vm501_vm5, %v2362_v44, %v2320_v24 }
 0x4e3   : > { %v2406_v2 = vunpack.c.l.b16 %v11899_v45 }
 0x4e5   : > { %v2326_v50 = vpop.permute.xlu2 %2325 }
 0x4e6   : > { %v2276_v57 = vpop.permute.xlu1 %2275 }
 0x4e7   : > { %v2280_v36 = vpop.permute.xlu0 %2279  ;;  %v2290_v58 = vsel %vm408_vm2, %v2274_v34, %v2276_v57  ;;  %v2291_v27 = vsel %vm408_vm2, %v2276_v57, %v2278_v19  ;;  %v2358_v57 = vsel %vm467_vm1, %v11797_v8, %v2247_v55 }
 0x4e8   : > { %v2364_v22 = vsel %vm484_vm3, %v2346_v49, %v2290_v58  ;;  %v2292_v6 = vsel %vm408_vm2, %v2278_v19, %v2280_v36  ;;  %v2366_v15 = vsel %vm484_vm3, %v2348_v46, %v2291_v27  ;;  %v2352_v19 = vsel %vm467_vm1, %v11782_v29, %v2244_v4  ;;  %v2521_v58 = vld.sshfl [vmem:[#allocation1 + $0x10] sm:$0xff pattern:$0x73625140]  ;;  %v2523_v49 = vld.sshfl [vmem:[#allocation1 + $0x18] sm:$0xff pattern:$0x73625140] }
 0x4e9   : > { %v2368_v41 = vsel %vm484_vm3, %v2350_v62, %v2292_v6  ;;  %v11983_v46 = vld.sshfl [vmem:[#allocation1 + $0x30] sm:$0xff pattern:$0x73625140] }
 0x4ed   : > { %v2332_v11 = vpop.permute.xlu2 %2331 }
 0x4ee   : > { %v2282_v37 = vpop.permute.xlu1 %2281 }
 0x4ef   : > { %v11887_v61 = vpop.permute.xlu0 %2285  ;;  %v2293_v47 = vsel %vm408_vm2, %v2280_v36, %v2282_v37  ;;  %v2294_v25 = vsel %vm408_vm2, %v2282_v37, %v2284_v14  ;;  %v2360_v36 = vsel %vm467_vm1, %v11750_v52, %v11885_v21 }
 0x4f0   : > { %v2295_v5 = vsel %vm408_vm2, %v2284_v14, %v11887_v61  ;;  %v2370_v29 = vsel %vm484_vm3, %v2352_v19, %v2293_v47  ;;  %v2372_v14 = vsel %vm484_vm3, %v2354_v0, %v2294_v25 }
 0x4f1   : > { %v2374_v37 = vsel %vm484_vm3, %v2356_v12, %v2295_v5 }
 0x4f6   : > { %v2288_v26 = vpop.permute.xlu1 %2287 }
 0x4f7   : > { %v2322_v28 = vpop.permute.xlu0 %2321  ;;  %v2296_v40 = vsel %vm408_vm2, %v11887_v61, %v2288_v26  ;;  %v2378_v8 = vsel %vm484_vm3, %v2360_v36, %v2288_v26 }
 0x4f8   : > { %v2336_v51 = vsel %vm14842_vm15, %v2320_v24, %v2322_v28 }
 0x4f9   : > { %v11904_v54 = vsel %vm501_vm5, %v2364_v22, %v2336_v51  ;;  %v2517_v51 = vld.sshfl [vmem:[#allocation1] sm:$0xff pattern:$0x73625140] }
 0x4fa   : > { %v2407_v23 = vunpack.c.l.b16 %v11904_v54 }
 0x4fc   : > { %v2424_v48 = vpack.c.b16 %v2407_v23, %v2406_v2  ;;  %v2519_v2 = vld.sshfl [vmem:[#allocation1 + $0x8] sm:$0xff pattern:$0x73625140] }
 0x4fd   : > { %2534 = vst [vmem:[#allocation1 + $0x1] ss:$4 sm:$0xff] %v11966_v30 }
 0x4fe   : > { %2434 = vrot.lane.b32.xlu1 %v2424_v48, %s10414_s26  ;;  %v2324_v3 = vpop.permute.xlu1 %2323  ;;  %v11981_v48 = vld.sshfl [vmem:[#allocation1 + $0x28] sm:$0xff pattern:$0x73625140] }
 0x4ff   : > { %v2337_v39 = vsel %vm14842_vm15, %v2322_v28, %v2324_v3  ;;  %v2328_v56 = vpop.permute.xlu0 %2327  ;;  %v2338_v43 = vsel %vm14842_vm15, %v2324_v3, %v2326_v50  ;;  %v2376_v28 = vsel %vm484_vm3, %v2358_v57, %v2296_v40  ;;  %v11985_v3 = vld.sshfl [vmem:[#allocation1 + $0x38] sm:$0xff pattern:$0x73625140] }
 0x500   : > { %v11926_v35 = vsel %vm501_vm5, %v2366_v15, %v2337_v39  ;;  %v11929_v7 = vsel %vm501_vm5, %v2368_v41, %v2338_v43  ;;  %v2339_v34 = vsel %vm14842_vm15, %v2326_v50, %v2328_v56  ;;  %2516 = vst [vmem:[#allocation1 + $0x21] ss:$4 sm:$0xff] %v11860_v53  ;;  %v2416_v39 = vunpack.c.h.b16 %v11904_v54 }
 0x501   : > { %v2408_v60 = vunpack.c.l.b16 %v11926_v35  ;;  %v2409_v59 = vunpack.c.l.b16 %v11929_v7  ;;  %v2388_v32 = vsel %vm501_vm5, %v2370_v29, %v2339_v34  ;;  %v2418_v43 = vunpack.c.h.b16 %v11929_v7 }
 0x502   : > { %v2410_v23 = vunpack.c.l.b16 %v2388_v32  ;;  %v2419_v4 = vunpack.c.h.b16 %v2388_v32 }
 0x503   : > { %v2425_v31 = vpack.c.b16 %v2409_v59, %v2408_v60  ;;  %v2415_v59 = vunpack.c.h.b16 %v11899_v45 }
 0x504   : > { %v2535_v60 = vld.sshfl [vmem:[#allocation1] sm:$0xff pattern:$0x73625140] }
 0x505   : > { %2436 = vrot.lane.b32.xlu2 %v2425_v31, %s10414_s26  ;;  %2564 = vst [vmem:[#allocation1 + $0x2] ss:$4 sm:$0xff] %v11851_v1  ;;  %v2429_v10 = vpack.c.b16 %v2416_v39, %v2415_v59 }
 0x506   : > { %v2330_v17 = vpop.permute.xlu1 %2329 }
 0x507   : > { %v2340_v52 = vsel %vm14842_vm15, %v2328_v56, %v2330_v17  ;;  %v2334_v21 = vpop.permute.xlu0 %2333  ;;  %v2341_v24 = vsel %vm14842_vm15, %v2330_v17, %v2332_v11  ;;  %v2417_v56 = vunpack.c.h.b16 %v11926_v35  ;;  %v2527_v34 = vld.sshfl [vmem:[#allocation1 + $0x28] sm:$0xff pattern:$0x73625140]  ;;  %v2531_v0 = vld.sshfl [vmem:[#allocation1 + $0x38] sm:$0xff pattern:$0x73625140] }
 0x508   : > { %v2390_v18 = vsel %vm501_vm5, %v2372_v14, %v2340_v52  ;;  %v2396_v33 = vsel %vm501_vm5, %v2378_v8, %v2334_v21  ;;  %v2342_v44 = vsel %vm14842_vm15, %v2332_v11, %v2334_v21  ;;  %v2392_v61 = vsel %vm501_vm5, %v2374_v37, %v2341_v24  ;;  %v2525_v11 = vld.sshfl [vmem:[#allocation1 + $0x20] sm:$0xff pattern:$0x73625140]  ;;  %v2529_v12 = vld.sshfl [vmem:[#allocation1 + $0x30] sm:$0xff pattern:$0x73625140] }
 0x509   : > { %v2411_v26 = vunpack.c.l.b16 %v2390_v18  ;;  %v2414_v22 = vunpack.c.l.b16 %v2396_v33  ;;  %v2394_v50 = vsel %vm501_vm5, %v2376_v28, %v2342_v44  ;;  %v2412_v13 = vunpack.c.l.b16 %v2392_v61  ;;  %2566 = vst [vmem:[#allocation1 + $0x22] ss:$4 sm:$0xff] %v11860_v53  ;;  %v12021_v52 = vld [vmem:[%s11847_s22 + $0x10] sm:$0x3] }
 0x50a   : > { %v2413_v6 = vunpack.c.l.b16 %v2394_v50  ;;  %v2420_v41 = vunpack.c.h.b16 %v2390_v18  ;;  %v2430_v55 = vpack.c.b16 %v2418_v43, %v2417_v56  ;;  %v2421_v54 = vunpack.c.h.b16 %v2392_v61 }
 0x50b   : > { %v2428_v27 = vpack.c.b16 %v2414_v22, %v2414_v22  ;;  %v2426_v62 = vpack.c.b16 %v2411_v26, %v2410_v23  ;;  %v2422_v47 = vunpack.c.h.b16 %v2394_v50  ;;  %v2423_v35 = vunpack.c.h.b16 %v2396_v33 }
 0x50c   : > { %v2427_v15 = vpack.c.b16 %v2413_v6, %v2412_v13  ;;  %v2431_v42 = vpack.c.b16 %v2420_v41, %v2419_v4  ;;  %v2567_v25 = vld.sshfl [vmem:[#allocation1] sm:$0xff pattern:$0x73625140]  ;;  %v2569_v7 = vld.sshfl [vmem:[#allocation1 + $0x8] sm:$0xff pattern:$0x73625140] }
 0x50d   : > { %2442 = vrot.lane.b32.xlu2 %v2428_v27, %s10414_s26  ;;  %2438 = vrot.lane.b32.xlu0 %v2426_v62, %s10414_s26  ;;  %v2571_v5 = vld.sshfl [vmem:[#allocation1 + $0x10] sm:$0xff pattern:$0x73625140]  ;;  %v2573_v31 = vld.sshfl [vmem:[#allocation1 + $0x18] sm:$0xff pattern:$0x73625140]  ;;  %v2432_v45 = vpack.c.b16 %v2422_v47, %v2421_v54  ;;  %v2433_v19 = vpack.c.b16 %v2423_v35, %v2423_v35 }
 0x50e   : > { %2440 = vrot.lane.b32.xlu1 %v2427_v15, %s10414_s26  ;;  %2583 = vst [vmem:[#allocation1 + $0x2] ss:$4 sm:$0xff] %v11966_v30  ;;  %vm2465_vm15 = vcmask 293888  }
 0x510   : > { %v2577_v17 = vld.sshfl [vmem:[#allocation1 + $0x28] sm:$0xff pattern:$0x73625140]  ;;  %v2575_v8 = vld.sshfl [vmem:[#allocation1 + $0x20] sm:$0xff pattern:$0x73625140] }
 0x511   : > { %v2581_v32 = vld.sshfl [vmem:[#allocation1 + $0x38] sm:$0xff pattern:$0x73625140] }
 0x515   : > { %2448 = vrot.lane.b32.xlu2 %v2431_v42, %s10414_s26  ;;  %2444 = vrot.lane.b32.xlu0 %v2429_v10, %s10414_s26  ;;  %v2584_v57 = vld.sshfl [vmem:[#allocation1] sm:$0xff pattern:$0x73625140] }
 0x516   : > { %2446 = vrot.lane.b32.xlu1 %v2430_v55, %s10414_s26  ;;  %2613 = vst [vmem:[#allocation1 + $0x3] ss:$4 sm:$0xff] %v11851_v1 }
 0x51d   : > { %2537 = vrot.lane.b32.xlu2 %v2517_v51, %s10400_s30  ;;  %2450 = vrot.lane.b32.xlu0 %v2432_v45, %s10414_s26  ;;  %v2616_v36 = vld.sshfl [vmem:[#allocation1] sm:$0xff pattern:$0x73625140]  ;;  %v2618_v29 = vld.sshfl [vmem:[#allocation1 + $0x8] sm:$0xff pattern:$0x73625140] }
 0x51e   : > { %2452 = vrot.lane.b32.xlu1 %v2433_v19, %s10414_s26  ;;  %v2620_v14 = vld.sshfl [vmem:[#allocation1 + $0x10] sm:$0xff pattern:$0x73625140]  ;;  %v2622_v37 = vld.sshfl [vmem:[#allocation1 + $0x18] sm:$0xff pattern:$0x73625140] }
 0x51f   : > { %2632 = vst [vmem:[#allocation1 + $0x3] ss:$4 sm:$0xff] %v11966_v30  ;;  %v2579_v30 = vld.sshfl [vmem:[#allocation1 + $0x30] sm:$0xff pattern:$0x73625140] }
 0x520   : > { %2615 = vst [vmem:[#allocation1 + $0x23] ss:$4 sm:$0xff] %v11860_v53 }
 0x525   : > { %2543 = vrot.lane.b32.xlu2 %v2523_v49, %s10400_s30  ;;  %2539 = vrot.lane.b32.xlu0 %v2519_v2, %s10400_s30 }
 0x526   : > { %2541 = vrot.lane.b32.xlu1 %v2521_v58, %s10400_s30  ;;  %v2633_v40 = vld.sshfl [vmem:[#allocation1] sm:$0xff pattern:$0x73625140] }
 0x527   : > { %2761 = vst [vmem:[#allocation1] ss:$4 sm:$0xff] %v11851_v1  ;;  %v2630_v44 = vld.sshfl [vmem:[#allocation1 + $0x38] sm:$0xff pattern:$0x73625140] }
 0x528   : > { %v2626_v61 = vld.sshfl [vmem:[#allocation1 + $0x28] sm:$0xff pattern:$0x73625140]  ;;  %v2624_v58 = vld.sshfl [vmem:[#allocation1 + $0x20] sm:$0xff pattern:$0x73625140] }
 0x529   : > { %v2628_v49 = vld.sshfl [vmem:[#allocation1 + $0x30] sm:$0xff pattern:$0x73625140] }
 0x52a   : > { %2764 = vst [vmem:[#allocation1 + $0x20] ss:$4 sm:$0xff] %v11860_v53 }
 0x52d   : > { %2549 = vrot.lane.b32.xlu2 %v2529_v12, %s10400_s30  ;;  %2545 = vrot.lane.b32.xlu0 %v2525_v11, %s10400_s30 }
 0x52e   : > { %2547 = vrot.lane.b32.xlu1 %v2527_v34, %s10400_s30  ;;  %v12023_v21 = vld.sshfl [vmem:[#allocation1] sm:$0xff pattern:$0x73625140]  ;;  %v12025_v24 = vld.sshfl [vmem:[#allocation1 + $0x8] sm:$0xff pattern:$0x73625140] }
 0x52f   : > { %v12027_v18 = vld.sshfl [vmem:[#allocation1 + $0x10] sm:$0xff pattern:$0x73625140]  ;;  %v12029_v33 = vld.sshfl [vmem:[#allocation1 + $0x18] sm:$0xff pattern:$0x73625140] }
 0x530   : > { %2774 = vst [vmem:[#allocation1] ss:$4 sm:$0xff] %v12021_v52 }
 0x531   : > { %v12042_v26 = vld.sshfl [vmem:[#allocation1 + $0x20] sm:$0xff pattern:$0x73625140]  ;;  %v12044_v22 = vld.sshfl [vmem:[#allocation1 + $0x28] sm:$0xff pattern:$0x73625140] }
 0x532   : > { %v12048_v13 = vld.sshfl [vmem:[#allocation1 + $0x30] sm:$0xff pattern:$0x73625140]  ;;  %v12051_v27 = vld.sshfl [vmem:[#allocation1 + $0x38] sm:$0xff pattern:$0x73625140] }
 0x533   : > { %2779 = vst [vmem:[#allocation1 + $0x21] ss:$4 sm:$0xff] %v11860_v53 }
 0x535   : > { %2586 = vrot.lane.b32.xlu2 %v2567_v25, %s10401_s8  ;;  %2551 = vrot.lane.b32.xlu0 %v2531_v0, %s10400_s30 }
 0x536   : > { %2553 = vrot.lane.b32.xlu1 %v2535_v60, %s10400_s30 }
 0x537   : > { %v12035_v28 = vld.sshfl [vmem:[#allocation1] sm:$0xff pattern:$0x73625140] }
 0x538   : > { %2777 = vst [vmem:[#allocation1 + $0x1] ss:$4 sm:$0xff] %v11851_v1 }
 0x53a   : > { %v2790_v4 = vld.sshfl [vmem:[#allocation1 + $0x28] sm:$0xff pattern:$0x73625140]  ;;  %v2788_v60 = vld.sshfl [vmem:[#allocation1 + $0x20] sm:$0xff pattern:$0x73625140] }
 0x53b   : > { %v2794_v59 = vld.sshfl [vmem:[#allocation1 + $0x38] sm:$0xff pattern:$0x73625140]  ;;  %v2792_v42 = vld.sshfl [vmem:[#allocation1 + $0x30] sm:$0xff pattern:$0x73625140] }
 0x53c   : > { %2828 = vst [vmem:[#allocation1 + $0x22] ss:$4 sm:$0xff] %v11860_v53 }
 0x53d   : > { %2592 = vrot.lane.b32.xlu2 %v2573_v31, %s10401_s8  ;;  %2588 = vrot.lane.b32.xlu0 %v2569_v7, %s10401_s8 }
 0x53e   : > { %2590 = vrot.lane.b32.xlu1 %v2571_v5, %s10401_s8 }
 0x53f   : > { %v2784_v51 = vld.sshfl [vmem:[#allocation1 + $0x10] sm:$0xff pattern:$0x73625140]  ;;  %v2786_v2 = vld.sshfl [vmem:[#allocation1 + $0x18] sm:$0xff pattern:$0x73625140] }
 0x540   : > { %v2780_v23 = vld.sshfl [vmem:[#allocation1] sm:$0xff pattern:$0x73625140]  ;;  %v2782_v50 = vld.sshfl [vmem:[#allocation1 + $0x8] sm:$0xff pattern:$0x73625140] }
 0x541   : > { %2796 = vst [vmem:[#allocation1 + $0x1] ss:$4 sm:$0xff] %v12021_v52 }
 0x545   : > { %2598 = vrot.lane.b32.xlu2 %v2579_v30, %s10401_s8  ;;  %2594 = vrot.lane.b32.xlu0 %v2575_v8, %s10401_s8  ;;  %v2841_v8 = vld.sshfl [vmem:[#allocation1 + $0x30] sm:$0xff pattern:$0x73625140] }
 0x546   : > { %2596 = vrot.lane.b32.xlu1 %v2577_v17, %s10401_s8 }
 0x548   : > { %v2797_v6 = vld.sshfl [vmem:[#allocation1] sm:$0xff pattern:$0x73625140] }
 0x549   : > { %2826 = vst [vmem:[#allocation1 + $0x2] ss:$4 sm:$0xff] %v11851_v1 }
 0x54d   : > { %2635 = vrot.lane.b32.xlu2 %v2616_v36, %s10402_s9  ;;  %2600 = vrot.lane.b32.xlu0 %v2581_v32, %s10401_s8  ;;  %v2837_v36 = vld.sshfl [vmem:[#allocation1 + $0x20] sm:$0xff pattern:$0x73625140] }
 0x54e   : > { %2602 = vrot.lane.b32.xlu1 %v2584_v57, %s10401_s8  ;;  %v2839_v57 = vld.sshfl [vmem:[#allocation1 + $0x28] sm:$0xff pattern:$0x73625140] }
 0x550   : > { %v2829_v15 = vld.sshfl [vmem:[#allocation1] sm:$0xff pattern:$0x73625140]  ;;  %v2831_v41 = vld.sshfl [vmem:[#allocation1 + $0x8] sm:$0xff pattern:$0x73625140] }
 0x551   : > { %v2833_v39 = vld.sshfl [vmem:[#allocation1 + $0x10] sm:$0xff pattern:$0x73625140]  ;;  %v2835_v56 = vld.sshfl [vmem:[#allocation1 + $0x18] sm:$0xff pattern:$0x73625140] }
 0x552   : > { %2845 = vst [vmem:[#allocation1 + $0x2] ss:$4 sm:$0xff] %v12021_v52 }
 0x555   : > { %2641 = vrot.lane.b32.xlu2 %v2622_v37, %s10402_s9  ;;  %2637 = vrot.lane.b32.xlu0 %v2618_v29, %s10402_s9  ;;  %v2843_v37 = vld.sshfl [vmem:[#allocation1 + $0x38] sm:$0xff pattern:$0x73625140] }
 0x556   : > { %2639 = vrot.lane.b32.xlu1 %v2620_v14, %s10402_s9  ;;  %2877 = vst [vmem:[#allocation1 + $0x23] ss:$4 sm:$0xff] %v11860_v53 }
 0x559   : > { %v12064_v10 = vld.sshfl [vmem:[#allocation1] sm:$0xff pattern:$0x73625140] }
 0x55a   : > { %2875 = vst [vmem:[#allocation1 + $0x3] ss:$4 sm:$0xff] %v11851_v1 }
 0x55d   : > { %2647 = vrot.lane.b32.xlu2 %v2628_v49, %s10402_s9  ;;  %2643 = vrot.lane.b32.xlu0 %v2624_v58, %s10402_s9 }
 0x55e   : > { %2645 = vrot.lane.b32.xlu1 %v2626_v61, %s10402_s9 }
 0x55f   : > { %v2437_v62 = vpop.permute.xlu2 %2436 }
 0x560   : > { %v2455_v47 = vrot.slane %v2437_v62, 4 }
 0x561   : > { %v12073_v7 = vld.sshfl [vmem:[#allocation1] sm:$0xff pattern:$0x73625140]  ;;  %v12075_v5 = vld.sshfl [vmem:[#allocation1 + $0x8] sm:$0xff pattern:$0x73625140] }
 0x562   : > { %v12079_v45 = vld.sshfl [vmem:[#allocation1 + $0x10] sm:$0xff pattern:$0x73625140]  ;;  %v12081_v19 = vld.sshfl [vmem:[#allocation1 + $0x18] sm:$0xff pattern:$0x73625140] }
 0x563   : > { %2894 = vst [vmem:[#allocation1 + $0x3] ss:$4 sm:$0xff] %v12021_v52 }
 0x565   : > { %2799 = vrot.lane.b32.xlu2 %v2780_v23, %s10400_s30  ;;  %2649 = vrot.lane.b32.xlu0 %v2630_v44, %s10402_s9 }
 0x566   : > { %2651 = vrot.lane.b32.xlu1 %v2633_v40, %s10402_s9 }
 0x567   : > { %v2443_v43 = vpop.permute.xlu2 %2442 }
 0x568   : > { %v2458_v40 = vrot.slane %v2443_v43, 4 }
 0x56a   : > { %v12089_v11 = vld.sshfl [vmem:[#allocation1] sm:$0xff pattern:$0x73625140] }
 0x56b   : > { %3080 = vst [vmem:[#allocation1] ss:$4 sm:$0xff] %v11851_v1 }
 0x56d   : > { %2805 = vrot.lane.b32.xlu2 %v2786_v2, %s10400_s30  ;;  %2801 = vrot.lane.b32.xlu0 %v2782_v50, %s10400_s30 }
 0x56e   : > { %2803 = vrot.lane.b32.xlu1 %v2784_v51, %s10400_s30 }
 0x56f   : > { %v12070_v55 = vpop.permute.xlu2 %2448 }
 0x570   : > { %v2435_v54 = vpop.permute.xlu1 %2434  ;;  %v2461_v50 = vrot.slane %v12070_v55, 4 }
 0x571   : > { %v2454_v35 = vrot.slane %v2435_v54, 4 }
 0x573   : > { %v2464_v25 = vsel %vm484_vm3, %v2454_v35, %v2455_v47  ;;  %v12125_v35 = vld.sshfl [vmem:[#allocation1 + $0x18] sm:$0xff pattern:$0x73625140] }
 0x574   : > { %v2466_v31 = vsel %vm2465_vm15, %v2435_v54, %v2464_v25 }
 0x575   : > { %2811 = vrot.lane.b32.xlu2 %v2792_v42, %s10400_s30  ;;  %2807 = vrot.lane.b32.xlu0 %v2788_v60, %s10400_s30  ;;  %2489 = vst [vmem:[#allocation2 + $0x180] sm:$0xff] %v2466_v31  ;;  %v12123_v42 = vld.sshfl [vmem:[#allocation1 + $0x10] sm:$0xff pattern:$0x73625140] }
 0x576   : > { %2809 = vrot.lane.b32.xlu1 %v2790_v4, %s10400_s30  ;;  %v12119_v4 = vld.sshfl [vmem:[#allocation1] sm:$0xff pattern:$0x73625140] }
 0x577   : > { %v12086_v34 = vpop.permute.xlu2 %2537 }
 0x57d   : > { %2848 = vrot.lane.b32.xlu2 %v2829_v15, %s10403_s10  ;;  %2813 = vrot.lane.b32.xlu0 %v2794_v59, %s10400_s30  ;;  %v12121_v59 = vld.sshfl [vmem:[#allocation1 + $0x8] sm:$0xff pattern:$0x73625140] }
 0x57e   : > { %2815 = vrot.lane.b32.xlu1 %v2797_v6, %s10400_s30 }
 0x57f   : > { %v12094_v0 = vpop.permute.xlu2 %2543  ;;  %v2439_v12 = vpop.permute.xlu0 %2438 }
 0x580   : > { %v2456_v29 = vrot.slane %v2439_v12, 4  ;;  %v2441_v14 = vpop.permute.xlu1 %2440 }
 0x581   : > { %v2457_v17 = vrot.slane %v2441_v14, 4 }
 0x582   : > { %v2467_v32 = vsel %vm484_vm3, %v2455_v47, %v2456_v29 }
 0x583   : > { %v2468_v30 = vsel %vm2465_vm15, %v2437_v62, %v2467_v32  ;;  %v2469_v52 = vsel %vm484_vm3, %v2456_v29, %v2457_v17  ;;  %v2471_v44 = vsel %vm484_vm3, %v2457_v17, %v2458_v40  ;;  %v2888_v17 = vld.sshfl [vmem:[#allocation1 + $0x28] sm:$0xff pattern:$0x73625140]  ;;  %v2890_v32 = vld.sshfl [vmem:[#allocation1 + $0x30] sm:$0xff pattern:$0x73625140] }
 0x584   : > { %2490 = vst [vmem:[#allocation2 + $0x188] sm:$0xff] %v2468_v30  ;;  %v2470_v61 = vsel %vm2465_vm15, %v2439_v12, %v2469_v52  ;;  %v2472_v58 = vsel %vm2465_vm15, %v2441_v14, %v2471_v44 }
 0x585   : > { %2854 = vrot.lane.b32.xlu2 %v2835_v56, %s10403_s10  ;;  %2491 = vst [vmem:[#allocation2 + $0x190] sm:$0xff] %v2470_v61  ;;  %2850 = vrot.lane.b32.xlu0 %v2831_v41, %s10403_s10 }
 0x586   : > { %2492 = vst [vmem:[#allocation2 + $0x198] sm:$0xff] %v2472_v58  ;;  %2852 = vrot.lane.b32.xlu1 %v2833_v39, %s10403_s10  ;;  %v12116_v39 = vld [vmem:[%s11847_s22 + $0x10] sm:$0x3] }
 0x587   : > { %v12106_v49 = vpop.permute.xlu2 %2549  ;;  %v2445_v51 = vpop.permute.xlu0 %2444  ;;  %3093 = vst [vmem:[#allocation1] ss:$4 sm:$0xff] %v12116_v39 }
 0x588   : > { %v2459_v2 = vrot.slane %v2445_v51, 4  ;;  %v2447_v23 = vpop.permute.xlu1 %2446 }
 0x589   : > { %v2460_v6 = vrot.slane %v2447_v23, 4 }
 0x58b   : > { %v2473_v62 = vsel %vm484_vm3, %v2459_v2, %v2460_v6  ;;  %v2475_v15 = vsel %vm484_vm3, %v2460_v6, %v2461_v50 }
 0x58c   : > { %v2474_v56 = vsel %vm2465_vm15, %v2445_v51, %v2473_v62  ;;  %v2476_v41 = vsel %vm2465_vm15, %v2447_v23, %v2475_v15 }
 0x58d   : > { %2860 = vrot.lane.b32.xlu2 %v2841_v8, %s10403_s10  ;;  %2493 = vst [vmem:[#allocation2 + $0x1a0] sm:$0xff] %v2474_v56  ;;  %2856 = vrot.lane.b32.xlu0 %v2837_v36, %s10403_s10  ;;  %v2886_v8 = vld.sshfl [vmem:[#allocation1 + $0x20] sm:$0xff pattern:$0x73625140] }
 0x58e   : > { %2494 = vst [vmem:[#allocation2 + $0x1a8] sm:$0xff] %v2476_v41  ;;  %2858 = vrot.lane.b32.xlu1 %v2839_v57, %s10403_s10 }
 0x58f   : > { %v2587_v43 = vpop.permute.xlu2 %2586  ;;  %v2451_v60 = vpop.permute.xlu0 %2450 }
 0x590   : > { %v2462_v54 = vrot.slane %v2451_v60, 4  ;;  %v2453_v47 = vpop.permute.xlu1 %2452 }
 0x591   : > { %v2463_v25 = vrot.slane %v2453_v47, 4 }
 0x592   : > { %v2477_v31 = vsel %vm484_vm3, %v2461_v50, %v2462_v54 }
 0x593   : > { %v2478_v12 = vsel %vm2465_vm15, %v12070_v55, %v2477_v31  ;;  %v2479_v57 = vsel %vm484_vm3, %v2462_v54, %v2463_v25  ;;  %v2892_v55 = vld.sshfl [vmem:[#allocation1 + $0x38] sm:$0xff pattern:$0x73625140] }
 0x594   : > { %2495 = vst [vmem:[#allocation2 + $0x1b0] sm:$0xff] %v2478_v12  ;;  %v2480_v36 = vsel %vm2465_vm15, %v2451_v60, %v2479_v57 }
 0x595   : > { %2897 = vrot.lane.b32.xlu2 %v12073_v7, %s10402_s9  ;;  %2496 = vst [vmem:[#allocation2 + $0x1b8] sm:$0xff] %v2480_v36  ;;  %2862 = vrot.lane.b32.xlu0 %v2843_v37, %s10403_s10 }
 0x596   : > { %2864 = vrot.lane.b32.xlu1 %v12064_v10, %s10403_s10  ;;  %3083 = vst [vmem:[#allocation1 + $0x20] ss:$4 sm:$0xff] %v11860_v53 }
 0x597   : > { %v2593_v29 = vpop.permute.xlu2 %2592  ;;  %v2540_v14 = vpop.permute.xlu0 %2539 }
 0x598   : > { %v2542_v40 = vpop.permute.xlu1 %2541  ;;  %v2555_v50 = vsel %vm358_vm0, %v12086_v34, %v2540_v14 }
 0x599   : > { %v2556_v6 = vsel %vm358_vm0, %v2540_v14, %v2542_v40  ;;  %v2557_v62 = vsel %vm358_vm0, %v2542_v40, %v12094_v0  ;;  %v2662_v41 = vsel %vm467_vm1, %v11921_v16, %v2555_v50 }
 0x59a   : > { %v2664_v54 = vsel %vm467_vm1, %v11923_v63, %v2556_v6  ;;  %v2666_v34 = vsel %vm467_vm1, %v11931_v20, %v2557_v62 }
 0x59d   : > { %2903 = vrot.lane.b32.xlu2 %v12081_v19, %s10402_s9  ;;  %2899 = vrot.lane.b32.xlu0 %v12075_v5, %s10402_s9 }
 0x59e   : > { %2901 = vrot.lane.b32.xlu1 %v12079_v45, %s10402_s9 }
 0x59f   : > { %v12145_v7 = vpop.permute.xlu2 %2598  ;;  %v2546_v10 = vpop.permute.xlu0 %2545 }
 0x5a0   : > { %v2548_v37 = vpop.permute.xlu1 %2547  ;;  %v2558_v20 = vsel %vm358_vm0, %v12094_v0, %v2546_v10 }
 0x5a5   : > { %2909 = vrot.lane.b32.xlu2 %v2890_v32, %s10402_s9  ;;  %2905 = vrot.lane.b32.xlu0 %v2886_v8, %s10402_s9  ;;  %v2560_v32 = vsel %vm358_vm0, %v2548_v37, %v12106_v49 }
 0x5a6   : > { %2907 = vrot.lane.b32.xlu1 %v2888_v17, %s10402_s9  ;;  %v2559_v17 = vsel %vm358_vm0, %v2546_v10, %v2548_v37  ;;  %v2668_v10 = vsel %vm467_vm1, %v11933_v9, %v2558_v20  ;;  %v2672_v37 = vsel %vm467_vm1, %v11981_v48, %v2560_v32 }
 0x5a7   : > { %v12150_v30 = vpop.permute.xlu0 %2551  ;;  %v2636_v19 = vpop.permute.xlu2 %2635 }
 0x5a8   : > { %v12152_v52 = vpop.permute.xlu1 %2553 }
 0x5ad   : > { %2911 = vrot.lane.b32.xlu0 %v2892_v55, %s10402_s9 }
 0x5ae   : > { %2913 = vrot.lane.b32.xlu1 %v12089_v11, %s10402_s9 }
 0x5af   : > { %v2589_v5 = vpop.permute.xlu0 %2588  ;;  %v2642_v44 = vpop.permute.xlu2 %2641 }
 0x5b0   : > { %v2591_v45 = vpop.permute.xlu1 %2590  ;;  %v2604_v11 = vsel %vm408_vm2, %v2587_v43, %v2589_v5 }
 0x5b1   : > { %v2605_v15 = vsel %vm408_vm2, %v2589_v5, %v2591_v45  ;;  %v2678_v47 = vsel %vm484_vm3, %v2662_v41, %v2604_v11  ;;  %v2606_v12 = vsel %vm408_vm2, %v2591_v45, %v2593_v29  ;;  %v2670_v11 = vsel %vm467_vm1, %v11979_v38, %v2559_v17 }
 0x5b2   : > { %v2680_v43 = vsel %vm484_vm3, %v2664_v54, %v2605_v15 }
 0x5b7   : > { %v2595_v61 = vpop.permute.xlu0 %2594  ;;  %v12157_v51 = vpop.permute.xlu2 %2647 }
 0x5b8   : > { %v2597_v58 = vpop.permute.xlu1 %2596  ;;  %v2607_v5 = vsel %vm408_vm2, %v2593_v29, %v2595_v61 }
 0x5b9   : > { %v2608_v45 = vsel %vm408_vm2, %v2595_v61, %v2597_v58  ;;  %v2609_v50 = vsel %vm408_vm2, %v2597_v58, %v12145_v7  ;;  %v2684_v29 = vsel %vm484_vm3, %v2668_v10, %v2607_v5  ;;  %v10180_v10 = vld [vmem:[#allocation2 + $0x19c] sm:$0xf0] }
 0x5ba   : > { %v2686_v15 = vsel %vm484_vm3, %v2670_v11, %v2608_v45  ;;  %v2688_v58 = vsel %vm484_vm3, %v2672_v37, %v2609_v50  ;;  %v9409_v11 = vld [vmem:[#allocation2 + $0x1a0] sm:$0xf0] }
 0x5bf   : > { %v12159_v2 = vpop.permute.xlu0 %2600  ;;  %v12170_v56 = vpop.permute.xlu2 %2799 }
 0x5c0   : > { %v12161_v23 = vpop.permute.xlu1 %2602  ;;  %v2610_v17 = vsel %vm408_vm2, %v12145_v7, %v12159_v2 }
 0x5c1   : > { %v2611_v32 = vsel %vm408_vm2, %v12159_v2, %v12161_v23 }
 0x5c7   : > { %v2638_v60 = vpop.permute.xlu0 %2637  ;;  %v12207_v9 = vpop.permute.xlu2 %2805 }
 0x5c8   : > { %v2640_v25 = vpop.permute.xlu1 %2639  ;;  %v2653_v31 = vsel %vm458_vm4, %v2636_v19, %v2638_v60  ;;  %v2682_v19 = vsel %vm484_vm3, %v2666_v34, %v2606_v12 }
 0x5c9   : > { %v2654_v57 = vsel %vm458_vm4, %v2638_v60, %v2640_v25  ;;  %v2694_v16 = vsel %vm501_vm5, %v2678_v47, %v2653_v31  ;;  %v2655_v40 = vsel %vm458_vm4, %v2640_v25, %v2642_v44 }
 0x5ca   : > { %v2696_v36 = vsel %vm501_vm5, %v2680_v43, %v2654_v57  ;;  %v2717_v14 = vunpack.c.l.b16 %v2694_v16  ;;  %v2725_v63 = vunpack.c.h.b16 %v2694_v16  ;;  %v2698_v0 = vsel %vm501_vm5, %v2682_v19, %v2655_v40 }
 0x5cb   : > { %v2718_v8 = vunpack.c.l.b16 %v2696_v36  ;;  %v2726_v55 = vunpack.c.h.b16 %v2696_v36  ;;  %v2719_v41 = vunpack.c.l.b16 %v2698_v0  ;;  %v2727_v34 = vunpack.c.h.b16 %v2698_v0 }
 0x5cd   : > { %v2733_v6 = vpack.c.b16 %v2718_v8, %v2717_v14  ;;  %v2737_v62 = vpack.c.b16 %v2726_v55, %v2725_v63  ;;  %v2561_v14 = vsel %vm358_vm0, %v12106_v49, %v12150_v30  ;;  %v2562_v63 = vsel %vm358_vm0, %v12150_v30, %v12152_v52 }
 0x5ce   : > { %v2674_v49 = vsel %vm467_vm1, %v11983_v46, %v2561_v14  ;;  %v2676_v30 = vsel %vm467_vm1, %v11985_v3, %v2562_v63  ;;  %v9345_v14 = vld [vmem:[#allocation2 + $0x120] sm:$0xf0]  ;;  %v9343_v63 = vld [vmem:[#allocation2 + $0x100] sm:$0xf] }
 0x5cf   : > { %2749 = vst [vmem:[#allocation2 + $0x1c0] sm:$0xff] %v2733_v6  ;;  %v2644_v61 = vpop.permute.xlu0 %2643  ;;  %v2690_v7 = vsel %vm484_vm3, %v2674_v49, %v2610_v17  ;;  %v2692_v0 = vsel %vm484_vm3, %v2676_v30, %v2611_v32  ;;  %v9311_v32 = vld [vmem:[#allocation2 + $0xc0] sm:$0xf] }
 0x5d0   : > { %2753 = vst [vmem:[#allocation2 + $0x1e0] sm:$0xff] %v2737_v62  ;;  %v2646_v60 = vpop.permute.xlu1 %2645  ;;  %v2656_v54 = vsel %vm458_vm4, %v2642_v44, %v2644_v61 }
 0x5d1   : > { %v2657_v38 = vsel %vm458_vm4, %v2644_v61, %v2646_v60  ;;  %v2700_v48 = vsel %vm501_vm5, %v2684_v29, %v2656_v54  ;;  %v2658_v47 = vsel %vm458_vm4, %v2646_v60, %v12157_v51  ;;  %v10176_v60 = vld [vmem:[#allocation2 + $0x184] sm:$0xf] }
 0x5d2   : > { %v2702_v25 = vsel %vm501_vm5, %v2686_v15, %v2657_v38  ;;  %v2720_v31 = vunpack.c.l.b16 %v2700_v48  ;;  %v2728_v43 = vunpack.c.h.b16 %v2700_v48  ;;  %v2704_v12 = vsel %vm501_vm5, %v2688_v58, %v2658_v47  ;;  %v12238_v15 = vpop.permute.xlu2 %2811  ;;  %v10172_v47 = vld [vmem:[#allocation2 + $0x15c] sm:$0xf0] }
 0x5d3   : > { %v2721_v57 = vunpack.c.l.b16 %v2702_v25  ;;  %v2729_v16 = vunpack.c.h.b16 %v2702_v25  ;;  %v2722_v36 = vunpack.c.l.b16 %v2704_v12  ;;  %v2730_v44 = vunpack.c.h.b16 %v2704_v12  ;;  %v9377_v25 = vld [vmem:[#allocation2 + $0x160] sm:$0xf0] }
 0x5d4   : > { %v2734_v40 = vpack.c.b16 %v2720_v31, %v2719_v41  ;;  %v2738_v20 = vpack.c.b16 %v2728_v43, %v2727_v34  ;;  %v9407_v41 = vld [vmem:[#allocation2 + $0x180] sm:$0xf]  ;;  %v9412_v34 = vor.u32 %v10176_v60, %v9409_v11  ;;  %v10168_v12 = vld [vmem:[#allocation2 + $0x144] sm:$0xf] }
 0x5d5   : > { %v2735_v8 = vpack.c.b16 %v2722_v36, %v2721_v57  ;;  %v2739_v55 = vpack.c.b16 %v2730_v44, %v2729_v16  ;;  %v9408_v54 = vor.u32 %v10180_v10, %v9407_v41  ;;  %v9375_v43 = vld [vmem:[#allocation2 + $0x140] sm:$0xf]  ;;  %v9380_v36 = vor.u32 %v10168_v12, %v9377_v25  ;;  %v10128_v60 = vld [vmem:[#allocation2 + $0x4] sm:$0xf] }
 0x5d6   : > { %2750 = vst [vmem:[#allocation2 + $0x1c8] sm:$0xff] %v2734_v40  ;;  %v9439_v19 = vld [vmem:[#allocation2 + $0x1c0] sm:$0xf]  ;;  %v10184_v5 = vld [vmem:[#allocation2 + $0x1c4] sm:$0xf]  ;;  %v9376_v16 = vor.u32 %v10172_v47, %v9375_v43 }
 0x5d7   : > { %2754 = vst [vmem:[#allocation2 + $0x1e8] sm:$0xff] %v2738_v20  ;;  %v2650_v52 = vpop.permute.xlu0 %2649  ;;  %v10188_v45 = vld [vmem:[#allocation2 + $0x1dc] sm:$0xf0]  ;;  %v9441_v50 = vld [vmem:[#allocation2 + $0x1e0] sm:$0xf0] }
 0x5d8   : > { %2751 = vst [vmem:[#allocation2 + $0x1d0] sm:$0xff] %v2735_v8  ;;  %v2659_v6 = vsel %vm458_vm4, %v12157_v51, %v2650_v52  ;;  %v2652_v2 = vpop.permute.xlu1 %2651  ;;  %v9440_v23 = vor.u32 %v10188_v45, %v9439_v19  ;;  %v9444_v62 = vor.u32 %v10184_v5, %v9441_v50  ;;  %v10164_v44 = vld [vmem:[#allocation2 + $0x11c] sm:$0xf0]  ;;  %v10160_v40 = vld [vmem:[#allocation2 + $0x104] sm:$0xf] }
 0x5d9   : > { %2755 = vst [vmem:[#allocation2 + $0x1f0] sm:$0xff] %v2739_v55  ;;  %v2706_v46 = vsel %vm501_vm5, %v2690_v7, %v2659_v6  ;;  %v2660_v3 = vsel %vm458_vm4, %v2650_v52, %v2652_v2  ;;  %v9344_v20 = vor.u32 %v10164_v44, %v9343_v63  ;;  %v9348_v17 = vor.u32 %v10160_v40, %v9345_v14  ;;  %v10156_v8 = vld [vmem:[#allocation2 + $0xdc] sm:$0xf0]  ;;  %v10152_v19 = vld [vmem:[#allocation2 + $0xc4] sm:$0xf] }
 0x5da   : > { %v2723_v37 = vunpack.c.l.b16 %v2706_v46  ;;  %v2731_v29 = vunpack.c.h.b16 %v2706_v46  ;;  %v2708_v61 = vsel %vm501_vm5, %v2692_v0, %v2660_v3  ;;  %5364 = vmatpush.bf16.msra.mxu0 %v9440_v23  ;;  %5390 = vmatpush.bf16.msra.mxu2 %v9444_v62  ;;  %v12244_v55 = vpop.permute.xlu2 %2848  ;;  %v9313_v5 = vld [vmem:[#allocation2 + $0xe0] sm:$0xf0]  ;;  %v9312_v52 = vor.u32 %v10156_v8, %v9311_v32  ;;  %v10148_v50 = vld [vmem:[#allocation2 + $0x9c] sm:$0xf0]  ;;  %v9417_v43 = vld [vmem:[#allocation2 + $0x1a8] sm:$0xf0] }
 0x5db   : > { %v2724_v51 = vunpack.c.l.b16 %v2708_v61  ;;  %v2732_v58 = vunpack.c.h.b16 %v2708_v61  ;;  %v9316_v45 = vor.u32 %v10152_v19, %v9313_v5  ;;  %v9281_v7 = vld [vmem:[#allocation2 + $0xa0] sm:$0xf0]  ;;  %v9279_v6 = vld [vmem:[#allocation2 + $0x80] sm:$0xf]  ;;  %v9385_v63 = vld [vmem:[#allocation2 + $0x168] sm:$0xf0] }
 0x5dc   : > { %v10144_v2 = vld [vmem:[#allocation2 + $0x84] sm:$0xf]  ;;  %v9280_v23 = vor.u32 %v10148_v50, %v9279_v6  ;;  %v10140_v0 = vld [vmem:[#allocation2 + $0x5c] sm:$0xf0]  ;;  %v10169_v40 = vld [vmem:[#allocation2 + $0x14c] sm:$0xf] }
 0x5dd   : > { %v2736_v38 = vpack.c.b16 %v2724_v51, %v2723_v37  ;;  %v2740_v48 = vpack.c.b16 %v2732_v58, %v2731_v29  ;;  %v9284_v62 = vor.u32 %v10144_v2, %v9281_v7  ;;  %v9249_v46 = vld [vmem:[#allocation2 + $0x60] sm:$0xf0]  ;;  %v9247_v11 = vld [vmem:[#allocation2 + $0x40] sm:$0xf]  ;;  %v10161_v19 = vld [vmem:[#allocation2 + $0x10c] sm:$0xf] }
 0x5de   : > { %5365 = vmatpush.bf16.msra.mxu0 %v9408_v54  ;;  %5391 = vmatpush.bf16.msra.mxu2 %v9412_v34  ;;  %v10136_v37 = vld [vmem:[#allocation2 + $0x44] sm:$0xf]  ;;  %v9248_v61 = vor.u32 %v10140_v0, %v9247_v11  ;;  %v9215_v58 = vld [vmem:[#allocation2] sm:$0xf]  ;;  %v10185_v34 = vld [vmem:[#allocation2 + $0x1cc] sm:$0xf] }
 0x5df   : > { %2752 = vst [vmem:[#allocation2 + $0x1d8] sm:$0xff] %v2736_v38  ;;  %v12240_v31 = vpop.permute.xlu0 %2801  ;;  %v9252_v51 = vor.u32 %v10136_v37, %v9249_v46  ;;  %v10132_v41 = vld [vmem:[#allocation2 + $0x1c] sm:$0xf0]  ;;  %v9217_v54 = vld [vmem:[#allocation2 + $0x20] sm:$0xf0] }
 0x5e0   : > { %2756 = vst [vmem:[#allocation2 + $0x1f8] sm:$0xff] %v2740_v48  ;;  %v12242_v57 = vpop.permute.xlu1 %2803  ;;  %v9449_v38 = vld [vmem:[#allocation2 + $0x1e8] sm:$0xf0]  ;;  %v9216_v48 = vor.u32 %v10132_v41, %v9215_v58  ;;  %v9220_v47 = vor.u32 %v10128_v60, %v9217_v54  ;;  %v2817_v11 = vsel %vm358_vm0, %v12170_v56, %v12240_v31 }
 0x5e1   : > { %v9452_v25 = vor.u32 %v10185_v34, %v9449_v38  ;;  %v9321_v50 = vld [vmem:[#allocation2 + $0xe8] sm:$0xf0]  ;;  %v2924_v38 = vsel %vm467_vm1, %v12023_v21, %v2817_v11 }
 0x5e2   : > { %5366 = vmatpush.bf16.msra.mxu0 %v9376_v16  ;;  %5392 = vmatpush.bf16.msra.mxu2 %v9380_v36  ;;  %v12250_v3 = vpop.permute.xlu2 %2854  ;;  %v10177_v36 = vld [vmem:[#allocation2 + $0x18c] sm:$0xf] }
 0x5e3   : > { %v9420_v14 = vor.u32 %v10177_v36, %v9417_v43  ;;  %v10145_v6 = vld [vmem:[#allocation2 + $0x8c] sm:$0xf] }
 0x5e4   : > { %v9257_v46 = vld [vmem:[#allocation2 + $0x68] sm:$0xf0] }
 0x5e5   : > { %v10137_v37 = vld [vmem:[#allocation2 + $0x4c] sm:$0xf] }
 0x5e6   : > { %5367 = vmatpush.bf16.msra.mxu0 %v9344_v20  ;;  %5393 = vmatpush.bf16.msra.mxu2 %v9348_v17  ;;  %v9388_v20 = vor.u32 %v10169_v40, %v9385_v63  ;;  %v9353_v17 = vld [vmem:[#allocation2 + $0x128] sm:$0xf0]  ;;  %v9260_v41 = vor.u32 %v10137_v37, %v9257_v46  ;;  %v12289_v63 = vld.sshfl [vmem:[#allocation1] sm:$0xff pattern:$0x73625140] }
 0x5e7   : > { %v12246_v49 = vpop.permute.xlu0 %2807  ;;  %v9356_v5 = vor.u32 %v10161_v19, %v9353_v17  ;;  %v10129_v60 = vld [vmem:[#allocation2 + $0xc] sm:$0xf]  ;;  %3096 = vst [vmem:[#allocation1 + $0x1] ss:$4 sm:$0xff] %v11851_v1 }
 0x5e8   : > { %v12248_v30 = vpop.permute.xlu1 %2809  ;;  %v9225_v54 = vld [vmem:[#allocation2 + $0x28] sm:$0xf0]  ;;  %v2820_v17 = vsel %vm358_vm0, %v12207_v9, %v12246_v49 }
 0x5e9   : > { %v9228_v43 = vor.u32 %v10129_v60, %v9225_v54  ;;  %v2821_v19 = vsel %vm358_vm0, %v12246_v49, %v12248_v30  ;;  %v2930_v49 = vsel %vm467_vm1, %v12029_v33, %v2820_v17 }
 0x5ea   : > { %5368 = vmatpush.bf16.msra.mxu0 %v9312_v52  ;;  %5394 = vmatpush.bf16.msra.mxu2 %v9316_v45  ;;  %v12256_v44 = vpop.permute.xlu2 %2860  ;;  %v10153_v52 = vld [vmem:[#allocation2 + $0xcc] sm:$0xf] }
 0x5eb   : > { %v9324_v7 = vor.u32 %v10153_v52, %v9321_v50 }
 0x5ee   : > { %5369 = vmatpush.bf16.msra.mxu0 %v9280_v23  ;;  %5395 = vmatpush.bf16.msra.mxu2 %v9284_v62  ;;  %v9289_v62 = vld [vmem:[#allocation2 + $0xa8] sm:$0xf0]  ;;  %v12338_v60 = vld.sshfl [vmem:[#allocation1 + $0x8] sm:$0xff pattern:$0x73625140] }
 0x5ef   : > { %v12252_v10 = vpop.permute.xlu0 %2813  ;;  %v9292_v0 = vor.u32 %v10145_v6, %v9289_v62  ;;  %v2932_v6 = vsel %vm467_vm1, %v12042_v26, %v2821_v19 }
 0x5f0   : > { %v12254_v29 = vpop.permute.xlu1 %2815  ;;  %v2823_v54 = vsel %vm358_vm0, %v12238_v15, %v12252_v10 }
 0x5f2   : > { %5370 = vmatpush.bf16.msra.mxu0 %v9248_v61  ;;  %5396 = vmatpush.bf16.msra.mxu2 %v9252_v51  ;;  %v2898_v45 = vpop.permute.xlu2 %2897  ;;  %v2818_v51 = vsel %vm358_vm0, %v12240_v31, %v12242_v57 }
 0x5f3   : > { %v2926_v56 = vsel %vm467_vm1, %v12025_v24, %v2818_v51 }
 0x5f6   : > { %5371 = vmatpush.bf16.msra.mxu0 %v9216_v48  ;;  %5397 = vmatpush.bf16.msra.mxu2 %v9220_v47 }
 0x5f7   : > { %v2851_v12 = vpop.permute.xlu0 %2850 }
 0x5f8   : > { %v2853_v16 = vpop.permute.xlu1 %2852  ;;  %v2866_v58 = vsel %vm675_vm6, %v12244_v55, %v2851_v12  ;;  %v2819_v55 = vsel %vm358_vm0, %v12242_v57, %v12207_v9 }
 0x5f9   : > { %v2867_v34 = vsel %vm675_vm6, %v2851_v12, %v2853_v16  ;;  %v2942_v47 = vsel %vm484_vm3, %v2924_v38, %v2866_v58  ;;  %v2868_v40 = vsel %vm675_vm6, %v2853_v16, %v12250_v3  ;;  %v2928_v57 = vsel %vm467_vm1, %v12027_v18, %v2819_v55 }
 0x5fa   : > { %5442 = vmatpush.bf16.msrb.mxu0 %v9452_v25  ;;  %v2904_v61 = vpop.permute.xlu2 %2903  ;;  %v2944_v12 = vsel %vm484_vm3, %v2926_v56, %v2867_v34  ;;  %v2822_v16 = vsel %vm358_vm0, %v12248_v30, %v12238_v15  ;;  %v2946_v50 = vsel %vm484_vm3, %v2928_v57, %v2868_v40  ;;  %v12348_v56 = vld.sshfl [vmem:[#allocation1] sm:$0xff pattern:$0x73625140]  ;;  %v2940_v40 = vsel %vm467_vm1, %v12035_v28, %v12254_v29 }
 0x5fe   : > { %5443 = vmatpush.bf16.msrb.mxu0 %v9420_v14 }
 0x5ff   : > { %v2857_v8 = vpop.permute.xlu0 %2856 }
 0x600   : > { %v2859_v32 = vpop.permute.xlu1 %2858  ;;  %v2869_v52 = vsel %vm675_vm6, %v12250_v3, %v2857_v8 }
 0x601   : > { %v2871_v9 = vsel %vm675_vm6, %v2859_v32, %v12256_v44  ;;  %v2948_v62 = vsel %vm484_vm3, %v2930_v49, %v2869_v52 }
 0x602   : > { %5444 = vmatpush.bf16.msrb.mxu0 %v9388_v20 }
 0x606   : > { %5445 = vmatpush.bf16.msrb.mxu0 %v9356_v5 }
 0x607   : > { %v12258_v2 = vpop.permute.xlu0 %2862 }
 0x608   : > { %v12260_v23 = vpop.permute.xlu1 %2864 }
 0x609   : > { %v2873_v15 = vsel %vm675_vm6, %v12258_v2, %v12260_v23  ;;  %v2958_v57 = vsel %vm484_vm3, %v2940_v40, %v12260_v23  ;;  %v12426_v40 = vld [vmem:[%s11847_s22 + $0x10] sm:$0x3] }
 0x60a   : > { %5446 = vmatpush.bf16.msrb.mxu0 %v9324_v7  ;;  %v2910_v7 = vpop.permute.xlu2 %2909 }
 0x60e   : > { %5447 = vmatpush.bf16.msrb.mxu0 %v9292_v0 }
 0x60f   : > { %v2900_v48 = vpop.permute.xlu0 %2899 }
 0x610   : > { %v2902_v25 = vpop.permute.xlu1 %2901  ;;  %v2915_v31 = vsel %vm458_vm4, %v2898_v45, %v2900_v48  ;;  %v2870_v45 = vsel %vm675_vm6, %v2857_v8, %v2859_v32  ;;  %v2934_v8 = vsel %vm467_vm1, %v12044_v22, %v2822_v16 }
 0x611   : > { %v2916_v36 = vsel %vm458_vm4, %v2900_v48, %v2902_v25  ;;  %v12283_v21 = vsel %vm501_vm5, %v2942_v47, %v2915_v31  ;;  %v2917_v5 = vsel %vm458_vm4, %v2902_v25, %v2904_v61  ;;  %v2950_v32 = vsel %vm484_vm3, %v2932_v6, %v2870_v45  ;;  %v12346_v48 = vld.sshfl [vmem:[#allocation1 + $0x18] sm:$0xff pattern:$0x73625140] }
 0x612   : > { %5448 = vmatpush.bf16.msrb.mxu0 %v9260_v41  ;;  %v12286_v14 = vsel %vm501_vm5, %v2944_v12, %v2916_v36  ;;  %v2986_v24 = vunpack.c.l.b16 %v12283_v21  ;;  %v12318_v30 = vsel %vm501_vm5, %v2946_v50, %v2917_v5  ;;  %v2952_v33 = vsel %vm484_vm3, %v2934_v8, %v2871_v9  ;;  %v12362_v12 = vld.sshfl [vmem:[#allocation1 + $0x28] sm:$0xff pattern:$0x73625140]  ;;  %v12364_v36 = vld.sshfl [vmem:[#allocation1 + $0x30] sm:$0xff pattern:$0x73625140] }
 0x613   : > { %v2987_v20 = vunpack.c.l.b16 %v12286_v14  ;;  %v2988_v51 = vunpack.c.l.b16 %v12318_v30  ;;  %v2824_v47 = vsel %vm358_vm0, %v12252_v10, %v12254_v29  ;;  %v2872_v25 = vsel %vm675_vm6, %v12256_v44, %v12258_v2  ;;  %v12369_v44 = vld.sshfl [vmem:[#allocation1 + $0x38] sm:$0xff pattern:$0x73625140] }
 0x614   : > { %v2936_v10 = vsel %vm467_vm1, %v12048_v13, %v2823_v54  ;;  %v2995_v17 = vunpack.c.h.b16 %v12283_v21  ;;  %v2996_v5 = vunpack.c.h.b16 %v12286_v14 }
 0x615   : > { %v3004_v18 = vpack.c.b16 %v2987_v20, %v2986_v24  ;;  %v2938_v24 = vsel %vm467_vm1, %v12051_v27, %v2824_v47  ;;  %v2954_v2 = vsel %vm484_vm3, %v2936_v10, %v2872_v25 }
 0x616   : > { %5449 = vmatpush.bf16.msrb.mxu0 %v9228_v43  ;;  %v12357_v43 = vld.sshfl [vmem:[#allocation1 + $0x20] sm:$0xff pattern:$0x73625140]  ;;  %v2956_v13 = vsel %vm484_vm3, %v2938_v24, %v2873_v15  ;;  %v3009_v21 = vpack.c.b16 %v2996_v5, %v2995_v17 }
 0x617   : > { %3014 = vrot.lane.b32.xlu2 %v3004_v18, %s10407_s14  ;;  %v2906_v3 = vpop.permute.xlu0 %2905  ;;  %3098 = vst [vmem:[#allocation1 + $0x21] ss:$4 sm:$0xff] %v11860_v53 }
 0x618   : > { %v2908_v0 = vpop.permute.xlu1 %2907  ;;  %v2918_v46 = vsel %vm458_vm4, %v2904_v61, %v2906_v3  ;;  %v12340_v61 = vld.sshfl [vmem:[#allocation1 + $0x10] sm:$0xff pattern:$0x73625140] }
 0x619   : > { %v2919_v26 = vsel %vm458_vm4, %v2906_v3, %v2908_v0  ;;  %v12329_v11 = vsel %vm501_vm5, %v2948_v62, %v2918_v46  ;;  %v2920_v37 = vsel %vm458_vm4, %v2908_v0, %v2910_v7  ;;  %3115 = vst [vmem:[#allocation1 + $0x1] ss:$4 sm:$0xff] %v12116_v39 }
 0x61a   : > { %v12334_v22 = vsel %vm501_vm5, %v2950_v32, %v2919_v26  ;;  %v2989_v58 = vunpack.c.l.b16 %v12329_v11  ;;  %v2970_v41 = vsel %vm501_vm5, %v2952_v33, %v2920_v37  ;;  %v2998_v32 = vunpack.c.h.b16 %v12329_v11 }
 0x61b   : > { %v2990_v34 = vunpack.c.l.b16 %v12334_v22  ;;  %v2991_v38 = vunpack.c.l.b16 %v2970_v41  ;;  %v2999_v8 = vunpack.c.h.b16 %v12334_v22  ;;  %v3000_v62 = vunpack.c.h.b16 %v2970_v41 }
 0x61c   : > { %v3005_v31 = vpack.c.b16 %v2989_v58, %v2988_v51  ;;  %v2997_v33 = vunpack.c.h.b16 %v12318_v30 }
 0x61d   : > { %v3006_v55 = vpack.c.b16 %v2991_v38, %v2990_v34  ;;  %v3011_v51 = vpack.c.b16 %v3000_v62, %v2999_v8 }
 0x61e   : > { %3016 = vrot.lane.b32.xlu0 %v3005_v31, %s10407_s14  ;;  %v3107_v14 = vld.sshfl [vmem:[#allocation1 + $0x20] sm:$0xff pattern:$0x73625140]  ;;  %v3109_v49 = vld.sshfl [vmem:[#allocation1 + $0x28] sm:$0xff pattern:$0x73625140]  ;;  %v3010_v38 = vpack.c.b16 %v2998_v32, %v2997_v33 }
 0x61f   : > { %3018 = vrot.lane.b32.xlu1 %v3006_v55, %s10407_s14  ;;  %v2912_v20 = vpop.permute.xlu0 %2911  ;;  %v3113_v6 = vld.sshfl [vmem:[#allocation1 + $0x38] sm:$0xff pattern:$0x73625140]  ;;  %v3111_v3 = vld.sshfl [vmem:[#allocation1 + $0x30] sm:$0xff pattern:$0x73625140] }
 0x620   : > { %v2921_v27 = vsel %vm458_vm4, %v2910_v7, %v2912_v20  ;;  %v2914_v19 = vpop.permute.xlu1 %2913  ;;  %v3116_v9 = vld.sshfl [vmem:[#allocation1] sm:$0xff pattern:$0x73625140]  ;;  %3147 = vst [vmem:[#allocation1 + $0x22] ss:$4 sm:$0xff] %v11860_v53 }
 0x621   : > { %v2972_v28 = vsel %vm501_vm5, %v2954_v2, %v2921_v27  ;;  %v2922_v29 = vsel %vm458_vm4, %v2912_v20, %v2914_v19  ;;  %v2976_v16 = vsel %vm501_vm5, %v2958_v57, %v2914_v19  ;;  %3145 = vst [vmem:[#allocation1 + $0x2] ss:$4 sm:$0xff] %v11851_v1 }
 0x622   : > { %v2992_v52 = vunpack.c.l.b16 %v2972_v28  ;;  %v2974_v45 = vsel %vm501_vm5, %v2956_v13, %v2922_v29  ;;  %v2994_v18 = vunpack.c.l.b16 %v2976_v16  ;;  %v3001_v0 = vunpack.c.h.b16 %v2972_v28 }
 0x623   : > { %v2993_v50 = vunpack.c.l.b16 %v2974_v45  ;;  %v3002_v46 = vunpack.c.h.b16 %v2974_v45  ;;  %v3003_v11 = vunpack.c.h.b16 %v2976_v16 }
 0x624   : > { %v3008_v23 = vpack.c.b16 %v2994_v18, %v2994_v18 }
 0x625   : > { %v3007_v7 = vpack.c.b16 %v2993_v50, %v2992_v52  ;;  %v3012_v34 = vpack.c.b16 %v3002_v46, %v3001_v0  ;;  %v3013_v41 = vpack.c.b16 %v3003_v11, %v3003_v11 }
 0x626   : > { %3022 = vrot.lane.b32.xlu0 %v3008_v23, %s10407_s14 }
 0x627   : > { %3024 = vrot.lane.b32.xlu1 %v3009_v21, %s10407_s14  ;;  %3020 = vrot.lane.b32.xlu2 %v3007_v7, %s10407_s14  ;;  %v3156_v15 = vld.sshfl [vmem:[#allocation1 + $0x20] sm:$0xff pattern:$0x73625140]  ;;  %v3158_v55 = vld.sshfl [vmem:[#allocation1 + $0x28] sm:$0xff pattern:$0x73625140] }
 0x628   : > { %v3148_v26 = vld.sshfl [vmem:[#allocation1] sm:$0xff pattern:$0x73625140]  ;;  %v3150_v37 = vld.sshfl [vmem:[#allocation1 + $0x8] sm:$0xff pattern:$0x73625140] }
 0x629   : > { %v3152_v58 = vld.sshfl [vmem:[#allocation1 + $0x10] sm:$0xff pattern:$0x73625140]  ;;  %v3154_v54 = vld.sshfl [vmem:[#allocation1 + $0x18] sm:$0xff pattern:$0x73625140] }
 0x62a   : > { %3164 = vst [vmem:[#allocation1 + $0x2] ss:$4 sm:$0xff] %v12116_v39  ;;  %v3160_v10 = vld.sshfl [vmem:[#allocation1 + $0x30] sm:$0xff pattern:$0x73625140] }
 0x62e   : > { %3028 = vrot.lane.b32.xlu0 %v3011_v51, %s10407_s14 }
 0x62f   : > { %3030 = vrot.lane.b32.xlu1 %v3012_v34, %s10407_s14  ;;  %3026 = vrot.lane.b32.xlu2 %v3010_v38, %s10407_s14 }
 0x631   : > { %v3165_v22 = vld.sshfl [vmem:[#allocation1] sm:$0xff pattern:$0x73625140] }
 0x632   : > { %3194 = vst [vmem:[#allocation1 + $0x3] ss:$4 sm:$0xff] %v11851_v1 }
 0x636   : > { %3118 = vrot.lane.b32.xlu0 %v12348_v56, %s10404_s11  ;;  %v3162_v56 = vld.sshfl [vmem:[#allocation1 + $0x38] sm:$0xff pattern:$0x73625140] }
 0x637   : > { %3032 = vrot.lane.b32.xlu2 %v3013_v41, %s10407_s14  ;;  %3120 = vrot.lane.b32.xlu1 %v12338_v60, %s10404_s11  ;;  %3196 = vst [vmem:[#allocation1 + $0x23] ss:$4 sm:$0xff] %v11860_v53  ;;  %s10417_s14 = smov 109  }
 0x639   : > { %v3197_v30 = vld.sshfl [vmem:[#allocation1] sm:$0xff pattern:$0x73625140]  ;;  %v3199_v47 = vld.sshfl [vmem:[#allocation1 + $0x8] sm:$0xff pattern:$0x73625140] }
 0x63a   : > { %v3201_v25 = vld.sshfl [vmem:[#allocation1 + $0x10] sm:$0xff pattern:$0x73625140]  ;;  %v3203_v31 = vld.sshfl [vmem:[#allocation1 + $0x18] sm:$0xff pattern:$0x73625140] }
 0x63b   : > { %3213 = vst [vmem:[#allocation1 + $0x3] ss:$4 sm:$0xff] %v12116_v39 }
 0x63e   : > { %3124 = vrot.lane.b32.xlu0 %v12346_v48, %s10404_s11  ;;  %v3205_v39 = vld.sshfl [vmem:[#allocation1 + $0x20] sm:$0xff pattern:$0x73625140]  ;;  %v3211_v48 = vld.sshfl [vmem:[#allocation1 + $0x38] sm:$0xff pattern:$0x73625140] }
 0x63f   : > { %3122 = vrot.lane.b32.xlu2 %v12340_v61, %s10404_s11  ;;  %3126 = vrot.lane.b32.xlu1 %v3107_v14, %s10404_s11  ;;  %v3207_v61 = vld.sshfl [vmem:[#allocation1 + $0x28] sm:$0xff pattern:$0x73625140]  ;;  %v3209_v24 = vld.sshfl [vmem:[#allocation1 + $0x30] sm:$0xff pattern:$0x73625140] }
 0x640   : > { %3402 = vst [vmem:[#allocation1 + $0x20] ss:$4 sm:$0xff] %v11860_v53 }
 0x642   : > { %v3214_v60 = vld.sshfl [vmem:[#allocation1] sm:$0xff pattern:$0x73625140] }
 0x643   : > { %3399 = vst [vmem:[#allocation1] ss:$4 sm:$0xff] %v11851_v1 }
 0x646   : > { %3130 = vrot.lane.b32.xlu0 %v3111_v3, %s10404_s11 }
 0x647   : > { %3128 = vrot.lane.b32.xlu2 %v3109_v49, %s10404_s11  ;;  %3132 = vrot.lane.b32.xlu1 %v3113_v6, %s10404_s11 }
 0x64a   : > { %v12431_v2 = vld.sshfl [vmem:[#allocation1] sm:$0xff pattern:$0x73625140]  ;;  %v12433_v20 = vld.sshfl [vmem:[#allocation1 + $0x8] sm:$0xff pattern:$0x73625140] }
 0x64b   : > { %v12435_v13 = vld.sshfl [vmem:[#allocation1 + $0x10] sm:$0xff pattern:$0x73625140]  ;;  %v12437_v57 = vld.sshfl [vmem:[#allocation1 + $0x18] sm:$0xff pattern:$0x73625140] }
 0x64c   : > { %3412 = vst [vmem:[#allocation1] ss:$4 sm:$0xff] %v12426_v40 }
 0x64e   : > { %3167 = vrot.lane.b32.xlu0 %v3148_v26, %s10405_s12 }
 0x64f   : > { %3134 = vrot.lane.b32.xlu2 %v3116_v9, %s10404_s11  ;;  %3169 = vrot.lane.b32.xlu1 %v3150_v37, %s10405_s12 }
 0x656   : > { %3173 = vrot.lane.b32.xlu0 %v3154_v54, %s10405_s12 }
 0x657   : > { %3171 = vrot.lane.b32.xlu2 %v3152_v58, %s10405_s12  ;;  %3175 = vrot.lane.b32.xlu1 %v3156_v15, %s10405_s12 }
 0x65e   : > { %3179 = vrot.lane.b32.xlu0 %v3160_v10, %s10405_s12 }
 0x65f   : > { %3177 = vrot.lane.b32.xlu2 %v3158_v55, %s10405_s12  ;;  %3181 = vrot.lane.b32.xlu1 %v3162_v56, %s10405_s12 }
 0x666   : > { %3216 = vrot.lane.b32.xlu0 %v3197_v30, %s10406_s13 }
 0x667   : > { %3183 = vrot.lane.b32.xlu2 %v3165_v22, %s10405_s12  ;;  %3218 = vrot.lane.b32.xlu1 %v3199_v47, %s10406_s13 }
 0x66e   : > { %3222 = vrot.lane.b32.xlu0 %v3203_v31, %s10406_s13 }
 0x66f   : > { %3220 = vrot.lane.b32.xlu2 %v3201_v25, %s10406_s13  ;;  %3224 = vrot.lane.b32.xlu1 %v3205_v39, %s10406_s13 }
 0x671   : > { %v3015_v17 = vpop.permute.xlu2 %3014 }
 0x672   : > { %v3034_v28 = vrot.slane %v3015_v17, 4 }
 0x676   : > { %3228 = vrot.lane.b32.xlu0 %v3209_v24, %s10406_s13 }
 0x677   : > { %3226 = vrot.lane.b32.xlu2 %v3207_v61, %s10406_s13  ;;  %3230 = vrot.lane.b32.xlu1 %v3211_v48, %s10406_s13 }
 0x67f   : > { %3232 = vrot.lane.b32.xlu2 %v3214_v60, %s10406_s13 }
 0x681   : > { %v3021_v27 = vpop.permute.xlu2 %3020 }
 0x682   : > { %v3037_v45 = vrot.slane %v3021_v27, 4 }
 0x689   : > { %v3027_v19 = vpop.permute.xlu2 %3026 }
 0x68a   : > { %v3040_v62 = vrot.slane %v3027_v19, 4 }
 0x690   : > { %v3017_v5 = vpop.permute.xlu0 %3016 }
 0x691   : > { %v3035_v29 = vrot.slane %v3017_v5, 4  ;;  %v3033_v16 = vpop.permute.xlu2 %3032  ;;  %v3019_v52 = vpop.permute.xlu1 %3018 }
 0x692   : > { %v3036_v18 = vrot.slane %v3019_v52, 4  ;;  %v3043_v34 = vrot.slane %v3033_v16, 4 }
 0x693   : > { %v3044_v50 = vsel %vm484_vm3, %v3034_v28, %v3035_v29 }
 0x694   : > { %v3045_v9 = vsel %vm856_vm10, %v3015_v17, %v3044_v50  ;;  %v3046_v23 = vsel %vm484_vm3, %v3035_v29, %v3036_v18  ;;  %v3048_v21 = vsel %vm484_vm3, %v3036_v18, %v3037_v45 }
 0x695   : > { %3068 = vst [vmem:[#allocation2 + $0x200] sm:$0xff] %v3045_v9  ;;  %v3047_v7 = vsel %vm856_vm10, %v3017_v5, %v3046_v23  ;;  %v3049_v14 = vsel %vm856_vm10, %v3019_v52, %v3048_v21 }
 0x696   : > { %3069 = vst [vmem:[#allocation2 + $0x208] sm:$0xff] %v3047_v7 }
 0x697   : > { %3070 = vst [vmem:[#allocation2 + $0x210] sm:$0xff] %v3049_v14 }
 0x698   : > { %v3023_v49 = vpop.permute.xlu0 %3022 }
 0x699   : > { %v3038_v6 = vrot.slane %v3023_v49, 4  ;;  %v3025_v3 = vpop.permute.xlu1 %3024  ;;  %v3123_v8 = vpop.permute.xlu2 %3122 }
 0x69a   : > { %v3039_v32 = vrot.slane %v3025_v3, 4 }
 0x69b   : > { %v3050_v0 = vsel %vm484_vm3, %v3037_v45, %v3038_v6 }
 0x69c   : > { %v3051_v46 = vsel %vm856_vm10, %v3021_v27, %v3050_v0  ;;  %v3052_v33 = vsel %vm484_vm3, %v3039_v32, %v3040_v62 }
 0x69d   : > { %3071 = vst [vmem:[#allocation2 + $0x218] sm:$0xff] %v3051_v46  ;;  %v3053_v26 = vsel %vm856_vm10, %v3025_v3, %v3052_v33 }
 0x69e   : > { %3072 = vst [vmem:[#allocation2 + $0x220] sm:$0xff] %v3053_v26 }
 0x6a0   : > { %v3029_v37 = vpop.permute.xlu0 %3028 }
 0x6a1   : > { %v3041_v51 = vrot.slane %v3029_v37, 4  ;;  %v3031_v58 = vpop.permute.xlu1 %3030  ;;  %v12460_v54 = vpop.permute.xlu2 %3128 }
 0x6a2   : > { %v3042_v38 = vrot.slane %v3031_v58, 4 }
 0x6a3   : > { %v3054_v11 = vsel %vm484_vm3, %v3040_v62, %v3041_v51 }
 0x6a4   : > { %v3055_v22 = vsel %vm856_vm10, %v3027_v19, %v3054_v11  ;;  %v3056_v41 = vsel %vm484_vm3, %v3041_v51, %v3042_v38  ;;  %v3058_v30 = vsel %vm484_vm3, %v3042_v38, %v3043_v34 }
 0x6a5   : > { %3073 = vst [vmem:[#allocation2 + $0x228] sm:$0xff] %v3055_v22  ;;  %v3057_v47 = vsel %vm856_vm10, %v3029_v37, %v3056_v41  ;;  %v3059_v25 = vsel %vm856_vm10, %v3031_v58, %v3058_v30 }
 0x6a6   : > { %3074 = vst [vmem:[#allocation2 + $0x230] sm:$0xff] %v3057_v47 }
 0x6a7   : > { %3075 = vst [vmem:[#allocation2 + $0x238] sm:$0xff] %v3059_v25 }
 0x6a8   : > { %v3119_v31 = vpop.permute.xlu0 %3118 }
 0x6a9   : > { %v3121_v15 = vpop.permute.xlu1 %3120  ;;  %v3135_v55 = vpop.permute.xlu2 %3134 }
 0x6aa   : > { %v3137_v52 = vsel %vm948_vm7, %v3121_v15, %v3123_v8  ;;  %v3136_v45 = vsel %vm948_vm7, %v3119_v31, %v3121_v15  ;;  %v3259_v31 = vsel %vm467_vm1, %v12289_v63, %v3135_v55 }
 0x6ab   : > { %v3245_v23 = vsel %vm467_vm1, %v12121_v59, %v3137_v52  ;;  %v3243_v21 = vsel %vm467_vm1, %v12119_v4, %v3136_v45  ;;  %v12486_v59 = vld.sshfl [vmem:[#allocation1] sm:$0xff pattern:$0x73625140] }
 0x6ac   : > { %3415 = vst [vmem:[#allocation1 + $0x1] ss:$4 sm:$0xff] %v11851_v1 }
 0x6b0   : > { %v3125_v56 = vpop.permute.xlu0 %3124 }
 0x6b1   : > { %v3127_v10 = vpop.permute.xlu1 %3126  ;;  %v3172_v60 = vpop.permute.xlu2 %3171  ;;  %v3138_v33 = vsel %vm948_vm7, %v3123_v8, %v3125_v56 }
 0x6b2   : > { %v3139_v26 = vsel %vm948_vm7, %v3125_v56, %v3127_v10  ;;  %v3247_v34 = vsel %vm467_vm1, %v12123_v42, %v3138_v33  ;;  %v3140_v11 = vsel %vm948_vm7, %v3127_v10, %v12460_v54  ;;  %v12555_v33 = vld.sshfl [vmem:[#allocation1 + $0x38] sm:$0xff pattern:$0x73625140] }
 0x6b3   : > { %v3249_v22 = vsel %vm467_vm1, %v12125_v35, %v3139_v26  ;;  %v3251_v56 = vsel %vm467_vm1, %v12357_v43, %v3140_v11 }
 0x6b8   : > { %v3131_v39 = vpop.permute.xlu0 %3130 }
 0x6b9   : > { %v3133_v61 = vpop.permute.xlu1 %3132  ;;  %v3178_v48 = vpop.permute.xlu2 %3177  ;;  %v3141_v10 = vsel %vm948_vm7, %v12460_v54, %v3131_v39 }
 0x6ba   : > { %v3142_v63 = vsel %vm948_vm7, %v3131_v39, %v3133_v61  ;;  %v3253_v39 = vsel %vm467_vm1, %v12362_v12, %v3141_v10 }
 0x6c0   : > { %v3168_v24 = vpop.permute.xlu0 %3167 }
 0x6c1   : > { %v3170_v17 = vpop.permute.xlu1 %3169  ;;  %v3184_v27 = vpop.permute.xlu2 %3183 }
 0x6c2   : > { %v3186_v18 = vsel %vm998_vm9, %v3170_v17, %v3172_v60  ;;  %v3185_v50 = vsel %vm998_vm9, %v3168_v24, %v3170_v17 }
 0x6c3   : > { %v3263_v14 = vsel %vm484_vm3, %v3245_v23, %v3186_v18  ;;  %v3261_v49 = vsel %vm484_vm3, %v3243_v21, %v3185_v50 }
 0x6c8   : > { %v3174_v19 = vpop.permute.xlu0 %3173 }
 0x6c9   : > { %v3176_v5 = vpop.permute.xlu1 %3175  ;;  %v3221_v28 = vpop.permute.xlu2 %3220  ;;  %v3187_v37 = vsel %vm998_vm9, %v3172_v60, %v3174_v19 }
 0x6ca   : > { %v3188_v58 = vsel %vm998_vm9, %v3174_v19, %v3176_v5  ;;  %v3265_v8 = vsel %vm484_vm3, %v3247_v34, %v3187_v37  ;;  %v3189_v60 = vsel %vm998_vm9, %v3176_v5, %v3178_v48  ;;  %v3143_v19 = vsel %vm948_vm7, %v3133_v61, %v3135_v55 }
 0x6cb   : > { %v3267_v47 = vsel %vm484_vm3, %v3249_v22, %v3188_v58  ;;  %v3269_v5 = vsel %vm484_vm3, %v3251_v56, %v3189_v60  ;;  %v3257_v55 = vsel %vm467_vm1, %v12369_v44, %v3143_v19  ;;  %v3255_v61 = vsel %vm467_vm1, %v12364_v36, %v3142_v63  ;;  %v12550_v36 = vld.sshfl [vmem:[#allocation1 + $0x30] sm:$0xff pattern:$0x73625140]  ;;  %v3420_v58 = vld.sshfl [vmem:[#allocation1 + $0x8] sm:$0xff pattern:$0x73625140] }
 0x6d0   : > { %v3180_v29 = vpop.permute.xlu0 %3179 }
 0x6d1   : > { %v3182_v16 = vpop.permute.xlu1 %3181  ;;  %v3227_v6 = vpop.permute.xlu2 %3226  ;;  %v3190_v43 = vsel %vm998_vm9, %v3178_v48, %v3180_v29 }
 0x6d2   : > { %v3192_v45 = vsel %vm998_vm9, %v3182_v16, %v3184_v27  ;;  %v3191_v18 = vsel %vm998_vm9, %v3180_v29, %v3182_v16  ;;  %v12540_v29 = vld.sshfl [vmem:[#allocation1 + $0x18] sm:$0xff pattern:$0x73625140]  ;;  %v12542_v16 = vld.sshfl [vmem:[#allocation1 + $0x20] sm:$0xff pattern:$0x73625140]  ;;  %v3271_v21 = vsel %vm484_vm3, %v3253_v39, %v3190_v43 }
 0x6d3   : > { %v3275_v23 = vsel %vm484_vm3, %v3257_v55, %v3192_v45  ;;  %v3273_v44 = vsel %vm484_vm3, %v3255_v61, %v3191_v18 }
 0x6d8   : > { %v3217_v9 = vpop.permute.xlu0 %3216 }
 0x6d9   : > { %v3219_v7 = vpop.permute.xlu1 %3218  ;;  %v3233_v24 = vpop.permute.xlu2 %3232 }
 0x6da   : > { %v3235_v3 = vsel %vm1048_vm8, %v3219_v7, %v3221_v28  ;;  %v3234_v62 = vsel %vm1048_vm8, %v3217_v9, %v3219_v7  ;;  %v12530_v9 = vld.sshfl [vmem:[#allocation1 + $0x10] sm:$0xff pattern:$0x73625140] }
 0x6db   : > { %v12481_v32 = vsel %vm501_vm5, %v3263_v14, %v3235_v3  ;;  %v12484_v0 = vsel %vm501_vm5, %v3261_v49, %v3234_v62  ;;  %v12548_v14 = vld.sshfl [vmem:[#allocation1 + $0x28] sm:$0xff pattern:$0x73625140] }
 0x6dc   : > { %v3306_v4 = vunpack.c.l.b16 %v12481_v32  ;;  %v3305_v46 = vunpack.c.l.b16 %v12484_v0  ;;  %3417 = vst [vmem:[#allocation1 + $0x21] ss:$4 sm:$0xff] %v11860_v53 }
 0x6de   : > { %v3323_v51 = vpack.c.b16 %v3306_v4, %v3305_v46  ;;  %v3418_v46 = vld.sshfl [vmem:[#allocation1] sm:$0xff pattern:$0x73625140] }
 0x6df   : > { %3434 = vst [vmem:[#allocation1 + $0x1] ss:$4 sm:$0xff] %v12426_v40 }
 0x6e0   : > { %3333 = vrot.lane.b32.xlu0 %v3323_v51, %s10408_s15  ;;  %v3223_v38 = vpop.permute.xlu0 %3222 }
 0x6e1   : > { %v3225_v41 = vpop.permute.xlu1 %3224  ;;  %v3236_v30 = vsel %vm1048_vm8, %v3221_v28, %v3223_v38  ;;  %v3277_v28 = vsel %vm484_vm3, %v3259_v31, %v3184_v27 }
 0x6e2   : > { %v3237_v25 = vsel %vm1048_vm8, %v3223_v38, %v3225_v41  ;;  %v12507_v42 = vsel %vm501_vm5, %v3265_v8, %v3236_v30  ;;  %v3238_v52 = vsel %vm1048_vm8, %v3225_v41, %v3227_v6  ;;  %v3295_v50 = vsel %vm501_vm5, %v3277_v28, %v3233_v24 }
 0x6e3   : > { %v12512_v15 = vsel %vm501_vm5, %v3267_v47, %v3237_v25  ;;  %v3307_v35 = vunpack.c.l.b16 %v12507_v42  ;;  %v3287_v48 = vsel %vm501_vm5, %v3269_v5, %v3238_v52  ;;  %v3313_v49 = vunpack.c.l.b16 %v3295_v50  ;;  %v3428_v63 = vld.sshfl [vmem:[#allocation1 + $0x28] sm:$0xff pattern:$0x73625140]  ;;  %v3430_v28 = vld.sshfl [vmem:[#allocation1 + $0x30] sm:$0xff pattern:$0x73625140] }
 0x6e4   : > { %v3308_v17 = vunpack.c.l.b16 %v12512_v15  ;;  %v3309_v26 = vunpack.c.l.b16 %v3287_v48  ;;  %v3315_v41 = vunpack.c.h.b16 %v12481_v32  ;;  %v3314_v30 = vunpack.c.h.b16 %v12484_v0  ;;  %v3432_v45 = vld.sshfl [vmem:[#allocation1 + $0x38] sm:$0xff pattern:$0x73625140] }
 0x6e5   : > { %v3327_v22 = vpack.c.b16 %v3313_v49, %v3313_v49  ;;  %v3316_v47 = vunpack.c.h.b16 %v12507_v42  ;;  %v3317_v25 = vunpack.c.h.b16 %v12512_v15  ;;  %v3318_v56 = vunpack.c.h.b16 %v3287_v48  ;;  %v3426_v15 = vld.sshfl [vmem:[#allocation1 + $0x20] sm:$0xff pattern:$0x73625140] }
 0x6e6   : > { %v3324_v54 = vpack.c.b16 %v3308_v17, %v3307_v35  ;;  %v3435_v35 = vld.sshfl [vmem:[#allocation1] sm:$0xff pattern:$0x73625140]  ;;  %v3328_v10 = vpack.c.b16 %v3315_v41, %v3314_v30  ;;  %v3322_v17 = vunpack.c.h.b16 %v3295_v50  ;;  %3466 = vst [vmem:[#allocation1 + $0x22] ss:$4 sm:$0xff] %v11860_v53 }
 0x6e7   : > { %3464 = vst [vmem:[#allocation1 + $0x2] ss:$4 sm:$0xff] %v11851_v1 }
 0x6e8   : > { %3335 = vrot.lane.b32.xlu1 %v3324_v54, %s10408_s15  ;;  %v3229_v27 = vpop.permute.xlu0 %3228  ;;  %v3332_v19 = vpack.c.b16 %v3322_v17, %v3322_v17 }
 0x6e9   : > { %v3231_v7 = vpop.permute.xlu1 %3230  ;;  %v3239_v12 = vsel %vm1048_vm8, %v3227_v6, %v3229_v27 }
 0x6ea   : > { %v3241_v3 = vsel %vm1048_vm8, %v3231_v7, %v3233_v24  ;;  %v3240_v62 = vsel %vm1048_vm8, %v3229_v27, %v3231_v7  ;;  %v3289_v4 = vsel %vm501_vm5, %v3271_v21, %v3239_v12  ;;  %v3329_v24 = vpack.c.b16 %v3317_v25, %v3316_v47  ;;  %v12600_v21 = vld [vmem:[%s11847_s22 + $0x10] sm:$0x3] }
 0x6eb   : > { %v3293_v37 = vsel %vm501_vm5, %v3275_v23, %v3241_v3  ;;  %v3291_v51 = vsel %vm501_vm5, %v3273_v44, %v3240_v62  ;;  %v3310_v6 = vunpack.c.l.b16 %v3289_v4  ;;  %v3319_v31 = vunpack.c.h.b16 %v3289_v4 }
 0x6ec   : > { %v3312_v34 = vunpack.c.l.b16 %v3293_v37  ;;  %v3311_v38 = vunpack.c.l.b16 %v3291_v51  ;;  %v3321_v32 = vunpack.c.h.b16 %v3293_v37  ;;  %v3320_v0 = vunpack.c.h.b16 %v3291_v51 }
 0x6ed   : > { %v3325_v11 = vpack.c.b16 %v3310_v6, %v3309_v26  ;;  %v3330_v60 = vpack.c.b16 %v3319_v31, %v3318_v56  ;;  %v3475_v50 = vld.sshfl [vmem:[#allocation1 + $0x20] sm:$0xff pattern:$0x73625140]  ;;  %v3477_v55 = vld.sshfl [vmem:[#allocation1 + $0x28] sm:$0xff pattern:$0x73625140] }
 0x6ee   : > { %v3326_v8 = vpack.c.b16 %v3312_v34, %v3311_v38  ;;  %v3331_v42 = vpack.c.b16 %v3321_v32, %v3320_v0  ;;  %v3471_v52 = vld.sshfl [vmem:[#allocation1 + $0x10] sm:$0xff pattern:$0x73625140]  ;;  %v3473_v43 = vld.sshfl [vmem:[#allocation1 + $0x18] sm:$0xff pattern:$0x73625140] }
 0x6ef   : > { %3337 = vrot.lane.b32.xlu2 %v3325_v11, %s10408_s15  ;;  %v3467_v18 = vld.sshfl [vmem:[#allocation1] sm:$0xff pattern:$0x73625140]  ;;  %v3469_v54 = vld.sshfl [vmem:[#allocation1 + $0x8] sm:$0xff pattern:$0x73625140] }
 0x6f0   : > { %3341 = vrot.lane.b32.xlu1 %v3327_v22, %s10408_s15  ;;  %3339 = vrot.lane.b32.xlu0 %v3326_v8, %s10408_s15  ;;  %3483 = vst [vmem:[#allocation1 + $0x2] ss:$4 sm:$0xff] %v12426_v40  ;;  %v3481_v39 = vld.sshfl [vmem:[#allocation1 + $0x38] sm:$0xff pattern:$0x73625140] }
 0x6f7   : > { %3343 = vrot.lane.b32.xlu2 %v3328_v10, %s10408_s15  ;;  %v3484_v5 = vld.sshfl [vmem:[#allocation1] sm:$0xff pattern:$0x73625140] }
 0x6f8   : > { %3347 = vrot.lane.b32.xlu1 %v3330_v60, %s10408_s15  ;;  %3345 = vrot.lane.b32.xlu0 %v3329_v24, %s10408_s15  ;;  %3513 = vst [vmem:[#allocation1 + $0x3] ss:$4 sm:$0xff] %v11851_v1 }
 0x6ff   : > { %3349 = vrot.lane.b32.xlu2 %v3331_v42, %s10408_s15  ;;  %v3516_v61 = vld.sshfl [vmem:[#allocation1] sm:$0xff pattern:$0x73625140]  ;;  %v3520_v48 = vld.sshfl [vmem:[#allocation1 + $0x10] sm:$0xff pattern:$0x73625140] }
 0x700   : > { %3351 = vrot.lane.b32.xlu0 %v3332_v19, %s10408_s15  ;;  %3437 = vrot.lane.b32.xlu1 %v3418_v46, %s10400_s30  ;;  %v3522_v27 = vld.sshfl [vmem:[#allocation1 + $0x18] sm:$0xff pattern:$0x73625140]  ;;  %s10418_s15 = smov 100  }
 0x707   : > { %3439 = vrot.lane.b32.xlu2 %v3420_v58, %s10400_s30 }
 0x708   : > { %3441 = vrot.lane.b32.xlu0 %v12530_v9, %s10400_s30  ;;  %3443 = vrot.lane.b32.xlu1 %v12540_v29, %s10400_s30  ;;  %v3479_v9 = vld.sshfl [vmem:[#allocation1 + $0x30] sm:$0xff pattern:$0x73625140]  ;;  %v3518_v29 = vld.sshfl [vmem:[#allocation1 + $0x8] sm:$0xff pattern:$0x73625140] }
 0x709   : > { %3515 = vst [vmem:[#allocation1 + $0x23] ss:$4 sm:$0xff] %v11860_v53 }
 0x70a   : > { %3532 = vst [vmem:[#allocation1 + $0x3] ss:$4 sm:$0xff] %v12426_v40 }
 0x70f   : > { %3445 = vrot.lane.b32.xlu2 %v3426_v15, %s10400_s30 }
 0x710   : > { %3447 = vrot.lane.b32.xlu0 %v3428_v63, %s10400_s30  ;;  %3449 = vrot.lane.b32.xlu1 %v3430_v28, %s10400_s30  ;;  %v3526_v44 = vld.sshfl [vmem:[#allocation1 + $0x28] sm:$0xff pattern:$0x73625140]  ;;  %v3528_v7 = vld.sshfl [vmem:[#allocation1 + $0x30] sm:$0xff pattern:$0x73625140] }
 0x711   : > { %v3533_v23 = vld.sshfl [vmem:[#allocation1] sm:$0xff pattern:$0x73625140]  ;;  %v3530_v4 = vld.sshfl [vmem:[#allocation1 + $0x38] sm:$0xff pattern:$0x73625140] }
 0x712   : > { %3721 = vst [vmem:[#allocation1] ss:$4 sm:$0xff] %v11851_v1  ;;  %v3524_v49 = vld.sshfl [vmem:[#allocation1 + $0x20] sm:$0xff pattern:$0x73625140] }
 0x713   : > { %3724 = vst [vmem:[#allocation1 + $0x20] ss:$4 sm:$0xff] %v11860_v53 }
 0x717   : > { %3451 = vrot.lane.b32.xlu2 %v3432_v45, %s10400_s30 }
 0x718   : > { %3453 = vrot.lane.b32.xlu0 %v3435_v35, %s10400_s30  ;;  %3486 = vrot.lane.b32.xlu1 %v3467_v18, %s10401_s8 }
 0x719   : > { %v12604_v40 = vld.sshfl [vmem:[#allocation1] sm:$0xff pattern:$0x73625140]  ;;  %v12606_v12 = vld.sshfl [vmem:[#allocation1 + $0x8] sm:$0xff pattern:$0x73625140] }
 0x71a   : > { %v12608_v3 = vld.sshfl [vmem:[#allocation1 + $0x10] sm:$0xff pattern:$0x73625140]  ;;  %v12610_v62 = vld.sshfl [vmem:[#allocation1 + $0x18] sm:$0xff pattern:$0x73625140] }
 0x71b   : > { %3734 = vst [vmem:[#allocation1] ss:$4 sm:$0xff] %v12600_v21 }
 0x71f   : > { %3488 = vrot.lane.b32.xlu2 %v3469_v54, %s10401_s8 }
 0x720   : > { %3490 = vrot.lane.b32.xlu0 %v3471_v52, %s10401_s8  ;;  %3492 = vrot.lane.b32.xlu1 %v3473_v43, %s10401_s8 }
 0x727   : > { %3494 = vrot.lane.b32.xlu2 %v3475_v50, %s10401_s8 }
 0x728   : > { %3496 = vrot.lane.b32.xlu0 %v3477_v55, %s10401_s8  ;;  %3498 = vrot.lane.b32.xlu1 %v3479_v9, %s10401_s8 }
 0x72f   : > { %3500 = vrot.lane.b32.xlu2 %v3481_v39, %s10401_s8 }
 0x730   : > { %3502 = vrot.lane.b32.xlu0 %v3484_v5, %s10401_s8  ;;  %3535 = vrot.lane.b32.xlu1 %v3516_v61, %s10402_s9 }
 0x737   : > { %3537 = vrot.lane.b32.xlu2 %v3518_v29, %s10402_s9 }
 0x738   : > { %3539 = vrot.lane.b32.xlu0 %v3520_v48, %s10402_s9  ;;  %3541 = vrot.lane.b32.xlu1 %v3522_v27, %s10402_s9 }
 0x73f   : > { %3543 = vrot.lane.b32.xlu2 %v3524_v49, %s10402_s9 }
 0x740   : > { %3545 = vrot.lane.b32.xlu0 %v3526_v44, %s10402_s9  ;;  %3547 = vrot.lane.b32.xlu1 %v3528_v7, %s10402_s9 }
 0x747   : > { %3549 = vrot.lane.b32.xlu2 %v3530_v4, %s10402_s9 }
 0x748   : > { %3551 = vrot.lane.b32.xlu0 %v3533_v23, %s10402_s9 }
 0x749   : > { %v3338_v46 = vpop.permute.xlu2 %3337 }
 0x74a   : > { %v3355_v58 = vrot.slane %v3338_v46, 4 }
 0x751   : > { %v3344_v26 = vpop.permute.xlu2 %3343 }
 0x752   : > { %v3334_v37 = vpop.permute.xlu0 %3333  ;;  %v3358_v17 = vrot.slane %v3344_v26, 4 }
 0x753   : > { %v3353_v34 = vrot.slane %v3334_v37, 4 }
 0x759   : > { %v3350_v51 = vpop.permute.xlu2 %3349 }
 0x75a   : > { %v3336_v6 = vpop.permute.xlu1 %3335  ;;  %v3361_v42 = vrot.slane %v3350_v51, 4 }
 0x75b   : > { %v3354_v38 = vrot.slane %v3336_v6, 4 }
 0x75d   : > { %v3363_v11 = vsel %vm484_vm3, %v3353_v34, %v3354_v38  ;;  %v3365_v22 = vsel %vm484_vm3, %v3354_v38, %v3355_v58 }
 0x75e   : > { %v3364_v8 = vsel %vm1179_vm11, %v3334_v37, %v3363_v11  ;;  %v3366_v41 = vsel %vm1179_vm11, %v3336_v6, %v3365_v22 }
 0x75f   : > { %3387 = vst [vmem:[#allocation2 + $0x240] sm:$0xff] %v3364_v8 }
 0x760   : > { %3388 = vst [vmem:[#allocation2 + $0x248] sm:$0xff] %v3366_v41 }
 0x761   : > { %v3440_v30 = vpop.permute.xlu2 %3439 }
 0x762   : > { %v3342_v47 = vpop.permute.xlu1 %3341  ;;  %v3340_v25 = vpop.permute.xlu0 %3339 }
 0x763   : > { %v3357_v31 = vrot.slane %v3342_v47, 4  ;;  %v3356_v35 = vrot.slane %v3340_v25, 4 }
 0x765   : > { %v3367_v56 = vsel %vm484_vm3, %v3355_v58, %v3356_v35  ;;  %v3369_v10 = vsel %vm484_vm3, %v3356_v35, %v3357_v31 }
 0x766   : > { %v3368_v60 = vsel %vm1179_vm11, %v3338_v46, %v3367_v56  ;;  %v3370_v24 = vsel %vm1179_vm11, %v3340_v25, %v3369_v10 }
 0x767   : > { %3389 = vst [vmem:[#allocation2 + $0x250] sm:$0xff] %v3368_v60 }
 0x768   : > { %3390 = vst [vmem:[#allocation2 + $0x258] sm:$0xff] %v3370_v24 }
 0x769   : > { %v12630_v63 = vpop.permute.xlu2 %3445 }
 0x76a   : > { %v3348_v32 = vpop.permute.xlu1 %3347  ;;  %v3346_v0 = vpop.permute.xlu0 %3345 }
 0x76b   : > { %v3360_v19 = vrot.slane %v3348_v32, 4  ;;  %v3359_v15 = vrot.slane %v3346_v0, 4 }
 0x76d   : > { %v3375_v28 = vsel %vm484_vm3, %v3360_v19, %v3361_v42  ;;  %v3371_v52 = vsel %vm484_vm3, %v3358_v17, %v3359_v15  ;;  %v3373_v45 = vsel %vm484_vm3, %v3359_v15, %v3360_v19 }
 0x76e   : > { %v3376_v43 = vsel %vm1179_vm11, %v3348_v32, %v3375_v28  ;;  %v3372_v18 = vsel %vm1179_vm11, %v3344_v26, %v3371_v52  ;;  %v3374_v54 = vsel %vm1179_vm11, %v3346_v0, %v3373_v45  ;;  %v12669_v0 = vld.sshfl [vmem:[#allocation1] sm:$0xff pattern:$0x73625140] }
 0x76f   : > { %3393 = vst [vmem:[#allocation2 + $0x270] sm:$0xff] %v3376_v43 }
 0x770   : > { %3391 = vst [vmem:[#allocation2 + $0x260] sm:$0xff] %v3372_v18 }
 0x771   : > { %3392 = vst [vmem:[#allocation2 + $0x268] sm:$0xff] %v3374_v54  ;;  %v12639_v39 = vpop.permute.xlu2 %3451 }
 0x772   : > { %v3352_v5 = vpop.permute.xlu0 %3351  ;;  %v3438_v50 = vpop.permute.xlu1 %3437  ;;  %3737 = vst [vmem:[#allocation1 + $0x1] ss:$4 sm:$0xff] %v11851_v1 }
 0x773   : > { %v3362_v55 = vrot.slane %v3352_v5, 4  ;;  %v3455_v11 = vsel %vm358_vm0, %v3438_v50, %v3440_v30 }
 0x774   : > { %v3562_v56 = vsel %vm467_vm1, %v12431_v2, %v3455_v11 }
 0x775   : > { %v3377_v9 = vsel %vm484_vm3, %v3361_v42, %v3362_v55 }
 0x776   : > { %v3378_v61 = vsel %vm1179_vm11, %v3350_v51, %v3377_v9 }
 0x777   : > { %3394 = vst [vmem:[#allocation2 + $0x278] sm:$0xff] %v3378_v61 }
 0x779   : > { %v3489_v29 = vpop.permute.xlu2 %3488 }
 0x77a   : > { %v3442_v48 = vpop.permute.xlu0 %3441  ;;  %v3444_v27 = vpop.permute.xlu1 %3443 }
 0x77b   : > { %v3456_v22 = vsel %vm358_vm0, %v3440_v30, %v3442_v48  ;;  %v3457_v8 = vsel %vm358_vm0, %v3442_v48, %v3444_v27  ;;  %v3458_v47 = vsel %vm358_vm0, %v3444_v27, %v12630_v63 }
 0x77c   : > { %v3564_v30 = vsel %vm467_vm1, %v12433_v20, %v3456_v22  ;;  %v3566_v24 = vsel %vm467_vm1, %v12435_v13, %v3457_v8  ;;  %v3568_v17 = vsel %vm467_vm1, %v12437_v57, %v3458_v47 }
 0x781   : > { %v3495_v7 = vpop.permute.xlu2 %3494 }
 0x782   : > { %v3448_v23 = vpop.permute.xlu0 %3447  ;;  %v12642_v44 = vpop.permute.xlu1 %3449 }
 0x783   : > { %v3459_v9 = vsel %vm358_vm0, %v12630_v63, %v3448_v23  ;;  %v3460_v61 = vsel %vm358_vm0, %v3448_v23, %v12642_v44 }
 0x784   : > { %v3572_v63 = vsel %vm467_vm1, %v12548_v14, %v3460_v61  ;;  %v3461_v14 = vsel %vm358_vm0, %v12642_v44, %v12639_v39 }
 0x789   : > { %v12646_v37 = vpop.permute.xlu2 %3500 }
 0x78a   : > { %v12644_v49 = vpop.permute.xlu0 %3453  ;;  %v3487_v4 = vpop.permute.xlu1 %3486 }
 0x78b   : > { %v3504_v41 = vsel %vm408_vm2, %v3487_v4, %v3489_v29 }
 0x78c   : > { %v3580_v32 = vsel %vm484_vm3, %v3562_v56, %v3504_v41  ;;  %v12715_v41 = vld.sshfl [vmem:[#allocation1 + $0x20] sm:$0xff pattern:$0x73625140] }
 0x791   : > { %v3538_v34 = vpop.permute.xlu2 %3537 }
 0x792   : > { %v3491_v46 = vpop.permute.xlu0 %3490  ;;  %v3493_v26 = vpop.permute.xlu1 %3492 }
 0x793   : > { %v3505_v25 = vsel %vm408_vm2, %v3489_v29, %v3491_v46  ;;  %v3506_v31 = vsel %vm408_vm2, %v3491_v46, %v3493_v26  ;;  %v3507_v10 = vsel %vm408_vm2, %v3493_v26, %v3495_v7  ;;  %v3570_v46 = vsel %vm467_vm1, %v12542_v16, %v3459_v9  ;;  %v12717_v16 = vld.sshfl [vmem:[#allocation1 + $0x28] sm:$0xff pattern:$0x73625140] }
 0x794   : > { %v3582_v42 = vsel %vm484_vm3, %v3564_v30, %v3505_v25  ;;  %v3584_v2 = vsel %vm484_vm3, %v3566_v24, %v3506_v31  ;;  %v3586_v20 = vsel %vm484_vm3, %v3568_v17, %v3507_v10  ;;  %v12722_v31 = vld.sshfl [vmem:[#allocation1 + $0x30] sm:$0xff pattern:$0x73625140]  ;;  %v12729_v10 = vld.sshfl [vmem:[#allocation1 + $0x18] sm:$0xff pattern:$0x73625140] }
 0x795   : > { %v3740_v24 = vld.sshfl [vmem:[#allocation1] sm:$0xff pattern:$0x73625140] }
 0x799   : > { %v3544_v60 = vpop.permute.xlu2 %3543 }
 0x79a   : > { %v3497_v6 = vpop.permute.xlu0 %3496  ;;  %v12648_v58 = vpop.permute.xlu1 %3498 }
 0x79b   : > { %v3508_v29 = vsel %vm408_vm2, %v3495_v7, %v3497_v6  ;;  %v3509_v4 = vsel %vm408_vm2, %v3497_v6, %v12648_v58  ;;  %v3510_v56 = vsel %vm408_vm2, %v12648_v58, %v12646_v37  ;;  %v3742_v58 = vld.sshfl [vmem:[#allocation1 + $0x8] sm:$0xff pattern:$0x73625140] }
 0x79c   : > { %v3588_v23 = vsel %vm484_vm3, %v3570_v46, %v3508_v29 }
 0x7a1   : > { %v3550_v22 = vpop.permute.xlu2 %3549 }
 0x7a2   : > { %v12650_v51 = vpop.permute.xlu0 %3502  ;;  %v3536_v38 = vpop.permute.xlu1 %3535 }
 0x7a3   : > { %v3553_v35 = vsel %vm458_vm4, %v3536_v38, %v3538_v34  ;;  %v3590_v38 = vsel %vm484_vm3, %v3572_v63, %v3509_v4  ;;  %v3511_v17 = vsel %vm408_vm2, %v12646_v37, %v12650_v51 }
 0x7a4   : > { %v12676_v19 = vsel %vm501_vm5, %v3580_v32, %v3553_v35  ;;  %v12724_v35 = vld.sshfl [vmem:[#allocation1 + $0x38] sm:$0xff pattern:$0x73625140]  ;;  %v3574_v32 = vsel %vm467_vm1, %v12550_v36, %v3461_v14 }
 0x7a5   : > { %v3624_v54 = vunpack.c.l.b16 %v12676_v19  ;;  %3739 = vst [vmem:[#allocation1 + $0x21] ss:$4 sm:$0xff] %v11860_v53 }
 0x7aa   : > { %v3540_v15 = vpop.permute.xlu0 %3539  ;;  %v3542_v28 = vpop.permute.xlu1 %3541 }
 0x7ab   : > { %v3554_v13 = vsel %vm458_vm4, %v3538_v34, %v3540_v15  ;;  %v3555_v52 = vsel %vm458_vm4, %v3540_v15, %v3542_v28  ;;  %v3556_v45 = vsel %vm458_vm4, %v3542_v28, %v3544_v60  ;;  %v3592_v15 = vsel %vm484_vm3, %v3574_v32, %v3510_v56 }
 0x7ac   : > { %v12684_v57 = vsel %vm501_vm5, %v3582_v42, %v3554_v13  ;;  %v12687_v43 = vsel %vm501_vm5, %v3584_v2, %v3555_v52  ;;  %v12690_v18 = vsel %vm501_vm5, %v3586_v20, %v3556_v45  ;;  %v3744_v42 = vld.sshfl [vmem:[#allocation1 + $0x10] sm:$0xff pattern:$0x73625140]  ;;  %v3578_v2 = vsel %vm467_vm1, %v12486_v59, %v12644_v49  ;;  %v3748_v61 = vld.sshfl [vmem:[#allocation1 + $0x20] sm:$0xff pattern:$0x73625140] }
 0x7ad   : > { %v3625_v5 = vunpack.c.l.b16 %v12684_v57  ;;  %v3626_v50 = vunpack.c.l.b16 %v12687_v43  ;;  %v3627_v55 = vunpack.c.l.b16 %v12690_v18  ;;  %3756 = vst [vmem:[#allocation1 + $0x1] ss:$4 sm:$0xff] %v12600_v21  ;;  %v3634_v59 = vunpack.c.h.b16 %v12684_v57  ;;  %v3752_v57 = vld.sshfl [vmem:[#allocation1 + $0x30] sm:$0xff pattern:$0x73625140] }
 0x7ae   : > { %v3633_v45 = vunpack.c.h.b16 %v12676_v19  ;;  %v3635_v46 = vunpack.c.h.b16 %v12687_v43  ;;  %v3636_v63 = vunpack.c.h.b16 %v12690_v18 }
 0x7af   : > { %v3642_v48 = vpack.c.b16 %v3625_v5, %v3624_v54  ;;  %v3643_v27 = vpack.c.b16 %v3627_v55, %v3626_v50  ;;  %v12762_v50 = vld [vmem:[%s11847_s22 + $0xa] sm:$0xff] }
 0x7b0   : > { %v3647_v55 = vpack.c.b16 %v3634_v59, %v3633_v45 }
 0x7b1   : > { %3652 = vrot.lane.b32.xlu1 %v3642_v48, %s10409_s16  ;;  %3654 = vrot.lane.b32.xlu2 %v3643_v27, %s10409_s16  ;;  %v3750_v48 = vld.sshfl [vmem:[#allocation1 + $0x28] sm:$0xff pattern:$0x73625140]  ;;  %v3754_v27 = vld.sshfl [vmem:[#allocation1 + $0x38] sm:$0xff pattern:$0x73625140] }
 0x7b2   : > { %v3546_v26 = vpop.permute.xlu0 %3545  ;;  %v3548_v34 = vpop.permute.xlu1 %3547  ;;  %3790 = vst [vmem:[#allocation1 + $0x22] ss:$4 sm:$0xff] %v12762_v50 }
 0x7b3   : > { %v3557_v7 = vsel %vm458_vm4, %v3544_v60, %v3546_v26  ;;  %v3558_v6 = vsel %vm458_vm4, %v3546_v26, %v3548_v34  ;;  %v3462_v60 = vsel %vm358_vm0, %v12639_v39, %v12644_v49  ;;  %v3559_v44 = vsel %vm458_vm4, %v3548_v34, %v3550_v22 }
 0x7b4   : > { %v3606_v11 = vsel %vm501_vm5, %v3588_v23, %v3557_v7  ;;  %v3608_v8 = vsel %vm501_vm5, %v3590_v38, %v3558_v6  ;;  %v3576_v36 = vsel %vm467_vm1, %v12555_v33, %v3462_v60  ;;  %v3596_v39 = vsel %vm484_vm3, %v3578_v2, %v12650_v51  ;;  %v12759_v51 = vld [vmem:[%s11847_s22 + $0x2] sm:$0xff] }
 0x7b5   : > { %v3628_v47 = vunpack.c.l.b16 %v3606_v11  ;;  %v3629_v25 = vunpack.c.l.b16 %v3608_v8  ;;  %v3610_v37 = vsel %vm501_vm5, %v3592_v15, %v3559_v44  ;;  %v3594_v20 = vsel %vm484_vm3, %v3576_v36, %v3511_v17  ;;  %v3757_v19 = vld.sshfl [vmem:[#allocation1] sm:$0xff pattern:$0x73625140] }
 0x7b6   : > { %v3630_v33 = vunpack.c.l.b16 %v3610_v37  ;;  %v3637_v29 = vunpack.c.h.b16 %v3606_v11  ;;  %v3638_v4 = vunpack.c.h.b16 %v3608_v8  ;;  %3787 = vst [vmem:[#allocation1 + $0x2] ss:$4 sm:$0xff] %v12759_v51  ;;  %v3639_v34 = vunpack.c.h.b16 %v3610_v37  ;;  %v3719_v11 = vld [vmem:[%s11847_s22 + $0x12] sm:$0x3] }
 0x7b7   : > { %v3644_v30 = vpack.c.b16 %v3629_v25, %v3628_v47  ;;  %v3648_v7 = vpack.c.b16 %v3636_v63, %v3635_v46 }
 0x7b8   : > { %v3649_v23 = vpack.c.b16 %v3638_v4, %v3637_v29 }
 0x7b9   : > { %3656 = vrot.lane.b32.xlu0 %v3644_v30, %s10409_s16  ;;  %v3799_v47 = vld.sshfl [vmem:[#allocation1 + $0x20] sm:$0xff pattern:$0x73625140]  ;;  %v3803_v25 = vld.sshfl [vmem:[#allocation1 + $0x30] sm:$0xff pattern:$0x73625140] }
 0x7ba   : > { %v3552_v28 = vpop.permute.xlu0 %3551  ;;  %v3801_v56 = vld.sshfl [vmem:[#allocation1 + $0x28] sm:$0xff pattern:$0x73625140]  ;;  %v3805_v60 = vld.sshfl [vmem:[#allocation1 + $0x38] sm:$0xff pattern:$0x73625140] }
 0x7bb   : > { %v3560_v49 = vsel %vm458_vm4, %v3550_v22, %v3552_v28  ;;  %v3614_v13 = vsel %vm501_vm5, %v3596_v39, %v3552_v28  ;;  %3840 = vst [vmem:[#allocation1 + $0x23] ss:$4 sm:$0xff] %v12762_v50 }
 0x7bc   : > { %v3612_v21 = vsel %vm501_vm5, %v3594_v20, %v3560_v49  ;;  %v3632_v52 = vunpack.c.l.b16 %v3614_v13  ;;  %v3641_v6 = vunpack.c.h.b16 %v3614_v13 }
 0x7bd   : > { %v3631_v54 = vunpack.c.l.b16 %v3612_v21  ;;  %v3640_v26 = vunpack.c.h.b16 %v3612_v21  ;;  %v3797_v22 = vld.sshfl [vmem:[#allocation1 + $0x18] sm:$0xff pattern:$0x73625140]  ;;  %v3791_v43 = vld.sshfl [vmem:[#allocation1] sm:$0xff pattern:$0x73625140] }
 0x7be   : > { %v3646_v5 = vpack.c.b16 %v3632_v52, %v3632_v52  ;;  %v3651_v8 = vpack.c.b16 %v3641_v6, %v3641_v6  ;;  %v3793_v18 = vld.sshfl [vmem:[#allocation1 + $0x8] sm:$0xff pattern:$0x73625140]  ;;  %v3795_v14 = vld.sshfl [vmem:[#allocation1 + $0x10] sm:$0xff pattern:$0x73625140] }
 0x7bf   : > { %v3645_v9 = vpack.c.b16 %v3631_v54, %v3630_v33  ;;  %v3650_v38 = vpack.c.b16 %v3640_v26, %v3639_v34  ;;  %3808 = vst [vmem:[#allocation1 + $0x2] ss:$4 sm:$0xff] %v3719_v11 }
 0x7c0   : > { %3660 = vrot.lane.b32.xlu2 %v3646_v5, %s10409_s16 }
 0x7c1   : > { %3662 = vrot.lane.b32.xlu0 %v3647_v55, %s10409_s16  ;;  %3658 = vrot.lane.b32.xlu1 %v3645_v9, %s10409_s16 }
 0x7c2   : > { %v3849_v39 = vld.sshfl [vmem:[#allocation1 + $0x20] sm:$0xff pattern:$0x73625140]  ;;  %v3851_v37 = vld.sshfl [vmem:[#allocation1 + $0x28] sm:$0xff pattern:$0x73625140] }
 0x7c3   : > { %v3855_v28 = vld.sshfl [vmem:[#allocation1 + $0x38] sm:$0xff pattern:$0x73625140]  ;;  %v3853_v20 = vld.sshfl [vmem:[#allocation1 + $0x30] sm:$0xff pattern:$0x73625140] }
 0x7c4   : > { %4046 = vst [vmem:[#allocation1 + $0x20] ss:$4 sm:$0xff] %v12762_v50 }
 0x7c6   : > { %v3809_v44 = vld.sshfl [vmem:[#allocation1] sm:$0xff pattern:$0x73625140] }
 0x7c7   : > { %3838 = vst [vmem:[#allocation1 + $0x3] ss:$4 sm:$0xff] %v12759_v51 }
 0x7c8   : > { %3666 = vrot.lane.b32.xlu2 %v3649_v23, %s10409_s16 }
 0x7c9   : > { %3668 = vrot.lane.b32.xlu0 %v3650_v38, %s10409_s16  ;;  %3664 = vrot.lane.b32.xlu1 %v3648_v7, %s10409_s16 }
 0x7cb   : > { %v12816_v59 = vld.sshfl [vmem:[#allocation1 + $0x20] sm:$0xff pattern:$0x73625140]  ;;  %v12818_v49 = vld.sshfl [vmem:[#allocation1 + $0x28] sm:$0xff pattern:$0x73625140] }
 0x7cc   : > { %v12823_v13 = vld.sshfl [vmem:[#allocation1 + $0x30] sm:$0xff pattern:$0x73625140]  ;;  %v12825_v21 = vld.sshfl [vmem:[#allocation1 + $0x38] sm:$0xff pattern:$0x73625140] }
 0x7cd   : > { %4061 = vst [vmem:[#allocation1 + $0x21] ss:$4 sm:$0xff] %v12762_v50 }
 0x7ce   : > { %v3847_v30 = vld.sshfl [vmem:[#allocation1 + $0x18] sm:$0xff pattern:$0x73625140]  ;;  %v3845_v32 = vld.sshfl [vmem:[#allocation1 + $0x10] sm:$0xff pattern:$0x73625140] }
 0x7d0   : > { %3759 = vrot.lane.b32.xlu2 %v3740_v24, %s10400_s30  ;;  %v3843_v24 = vld.sshfl [vmem:[#allocation1 + $0x8] sm:$0xff pattern:$0x73625140] }
 0x7d1   : > { %3670 = vrot.lane.b32.xlu1 %v3651_v8, %s10409_s16  ;;  %3761 = vrot.lane.b32.xlu0 %v3742_v58, %s10400_s30  ;;  %v12795_v58 = vld [vmem:[%s11847_s22 + $0x12] sm:$0x3]  ;;  %s10419_s16 = smov 91  }
 0x7d8   : > { %3765 = vrot.lane.b32.xlu2 %v12729_v10, %s10400_s30  ;;  %v3841_v10 = vld.sshfl [vmem:[#allocation1] sm:$0xff pattern:$0x73625140] }
 0x7d9   : > { %3763 = vrot.lane.b32.xlu1 %v3744_v42, %s10400_s30  ;;  %3767 = vrot.lane.b32.xlu0 %v3748_v61, %s10400_s30  ;;  %3857 = vst [vmem:[#allocation1 + $0x3] ss:$4 sm:$0xff] %v3719_v11 }
 0x7e0   : > { %3771 = vrot.lane.b32.xlu2 %v3752_v57, %s10400_s30  ;;  %v3858_v17 = vld.sshfl [vmem:[#allocation1] sm:$0xff pattern:$0x73625140] }
 0x7e1   : > { %3769 = vrot.lane.b32.xlu1 %v3750_v48, %s10400_s30  ;;  %3773 = vrot.lane.b32.xlu0 %v3754_v27, %s10400_s30  ;;  %4043 = vst [vmem:[#allocation1] ss:$4 sm:$0xff] %v12759_v51 }
 0x7e8   : > { %3811 = vrot.lane.b32.xlu2 %v3791_v43, %s10405_s12  ;;  %v12800_v42 = vld.sshfl [vmem:[#allocation1] sm:$0xff pattern:$0x73625140]  ;;  %v12802_v2 = vld.sshfl [vmem:[#allocation1 + $0x8] sm:$0xff pattern:$0x73625140] }
 0x7e9   : > { %3775 = vrot.lane.b32.xlu1 %v3757_v19, %s10400_s30  ;;  %3813 = vrot.lane.b32.xlu0 %v3793_v18, %s10405_s12  ;;  %v12804_v15 = vld.sshfl [vmem:[#allocation1 + $0x10] sm:$0xff pattern:$0x73625140]  ;;  %v12806_v36 = vld.sshfl [vmem:[#allocation1 + $0x18] sm:$0xff pattern:$0x73625140] }
 0x7ea   : > { %4056 = vst [vmem:[#allocation1] ss:$4 sm:$0xff] %v12795_v58 }
 0x7f0   : > { %3817 = vrot.lane.b32.xlu2 %v3797_v22, %s10405_s12 }
 0x7f1   : > { %3815 = vrot.lane.b32.xlu1 %v3795_v14, %s10405_s12  ;;  %3819 = vrot.lane.b32.xlu0 %v3799_v47, %s10405_s12 }
 0x7f8   : > { %3823 = vrot.lane.b32.xlu2 %v3803_v25, %s10405_s12 }
 0x7f9   : > { %3821 = vrot.lane.b32.xlu1 %v3801_v56, %s10405_s12  ;;  %3825 = vrot.lane.b32.xlu0 %v3805_v60, %s10405_s12 }
 0x800   : > { %3860 = vrot.lane.b32.xlu2 %v3841_v10, %s10406_s13 }
 0x801   : > { %3827 = vrot.lane.b32.xlu1 %v3809_v44, %s10405_s12  ;;  %3862 = vrot.lane.b32.xlu0 %v3843_v24, %s10406_s13 }
 0x808   : > { %3866 = vrot.lane.b32.xlu2 %v3847_v30, %s10406_s13 }
 0x809   : > { %3864 = vrot.lane.b32.xlu1 %v3845_v32, %s10406_s13  ;;  %3868 = vrot.lane.b32.xlu0 %v3849_v39, %s10406_s13 }
 0x80b   : > { %v3655_v52 = vpop.permute.xlu2 %3654 }
 0x80c   : > { %v3673_v54 = vrot.slane %v3655_v52, 4 }
 0x810   : > { %3872 = vrot.lane.b32.xlu2 %v3853_v20, %s10406_s13 }
 0x811   : > { %3870 = vrot.lane.b32.xlu1 %v3851_v37, %s10406_s13  ;;  %3874 = vrot.lane.b32.xlu0 %v3855_v28, %s10406_s13 }
 0x819   : > { %3876 = vrot.lane.b32.xlu1 %v3858_v17, %s10406_s13  ;;  %s10416_s13 = smov 111  }
 0x81a   : > { %v3661_v45 = vpop.permute.xlu2 %3660 }
 0x81b   : > { %v3676_v63 = vrot.slane %v3661_v45, 4 }
 0x822   : > { %v3667_v61 = vpop.permute.xlu2 %3666 }
 0x823   : > { %v3653_v33 = vpop.permute.xlu1 %3652  ;;  %v3679_v22 = vrot.slane %v3667_v61, 4 }
 0x824   : > { %v3672_v5 = vrot.slane %v3653_v33, 4 }
 0x826   : > { %v3682_v55 = vsel %vm484_vm3, %v3672_v5, %v3673_v54 }
 0x827   : > { %v3683_v9 = vsel %vm1499_vm12, %v3653_v33, %v3682_v55 }
 0x828   : > { %3706 = vst [vmem:[#allocation2 + $0x280] sm:$0xff] %v3683_v9 }
 0x82a   : > { %v3760_v29 = vpop.permute.xlu2 %3759 }
 0x82b   : > { %v3657_v57 = vpop.permute.xlu0 %3656 }
 0x82c   : > { %v3674_v48 = vrot.slane %v3657_v57, 4 }
 0x82e   : > { %v3684_v27 = vsel %vm484_vm3, %v3673_v54, %v3674_v48 }
 0x82f   : > { %v3685_v19 = vsel %vm1499_vm12, %v3655_v52, %v3684_v27 }
 0x830   : > { %3707 = vst [vmem:[#allocation2 + $0x288] sm:$0xff] %v3685_v19 }
 0x832   : > { %v3766_v8 = vpop.permute.xlu2 %3765 }
 0x833   : > { %v3659_v4 = vpop.permute.xlu1 %3658  ;;  %v3663_v46 = vpop.permute.xlu0 %3662 }
 0x834   : > { %v3675_v26 = vrot.slane %v3659_v4, 4  ;;  %v3677_v43 = vrot.slane %v3663_v46, 4 }
 0x836   : > { %v3686_v34 = vsel %vm484_vm3, %v3674_v48, %v3675_v26  ;;  %v3688_v23 = vsel %vm484_vm3, %v3675_v26, %v3676_v63 }
 0x837   : > { %v3687_v38 = vsel %vm1499_vm12, %v3657_v57, %v3686_v34  ;;  %v3689_v7 = vsel %vm1499_vm12, %v3659_v4, %v3688_v23 }
 0x838   : > { %3708 = vst [vmem:[#allocation2 + $0x290] sm:$0xff] %v3687_v38 }
 0x839   : > { %3709 = vst [vmem:[#allocation2 + $0x298] sm:$0xff] %v3689_v7 }
 0x83a   : > { %v3772_v17 = vpop.permute.xlu2 %3771 }
 0x83b   : > { %v3665_v6 = vpop.permute.xlu1 %3664  ;;  %v3669_v11 = vpop.permute.xlu0 %3668 }
 0x83c   : > { %v3678_v18 = vrot.slane %v3665_v6, 4  ;;  %v3680_v14 = vrot.slane %v3669_v11, 4 }
 0x83e   : > { %v3690_v47 = vsel %vm484_vm3, %v3677_v43, %v3678_v18  ;;  %v3692_v25 = vsel %vm484_vm3, %v3678_v18, %v3679_v22  ;;  %v3694_v56 = vsel %vm484_vm3, %v3679_v22, %v3680_v14 }
 0x83f   : > { %v3691_v60 = vsel %vm1499_vm12, %v3663_v46, %v3690_v47  ;;  %v3693_v44 = vsel %vm1499_vm12, %v3665_v6, %v3692_v25  ;;  %v3695_v10 = vsel %vm1499_vm12, %v3667_v61, %v3694_v56 }
 0x840   : > { %3710 = vst [vmem:[#allocation2 + $0x2a0] sm:$0xff] %v3691_v60 }
 0x841   : > { %3711 = vst [vmem:[#allocation2 + $0x2a8] sm:$0xff] %v3693_v44 }
 0x842   : > { %3712 = vst [vmem:[#allocation2 + $0x2b0] sm:$0xff] %v3695_v10  ;;  %v3812_v52 = vpop.permute.xlu2 %3811 }
 0x843   : > { %v3671_v30 = vpop.permute.xlu1 %3670  ;;  %v3762_v24 = vpop.permute.xlu0 %3761 }
 0x844   : > { %v3681_v32 = vrot.slane %v3671_v30, 4  ;;  %v3777_v19 = vsel %vm358_vm0, %v3760_v29, %v3762_v24 }
 0x845   : > { %v3887_v4 = vsel %vm467_vm1, %v12604_v40, %v3777_v19 }
 0x846   : > { %v3696_v39 = vsel %vm484_vm3, %v3680_v14, %v3681_v32  ;;  %v3905_v34 = vsel %vm484_vm3, %v3887_v4, %v3812_v52 }
 0x847   : > { %v3697_v37 = vsel %vm1499_vm12, %v3669_v11, %v3696_v39 }
 0x848   : > { %3713 = vst [vmem:[#allocation2 + $0x2b8] sm:$0xff] %v3697_v37 }
 0x84a   : > { %v3818_v54 = vpop.permute.xlu2 %3817 }
 0x84b   : > { %v3764_v28 = vpop.permute.xlu1 %3763  ;;  %v3768_v20 = vpop.permute.xlu0 %3767 }
 0x84c   : > { %v3778_v63 = vsel %vm358_vm0, %v3762_v24, %v3764_v28  ;;  %v3779_v14 = vsel %vm358_vm0, %v3764_v28, %v3766_v8  ;;  %v12876_v24 = vld.sshfl [vmem:[#allocation1] sm:$0xff pattern:$0x73625140] }
 0x84d   : > { %v3889_v23 = vsel %vm467_vm1, %v12606_v12, %v3778_v63  ;;  %v3780_v12 = vsel %vm358_vm0, %v3766_v8, %v3768_v20  ;;  %v3891_v60 = vsel %vm467_vm1, %v12608_v3, %v3779_v14  ;;  %4059 = vst [vmem:[#allocation1 + $0x1] ss:$4 sm:$0xff] %v12759_v51 }
 0x84e   : > { %v3893_v44 = vsel %vm467_vm1, %v12610_v62, %v3780_v12 }
 0x852   : > { %v3824_v57 = vpop.permute.xlu2 %3823 }
 0x853   : > { %v3770_v45 = vpop.permute.xlu1 %3769  ;;  %v3774_v33 = vpop.permute.xlu0 %3773 }
 0x854   : > { %v3781_v62 = vsel %vm358_vm0, %v3768_v20, %v3770_v45  ;;  %v3783_v19 = vsel %vm358_vm0, %v3772_v17, %v3774_v33 }
 0x855   : > { %v3895_v20 = vsel %vm467_vm1, %v12715_v41, %v3781_v62 }
 0x85a   : > { %v3861_v46 = vpop.permute.xlu2 %3860 }
 0x85b   : > { %v12845_v5 = vpop.permute.xlu1 %3775  ;;  %v3814_v55 = vpop.permute.xlu0 %3813  ;;  %v12858_v38 = vsel %vm501_vm5, %v3905_v34, %v3861_v46 }
 0x85c   : > { %v3829_v26 = vsel %vm998_vm9, %v3812_v52, %v3814_v55  ;;  %v3949_v22 = vunpack.c.l.b16 %v12858_v38  ;;  %v3784_v4 = vsel %vm358_vm0, %v3774_v33, %v12845_v5  ;;  %v3899_v33 = vsel %vm467_vm1, %v12722_v31, %v3783_v19 }
 0x85d   : > { %v3907_v29 = vsel %vm484_vm3, %v3889_v23, %v3829_v26 }
 0x862   : > { %v3867_v18 = vpop.permute.xlu2 %3866 }
 0x863   : > { %v3816_v9 = vpop.permute.xlu1 %3815  ;;  %v3820_v61 = vpop.permute.xlu0 %3819 }
 0x864   : > { %v3830_v25 = vsel %vm998_vm9, %v3814_v55, %v3816_v9  ;;  %v3831_v56 = vsel %vm998_vm9, %v3816_v9, %v3818_v54  ;;  %v3782_v9 = vsel %vm358_vm0, %v3770_v45, %v3772_v17 }
 0x865   : > { %v3909_v32 = vsel %vm484_vm3, %v3891_v60, %v3830_v25  ;;  %v3911_v8 = vsel %vm484_vm3, %v3893_v44, %v3831_v56  ;;  %v3897_v17 = vsel %vm467_vm1, %v12717_v16, %v3782_v9 }
 0x86b   : > { %v3822_v48 = vpop.permute.xlu1 %3821  ;;  %v12847_v27 = vpop.permute.xlu0 %3825 }
 0x86c   : > { %v3833_v63 = vsel %vm998_vm9, %v3820_v61, %v3822_v48  ;;  %v3834_v26 = vsel %vm998_vm9, %v3822_v48, %v3824_v57  ;;  %v3835_v45 = vsel %vm998_vm9, %v3824_v57, %v12847_v27 }
 0x86d   : > { %v3915_v48 = vsel %vm484_vm3, %v3897_v17, %v3833_v63  ;;  %v3917_v41 = vsel %vm484_vm3, %v3899_v33, %v3834_v26  ;;  %v4072_v26 = vld.sshfl [vmem:[#allocation1 + $0x28] sm:$0xff pattern:$0x73625140] }
 0x873   : > { %v3828_v7 = vpop.permute.xlu1 %3827  ;;  %v3863_v6 = vpop.permute.xlu0 %3862 }
 0x874   : > { %v3878_v11 = vsel %vm1048_vm8, %v3861_v46, %v3863_v6  ;;  %v3832_v46 = vsel %vm998_vm9, %v3818_v54, %v3820_v61  ;;  %v3901_v61 = vsel %vm467_vm1, %v12724_v35, %v3784_v4  ;;  %v3836_v60 = vsel %vm998_vm9, %v12847_v27, %v3828_v7 }
 0x875   : > { %v12863_v40 = vsel %vm501_vm5, %v3907_v29, %v3878_v11  ;;  %v3913_v54 = vsel %vm484_vm3, %v3895_v20, %v3832_v46  ;;  %v3919_v16 = vsel %vm484_vm3, %v3901_v61, %v3835_v45 }
 0x876   : > { %v3950_v43 = vunpack.c.l.b16 %v12863_v40  ;;  %v3959_v27 = vunpack.c.h.b16 %v12863_v40  ;;  %v4074_v40 = vld.sshfl [vmem:[#allocation1 + $0x30] sm:$0xff pattern:$0x73625140] }
 0x878   : > { %v3967_v47 = vpack.c.b16 %v3950_v43, %v3949_v22 }
 0x87a   : > { %3977 = vrot.lane.b32.xlu2 %v3967_v47, %s10410_s17 }
 0x87b   : > { %v3865_v10 = vpop.permute.xlu1 %3864  ;;  %v3869_v30 = vpop.permute.xlu0 %3868 }
 0x87c   : > { %v3879_v39 = vsel %vm1048_vm8, %v3863_v6, %v3865_v10  ;;  %v3880_v37 = vsel %vm1048_vm8, %v3865_v10, %v3867_v18  ;;  %v3881_v34 = vsel %vm1048_vm8, %v3867_v18, %v3869_v30  ;;  %v3873_v6 = vpop.permute.xlu2 %3872 }
 0x87d   : > { %v3927_v28 = vsel %vm501_vm5, %v3909_v32, %v3879_v39  ;;  %v3929_v3 = vsel %vm501_vm5, %v3911_v8, %v3880_v37  ;;  %v3931_v57 = vsel %vm501_vm5, %v3913_v54, %v3881_v34  ;;  %v4064_v32 = vld.sshfl [vmem:[#allocation1 + $0x8] sm:$0xff pattern:$0x73625140]  ;;  %v3903_v8 = vsel %vm467_vm1, %v12669_v0, %v12845_v5  ;;  %v4062_v39 = vld.sshfl [vmem:[#allocation1] sm:$0xff pattern:$0x73625140] }
 0x87e   : > { %v3951_v52 = vunpack.c.l.b16 %v3927_v28  ;;  %v3952_v55 = vunpack.c.l.b16 %v3929_v3  ;;  %v3953_v12 = vunpack.c.l.b16 %v3931_v57  ;;  %v4068_v37 = vld.sshfl [vmem:[#allocation1 + $0x18] sm:$0xff pattern:$0x73625140]  ;;  %v3921_v62 = vsel %vm484_vm3, %v3903_v8, %v3836_v60  ;;  %v4070_v34 = vld.sshfl [vmem:[#allocation1 + $0x20] sm:$0xff pattern:$0x73625140] }
 0x87f   : > { %v3960_v7 = vunpack.c.h.b16 %v3927_v28  ;;  %v3958_v0 = vunpack.c.h.b16 %v12858_v38 }
 0x880   : > { %v3968_v23 = vpack.c.b16 %v3952_v55, %v3951_v52  ;;  %v3961_v55 = vunpack.c.h.b16 %v3929_v3 }
 0x881   : > { %v3972_v63 = vpack.c.b16 %v3959_v27, %v3958_v0 }
 0x882   : > { %3979 = vrot.lane.b32.xlu0 %v3968_v23, %s10410_s17  ;;  %v3973_v46 = vpack.c.b16 %v3961_v55, %v3960_v7  ;;  %v4076_v23 = vld.sshfl [vmem:[#allocation1 + $0x38] sm:$0xff pattern:$0x73625140] }
 0x883   : > { %v3871_v29 = vpop.permute.xlu1 %3870  ;;  %v3875_v11 = vpop.permute.xlu0 %3874  ;;  %4110 = vst [vmem:[#allocation1 + $0x22] ss:$4 sm:$0xff] %v12762_v50 }
 0x884   : > { %v3882_v22 = vsel %vm1048_vm8, %v3869_v30, %v3871_v29  ;;  %v3883_v31 = vsel %vm1048_vm8, %v3871_v29, %v3873_v6  ;;  %v3884_v43 = vsel %vm1048_vm8, %v3873_v6, %v3875_v11  ;;  %v4066_v30 = vld.sshfl [vmem:[#allocation1 + $0x10] sm:$0xff pattern:$0x73625140]  ;;  %v3962_v6 = vunpack.c.h.b16 %v3931_v57 }
 0x885   : > { %v3933_v18 = vsel %vm501_vm5, %v3915_v48, %v3882_v22  ;;  %v3935_v35 = vsel %vm501_vm5, %v3917_v41, %v3883_v31  ;;  %v3937_v14 = vsel %vm501_vm5, %v3919_v16, %v3884_v43  ;;  %4078 = vst [vmem:[#allocation1 + $0x1] ss:$4 sm:$0xff] %v12795_v58 }
 0x886   : > { %v3954_v47 = vunpack.c.l.b16 %v3933_v18  ;;  %v3955_v25 = vunpack.c.l.b16 %v3935_v35  ;;  %v3956_v56 = vunpack.c.l.b16 %v3937_v14  ;;  %v3964_v3 = vunpack.c.h.b16 %v3935_v35 }
 0x887   : > { %v3965_v20 = vunpack.c.h.b16 %v3937_v14  ;;  %v3963_v45 = vunpack.c.h.b16 %v3933_v18 }
 0x888   : > { %v3970_v44 = vpack.c.b16 %v3956_v56, %v3955_v25  ;;  %v3969_v10 = vpack.c.b16 %v3954_v47, %v3953_v12 }
 0x889   : > { %v3975_v33 = vpack.c.b16 %v3965_v20, %v3964_v3  ;;  %v3974_v54 = vpack.c.b16 %v3963_v45, %v3962_v6 }
 0x88a   : > { %3983 = vrot.lane.b32.xlu2 %v3970_v44, %s10410_s17  ;;  %3981 = vrot.lane.b32.xlu1 %v3969_v10, %s10410_s17  ;;  %v4121_v57 = vld.sshfl [vmem:[#allocation1 + $0x28] sm:$0xff pattern:$0x73625140]  ;;  %v4125_v16 = vld.sshfl [vmem:[#allocation1 + $0x38] sm:$0xff pattern:$0x73625140] }
 0x88b   : > { %v3877_v52 = vpop.permute.xlu1 %3876  ;;  %v4123_v22 = vld.sshfl [vmem:[#allocation1 + $0x30] sm:$0xff pattern:$0x73625140] }
 0x88c   : > { %v3885_v9 = vsel %vm1048_vm8, %v3875_v11, %v3877_v52  ;;  %v4079_v28 = vld.sshfl [vmem:[#allocation1] sm:$0xff pattern:$0x73625140]  ;;  %v12959_v44 = vld [vmem:[%s11847_s22 + $0x12] sm:$0x3]  ;;  %s10427_s22 = smov 39  }
 0x88d   : > { %v3939_v19 = vsel %vm501_vm5, %v3921_v62, %v3885_v9  ;;  %4108 = vst [vmem:[#allocation1 + $0x2] ss:$4 sm:$0xff] %v12759_v51  ;;  %v4119_v11 = vld.sshfl [vmem:[#allocation1 + $0x20] sm:$0xff pattern:$0x73625140] }
 0x88e   : > { %v3957_v5 = vunpack.c.l.b16 %v3939_v19  ;;  %v3966_v38 = vunpack.c.h.b16 %v3939_v19  ;;  %4159 = vst [vmem:[#allocation1 + $0x23] ss:$4 sm:$0xff] %v12762_v50 }
 0x890   : > { %v3971_v4 = vpack.c.b16 %v3957_v5, %v3957_v5  ;;  %v3976_v17 = vpack.c.b16 %v3966_v38, %v3966_v38 }
 0x892   : > { %3989 = vrot.lane.b32.xlu2 %v3973_v46, %s10410_s17  ;;  %3987 = vrot.lane.b32.xlu1 %v3972_v63, %s10410_s17 }
 0x893   : > { %3985 = vrot.lane.b32.xlu0 %v3971_v4, %s10410_s17 }
 0x894   : > { %v4115_v61 = vld.sshfl [vmem:[#allocation1 + $0x10] sm:$0xff pattern:$0x73625140]  ;;  %v4113_v48 = vld.sshfl [vmem:[#allocation1 + $0x8] sm:$0xff pattern:$0x73625140] }
 0x895   : > { %v4111_v41 = vld.sshfl [vmem:[#allocation1] sm:$0xff pattern:$0x73625140]  ;;  %v4117_v29 = vld.sshfl [vmem:[#allocation1 + $0x18] sm:$0xff pattern:$0x73625140] }
 0x896   : > { %4127 = vst [vmem:[#allocation1 + $0x2] ss:$4 sm:$0xff] %v12795_v58  ;;  %v4170_v12 = vld.sshfl [vmem:[#allocation1 + $0x28] sm:$0xff pattern:$0x73625140] }
 0x897   : > { %v4168_v47 = vld.sshfl [vmem:[#allocation1 + $0x20] sm:$0xff pattern:$0x73625140]  ;;  %v4174_v25 = vld.sshfl [vmem:[#allocation1 + $0x38] sm:$0xff pattern:$0x73625140] }
 0x898   : > { %v4172_v56 = vld.sshfl [vmem:[#allocation1 + $0x30] sm:$0xff pattern:$0x73625140] }
 0x899   : > { %4367 = vst [vmem:[#allocation1 + $0x20] ss:$4 sm:$0xff] %v12762_v50 }
 0x89a   : > { %3993 = vrot.lane.b32.xlu1 %v3975_v33, %s10410_s17  ;;  %3995 = vrot.lane.b32.xlu2 %v3976_v17, %s10410_s17 }
 0x89b   : > { %3991 = vrot.lane.b32.xlu0 %v3974_v54, %s10410_s17  ;;  %s10421_s17 = smov 10  }
 0x89d   : > { %v4128_v31 = vld.sshfl [vmem:[#allocation1] sm:$0xff pattern:$0x73625140] }
 0x89e   : > { %4157 = vst [vmem:[#allocation1 + $0x3] ss:$4 sm:$0xff] %v12759_v51 }
 0x8a0   : > { %v12965_v10 = vld.sshfl [vmem:[#allocation1 + $0x28] sm:$0xff pattern:$0x73625140] }
 0x8a2   : > { %4085 = vrot.lane.b32.xlu2 %v4066_v30, %s10411_s18  ;;  %4083 = vrot.lane.b32.xlu1 %v4064_v32, %s10411_s18  ;;  %v12968_v30 = vld.sshfl [vmem:[#allocation1 + $0x30] sm:$0xff pattern:$0x73625140]  ;;  %v12970_v32 = vld.sshfl [vmem:[#allocation1 + $0x38] sm:$0xff pattern:$0x73625140] }
 0x8a3   : > { %4081 = vrot.lane.b32.xlu0 %v4062_v39, %s10411_s18 }
 0x8a5   : > { %v4164_v43 = vld.sshfl [vmem:[#allocation1 + $0x10] sm:$0xff pattern:$0x73625140]  ;;  %v4162_v18 = vld.sshfl [vmem:[#allocation1 + $0x8] sm:$0xff pattern:$0x73625140] }
 0x8a6   : > { %v4160_v35 = vld.sshfl [vmem:[#allocation1] sm:$0xff pattern:$0x73625140]  ;;  %v4166_v14 = vld.sshfl [vmem:[#allocation1 + $0x18] sm:$0xff pattern:$0x73625140] }
 0x8a7   : > { %4176 = vst [vmem:[#allocation1 + $0x3] ss:$4 sm:$0xff] %v12795_v58  ;;  %v12963_v58 = vld.sshfl [vmem:[#allocation1 + $0x20] sm:$0xff pattern:$0x73625140] }
 0x8a8   : > { %4382 = vst [vmem:[#allocation1 + $0x21] ss:$4 sm:$0xff] %v12762_v50 }
 0x8aa   : > { %4091 = vrot.lane.b32.xlu2 %v4072_v26, %s10411_s18  ;;  %4089 = vrot.lane.b32.xlu1 %v4070_v34, %s10411_s18 }
 0x8ab   : > { %4087 = vrot.lane.b32.xlu0 %v4068_v37, %s10411_s18 }
 0x8ae   : > { %v4177_v60 = vld.sshfl [vmem:[#allocation1] sm:$0xff pattern:$0x73625140] }
 0x8af   : > { %4364 = vst [vmem:[#allocation1] ss:$4 sm:$0xff] %v12759_v51 }
 0x8b2   : > { %4095 = vrot.lane.b32.xlu1 %v4076_v23, %s10411_s18  ;;  %4097 = vrot.lane.b32.xlu2 %v4079_v28, %s10411_s18 }
 0x8b3   : > { %4093 = vrot.lane.b32.xlu0 %v4074_v40, %s10411_s18 }
 0x8b6   : > { %v12973_v8 = vld.sshfl [vmem:[#allocation1] sm:$0xff pattern:$0x73625140]  ;;  %v12975_v39 = vld.sshfl [vmem:[#allocation1 + $0x8] sm:$0xff pattern:$0x73625140] }
 0x8b7   : > { %v12977_v37 = vld.sshfl [vmem:[#allocation1 + $0x10] sm:$0xff pattern:$0x73625140]  ;;  %v12979_v62 = vld.sshfl [vmem:[#allocation1 + $0x18] sm:$0xff pattern:$0x73625140] }
 0x8b8   : > { %4377 = vst [vmem:[#allocation1] ss:$4 sm:$0xff] %v12959_v44 }
 0x8ba   : > { %4134 = vrot.lane.b32.xlu2 %v4115_v61, %s10403_s10  ;;  %4132 = vrot.lane.b32.xlu1 %v4113_v48, %s10403_s10 }
 0x8bb   : > { %4130 = vrot.lane.b32.xlu0 %v4111_v41, %s10403_s10 }
 0x8bf   : > { %v12985_v52 = vld.sshfl [vmem:[#allocation1] sm:$0xff pattern:$0x73625140] }
 0x8c0   : > { %4380 = vst [vmem:[#allocation1 + $0x1] ss:$4 sm:$0xff] %v12759_v51 }
 0x8c2   : > { %4140 = vrot.lane.b32.xlu2 %v4121_v57, %s10403_s10  ;;  %4138 = vrot.lane.b32.xlu1 %v4119_v11, %s10403_s10 }
 0x8c3   : > { %4136 = vrot.lane.b32.xlu0 %v4117_v29, %s10403_s10 }
 0x8ca   : > { %4144 = vrot.lane.b32.xlu1 %v4125_v16, %s10403_s10  ;;  %4146 = vrot.lane.b32.xlu2 %v4128_v31, %s10403_s10 }
 0x8cb   : > { %4142 = vrot.lane.b32.xlu0 %v4123_v22, %s10403_s10  ;;  %s14817_s10 = scalar_lea.vmem %s14837_s7, %s10127_s28 }
 0x8d2   : > { %4183 = vrot.lane.b32.xlu2 %v4164_v43, %s10402_s9  ;;  %4181 = vrot.lane.b32.xlu1 %v4162_v18, %s10402_s9 }
 0x8d3   : > { %4179 = vrot.lane.b32.xlu0 %v4160_v35, %s10402_s9 }
 0x8d4   : > { %v3978_v27 = vpop.permute.xlu2 %3977 }
 0x8d5   : > { %v3997_v19 = vrot.slane %v3978_v27, 4 }
 0x8da   : > { %4189 = vrot.lane.b32.xlu2 %v4170_v12, %s10402_s9  ;;  %4187 = vrot.lane.b32.xlu1 %v4168_v47, %s10402_s9 }
 0x8db   : > { %4185 = vrot.lane.b32.xlu0 %v4166_v14, %s10402_s9 }
 0x8e2   : > { %4193 = vrot.lane.b32.xlu1 %v4174_v25, %s10402_s9  ;;  %4195 = vrot.lane.b32.xlu2 %v4177_v60, %s10402_s9 }
 0x8e3   : > { %4191 = vrot.lane.b32.xlu0 %v4172_v56, %s10402_s9 }
 0x8e4   : > { %v3984_v7 = vpop.permute.xlu2 %3983 }
 0x8e5   : > { %v4000_v26 = vrot.slane %v3984_v7, 4 }
 0x8ec   : > { %v3990_v55 = vpop.permute.xlu2 %3989 }
 0x8ed   : > { %v4003_v45 = vrot.slane %v3990_v55, 4 }
 0x8f4   : > { %v3980_v9 = vpop.permute.xlu0 %3979  ;;  %v3996_v5 = vpop.permute.xlu2 %3995 }
 0x8f5   : > { %v3998_v0 = vrot.slane %v3980_v9, 4  ;;  %v4006_v11 = vrot.slane %v3996_v5, 4 }
 0x8f7   : > { %v4007_v4 = vsel %vm484_vm3, %v3997_v19, %v3998_v0 }
 0x8f8   : > { %v4008_v46 = vsel %vm1825_vm13, %v3978_v27, %v4007_v4 }
 0x8f9   : > { %4031 = vst [vmem:[#allocation2 + $0x2c0] sm:$0xff] %v4008_v46 }
 0x8fc   : > { %v3982_v63 = vpop.permute.xlu1 %3981  ;;  %v12998_v28 = vpop.permute.xlu2 %4085 }
 0x8fd   : > { %v3999_v34 = vrot.slane %v3982_v63, 4 }
 0x8ff   : > { %v4009_v23 = vsel %vm484_vm3, %v3998_v0, %v3999_v34  ;;  %v4011_v40 = vsel %vm484_vm3, %v3999_v34, %v4000_v26 }
 0x900   : > { %v4010_v3 = vsel %vm1825_vm13, %v3980_v9, %v4009_v23  ;;  %v4012_v20 = vsel %vm1825_vm13, %v3982_v63, %v4011_v40 }
 0x901   : > { %4032 = vst [vmem:[#allocation2 + $0x2c8] sm:$0xff] %v4010_v3 }
 0x902   : > { %4033 = vst [vmem:[#allocation2 + $0x2d0] sm:$0xff] %v4012_v20 }
 0x904   : > { %v3988_v38 = vpop.permute.xlu1 %3987  ;;  %v13006_v29 = vpop.permute.xlu2 %4091 }
 0x905   : > { %v3986_v6 = vpop.permute.xlu0 %3985  ;;  %v4002_v17 = vrot.slane %v3988_v38, 4 }
 0x906   : > { %v4001_v33 = vrot.slane %v3986_v6, 4 }
 0x907   : > { %v4015_v54 = vsel %vm484_vm3, %v4002_v17, %v4003_v45 }
 0x908   : > { %v4013_v61 = vsel %vm484_vm3, %v4000_v26, %v4001_v33  ;;  %v4016_v48 = vsel %vm1825_vm13, %v3988_v38, %v4015_v54 }
 0x909   : > { %v4014_v41 = vsel %vm1825_vm13, %v3984_v7, %v4013_v61  ;;  %4035 = vst [vmem:[#allocation2 + $0x2e0] sm:$0xff] %v4016_v48 }
 0x90a   : > { %4034 = vst [vmem:[#allocation2 + $0x2d8] sm:$0xff] %v4014_v41 }
 0x90c   : > { %v3994_v57 = vpop.permute.xlu1 %3993  ;;  %v4098_v25 = vpop.permute.xlu2 %4097 }
 0x90d   : > { %v3992_v16 = vpop.permute.xlu0 %3991  ;;  %v4005_v22 = vrot.slane %v3994_v57, 4 }
 0x90e   : > { %v4004_v31 = vrot.slane %v3992_v16, 4 }
 0x90f   : > { %v4021_v43 = vsel %vm484_vm3, %v4005_v22, %v4006_v11 }
 0x910   : > { %v4017_v18 = vsel %vm484_vm3, %v4003_v45, %v4004_v31  ;;  %v4019_v35 = vsel %vm484_vm3, %v4004_v31, %v4005_v22  ;;  %v4022_v14 = vsel %vm1825_vm13, %v3994_v57, %v4021_v43 }
 0x911   : > { %v4018_v12 = vsel %vm1825_vm13, %v3990_v55, %v4017_v18  ;;  %v4020_v47 = vsel %vm1825_vm13, %v3992_v16, %v4019_v35  ;;  %4038 = vst [vmem:[#allocation2 + $0x2f8] sm:$0xff] %v4022_v14 }
 0x912   : > { %4036 = vst [vmem:[#allocation2 + $0x2e8] sm:$0xff] %v4018_v12 }
 0x913   : > { %4037 = vst [vmem:[#allocation2 + $0x2f0] sm:$0xff] %v4020_v47  ;;  %v4222_v47 = vsel %vm467_vm1, %v12876_v24, %v4098_v25 }
 0x914   : > { %v4084_v56 = vpop.permute.xlu1 %4083  ;;  %v4135_v7 = vpop.permute.xlu2 %4134 }
 0x915   : > { %v4082_v60 = vpop.permute.xlu0 %4081  ;;  %v4100_v3 = vsel %vm1917_vm14, %v4084_v56, %v12998_v28 }
 0x916   : > { %v4099_v20 = vsel %vm1917_vm14, %v4082_v60, %v4084_v56  ;;  %v4208_v6 = vsel %vm467_vm1, %v12802_v2, %v4100_v3 }
 0x917   : > { %v4206_v33 = vsel %vm467_vm1, %v12800_v42, %v4099_v20 }
 0x91c   : > { %v4090_v27 = vpop.permute.xlu1 %4089  ;;  %v4141_v5 = vpop.permute.xlu2 %4140 }
 0x91d   : > { %v4088_v9 = vpop.permute.xlu0 %4087 }
 0x91e   : > { %v4101_v31 = vsel %vm1917_vm14, %v12998_v28, %v4088_v9  ;;  %v4102_v43 = vsel %vm1917_vm14, %v4088_v9, %v4090_v27 }
 0x91f   : > { %v4210_v56 = vsel %vm467_vm1, %v12804_v15, %v4101_v31  ;;  %v4212_v60 = vsel %vm467_vm1, %v12806_v36, %v4102_v43  ;;  %v4385_v31 = vld.sshfl [vmem:[#allocation1 + $0x8] sm:$0xff pattern:$0x73625140] }
 0x924   : > { %v4096_v19 = vpop.permute.xlu1 %4095  ;;  %v4147_v63 = vpop.permute.xlu2 %4146 }
 0x925   : > { %v4094_v0 = vpop.permute.xlu0 %4093  ;;  %v4106_v20 = vsel %vm1917_vm14, %v4096_v19, %v4098_v25  ;;  %v4240_v36 = vsel %vm484_vm3, %v4222_v47, %v4147_v63 }
 0x92c   : > { %v4133_v4 = vpop.permute.xlu1 %4132  ;;  %v4184_v55 = vpop.permute.xlu2 %4183 }
 0x92d   : > { %v4131_v46 = vpop.permute.xlu0 %4130  ;;  %v4149_v38 = vsel %vm675_vm6, %v4133_v4, %v4135_v7 }
 0x92e   : > { %v4148_v45 = vsel %vm675_vm6, %v4131_v46, %v4133_v4  ;;  %v4226_v54 = vsel %vm484_vm3, %v4208_v6, %v4149_v38  ;;  %v4104_v6 = vsel %vm1917_vm14, %v13006_v29, %v4094_v0 }
 0x92f   : > { %v4224_v57 = vsel %vm484_vm3, %v4206_v33, %v4148_v45 }
 0x934   : > { %v4139_v26 = vpop.permute.xlu1 %4138  ;;  %v4190_v61 = vpop.permute.xlu2 %4189 }
 0x935   : > { %v4137_v34 = vpop.permute.xlu0 %4136 }
 0x936   : > { %v4150_v35 = vsel %vm675_vm6, %v4135_v7, %v4137_v34  ;;  %v4151_v14 = vsel %vm675_vm6, %v4137_v34, %v4139_v26  ;;  %v4103_v34 = vsel %vm1917_vm14, %v4090_v27, %v13006_v29 }
 0x937   : > { %v4228_v9 = vsel %vm484_vm3, %v4210_v56, %v4150_v35  ;;  %v4230_v4 = vsel %vm484_vm3, %v4212_v60, %v4151_v14 }
 0x93c   : > { %v4145_v23 = vpop.permute.xlu1 %4144  ;;  %v4196_v3 = vpop.permute.xlu2 %4195 }
 0x93d   : > { %v4143_v40 = vpop.permute.xlu0 %4142  ;;  %v4155_v27 = vsel %vm675_vm6, %v4145_v23, %v4147_v63 }
 0x93e   : > { %v4153_v33 = vsel %vm675_vm6, %v4141_v5, %v4143_v40  ;;  %v4154_v29 = vsel %vm675_vm6, %v4143_v40, %v4145_v23 }
 0x944   : > { %v4182_v17 = vpop.permute.xlu1 %4181 }
 0x945   : > { %v4198_v48 = vsel %vm458_vm4, %v4182_v17, %v4184_v55  ;;  %v4180_v41 = vpop.permute.xlu0 %4179 }
 0x946   : > { %v13027_v11 = vsel %vm501_vm5, %v4226_v54, %v4198_v48  ;;  %v4197_v16 = vsel %vm458_vm4, %v4180_v41, %v4182_v17  ;;  %v4152_v17 = vsel %vm675_vm6, %v4139_v26, %v4141_v5  ;;  %v4258_v54 = vsel %vm501_vm5, %v4240_v36, %v4196_v3 }
 0x947   : > { %v4269_v22 = vunpack.c.l.b16 %v13027_v11  ;;  %v13032_v2 = vsel %vm501_vm5, %v4224_v57, %v4197_v16  ;;  %v4214_v41 = vsel %vm467_vm1, %v12816_v59, %v4103_v34  ;;  %v4220_v57 = vsel %vm467_vm1, %v12825_v21, %v4106_v20  ;;  %v4383_v16 = vld.sshfl [vmem:[#allocation1] sm:$0xff pattern:$0x73625140] }
 0x948   : > { %v4268_v42 = vunpack.c.l.b16 %v13032_v2  ;;  %v4232_v63 = vsel %vm484_vm3, %v4214_v41, %v4152_v17  ;;  %v4238_v26 = vsel %vm484_vm3, %v4220_v57, %v4155_v27  ;;  %v4393_v17 = vld.sshfl [vmem:[#allocation1 + $0x28] sm:$0xff pattern:$0x73625140]  ;;  %v4395_v27 = vld.sshfl [vmem:[#allocation1 + $0x30] sm:$0xff pattern:$0x73625140] }
 0x949   : > { %vm14897_vm6 = vcmask 441344  }
 0x94a   : > { %v4286_v18 = vpack.c.b16 %v4269_v22, %v4268_v42  ;;  %v4276_v22 = vunpack.c.l.b16 %v4258_v54  ;;  %vm14898_vm8 = vmmov %vm14897_vm6 }
 0x94b   : > { %vm14899_vm9 = vmmov %vm14897_vm6 }
 0x94c   : > { %4296 = vrot.lane.b32.xlu0 %v4286_v18, %s10412_s19  ;;  %v4188_v12 = vpop.permute.xlu1 %4187  ;;  %vm14900_vm10 = vmmov %vm14897_vm6 }
 0x94d   : > { %v4186_v28 = vpop.permute.xlu0 %4185  ;;  %v4201_v48 = vsel %vm458_vm4, %v4188_v12, %v4190_v61  ;;  %vm14901_vm11 = vmmov %vm14897_vm6 }
 0x94e   : > { %v4199_v7 = vsel %vm458_vm4, %v4184_v55, %v4186_v28  ;;  %v4200_v46 = vsel %vm458_vm4, %v4186_v28, %v4188_v12  ;;  %v4105_v55 = vsel %vm1917_vm14, %v4094_v0, %v4096_v19  ;;  %v13070_v19 = vld.sshfl [vmem:[#allocation1 + $0x10] sm:$0xff pattern:$0x73625140]  ;;  %v4216_v0 = vsel %vm467_vm1, %v12818_v49, %v4104_v6  ;;  %v4389_v49 = vld.sshfl [vmem:[#allocation1 + $0x18] sm:$0xff pattern:$0x73625140]  ;;  %vm14902_vm12 = vmmov %vm14897_vm6 }
 0x94f   : > { %v4246_v24 = vsel %vm501_vm5, %v4228_v9, %v4199_v7  ;;  %v4248_v15 = vsel %vm501_vm5, %v4230_v4, %v4200_v46  ;;  %v4218_v5 = vsel %vm467_vm1, %v12823_v13, %v4105_v55  ;;  %v4234_v21 = vsel %vm484_vm3, %v4216_v0, %v4153_v33  ;;  %4399 = vst [vmem:[#allocation1 + $0x1] ss:$4 sm:$0xff] %v12959_v44  ;;  %vm14903_vm13 = vmmov %vm14897_vm6 }
 0x950   : > { %v4270_v38 = vunpack.c.l.b16 %v4246_v24  ;;  %v4271_v45 = vunpack.c.l.b16 %v4248_v15  ;;  %v4250_v23 = vsel %vm501_vm5, %v4232_v63, %v4201_v48  ;;  %v4236_v13 = vsel %vm484_vm3, %v4218_v5, %v4154_v29 }
 0x951   : > { %v4272_v56 = vunpack.c.l.b16 %v4250_v23  ;;  %v4290_v9 = vpack.c.b16 %v4276_v22, %v4276_v22  ;;  %v4277_v46 = vunpack.c.h.b16 %v13032_v2  ;;  %v4279_v20 = vunpack.c.h.b16 %v4246_v24  ;;  %v4397_v2 = vld.sshfl [vmem:[#allocation1 + $0x38] sm:$0xff pattern:$0x73625140] }
 0x952   : > { %v4287_v25 = vpack.c.b16 %v4271_v45, %v4270_v38  ;;  %v4280_v36 = vunpack.c.h.b16 %v4248_v15  ;;  %v4281_v38 = vunpack.c.h.b16 %v4250_v23  ;;  %v4285_v24 = vunpack.c.h.b16 %v4258_v54 }
 0x954   : > { %4298 = vrot.lane.b32.xlu1 %v4287_v25, %s10412_s19  ;;  %v4194_v59 = vpop.permute.xlu1 %4193  ;;  %v4292_v55 = vpack.c.b16 %v4280_v36, %v4279_v20  ;;  %v4295_v15 = vpack.c.b16 %v4285_v24, %v4285_v24 }
 0x955   : > { %v4204_v40 = vsel %vm458_vm4, %v4194_v59, %v4196_v3  ;;  %v4192_v42 = vpop.permute.xlu0 %4191 }
 0x956   : > { %v4256_v43 = vsel %vm501_vm5, %v4238_v26, %v4204_v40  ;;  %v4202_v18 = vsel %vm458_vm4, %v4190_v61, %v4192_v42  ;;  %v4203_v35 = vsel %vm458_vm4, %v4192_v42, %v4194_v59  ;;  %v4278_v61 = vunpack.c.h.b16 %v13027_v11  ;;  %v4400_v3 = vld.sshfl [vmem:[#allocation1] sm:$0xff pattern:$0x73625140] }
 0x957   : > { %v4275_v14 = vunpack.c.l.b16 %v4256_v43  ;;  %v4252_v12 = vsel %vm501_vm5, %v4234_v21, %v4202_v18  ;;  %v4254_v47 = vsel %vm501_vm5, %v4236_v13, %v4203_v35  ;;  %4429 = vst [vmem:[#allocation1 + $0x2] ss:$4 sm:$0xff] %v12759_v51  ;;  %v4391_v11 = vld.sshfl [vmem:[#allocation1 + $0x20] sm:$0xff pattern:$0x73625140]  ;;  %v4284_v33 = vunpack.c.h.b16 %v4256_v43 }
 0x958   : > { %v4273_v60 = vunpack.c.l.b16 %v4252_v12  ;;  %v4274_v28 = vunpack.c.l.b16 %v4254_v47  ;;  %v4282_v34 = vunpack.c.h.b16 %v4252_v12  ;;  %v4291_v45 = vpack.c.b16 %v4278_v61, %v4277_v46  ;;  %4431 = vst [vmem:[#allocation1 + $0x22] ss:$4 sm:$0xff] %v12762_v50 }
 0x959   : > { %v4283_v48 = vunpack.c.h.b16 %v4254_v47 }
 0x95a   : > { %v4288_v4 = vpack.c.b16 %v4273_v60, %v4272_v56  ;;  %v4289_v7 = vpack.c.b16 %v4275_v14, %v4274_v28  ;;  %v4293_v6 = vpack.c.b16 %v4282_v34, %v4281_v38 }
 0x95b   : > { %v4294_v51 = vpack.c.b16 %v4284_v33, %v4283_v48 }
 0x95c   : > { %4300 = vrot.lane.b32.xlu2 %v4288_v4, %s10412_s19  ;;  %4304 = vrot.lane.b32.xlu1 %v4290_v9, %s10412_s19 }
 0x95d   : > { %4302 = vrot.lane.b32.xlu0 %v4289_v7, %s10412_s19 }
 0x95e   : > { %v4436_v25 = vld.sshfl [vmem:[#allocation1 + $0x10] sm:$0xff pattern:$0x73625140]  ;;  %v4432_v41 = vld.sshfl [vmem:[#allocation1] sm:$0xff pattern:$0x73625140] }
 0x95f   : > { %v4438_v57 = vld.sshfl [vmem:[#allocation1 + $0x18] sm:$0xff pattern:$0x73625140]  ;;  %v4434_v29 = vld.sshfl [vmem:[#allocation1 + $0x8] sm:$0xff pattern:$0x73625140] }
 0x960   : > { %4448 = vst [vmem:[#allocation1 + $0x2] ss:$4 sm:$0xff] %v12959_v44  ;;  %v4442_v54 = vld.sshfl [vmem:[#allocation1 + $0x28] sm:$0xff pattern:$0x73625140] }
 0x961   : > { %v4444_v0 = vld.sshfl [vmem:[#allocation1 + $0x30] sm:$0xff pattern:$0x73625140]  ;;  %v4440_v5 = vld.sshfl [vmem:[#allocation1 + $0x20] sm:$0xff pattern:$0x73625140] }
 0x962   : > { %v4446_v44 = vld.sshfl [vmem:[#allocation1 + $0x38] sm:$0xff pattern:$0x73625140] }
 0x963   : > { %4482 = vst [vmem:[#allocation1 + $0x23] ss:$4 sm:$0xff] %v11860_v53 }
 0x964   : > { %4306 = vrot.lane.b32.xlu2 %v4291_v45, %s10412_s19  ;;  %4310 = vrot.lane.b32.xlu1 %v4293_v6, %s10412_s19 }
 0x965   : > { %4308 = vrot.lane.b32.xlu0 %v4292_v55, %s10412_s19 }
 0x967   : > { %v4449_v50 = vld.sshfl [vmem:[#allocation1] sm:$0xff pattern:$0x73625140] }
 0x968   : > { %4479 = vst [vmem:[#allocation1 + $0x3] ss:$4 sm:$0xff] %v11851_v1 }
 0x96a   : > { %v4495_v26 = vld.sshfl [vmem:[#allocation1 + $0x30] sm:$0xff pattern:$0x73625140]  ;;  %v4491_v59 = vld.sshfl [vmem:[#allocation1 + $0x20] sm:$0xff pattern:$0x73625140] }
 0x96b   : > { %v4497_v21 = vld.sshfl [vmem:[#allocation1 + $0x38] sm:$0xff pattern:$0x73625140] }
 0x96c   : > { %4312 = vrot.lane.b32.xlu2 %v4294_v51, %s10412_s19  ;;  %4402 = vrot.lane.b32.xlu1 %v4383_v16, %s10400_s30  ;;  %v4493_v16 = vld.sshfl [vmem:[#allocation1 + $0x28] sm:$0xff pattern:$0x73625140] }
 0x96d   : > { %4314 = vrot.lane.b32.xlu0 %v4295_v15, %s10412_s19  ;;  %s10422_s19 = smov 1  }
 0x96f   : > { %v4483_v1 = vld.sshfl [vmem:[#allocation1] sm:$0xff pattern:$0x73625140]  ;;  %v4489_v53 = vld.sshfl [vmem:[#allocation1 + $0x18] sm:$0xff pattern:$0x73625140] }
 0x970   : > { %v4487_v63 = vld.sshfl [vmem:[#allocation1 + $0x10] sm:$0xff pattern:$0x73625140] }
 0x974   : > { %4408 = vrot.lane.b32.xlu1 %v4389_v49, %s10400_s30  ;;  %4404 = vrot.lane.b32.xlu2 %v4385_v31, %s10400_s30 }
 0x975   : > { %4406 = vrot.lane.b32.xlu0 %v13070_v19, %s10400_s30  ;;  %v4485_v19 = vld.sshfl [vmem:[#allocation1 + $0x8] sm:$0xff pattern:$0x73625140] }
 0x97c   : > { %4414 = vrot.lane.b32.xlu1 %v4395_v27, %s10400_s30  ;;  %4410 = vrot.lane.b32.xlu2 %v4391_v11, %s10400_s30 }
 0x97d   : > { %4412 = vrot.lane.b32.xlu0 %v4393_v17, %s10400_s30 }
 0x984   : > { %4451 = vrot.lane.b32.xlu1 %v4432_v41, %s10401_s8  ;;  %4416 = vrot.lane.b32.xlu2 %v4397_v2, %s10400_s30 }
 0x985   : > { %4418 = vrot.lane.b32.xlu0 %v4400_v3, %s10400_s30 }
 0x98c   : > { %4457 = vrot.lane.b32.xlu1 %v4438_v57, %s10401_s8  ;;  %4453 = vrot.lane.b32.xlu2 %v4434_v29, %s10401_s8 }
 0x98d   : > { %4455 = vrot.lane.b32.xlu0 %v4436_v25, %s10401_s8 }
 0x994   : > { %4463 = vrot.lane.b32.xlu1 %v4444_v0, %s10401_s8  ;;  %4459 = vrot.lane.b32.xlu2 %v4440_v5, %s10401_s8 }
 0x995   : > { %4461 = vrot.lane.b32.xlu0 %v4442_v54, %s10401_s8 }
 0x99c   : > { %4499 = vrot.lane.b32.xlu1 %v4483_v1, %s10413_s23  ;;  %4465 = vrot.lane.b32.xlu2 %v4446_v44, %s10401_s8 }
 0x99d   : > { %4467 = vrot.lane.b32.xlu0 %v4449_v50, %s10401_s8 }
 0x9a4   : > { %4505 = vrot.lane.b32.xlu1 %v4489_v53, %s10413_s23  ;;  %4501 = vrot.lane.b32.xlu2 %v4485_v19, %s10413_s23 }
 0x9a5   : > { %4503 = vrot.lane.b32.xlu0 %v4487_v63, %s10413_s23 }
 0x9ac   : > { %4511 = vrot.lane.b32.xlu1 %v4495_v26, %s10413_s23  ;;  %4507 = vrot.lane.b32.xlu2 %v4491_v59, %s10413_s23 }
 0x9ad   : > { %4509 = vrot.lane.b32.xlu0 %v4493_v16, %s10413_s23 }
 0x9b4   : > { %4513 = vrot.lane.b32.xlu2 %v4497_v21, %s10413_s23 }
 0x9b6   : > { %v4301_v22 = vpop.permute.xlu2 %4300 }
 0x9b7   : > { %v4318_v31 = vrot.slane %v4301_v22, 4 }
 0x9be   : > { %v4307_v23 = vpop.permute.xlu2 %4306  ;;  %v4297_v40 = vpop.permute.xlu0 %4296 }
 0x9bf   : > { %v4316_v13 = vrot.slane %v4297_v40, 4  ;;  %v4321_v45 = vrot.slane %v4307_v23, 4 }
 0x9c6   : > { %v4299_v42 = vpop.permute.xlu1 %4298  ;;  %v4313_v49 = vpop.permute.xlu2 %4312 }
 0x9c7   : > { %v4317_v43 = vrot.slane %v4299_v42, 4  ;;  %v4324_v20 = vrot.slane %v4313_v49, 4 }
 0x9c9   : > { %v4326_v18 = vsel %vm484_vm3, %v4316_v13, %v4317_v43  ;;  %v4328_v35 = vsel %vm484_vm3, %v4317_v43, %v4318_v31 }
 0x9ca   : > { %v4327_v14 = vsel %vm14897_vm6, %v4297_v40, %v4326_v18  ;;  %v4329_v12 = vsel %vm14898_vm8, %v4299_v42, %v4328_v35  ;;  %vm14904_vm8 = vcmask 752640  }
 0x9cb   : > { %4350 = vst [vmem:[#allocation2 + $0x300] sm:$0xff] %v4327_v14 }
 0x9cc   : > { %4351 = vst [vmem:[#allocation2 + $0x308] sm:$0xff] %v4329_v12 }
 0x9ce   : > { %v4305_v47 = vpop.permute.xlu1 %4304  ;;  %v4405_v56 = vpop.permute.xlu2 %4404 }
 0x9cf   : > { %v4320_v60 = vrot.slane %v4305_v47, 4  ;;  %v4303_v28 = vpop.permute.xlu0 %4302 }
 0x9d0   : > { %v4319_v9 = vrot.slane %v4303_v28, 4 }
 0x9d2   : > { %v4330_v4 = vsel %vm484_vm3, %v4318_v31, %v4319_v9  ;;  %v4332_v7 = vsel %vm484_vm3, %v4319_v9, %v4320_v60 }
 0x9d3   : > { %v4331_v61 = vsel %vm14899_vm9, %v4301_v22, %v4330_v4  ;;  %v4333_v46 = vsel %vm14900_vm10, %v4303_v28, %v4332_v7  ;;  %vm14905_vm9 = vmmov %vm14904_vm8 }
 0x9d4   : > { %4352 = vst [vmem:[#allocation2 + $0x310] sm:$0xff] %v4331_v61  ;;  %vm14906_vm10 = vmmov %vm14904_vm8 }
 0x9d5   : > { %4353 = vst [vmem:[#allocation2 + $0x318] sm:$0xff] %v4333_v46 }
 0x9d6   : > { %v4311_v34 = vpop.permute.xlu1 %4310  ;;  %v13139_v3 = vpop.permute.xlu2 %4410 }
 0x9d7   : > { %v4323_v36 = vrot.slane %v4311_v34, 4  ;;  %v4309_v38 = vpop.permute.xlu0 %4308 }
 0x9d8   : > { %v4322_v6 = vrot.slane %v4309_v38, 4 }
 0x9d9   : > { %v4338_v55 = vsel %vm484_vm3, %v4323_v36, %v4324_v20 }
 0x9da   : > { %v4339_v17 = vsel %vm14901_vm11, %v4311_v34, %v4338_v55  ;;  %v4334_v27 = vsel %vm484_vm3, %v4321_v45, %v4322_v6  ;;  %v4336_v11 = vsel %vm484_vm3, %v4322_v6, %v4323_v36  ;;  %vm14907_vm11 = vmmov %vm14904_vm8 }
 0x9db   : > { %4356 = vst [vmem:[#allocation2 + $0x330] sm:$0xff] %v4339_v17  ;;  %v4335_v2 = vsel %vm14902_vm12, %v4307_v23, %v4334_v27  ;;  %v4337_v33 = vsel %vm14903_vm13, %v4309_v38, %v4336_v11 }
 0x9dc   : > { %4354 = vst [vmem:[#allocation2 + $0x320] sm:$0xff] %v4335_v2 }
 0x9dd   : > { %4355 = vst [vmem:[#allocation2 + $0x328] sm:$0xff] %v4337_v33 }
 0x9de   : > { %v4403_v48 = vpop.permute.xlu1 %4402  ;;  %v4417_v24 = vpop.permute.xlu2 %4416 }
 0x9df   : > { %v4315_v51 = vpop.permute.xlu0 %4314  ;;  %v4420_v21 = vsel %vm358_vm0, %v4403_v48, %v4405_v56 }
 0x9e0   : > { %v4325_v15 = vrot.slane %v4315_v51, 4  ;;  %v4523_v42 = vsel %vm467_vm1, %v12973_v8, %v4420_v21 }
 0x9e2   : > { %v4340_v25 = vsel %vm484_vm3, %v4324_v20, %v4325_v15 }
 0x9e3   : > { %v4341_v41 = vsel %vm14897_vm6, %v4313_v49, %v4340_v25 }
 0x9e4   : > { %4357 = vst [vmem:[#allocation2 + $0x338] sm:$0xff] %v4341_v41 }
 0x9e6   : > { %v4409_v57 = vpop.permute.xlu1 %4408  ;;  %v4454_v50 = vpop.permute.xlu2 %4453 }
 0x9e7   : > { %v4407_v29 = vpop.permute.xlu0 %4406  ;;  %v4423_v28 = vsel %vm358_vm0, %v4409_v57, %v13139_v3 }
 0x9e8   : > { %v4421_v22 = vsel %vm358_vm0, %v4405_v56, %v4407_v29  ;;  %v4422_v60 = vsel %vm358_vm0, %v4407_v29, %v4409_v57  ;;  %v4529_v46 = vsel %vm467_vm1, %v12979_v62, %v4423_v28 }
 0x9e9   : > { %v4525_v49 = vsel %vm467_vm1, %v12975_v39, %v4421_v22  ;;  %v4527_v61 = vsel %vm467_vm1, %v12977_v37, %v4422_v60 }
 0x9ee   : > { %v4415_v54 = vpop.permute.xlu1 %4414  ;;  %v4460_v5 = vpop.permute.xlu2 %4459 }
 0x9ef   : > { %v4413_v0 = vpop.permute.xlu0 %4412  ;;  %v4426_v6 = vsel %vm358_vm0, %v4415_v54, %v4417_v24 }
 0x9f0   : > { %v4424_v62 = vsel %vm358_vm0, %v13139_v3, %v4413_v0  ;;  %v4425_v48 = vsel %vm358_vm0, %v4413_v0, %v4415_v54 }
 0x9f1   : > { %v4531_v29 = vsel %vm467_vm1, %v12963_v58, %v4424_v62 }
 0x9f6   : > { %v4452_v44 = vpop.permute.xlu1 %4451  ;;  %v4466_v53 = vpop.permute.xlu2 %4465 }
 0x9f7   : > { %v4419_v1 = vpop.permute.xlu0 %4418  ;;  %v4469_v23 = vsel %vm408_vm2, %v4452_v44, %v4454_v50 }
 0x9f8   : > { %v4541_v31 = vsel %vm484_vm3, %v4523_v42, %v4469_v23  ;;  %v4539_v55 = vsel %vm467_vm1, %v12985_v52, %v4419_v1  ;;  %v4427_v51 = vsel %vm358_vm0, %v4417_v24, %v4419_v1  ;;  %v4533_v24 = vsel %vm467_vm1, %v12965_v10, %v4425_v48 }
 0x9f9   : > { %v4537_v0 = vsel %vm467_vm1, %v12970_v32, %v4427_v51 }
 0x9fe   : > { %v4458_v19 = vpop.permute.xlu1 %4457  ;;  %v4502_v26 = vpop.permute.xlu2 %4501 }
 0x9ff   : > { %v4456_v63 = vpop.permute.xlu0 %4455  ;;  %v4472_v4 = vsel %vm408_vm2, %v4458_v19, %v4460_v5 }
 0xa00   : > { %v4470_v40 = vsel %vm408_vm2, %v4454_v50, %v4456_v63  ;;  %v4471_v9 = vsel %vm408_vm2, %v4456_v63, %v4458_v19  ;;  %v4547_v36 = vsel %vm484_vm3, %v4529_v46, %v4472_v4  ;;  %v4535_v50 = vsel %vm467_vm1, %v12968_v30, %v4426_v6  ;;  %v13231_v46 = vld [vmem:[%s14832_s2] sm:$0xff] }
 0xa01   : > { %v4543_v43 = vsel %vm484_vm3, %v4525_v49, %v4470_v40  ;;  %v4545_v20 = vsel %vm484_vm3, %v4527_v61, %v4471_v9 }
 0xa06   : > { %v4464_v59 = vpop.permute.xlu1 %4463  ;;  %v4508_v12 = vpop.permute.xlu2 %4507 }
 0xa07   : > { %v4462_v16 = vpop.permute.xlu0 %4461  ;;  %v4475_v52 = vsel %vm408_vm2, %v4464_v59, %v4466_v53 }
 0xa08   : > { %v4473_v15 = vsel %vm408_vm2, %v4460_v5, %v4462_v16  ;;  %v4474_v25 = vsel %vm408_vm2, %v4462_v16, %v4464_v59  ;;  %v4553_v44 = vsel %vm484_vm3, %v4535_v50, %v4475_v52 }
 0xa09   : > { %v4549_v5 = vsel %vm484_vm3, %v4531_v29, %v4473_v15  ;;  %v4551_v58 = vsel %vm484_vm3, %v4533_v24, %v4474_v25 }
 0xa0e   : > { %v4500_v13 = vpop.permute.xlu1 %4499  ;;  %v4514_v11 = vpop.permute.xlu2 %4513 }
 0xa0f   : > { %v4468_v18 = vpop.permute.xlu0 %4467  ;;  %v4515_v35 = vsel %vm14904_vm8, %v4500_v13, %v4502_v26  ;;  %v13161_v14 = vsel %vm501_vm5, %v4541_v31, %v4500_v13 }
 0xa10   : > { %v13164_v47 = vsel %vm501_vm5, %v4543_v43, %v4515_v35  ;;  %v4585_v8 = vunpack.c.l.b16 %v13161_v14  ;;  %v4557_v27 = vsel %vm484_vm3, %v4539_v55, %v4468_v18  ;;  %v4476_v41 = vsel %vm408_vm2, %v4466_v53, %v4468_v18  ;;  %vm14908_vm2 = vmmov %vm14904_vm8 }
 0xa11   : > { %v4586_v56 = vunpack.c.l.b16 %v13164_v47  ;;  %v4575_v54 = vsel %vm501_vm5, %v4557_v27, %v4514_v11  ;;  %v4555_v53 = vsel %vm484_vm3, %v4537_v0, %v4476_v41  ;;  %vm14909_vm12 = vmmov %vm14908_vm2  ;;  %v4594_v43 = vunpack.c.h.b16 %v13161_v14 }
 0xa12   : > { %v4593_v10 = vunpack.c.l.b16 %v4575_v54  ;;  %vm14910_vm1 = vmmov %vm14908_vm2  ;;  %v4595_v18 = vunpack.c.h.b16 %v13164_v47 }
 0xa13   : > { %v4603_v39 = vpack.c.b16 %v4586_v56, %v4585_v8 }
 0xa14   : > { %v4607_v49 = vpack.c.b16 %v4593_v10, %v4593_v10 }
 0xa15   : > { %4613 = vrot.lane.b32.xlu0 %v4603_v39, %s10414_s26  ;;  %v4608_v39 = vpack.c.b16 %v4595_v18, %v4594_v43 }
 0xa16   : > { %v4506_v7 = vpop.permute.xlu1 %4505 }
 0xa17   : > { %v4504_v34 = vpop.permute.xlu0 %4503  ;;  %v4518_v57 = vsel %vm14907_vm11, %v4506_v7, %v4508_v12 }
 0xa18   : > { %v4516_v38 = vsel %vm14905_vm9, %v4502_v26, %v4504_v34  ;;  %v4517_v45 = vsel %vm14906_vm10, %v4504_v34, %v4506_v7  ;;  %v4567_v30 = vsel %vm501_vm5, %v4549_v5, %v4518_v57  ;;  %v4602_v7 = vunpack.c.h.b16 %v4575_v54 }
 0xa19   : > { %v4563_v17 = vsel %vm501_vm5, %v4545_v20, %v4516_v38  ;;  %v4565_v37 = vsel %vm501_vm5, %v4547_v36, %v4517_v45  ;;  %v4589_v23 = vunpack.c.l.b16 %v4567_v30  ;;  %v4598_v56 = vunpack.c.h.b16 %v4567_v30 }
 0xa1a   : > { %v4587_v2 = vunpack.c.l.b16 %v4563_v17  ;;  %v4588_v33 = vunpack.c.l.b16 %v4565_v37  ;;  %v4597_v8 = vunpack.c.h.b16 %v4565_v37  ;;  %v4612_v14 = vpack.c.b16 %v4602_v7, %v4602_v7  ;;  %v10225_v7 = vld [vmem:[#allocation2 + $0x30c] sm:$0xf] }
 0xa1b   : > { %v4795_v34 = vunpack.c.l.b16 %v13231_v46 }
 0xa1c   : > { %v4604_v3 = vpack.c.b16 %v4588_v33, %v4587_v2 }
 0xa1d   : > { %v13234_v36 = vpack.c.b16 %v4795_v34, %v4795_v34  ;;  %v9569_v34 = vld [vmem:[#allocation2 + $0x2e0] sm:$0xf0] }
 0xa1e   : > { %4615 = vrot.lane.b32.xlu1 %v4604_v3, %s10414_s26  ;;  %v4512_v1 = vpop.permute.xlu1 %4511 }
 0xa1f   : > { %v4510_v19 = vpop.permute.xlu0 %4509  ;;  %v4521_v63 = vsel %vm14908_vm2, %v4512_v1, %v4514_v11  ;;  %5372 = vmatmul.bf16.vlgmr.msra.gmra.mxu0 %v13234_v36  ;;  %5398 = vmatmul.bf16.vlgmr.msra.gmra.mxu2 %v13234_v36 }
 0xa20   : > { %v4519_v26 = vsel %vm14909_vm12, %v4508_v12, %v4510_v19  ;;  %v4520_v32 = vsel %vm14910_vm1, %v4510_v19, %v4512_v1  ;;  %v4573_v59 = vsel %vm501_vm5, %v4555_v53, %v4521_v63  ;;  %v4596_v12 = vunpack.c.h.b16 %v4563_v17 }
 0xa21   : > { %v4569_v16 = vsel %vm501_vm5, %v4551_v58, %v4519_v26  ;;  %v4571_v21 = vsel %vm501_vm5, %v4553_v44, %v4520_v32  ;;  %v4592_v22 = vunpack.c.l.b16 %v4573_v59  ;;  %v4601_v4 = vunpack.c.h.b16 %v4573_v59 }
 0xa22   : > { %v4590_v40 = vunpack.c.l.b16 %v4569_v16  ;;  %v4591_v42 = vunpack.c.l.b16 %v4571_v21  ;;  %v4599_v35 = vunpack.c.h.b16 %v4569_v16  ;;  %v4609_v28 = vpack.c.b16 %v4597_v8, %v4596_v12  ;;  %v9617_v16 = vld [vmem:[#allocation2 + $0x330] sm:$0xf0]  ;;  %v9601_v12 = vld [vmem:[#allocation2 + $0x320] sm:$0xf0]  ;;  %v9609_v8 = vld [vmem:[#allocation2 + $0x328] sm:$0xf0] }
 0xa23   : > { %v4600_v9 = vunpack.c.h.b16 %v4571_v21  ;;  %vm5360_vm5 = vcmask 785408   ;;  %vm5784_vm12 = vcmask 908288   ;;  %vm6146_vm1 = vcmask 818176  }
 0xa24   : > { %v4605_v31 = vpack.c.b16 %v4590_v40, %v4589_v23  ;;  %v4606_v13 = vpack.c.b16 %v4592_v22, %v4591_v42  ;;  %v4610_v60 = vpack.c.b16 %v4599_v35, %v4598_v56  ;;  %v10228_v35 = vld [vmem:[#allocation2 + $0x31c] sm:$0xf0]  ;;  %v10226_v56 = vld [vmem:[#allocation2 + $0x314] sm:$0xf] }
 0xa25   : > { %v4611_v61 = vpack.c.b16 %v4601_v4, %v4600_v9 }
 0xa26   : > { %4617 = vrot.lane.b32.xlu2 %v4605_v31, %s10414_s26  ;;  %4621 = vrot.lane.b32.xlu1 %v4607_v49, %s10414_s26 }
 0xa27   : > { %4619 = vrot.lane.b32.xlu0 %v4606_v13, %s10414_s26 }
 0xa2e   : > { %4623 = vrot.lane.b32.xlu2 %v4608_v39, %s10414_s26  ;;  %4627 = vrot.lane.b32.xlu1 %v4610_v60, %s10414_s26  ;;  %v9599_v39 = vld [vmem:[#allocation2 + $0x300] sm:$0xf]  ;;  %v10224_v60 = vld [vmem:[#allocation2 + $0x304] sm:$0xf] }
 0xa2f   : > { %4625 = vrot.lane.b32.xlu0 %v4609_v28, %s10414_s26  ;;  %5450 = vmatmul.bf16.vlgmr.msrb.gmra.mxu0 %v13234_v36  ;;  %v9620_v28 = vor.u32 %v10226_v56, %v9617_v16  ;;  %v9600_v9 = vor.u32 %v10228_v35, %v9599_v39  ;;  %v9604_v4 = vor.u32 %v10224_v60, %v9601_v12  ;;  %v10193_v56 = vld [vmem:[#allocation2 + $0x20c] sm:$0xf]  ;;  %v10187_v39 = vld [vmem:[#allocation2 + $0x1dc] sm:$0xf] }
 0xa30   : > { %v9465_v60 = vld [vmem:[#allocation2 + $0x1f8] sm:$0xf0] }
 0xa36   : > { %4629 = vrot.lane.b32.xlu2 %v4611_v61, %s10414_s26  ;;  %v9585_v61 = vld [vmem:[#allocation2 + $0x2f0] sm:$0xf0] }
 0xa37   : > { %4631 = vrot.lane.b32.xlu0 %v4612_v14, %s10414_s26  ;;  %v9612_v14 = vor.u32 %v10225_v7, %v9609_v8 }
 0xa80   : > { %v4618_v47 = vpop.permute.xlu2 %4617 }
 0xa81   : > { %v4635_v45 = vrot.slane %v4618_v47, 4 }
 0xa87   : > { %v4614_v20 = vpop.permute.xlu0 %4613 }
 0xa88   : > { %v4633_v6 = vrot.slane %v4614_v20, 4  ;;  %v4624_v62 = vpop.permute.xlu2 %4623 }
 0xa89   : > { %v4638_v24 = vrot.slane %v4624_v62, 4 }
 0xa90   : > { %v4616_v38 = vpop.permute.xlu1 %4615  ;;  %v4630_v57 = vpop.permute.xlu2 %4629 }
 0xa91   : > { %v4634_v55 = vrot.slane %v4616_v38, 4  ;;  %v4641_v29 = vrot.slane %v4630_v57, 4 }
 0xa93   : > { %v4643_v17 = vsel %vm484_vm3, %v4633_v6, %v4634_v55  ;;  %v4645_v37 = vsel %vm484_vm3, %v4634_v55, %v4635_v45  ;;  %v9567_v6 = vld [vmem:[#allocation2 + $0x2c0] sm:$0xf]  ;;  %v10216_v55 = vld [vmem:[#allocation2 + $0x2c4] sm:$0xf] }
 0xa94   : > { %v4644_v27 = vsel %vm2465_vm15, %v4614_v20, %v4643_v17  ;;  %v4646_v11 = vsel %vm2465_vm15, %v4616_v38, %v4645_v37  ;;  %v9577_v20 = vld [vmem:[#allocation2 + $0x2e8] sm:$0xf0]  ;;  %v10218_v38 = vld [vmem:[#allocation2 + $0x2d4] sm:$0xf] }
 0xa95   : > { %4667 = vst [vmem:[#allocation2 + $0x340] sm:$0xff] %v4644_v27  ;;  %v9588_v17 = vor.u32 %v10218_v38, %v9585_v61  ;;  %v10217_v27 = vld [vmem:[#allocation2 + $0x2cc] sm:$0xf]  ;;  %v9415_v38 = vld [vmem:[#allocation2 + $0x188] sm:$0xf] }
 0xa96   : > { %4668 = vst [vmem:[#allocation2 + $0x348] sm:$0xff] %v4646_v11  ;;  %v9553_v11 = vld [vmem:[#allocation2 + $0x2b0] sm:$0xf0] }
 0xa98   : > { %v4622_v2 = vpop.permute.xlu1 %4621 }
 0xa99   : > { %v4620_v33 = vpop.permute.xlu0 %4619  ;;  %v4637_v48 = vrot.slane %v4622_v2, 4  ;;  %v9580_v2 = vor.u32 %v10217_v27, %v9577_v20  ;;  %v9425_v20 = vld [vmem:[#allocation2 + $0x1b0] sm:$0xf0]  ;;  %v10179_v27 = vld [vmem:[#allocation2 + $0x19c] sm:$0xf] }
 0xa9a   : > { %v4636_v51 = vrot.slane %v4620_v33, 4 }
 0xa9c   : > { %v4647_v15 = vsel %vm484_vm3, %v4635_v45, %v4636_v51  ;;  %v4649_v52 = vsel %vm484_vm3, %v4636_v51, %v4637_v48  ;;  %v9631_v26 = vld [vmem:[#allocation2 + $0x340] sm:$0xf]  ;;  %v10232_v23 = vld [vmem:[#allocation2 + $0x344] sm:$0xf]  ;;  %v10415_v45 = vmov 0   ;;  %v4788_v51 = vld [vmem:[%s14833_s3] sm:$0xff] }
 0xa9d   : > { %v4648_v25 = vsel %vm2465_vm15, %v4618_v47, %v4647_v15  ;;  %v4650_v41 = vsel %vm2465_vm15, %v4620_v33, %v4649_v52  ;;  %v10233_v13 = vld [vmem:[#allocation2 + $0x34c] sm:$0xf]  ;;  %v10220_v47 = vld [vmem:[#allocation2 + $0x2dc] sm:$0xf0]  ;;  %5596 = vst [vmem:[#allocation4] sm:$0xff] %v10415_v45  ;;  %10389 = vset.pattern.permute.xlu1 %v10415_v45  ;;  %10390 = vset.pattern.permute.xlu2 %v10415_v45 }
 0xa9e   : > { %4669 = vst [vmem:[#allocation2 + $0x350] sm:$0xff] %v4648_v25  ;;  %v9568_v37 = vor.u32 %v10220_v47, %v9567_v6  ;;  %10391 = vset.pattern.permute.xlu0 %v10415_v45  ;;  %v10212_v33 = vld [vmem:[#allocation2 + $0x29c] sm:$0xf0]  ;;  %v9537_v48 = vld [vmem:[#allocation2 + $0x2a0] sm:$0xf0]  ;;  %4791 = vperm.xlu1 %10389, %v4788_v51   ;;  %v9468_v47 = vor.u32 %v10187_v39, %v9465_v60 }
 0xa9f   : > { %4670 = vst [vmem:[#allocation2 + $0x358] sm:$0xff] %v4650_v41  ;;  %v9545_v15 = vld [vmem:[#allocation2 + $0x2a8] sm:$0xf0]  ;;  %v10210_v52 = vld [vmem:[#allocation2 + $0x294] sm:$0xf] }
 0xaa0   : > { %v4628_v3 = vpop.permute.xlu1 %4627  ;;  %5597 = vst [vmem:[#allocation4 + $0x8] sm:$0xff] %v10415_v45  ;;  %v9535_v25 = vld [vmem:[#allocation2 + $0x280] sm:$0xf]  ;;  %v10208_v41 = vld [vmem:[#allocation2 + $0x284] sm:$0xf] }
 0xaa1   : > { %v4626_v50 = vpop.permute.xlu0 %4625  ;;  %v4640_v54 = vrot.slane %v4628_v3, 4  ;;  %5598 = vst [vmem:[#allocation4 + $0x10] sm:$0xff] %v10415_v45  ;;  %v9383_v51 = vld [vmem:[#allocation2 + $0x148] sm:$0xf]  ;;  %v10190_v39 = vld [vmem:[#allocation2 + $0x1ec] sm:$0xf0] }
 0xaa2   : > { %v4639_v0 = vrot.slane %v4626_v50, 4  ;;  %5599 = vst [vmem:[#allocation4 + $0x18] sm:$0xff] %v10415_v45 }
 0xaa3   : > { %v4655_v5 = vsel %vm484_vm3, %v4640_v54, %v4641_v29  ;;  %5600 = vst [vmem:[#allocation4 + $0x20] sm:$0xff] %v10415_v45  ;;  %v9433_v45 = vld [vmem:[#allocation2 + $0x1b8] sm:$0xf0] }
 0xaa4   : > { %v4651_v44 = vsel %vm484_vm3, %v4638_v24, %v4639_v0  ;;  %v4653_v1 = vsel %vm484_vm3, %v4639_v0, %v4640_v54  ;;  %v4656_v58 = vsel %vm2465_vm15, %v4628_v3, %v4655_v5  ;;  %v9536_v3 = vor.u32 %v10212_v33, %v9535_v25  ;;  %v9521_v54 = vld [vmem:[#allocation2 + $0x270] sm:$0xf0]  ;;  %v10204_v0 = vld [vmem:[#allocation2 + $0x25c] sm:$0xf0]  ;;  %v9505_v5 = vld [vmem:[#allocation2 + $0x260] sm:$0xf0] }
 0xaa5   : > { %v4652_v53 = vsel %vm2465_vm15, %v4624_v62, %v4651_v44  ;;  %v4654_v30 = vsel %vm2465_vm15, %v4626_v50, %v4653_v1  ;;  %4673 = vst [vmem:[#allocation2 + $0x370] sm:$0xff] %v4656_v58  ;;  %v10234_v32 = vld [vmem:[#allocation2 + $0x354] sm:$0xf]  ;;  %v9572_v62 = vor.u32 %v10216_v55, %v9569_v34  ;;  %v10209_v50 = vld [vmem:[#allocation2 + $0x28c] sm:$0xf] }
 0xaa6   : > { %4671 = vst [vmem:[#allocation2 + $0x360] sm:$0xff] %v4652_v53  ;;  %v9548_v24 = vor.u32 %v10209_v50, %v9545_v15  ;;  %v9513_v44 = vld [vmem:[#allocation2 + $0x268] sm:$0xf0]  ;;  %v10202_v1 = vld [vmem:[#allocation2 + $0x254] sm:$0xf] }
 0xaa7   : > { %4672 = vst [vmem:[#allocation2 + $0x368] sm:$0xff] %v4654_v30  ;;  %v9503_v58 = vld [vmem:[#allocation2 + $0x240] sm:$0xf]  ;;  %v10200_v53 = vld [vmem:[#allocation2 + $0x244] sm:$0xf]  ;;  %v9524_v30 = vor.u32 %v10202_v1, %v9521_v54 }
 0xaa8   : > { %v10229_v34 = vld [vmem:[#allocation2 + $0x324] sm:$0xf0]  ;;  %v9401_v15 = vld [vmem:[#allocation2 + $0x178] sm:$0xf0] }
 0xaa9   : > { %v4632_v19 = vpop.permute.xlu0 %4631  ;;  %v9607_v55 = vld [vmem:[#allocation2 + $0x308] sm:$0xf] }
 0xaaa   : > { %v4642_v63 = vrot.slane %v4632_v19, 4  ;;  %v9504_v19 = vor.u32 %v10204_v0, %v9503_v58  ;;  %v10221_v33 = vld [vmem:[#allocation2 + $0x2e4] sm:$0xf0]  ;;  %v9361_v0 = vld [vmem:[#allocation2 + $0x130] sm:$0xf0] }
 0xaab   : > { %v9575_v25 = vld [vmem:[#allocation2 + $0x2c8] sm:$0xf] }
 0xaac   : > { %v4657_v10 = vsel %vm484_vm3, %v4641_v29, %v4642_v63  ;;  %v9649_v59 = vld [vmem:[#allocation2 + $0x370] sm:$0xf0]  ;;  %v9540_v29 = vor.u32 %v10208_v41, %v9537_v48  ;;  %v9508_v63 = vor.u32 %v10200_v53, %v9505_v5  ;;  %v10165_v50 = vld [vmem:[#allocation2 + $0x124] sm:$0xf0] }
 0xaad   : > { %v4658_v21 = vsel %vm2465_vm15, %v4630_v57, %v4657_v10  ;;  %v10236_v22 = vld [vmem:[#allocation2 + $0x35c] sm:$0xf0]  ;;  %v9633_v40 = vld [vmem:[#allocation2 + $0x360] sm:$0xf0]  ;;  %v9652_v42 = vor.u32 %v10234_v32, %v9649_v59  ;;  %v9556_v57 = vor.u32 %v10210_v52, %v9553_v11  ;;  %v10201_v10 = vld [vmem:[#allocation2 + $0x24c] sm:$0xf] }
 0xaae   : > { %4674 = vst [vmem:[#allocation2 + $0x378] sm:$0xff] %v4658_v21  ;;  %v9632_v49 = vor.u32 %v10236_v22, %v9631_v26  ;;  %v9636_v31 = vor.u32 %v10232_v23, %v9633_v40  ;;  %v9641_v43 = vld [vmem:[#allocation2 + $0x368] sm:$0xf0]  ;;  %v9489_v26 = vld [vmem:[#allocation2 + $0x230] sm:$0xf0]  ;;  %v9516_v16 = vor.u32 %v10201_v10, %v9513_v44  ;;  %v4796_v40 = vunpack.c.h.b16 %v13231_v46 }
 0xaaf   : > { %v9644_v18 = vor.u32 %v10233_v13, %v9641_v43  ;;  %5509 = vmatpush.bf16.msra.mxu0 %v9652_v42  ;;  %v9447_v32 = vld [vmem:[#allocation2 + $0x1c8] sm:$0xf]  ;;  %v10196_v21 = vld [vmem:[#allocation2 + $0x21c] sm:$0xf0]  ;;  %v9473_v22 = vld [vmem:[#allocation2 + $0x220] sm:$0xf0] }
 0xab0   : > { %5379 = vmatpush.bf16.msra.mxu1 %v9632_v49  ;;  %5405 = vmatpush.bf16.msra.mxu3 %v9636_v31  ;;  %v10189_v59 = vld [vmem:[#allocation2 + $0x1e4] sm:$0xf0]  ;;  %v10186_v23 = vld [vmem:[#allocation2 + $0x1d4] sm:$0xf]  ;;  %v9481_v42 = vld [vmem:[#allocation2 + $0x228] sm:$0xf0]  ;;  %v13259_v46 = vpack.c.b16 %v4796_v40, %v4796_v40 }
 0xab1   : > { %5457 = vmatpush.bf16.msrb.mxu2 %v9644_v18  ;;  %v10194_v49 = vld [vmem:[#allocation2 + $0x214] sm:$0xf]  ;;  %v9471_v13 = vld [vmem:[#allocation2 + $0x200] sm:$0xf]  ;;  %v10192_v43 = vld [vmem:[#allocation2 + $0x204] sm:$0xf] }
 0xab2   : > { %v9457_v31 = vld [vmem:[#allocation2 + $0x1f0] sm:$0xf0]  ;;  %v9492_v18 = vor.u32 %v10194_v49, %v9489_v26  ;;  %v10237_v35 = vld [vmem:[#allocation2 + $0x364] sm:$0xf0]  ;;  %v9472_v12 = vor.u32 %v10196_v21, %v9471_v13  ;;  %v9476_v8 = vor.u32 %v10192_v43, %v9473_v22  ;;  %v9369_v44 = vld [vmem:[#allocation2 + $0x138] sm:$0xf0] }
 0xab3   : > { %5510 = vmatpush.bf16.msra.mxu0 %v9620_v28  ;;  %v9484_v28 = vor.u32 %v10193_v56, %v9481_v42  ;;  %v9460_v61 = vor.u32 %v10186_v23, %v9457_v31  ;;  %v10173_v11 = vld [vmem:[#allocation2 + $0x164] sm:$0xf0]  ;;  %v9393_v48 = vld [vmem:[#allocation2 + $0x170] sm:$0xf0]  ;;  %v10155_v21 = vld [vmem:[#allocation2 + $0xdc] sm:$0xf] }
 0xab4   : > { %5380 = vmatpush.bf16.msra.mxu1 %v9600_v9  ;;  %5406 = vmatpush.bf16.msra.mxu3 %v9604_v4  ;;  %v9448_v9 = vor.u32 %v10189_v59, %v9447_v32  ;;  %v9639_v4 = vld [vmem:[#allocation2 + $0x348] sm:$0xf]  ;;  %v9384_v52 = vor.u32 %v10173_v11, %v9383_v51  ;;  %v10170_v41 = vld [vmem:[#allocation2 + $0x154] sm:$0xf]  ;;  %v9337_v22 = vld [vmem:[#allocation2 + $0xf8] sm:$0xf0] }
 0xab5   : > { %5458 = vmatpush.bf16.msrb.mxu2 %v9612_v14  ;;  %v9640_v7 = vor.u32 %v10237_v35, %v9639_v4  ;;  %v10181_v14 = vld [vmem:[#allocation2 + $0x1a4] sm:$0xf0]  ;;  %v10162_v53 = vld [vmem:[#allocation2 + $0x114] sm:$0xf]  ;;  %v9340_v43 = vor.u32 %v10155_v21, %v9337_v22  ;;  %v9455_v56 = vld [vmem:[#allocation2 + $0x1d0] sm:$0xf] }
 0xab6   : > { %v9416_v6 = vor.u32 %v10181_v14, %v9415_v38  ;;  %v9351_v5 = vld [vmem:[#allocation2 + $0x108] sm:$0xf]  ;;  %v9329_v59 = vld [vmem:[#allocation2 + $0xf0] sm:$0xf0]  ;;  %v9423_v11 = vld [vmem:[#allocation2 + $0x190] sm:$0xf] }
 0xab7   : > { %5511 = vmatpush.bf16.msra.mxu0 %v9588_v17  ;;  %v10178_v17 = vld [vmem:[#allocation2 + $0x194] sm:$0xf]  ;;  %v9352_v1 = vor.u32 %v10165_v50, %v9351_v5  ;;  %v9543_v58 = vld [vmem:[#allocation2 + $0x288] sm:$0xf]  ;;  %v9657_v50 = vld [vmem:[#allocation2 + $0x378] sm:$0xf0] }
 0xab8   : > { %5381 = vmatpush.bf16.msra.mxu1 %v9568_v37  ;;  %5407 = vmatpush.bf16.msra.mxu3 %v9572_v62  ;;  %v9608_v37 = vor.u32 %v10229_v34, %v9607_v55  ;;  %v9428_v62 = vor.u32 %v10178_v17, %v9425_v20  ;;  %v9319_v10 = vld [vmem:[#allocation2 + $0xc8] sm:$0xf]  ;;  %v10154_v42 = vld [vmem:[#allocation2 + $0xd4] sm:$0xf]  ;;  %v9456_v34 = vor.u32 %v10190_v39, %v9455_v56  ;;  %v10158_v22 = vld [vmem:[#allocation2 + $0xec] sm:$0xf0] }
 0xab9   : > { %5459 = vmatpush.bf16.msrb.mxu2 %v9580_v2  ;;  %v9436_v2 = vor.u32 %v10179_v27, %v9433_v45  ;;  %v10205_v32 = vld [vmem:[#allocation2 + $0x264] sm:$0xf0]  ;;  %v9332_v31 = vor.u32 %v10154_v42, %v9329_v59  ;;  %v10138_v20 = vld [vmem:[#allocation2 + $0x54] sm:$0xf]  ;;  %v10139_v45 = vld [vmem:[#allocation2 + $0x5c] sm:$0xf] }
 0xaba   : > { %v9511_v40 = vld [vmem:[#allocation2 + $0x248] sm:$0xf]  ;;  %v9265_v17 = vld [vmem:[#allocation2 + $0x70] sm:$0xf0]  ;;  %v9273_v27 = vld [vmem:[#allocation2 + $0x78] sm:$0xf0] }
 0xabb   : > { %5512 = vmatpush.bf16.msra.mxu0 %v9556_v57  ;;  %v9576_v57 = vor.u32 %v10221_v33, %v9575_v25  ;;  %v9512_v49 = vor.u32 %v10205_v32, %v9511_v40  ;;  %v9287_v13 = vld [vmem:[#allocation2 + $0x88] sm:$0xf]  ;;  %v9276_v33 = vor.u32 %v10139_v45, %v9273_v27  ;;  %v10130_v51 = vld [vmem:[#allocation2 + $0x14] sm:$0xf]  ;;  %v10131_v25 = vld [vmem:[#allocation2 + $0x1c] sm:$0xf] }
 0xabc   : > { %5382 = vmatpush.bf16.msra.mxu1 %v9536_v3  ;;  %5408 = vmatpush.bf16.msra.mxu3 %v9540_v29  ;;  %v9396_v3 = vor.u32 %v10170_v41, %v9393_v48  ;;  %v10171_v29 = vld [vmem:[#allocation2 + $0x15c] sm:$0xf]  ;;  %v10197_v35 = vld [vmem:[#allocation2 + $0x224] sm:$0xf0]  ;;  %v9327_v42 = vld [vmem:[#allocation2 + $0xd0] sm:$0xf] }
 0xabd   : > { %5460 = vmatpush.bf16.msrb.mxu2 %v9548_v24  ;;  %v9404_v54 = vor.u32 %v10171_v29, %v9401_v15  ;;  %v10213_v24 = vld [vmem:[#allocation2 + $0x2a4] sm:$0xf0]  ;;  %v9233_v15 = vld [vmem:[#allocation2 + $0x30] sm:$0xf0]  ;;  %v9241_v41 = vld [vmem:[#allocation2 + $0x38] sm:$0xf0] }
 0xabe   : > { %v10141_v14 = vld [vmem:[#allocation2 + $0x64] sm:$0xf0]  ;;  %v9647_v29 = vld [vmem:[#allocation2 + $0x350] sm:$0xf]  ;;  %v9244_v5 = vor.u32 %v10131_v25, %v9241_v41  ;;  %v10227_v59 = vld [vmem:[#allocation2 + $0x31c] sm:$0xf] }
 0xabf   : > { %5513 = vmatpush.bf16.msra.mxu0 %v9524_v30  ;;  %v9544_v30 = vor.u32 %v10213_v24, %v9543_v58  ;;  %v9255_v38 = vld [vmem:[#allocation2 + $0x48] sm:$0xf]  ;;  %v9391_v24 = vld [vmem:[#allocation2 + $0x150] sm:$0xf]  ;;  %v9593_v40 = vld [vmem:[#allocation2 + $0x2f8] sm:$0xf0] }
 0xac0   : > { %5383 = vmatpush.bf16.msra.mxu1 %v9504_v19  ;;  %5409 = vmatpush.bf16.msra.mxu3 %v9508_v63  ;;  %v9364_v19 = vor.u32 %v10162_v53, %v9361_v0  ;;  %v10163_v63 = vld [vmem:[#allocation2 + $0x11c] sm:$0xf]  ;;  %v9256_v55 = vor.u32 %v10141_v14, %v9255_v38  ;;  %v10230_v58 = vld [vmem:[#allocation2 + $0x32c] sm:$0xf0] }
 0xac1   : > { %5461 = vmatpush.bf16.msrb.mxu2 %v9516_v16  ;;  %v9372_v26 = vor.u32 %v10163_v63, %v9369_v44  ;;  %v10157_v16 = vld [vmem:[#allocation2 + $0xe4] sm:$0xf0]  ;;  %v9625_v63 = vld [vmem:[#allocation2 + $0x338] sm:$0xf0]  ;;  %v9295_v56 = vld [vmem:[#allocation2 + $0x90] sm:$0xf] }
 0xac2   : > { %v9320_v23 = vor.u32 %v10157_v16, %v9319_v10  ;;  %v9359_v10 = vld [vmem:[#allocation2 + $0x110] sm:$0xf]  ;;  %v9628_v21 = vor.u32 %v10227_v59, %v9625_v63  ;;  %v9529_v14 = vld [vmem:[#allocation2 + $0x278] sm:$0xf0]  ;;  %v9367_v63 = vld [vmem:[#allocation2 + $0x118] sm:$0xf] }
 0xac3   : > { %5514 = vmatpush.bf16.msra.mxu0 %v9492_v18  ;;  %v10149_v18 = vld [vmem:[#allocation2 + $0xa4] sm:$0xf0]  ;;  %v10222_v16 = vld [vmem:[#allocation2 + $0x2ec] sm:$0xf0]  ;;  %v10203_v38 = vld [vmem:[#allocation2 + $0x25c] sm:$0xf] }
 0xac4   : > { %5384 = vmatpush.bf16.msra.mxu1 %v9472_v12  ;;  %5410 = vmatpush.bf16.msra.mxu3 %v9476_v8  ;;  %v9297_v12 = vld [vmem:[#allocation2 + $0xb0] sm:$0xf0]  ;;  %v9305_v8 = vld [vmem:[#allocation2 + $0xb8] sm:$0xf0]  ;;  %v9288_v60 = vor.u32 %v10149_v18, %v9287_v13  ;;  %v9231_v45 = vld [vmem:[#allocation2 + $0x10] sm:$0xf] }
 0xac5   : > { %5462 = vmatpush.bf16.msrb.mxu2 %v9484_v28  ;;  %v9479_v28 = vld [vmem:[#allocation2 + $0x208] sm:$0xf]  ;;  %v10219_v13 = vld [vmem:[#allocation2 + $0x2dc] sm:$0xf]  ;;  %v9487_v27 = vld [vmem:[#allocation2 + $0x210] sm:$0xf] }
 0xac6   : > { %9666 = vmatmul.msk.bf16.vlgmr.msra.gmra.mxu0 %vm5360_vm5, %v13259_v46  ;;  %v9480_v4 = vor.u32 %v10197_v35, %v9479_v28  ;;  %v9596_v18 = vor.u32 %v10219_v13, %v9593_v40  ;;  %v10150_v35 = vld [vmem:[#allocation2 + $0xac] sm:$0xf0]  ;;  %v10211_v28 = vld [vmem:[#allocation2 + $0x29c] sm:$0xf]  ;;  %v9335_v59 = vld [vmem:[#allocation2 + $0xd8] sm:$0xf] }
 0xac7   : > { %5546 = vmatpush.bf16.msrb.mxu0 %v9468_v47  ;;  %9662 = vmatmul.msk.bf16.vlgmr.msra.gmra.mxu3 %vm5360_vm5, %v13259_v46 }
 0xac8   : > { %5416 = vmatpush.bf16.msrb.mxu1 %v9448_v9  ;;  %5431 = vmatpush.bf16.msrb.mxu3 %v9640_v7  ;;  %v10146_v9 = vld [vmem:[#allocation2 + $0x94] sm:$0xf] }
 0xac9   : > { %5494 = vmatpush.bf16.msra.mxu2 %v9460_v61  ;;  %9661 = vmatmul.msk.bf16.vlgmr.msra.gmra.mxu1 %vm5360_vm5, %v13259_v46  ;;  %v9300_v7 = vor.u32 %v10146_v9, %v9297_v12  ;;  %v10147_v61 = vld [vmem:[#allocation2 + $0x9c] sm:$0xf]  ;;  %v9551_v12 = vld [vmem:[#allocation2 + $0x290] sm:$0xf] }
 0xaca   : > { %9664 = vmatmul.msk.bf16.vlgmr.msrb.gmra.mxu2 %vm5360_vm5, %v13259_v46  ;;  %v9308_v47 = vor.u32 %v10147_v61, %v9305_v8  ;;  %v9561_v8 = vld [vmem:[#allocation2 + $0x2b8] sm:$0xf0]  ;;  %v10206_v9 = vld [vmem:[#allocation2 + $0x26c] sm:$0xf0] }
 0xacb   : > { %5547 = vmatpush.bf16.msrb.mxu0 %v9436_v2  ;;  %v10133_v2 = vld [vmem:[#allocation2 + $0x24] sm:$0xf0]  ;;  %v9519_v61 = vld [vmem:[#allocation2 + $0x250] sm:$0xf] }
 0xacc   : > { %5417 = vmatpush.bf16.msrb.mxu1 %v9416_v6  ;;  %5432 = vmatpush.bf16.msrb.mxu3 %v9608_v37  ;;  %v10182_v6 = vld [vmem:[#allocation2 + $0x1ac] sm:$0xf0]  ;;  %v9223_v37 = vld [vmem:[#allocation2 + $0x8] sm:$0xf] }
 0xacd   : > { %5495 = vmatpush.bf16.msra.mxu2 %v9428_v62  ;;  %v9268_v62 = vor.u32 %v10138_v20, %v9265_v17  ;;  %v9424_v48 = vor.u32 %v10182_v6, %v9423_v11  ;;  %v10198_v6 = vld [vmem:[#allocation2 + $0x22c] sm:$0xf0]  ;;  %v9497_v11 = vld [vmem:[#allocation2 + $0x238] sm:$0xf0] }
 0xace   : > { %v10134_v17 = vld [vmem:[#allocation2 + $0x2c] sm:$0xf0] }
 0xacf   : > { %5548 = vmatpush.bf16.msrb.mxu0 %v9404_v54  ;;  %v9236_v54 = vor.u32 %v10130_v51, %v9233_v15  ;;  %v10195_v51 = vld [vmem:[#allocation2 + $0x21c] sm:$0xf] }
 0xad0   : > { %5418 = vmatpush.bf16.msrb.mxu1 %v9384_v52  ;;  %5433 = vmatpush.bf16.msrb.mxu3 %v9576_v57  ;;  %v10238_v52 = vld [vmem:[#allocation2 + $0x36c] sm:$0xf0]  ;;  %v9500_v25 = vor.u32 %v10195_v51, %v9497_v11 }
 0xad1   : > { %5496 = vmatpush.bf16.msra.mxu2 %v9396_v3  ;;  %v10174_v57 = vld [vmem:[#allocation2 + $0x16c] sm:$0xf0]  ;;  %v9224_v3 = vor.u32 %v10133_v2, %v9223_v37  ;;  %v9648_v0 = vor.u32 %v10238_v52, %v9647_v29  ;;  %v9463_v37 = vld [vmem:[#allocation2 + $0x1d8] sm:$0xf] }
 0xad2   : > { %v9392_v44 = vor.u32 %v10174_v57, %v9391_v24  ;;  %v10239_v2 = vld [vmem:[#allocation2 + $0x374] sm:$0xf0] }
 0xad3   : > { %5549 = vmatpush.bf16.msrb.mxu0 %v9372_v26  ;;  %v9655_v52 = vld [vmem:[#allocation2 + $0x358] sm:$0xf] }
 0xad4   : > { %5419 = vmatpush.bf16.msrb.mxu1 %v9352_v1  ;;  %5434 = vmatpush.bf16.msrb.mxu3 %v9544_v30  ;;  %v10235_v1 = vld [vmem:[#allocation2 + $0x35c] sm:$0xf]  ;;  %v10166_v30 = vld [vmem:[#allocation2 + $0x12c] sm:$0xf0]  ;;  %v9656_v41 = vor.u32 %v10239_v2, %v9655_v52  ;;  %v10183_v57 = vld [vmem:[#allocation2 + $0x1b4] sm:$0xf0] }
 0xad5   : > { %5497 = vmatpush.bf16.msra.mxu2 %v9364_v19  ;;  %v9660_v53 = vor.u32 %v10235_v1, %v9657_v50  ;;  %v9615_v19 = vld [vmem:[#allocation2 + $0x310] sm:$0xf]  ;;  %v9360_v32 = vor.u32 %v10166_v30, %v9359_v10  ;;  %v9431_v29 = vld [vmem:[#allocation2 + $0x198] sm:$0xf] }
 0xad6   : > { %v9616_v26 = vor.u32 %v10230_v58, %v9615_v19  ;;  %v9432_v50 = vor.u32 %v10183_v57, %v9431_v29  ;;  %v9591_v58 = vld [vmem:[#allocation2 + $0x2d8] sm:$0xf] }
 0xad7   : > { %5550 = vmatpush.bf16.msrb.mxu0 %v9340_v43  ;;  %v10214_v43 = vld [vmem:[#allocation2 + $0x2ac] sm:$0xf0]  ;;  %v10167_v30 = vld [vmem:[#allocation2 + $0x134] sm:$0xf0] }
 0xad8   : > { %5420 = vmatpush.bf16.msrb.mxu1 %v9320_v23  ;;  %5435 = vmatpush.bf16.msrb.mxu3 %v9512_v49  ;;  %v9583_v23 = vld [vmem:[#allocation2 + $0x2d0] sm:$0xf]  ;;  %v9552_v39 = vor.u32 %v10214_v43, %v9551_v12  ;;  %v10215_v19 = vld [vmem:[#allocation2 + $0x2b4] sm:$0xf0]  ;;  %v9368_v10 = vor.u32 %v10167_v30, %v9367_v63 }
 0xad9   : > { %5498 = vmatpush.bf16.msra.mxu2 %v9332_v31  ;;  %v9584_v49 = vor.u32 %v10222_v16, %v9583_v23  ;;  %v9328_v31 = vor.u32 %v10158_v22, %v9327_v42  ;;  %v10159_v16 = vld [vmem:[#allocation2 + $0xf4] sm:$0xf0] }
 0xada   : > { %v9336_v22 = vor.u32 %v10159_v16, %v9335_v59  ;;  %v9527_v23 = vld [vmem:[#allocation2 + $0x258] sm:$0xf] }
 0xadb   : > { %5551 = vmatpush.bf16.msrb.mxu0 %v9308_v47  ;;  %v10142_v47 = vld [vmem:[#allocation2 + $0x6c] sm:$0xf0]  ;;  %v10151_v42 = vld [vmem:[#allocation2 + $0xb4] sm:$0xf0] }
 0xadc   : > { %5421 = vmatpush.bf16.msrb.mxu1 %v9288_v60  ;;  %5436 = vmatpush.bf16.msrb.mxu3 %v9480_v4  ;;  %v9296_v60 = vor.u32 %v10150_v35, %v9295_v56  ;;  %v9564_v4 = vor.u32 %v10211_v28, %v9561_v8  ;;  %v9495_v43 = vld [vmem:[#allocation2 + $0x218] sm:$0xf] }
 0xadd   : > { %5499 = vmatpush.bf16.msra.mxu2 %v9300_v7  ;;  %v9263_v7 = vld [vmem:[#allocation2 + $0x50] sm:$0xf]  ;;  %v9271_v35 = vld [vmem:[#allocation2 + $0x58] sm:$0xf] }
 0xade   : > { %v9264_v20 = vor.u32 %v10142_v47, %v9263_v7  ;;  %v10143_v12 = vld [vmem:[#allocation2 + $0x74] sm:$0xf0] }
 0xadf   : > { %9663 = vmatmul.msk.bf16.vlgmr.msrb.gmra.mxu3 %vm5360_vm5, %v13259_v46  ;;  %5552 = vmatpush.bf16.msrb.mxu0 %v9276_v33  ;;  %v9488_v33 = vor.u32 %v10198_v6, %v9487_v27  ;;  %v9272_v8 = vor.u32 %v10143_v12, %v9271_v35  ;;  %v9239_v56 = vld [vmem:[#allocation2 + $0x18] sm:$0xf] }
 0xae0   : > { %5468 = vmatpush.bf16.msra.mxu3 %v9456_v34  ;;  %5422 = vmatpush.bf16.msrb.mxu1 %v9256_v55  ;;  %v9520_v34 = vor.u32 %v10206_v9, %v9519_v61  ;;  %v9532_v55 = vor.u32 %v10203_v38, %v9529_v14  ;;  %v5399_v9 = vpop.f32.mrf.mxu2  ;;  %v13288_v38 = vld [vmem:[%s14836_s6] sm:$0xff] }
 0xae1   : > { %5500 = vmatpush.bf16.msra.mxu2 %v9268_v62  ;;  %v10191_v62 = vld [vmem:[#allocation2 + $0x1f4] sm:$0xf0]  ;;  %v5604_v27 = vperm.slane %v13288_v38, 1  ;;  %v5606_v30 = vperm.slane %v13288_v38, 3 }
 0xae2   : > { %v9464_v15 = vor.u32 %v10191_v62, %v9463_v37 }
 0xae3   : > { %5553 = vmatpush.bf16.msrb.mxu0 %v9244_v5  ;;  %v10223_v5 = vld [vmem:[#allocation2 + $0x2f4] sm:$0xf0] }
 0xae4   : > { %5469 = vmatpush.bf16.msra.mxu3 %v9424_v48  ;;  %5423 = vmatpush.bf16.msrb.mxu1 %v9224_v3  ;;  %v9232_v48 = vor.u32 %v10134_v17, %v9231_v45  ;;  %v10231_v3 = vld [vmem:[#allocation2 + $0x334] sm:$0xf0] }
 0xae5   : > { %5501 = vmatpush.bf16.msra.mxu2 %v9236_v54  ;;  %v9623_v54 = vld [vmem:[#allocation2 + $0x318] sm:$0xf] }
 0xae6   : > { %5554 = vmatmul.bf16.vlgmr.msrb.gmra.mxu0 %v13234_v36  ;;  %v9624_v24 = vor.u32 %v10231_v3, %v9623_v54 }
 0xae7   : > { %5424 = vmatmul.bf16.vlgmr.msrb.gmra.mxu1 %v13234_v36 }
 0xae8   : > { %5483 = vmatpush.bf16.msra.mxu1 %v9648_v0  ;;  %5470 = vmatpush.bf16.msra.mxu3 %v9392_v44  ;;  %v10175_v0 = vld [vmem:[#allocation2 + $0x174] sm:$0xf0]  ;;  %v5401_v7 = vpop.f32.mrf.mxu2 }
 0xae9   : > { %5561 = vmatpush.bf16.msrb.mxu2 %v9660_v53  ;;  %v9399_v44 = vld [vmem:[#allocation2 + $0x158] sm:$0xf]  ;;  %v9592_v53 = vor.u32 %v10223_v5, %v9591_v58 }
 0xaea   : > { %5502 = vmatmul.bf16.vlgmr.msra.gmra.mxu2 %v13234_v36  ;;  %v9400_v1 = vor.u32 %v10175_v0, %v9399_v44 }
 0xaec   : > { %5484 = vmatpush.bf16.msra.mxu1 %v9616_v26  ;;  %5471 = vmatpush.bf16.msra.mxu3 %v9360_v32  ;;  %v9559_v26 = vld [vmem:[#allocation2 + $0x298] sm:$0xf] }
 0xaed   : > { %5562 = vmatpush.bf16.msrb.mxu2 %v9628_v21  ;;  %v9560_v32 = vor.u32 %v10215_v19, %v9559_v26  ;;  %v10207_v21 = vld [vmem:[#allocation2 + $0x274] sm:$0xf0]  ;;  %v5605_v26 = vperm.slane %v13288_v38, 2 }
 0xaee   : > { %v9528_v40 = vor.u32 %v10207_v21, %v9527_v23 }
 0xaf0   : > { %5485 = vmatpush.bf16.msra.mxu1 %v9584_v49  ;;  %5472 = vmatpush.bf16.msra.mxu3 %v9328_v31  ;;  %v10199_v49 = vld [vmem:[#allocation2 + $0x234] sm:$0xf0] }
 0xaf1   : > { %5563 = vmatpush.bf16.msrb.mxu2 %v9596_v18  ;;  %v9303_v31 = vld [vmem:[#allocation2 + $0x98] sm:$0xf]  ;;  %v9496_v18 = vor.u32 %v10199_v49, %v9495_v43 }
 0xaf2   : > { %v9304_v13 = vor.u32 %v10151_v42, %v9303_v31 }
 0xaf4   : > { %5486 = vmatpush.bf16.msra.mxu1 %v9552_v39  ;;  %5473 = vmatpush.bf16.msra.mxu3 %v9296_v60  ;;  %v10135_v39 = vld [vmem:[#allocation2 + $0x34] sm:$0xf0]  ;;  %v5373_v60 = vpop.f32.mrf.mxu0 }
 0xaf5   : > { %5564 = vmatpush.bf16.msrb.mxu2 %v9564_v4  ;;  %v9240_v28 = vor.u32 %v10135_v39, %v9239_v56 }
 0xaf8   : > { %5487 = vmatpush.bf16.msra.mxu1 %v9520_v34  ;;  %5474 = vmatpush.bf16.msra.mxu3 %v9264_v20 }
 0xaf9   : > { %5565 = vmatpush.bf16.msrb.mxu2 %v9532_v55 }
 0xafc   : > { %5488 = vmatpush.bf16.msra.mxu1 %v9488_v33  ;;  %5475 = vmatpush.bf16.msra.mxu3 %v9232_v48  ;;  %v5375_v4 = vpop.f32.mrf.mxu0 }
 0xafd   : > { %5566 = vmatpush.bf16.msrb.mxu2 %v9500_v25 }
 0xaff   : > { %9665 = vmatmul.msk.bf16.vlgmr.msra.gmra.mxu1 %vm5360_vm5, %v13259_v46  ;;  %5476 = vmatmul.bf16.vlgmr.msra.gmra.mxu3 %v13234_v36 }
 0xb00   : > { %5520 = vmatpush.bf16.msrb.mxu1 %v9464_v15  ;;  %5535 = vmatpush.bf16.msrb.mxu3 %v9656_v41 }
 0xb01   : > { %9668 = vmatmul.msk.bf16.vlgmr.msrb.gmra.mxu2 %vm5360_vm5, %v13259_v46 }
 0xb04   : > { %5521 = vmatpush.bf16.msrb.mxu1 %v9432_v50  ;;  %5536 = vmatpush.bf16.msrb.mxu3 %v9624_v24  ;;  %v5451_v47 = vpop.f32.mrf.mxu0 }
 0xb08   : > { %5522 = vmatpush.bf16.msrb.mxu1 %v9400_v1  ;;  %5537 = vmatpush.bf16.msrb.mxu3 %v9592_v53 }
 0xb0c   : > { %5523 = vmatpush.bf16.msrb.mxu1 %v9368_v10  ;;  %5538 = vmatpush.bf16.msrb.mxu3 %v9560_v32  ;;  %v5453_v55 = vpop.f32.mrf.mxu0 }
 0xb10   : > { %5524 = vmatpush.bf16.msrb.mxu1 %v9336_v22  ;;  %5539 = vmatpush.bf16.msrb.mxu3 %v9528_v40  ;;  %v13282_v61 = vpop.permute.xlu1 %4791 }
 0xb11   : > { %v5374_v14 = vadd.f32 %v5373_v60, %v13282_v61  ;;  %v5452_v57 = vadd.f32 %v5451_v47, %v13282_v61 }
 0xb14   : > { %5525 = vmatpush.bf16.msrb.mxu1 %v9304_v13  ;;  %5540 = vmatpush.bf16.msrb.mxu3 %v9496_v18 }
 0xb17   : > { %9667 = vmatmul.msk.bf16.vlgmr.msrb.gmra.mxu3 %vm5360_vm5, %v13259_v46  ;;  %v5400_v46 = vadd.f32 %v5399_v9, %v13282_v61 }
 0xb18   : > { %5526 = vmatpush.bf16.msrb.mxu1 %v9272_v8 }
 0xb1c   : > { %5527 = vmatpush.bf16.msrb.mxu1 %v9240_v28 }
 0xb1f   : > { %5528 = vmatmul.bf16.vlgmr.msrb.gmra.mxu1 %v13234_v36  ;;  %v5603_v36 = vperm.slane %v13288_v38, 0 }
 0xb43   : > { %v5516_v25 = vpop.f32.mrf.mxu0 }
 0xb46   : > { %v5386_v34 = vpop.f32.mrf.mxu1 }
 0xb47   : > { %v5387_v20 = vadd.f32 %v5386_v34, %v5374_v14  ;;  %v5608_v14 = vperm.slane %v13288_v38, 5 }
 0xb49   : > { %vm5572_vm15 = vcmp.ge.f32.partialorder %v5387_v20, 0.0  ;;  %v5580_v45 = vmul.f32 0.01, %v5387_v20 }
 0xb4a   : > { %v5412_v6 = vpop.f32.mrf.mxu3 }
 0xb4b   : > { %v5588_v17 = vsel %vm5572_vm15, %v5387_v20, %v5580_v45  ;;  %v5413_v37 = vadd.f32 %v5412_v6, %v5400_v46  ;;  %v5518_v3 = vpop.f32.mrf.mxu0  ;;  %v5607_v20 = vperm.slane %v13288_v38, 4  ;;  %vm5965_vm15 = vcmask 891904  }
 0xb4c   : > { %v5619_v33 = vmul.f32 %v5603_v36, %v5588_v17  ;;  %v5610_v3 = vperm.slane %v13288_v38, 7 }
 0xb4d   : > { %v5464_v62 = vpop.f32.mrf.mxu2  ;;  %vm5573_vm13 = vcmp.ge.f32.partialorder %v5413_v37, 0.0  ;;  %v5581_v11 = vmul.f32 0.01, %v5413_v37 }
 0xb4e   : > { %v5388_v2 = vpop.f32.mrf.mxu1  ;;  %v5465_v54 = vadd.f32 %v5464_v62, %v5452_v57 }
 0xb4f   : > { %v5589_v48 = vsel %vm5573_vm13, %v5413_v37, %v5581_v11  ;;  %vm6327_vm13 = vcmask 744448  }
 0xb50   : > { %v5620_v51 = vmul.f32 %v5604_v27, %v5589_v48  ;;  %v5583_v1 = vmul.f32 0.01, %v5465_v54  ;;  %vm5575_vm6 = vcmp.ge.f32.partialorder %v5465_v54, 0.0 }
 0xb52   : > { %v5627_v15 = vpack.c.bf16 %v5620_v51, %v5619_v33  ;;  %v5414_v52 = vpop.f32.mrf.mxu3  ;;  %v5591_v10 = vsel %vm5575_vm6, %v5465_v54, %v5583_v1  ;;  %vm6689_vm6 = vcmask 80896  }
 0xb53   : > { %v5622_v59 = vmul.f32 %v5606_v30, %v5591_v10 }
 0xb54   : > { %5631 = vst [vmem:[#allocation4 + $0x4] sm:$0xff] %v5627_v15 }
 0xb55   : > { %v5466_v41 = vpop.f32.mrf.mxu2 }
 0xb5b   : > { %v5635_v29 = vld [vmem:[#allocation4] sm:$0xff] }
 0xb5c   : > { %v5646_v50 = vunpack.c.h.b16 %v5635_v29  ;;  %v5645_v24 = vunpack.c.l.b16 %v5635_v29  ;;  %v5609_v29 = vperm.slane %v13288_v38, 6 }
 0xb5e   : > { %v13294_v0 = vpack.c.b16 %v5646_v50, %v5646_v50  ;;  %v13296_v5 = vpack.c.b16 %v5645_v24, %v5645_v24 }
 0xb60   : > { %5665 = vrot.lane.b32.xlu0 %v13294_v0, %s10400_s30  ;;  %5663 = vrot.lane.b32.xlu2 %v13296_v5, %s10400_s30 }
 0xb62   : > { %v5438_v44 = vpop.f32.mrf.mxu3 }
 0xb63   : > { %v5555_v19 = vpop.f32.mrf.mxu0 }
 0xb64   : > { %v5425_v58 = vpop.f32.mrf.mxu1  ;;  %v5556_v62 = vadd.f32 %v5555_v19, %v13282_v61 }
 0xb65   : > { %v5426_v53 = vadd.f32 %v5425_v58, %v13282_v61 }
 0xb67   : > { %v5439_v63 = vadd.f32 %v5438_v44, %v5426_v53 }
 0xb69   : > { %vm5574_vm8 = vcmp.ge.f32.partialorder %v5439_v63, 0.0  ;;  %v5582_v32 = vmul.f32 0.01, %v5439_v63 }
 0xb6a   : > { %v5440_v22 = vpop.f32.mrf.mxu3 }
 0xb6b   : > { %v5590_v16 = vsel %vm5574_vm8, %v5439_v63, %v5582_v32  ;;  %v5557_v49 = vpop.f32.mrf.mxu0  ;;  %vm6891_vm8 = vcmask 7168  }
 0xb6c   : > { %v5621_v23 = vmul.f32 %v5605_v26, %v5590_v16  ;;  %v5427_v40 = vpop.f32.mrf.mxu1 }
 0xb6d   : > { %v5503_v21 = vpop.f32.mrf.mxu2 }
 0xb6e   : > { %v5628_v42 = vpack.c.bf16 %v5622_v59, %v5621_v23  ;;  %v5504_v13 = vadd.f32 %v5503_v21, %v13282_v61 }
 0xb70   : > { %5632 = vst [vmem:[#allocation4 + $0xc] sm:$0xff] %v5628_v42  ;;  %v5517_v39 = vadd.f32 %v5516_v25, %v5504_v13 }
 0xb72   : > { %v5585_v60 = vmul.f32 0.01, %v5517_v39  ;;  %vm5577_vm9 = vcmp.ge.f32.partialorder %v5517_v39, 0.0 }
 0xb74   : > { %v5593_v47 = vsel %vm5577_vm9, %v5517_v39, %v5585_v60  ;;  %vm7794_vm9 = vcmask 228352  }
 0xb75   : > { %v5505_v31 = vpop.f32.mrf.mxu2  ;;  %v5624_v45 = vmul.f32 %v5608_v14, %v5593_v47 }
 0xb77   : > { %v5636_v43 = vld [vmem:[#allocation4 + $0x8] sm:$0xff] }
 0xb78   : > { %v5647_v18 = vunpack.c.l.b16 %v5636_v43  ;;  %v5648_v35 = vunpack.c.h.b16 %v5636_v43 }
 0xb7a   : > { %v13306_v8 = vpack.c.b16 %v5647_v18, %v5647_v18  ;;  %v13308_v56 = vpack.c.b16 %v5648_v35, %v5648_v35 }
 0xb7c   : > { %v5490_v12 = vpop.f32.mrf.mxu1  ;;  %5667 = vrot.lane.b32.xlu1 %v13306_v8, %s10400_s30  ;;  %5669 = vrot.lane.b32.xlu2 %v13308_v56, %s10400_s30 }
 0xb82   : > { %v5477_v28 = vpop.f32.mrf.mxu3 }
 0xb83   : > { %v5478_v9 = vadd.f32 %v5477_v28, %v13282_v61 }
 0xb84   : > { %v5492_v4 = vpop.f32.mrf.mxu1  ;;  %v5568_v7 = vpop.f32.mrf.mxu2 }
 0xb85   : > { %v5491_v34 = vadd.f32 %v5490_v12, %v5478_v9  ;;  %v5569_v27 = vadd.f32 %v5568_v7, %v5556_v62 }
 0xb87   : > { %vm5576_vm10 = vcmp.ge.f32.partialorder %v5491_v34, 0.0  ;;  %v5584_v46 = vmul.f32 0.01, %v5491_v34  ;;  %v5587_v25 = vmul.f32 0.01, %v5569_v27  ;;  %vm5579_vm11 = vcmp.ge.f32.partialorder %v5569_v27, 0.0 }
 0xb89   : > { %v5592_v36 = vsel %vm5576_vm10, %v5491_v34, %v5584_v46  ;;  %v5595_v50 = vsel %vm5579_vm11, %v5569_v27, %v5587_v25  ;;  %vm7613_vm10 = vcmask 302080   ;;  %vm7432_vm11 = vcmask 318464  }
 0xb8a   : > { %v5623_v6 = vmul.f32 %v5607_v20, %v5592_v36  ;;  %v5479_v55 = vpop.f32.mrf.mxu3  ;;  %v5626_v1 = vmul.f32 %v5610_v3, %v5595_v50 }
 0xb8c   : > { %v5570_v17 = vpop.f32.mrf.mxu2  ;;  %v5629_v37 = vpack.c.bf16 %v5624_v45, %v5623_v6 }
 0xb8e   : > { %5633 = vst [vmem:[#allocation4 + $0x14] sm:$0xff] %v5629_v37 }
 0xb95   : > { %v5637_v11 = vld [vmem:[#allocation4 + $0x10] sm:$0xff] }
 0xb96   : > { %v5650_v2 = vunpack.c.h.b16 %v5637_v11  ;;  %v5649_v33 = vunpack.c.l.b16 %v5637_v11 }
 0xb98   : > { %v13318_v15 = vpack.c.b16 %v5650_v2, %v5650_v2  ;;  %v13320_v52 = vpack.c.b16 %v5649_v33, %v5649_v33 }
 0xb9a   : > { %v5542_v48 = vpop.f32.mrf.mxu3  ;;  %5673 = vrot.lane.b32.xlu1 %v13318_v15, %s10400_s30  ;;  %5671 = vrot.lane.b32.xlu0 %v13320_v52, %s10400_s30 }
 0xb9c   : > { %v5529_v51 = vpop.f32.mrf.mxu1 }
 0xb9d   : > { %v5530_v41 = vadd.f32 %v5529_v51, %v13282_v61 }
 0xb9f   : > { %v5543_v57 = vadd.f32 %v5542_v48, %v5530_v41 }
 0xba1   : > { %vm5578_vm2 = vcmp.ge.f32.partialorder %v5543_v57, 0.0  ;;  %v5586_v54 = vmul.f32 0.01, %v5543_v57 }
 0xba2   : > { %v5544_v44 = vpop.f32.mrf.mxu3 }
 0xba3   : > { %v5594_v24 = vsel %vm5578_vm2, %v5543_v57, %v5586_v54 }
 0xba4   : > { %v5625_v58 = vmul.f32 %v5609_v29, %v5594_v24  ;;  %v5531_v61 = vpop.f32.mrf.mxu1 }
 0xba6   : > { %v5630_v53 = vpack.c.bf16 %v5626_v1, %v5625_v58 }
 0xba8   : > { %5634 = vst [vmem:[#allocation4 + $0x1c] sm:$0xff] %v5630_v53 }
 0xbaf   : > { %v5639_v30 = vld [vmem:[#allocation4 + $0x20] sm:$0xf]  ;;  %v5638_v19 = vld [vmem:[#allocation4 + $0x18] sm:$0xff] }
 0xbb0   : > { %v5653_v63 = vunpack.c.l.b16 %v5639_v30  ;;  %v5652_v10 = vunpack.c.h.b16 %v5638_v19  ;;  %v5651_v26 = vunpack.c.l.b16 %v5638_v19  ;;  %v5820_v16 = vld [vmem:[#allocation4 + $0x20] sm:$0xf] }
 0xbb1   : > { %v5834_v21 = vunpack.c.l.b16 %v5820_v16  ;;  %v6001_v23 = vld [vmem:[#allocation4 + $0x20] sm:$0xf] }
 0xbb2   : > { %v13329_v32 = vpack.c.b16 %v5653_v63, %v5653_v63  ;;  %v13331_v59 = vpack.c.b16 %v5652_v10, %v5652_v10  ;;  %v13333_v38 = vpack.c.b16 %v5651_v26, %v5651_v26  ;;  %v6015_v40 = vunpack.c.l.b16 %v6001_v23 }
 0xbb3   : > { %v13353_v22 = vpack.c.b16 %v5834_v21, %v5834_v21 }
 0xbb4   : > { %5679 = vrot.lane.b32.xlu1 %v13329_v32, %s10400_s30  ;;  %5677 = vrot.lane.b32.xlu0 %v13331_v59, %s10400_s30  ;;  %v13373_v42 = vpack.c.b16 %v6015_v40, %v6015_v40 }
 0xbb5   : > { %5675 = vrot.lane.b32.xlu2 %v13333_v38, %s10400_s30 }
 0xbba   : > { %v5664_v31 = vpop.permute.xlu2 %5663 }
 0xbbc   : > { %5846 = vrot.lane.b32.xlu1 %v13294_v0, %s10411_s18  ;;  %5844 = vrot.lane.b32.xlu0 %v13296_v5, %s10411_s18 }
 0xbbd   : > { %5848 = vrot.lane.b32.xlu2 %v13306_v8, %s10411_s18 }
 0xbc4   : > { %5852 = vrot.lane.b32.xlu1 %v13320_v52, %s10411_s18  ;;  %5850 = vrot.lane.b32.xlu0 %v13308_v56, %s10411_s18 }
 0xbc5   : > { %5854 = vrot.lane.b32.xlu2 %v13318_v15, %s10411_s18 }
 0xbcc   : > { %5858 = vrot.lane.b32.xlu1 %v13331_v59, %s10411_s18  ;;  %5856 = vrot.lane.b32.xlu0 %v13333_v38, %s10411_s18 }
 0xbcd   : > { %5860 = vrot.lane.b32.xlu2 %v13353_v22, %s10411_s18 }
 0xbd2   : > { %v5666_v49 = vpop.permute.xlu0 %5665 }
 0xbd3   : > { %v5681_v13 = vsel %vm358_vm0, %v5664_v31, %v5666_v49 }
 0xbd4   : > { %6025 = vrot.lane.b32.xlu1 %v13296_v5, %s10400_s30  ;;  %6029 = vrot.lane.b32.xlu0 %v13306_v8, %s10400_s30  ;;  %v5691_v43 = vsel %vm484_vm3, %v13296_v5, %v5681_v13 }
 0xbd5   : > { %6027 = vrot.lane.b32.xlu2 %v13294_v0, %s10400_s30  ;;  %v5725_v39 = vunpack.c.l.b16 %v5691_v43  ;;  %v5734_v60 = vunpack.c.h.b16 %v5691_v43 }
 0xbd6   : > { %v5670_v14 = vpop.permute.xlu2 %5669 }
 0xbdc   : > { %6031 = vrot.lane.b32.xlu1 %v13308_v56, %s10400_s30  ;;  %6035 = vrot.lane.b32.xlu0 %v13318_v15, %s10400_s30 }
 0xbdd   : > { %6033 = vrot.lane.b32.xlu2 %v13320_v52, %s10400_s30 }
 0xbe4   : > { %6037 = vrot.lane.b32.xlu1 %v13333_v38, %s10400_s30  ;;  %6041 = vrot.lane.b32.xlu0 %v13373_v42, %s10400_s30 }
 0xbe5   : > { %6039 = vrot.lane.b32.xlu2 %v13331_v59, %s10400_s30 }
 0xbee   : > { %v5668_v18 = vpop.permute.xlu1 %5667 }
 0xbef   : > { %v5682_v35 = vsel %vm358_vm0, %v5666_v49, %v5668_v18  ;;  %v5683_v41 = vsel %vm358_vm0, %v5668_v18, %v5670_v14 }
 0xbf0   : > { %v5694_v12 = vsel %vm484_vm3, %v13294_v0, %v5682_v35  ;;  %v5697_v50 = vsel %vm484_vm3, %v13306_v8, %v5683_v41 }
 0xbf1   : > { %v5726_v28 = vunpack.c.l.b16 %v5694_v12  ;;  %v5735_v9 = vunpack.c.h.b16 %v5694_v12  ;;  %v5736_v1 = vunpack.c.h.b16 %v5697_v50 }
 0xbf3   : > { %v5748_v4 = vpack.c.b16 %v5735_v9, %v5734_v60  ;;  %v5743_v7 = vpack.c.b16 %v5726_v28, %v5725_v39 }
 0xbf5   : > { %5763 = vrot.lane.b32.xlu1 %v5748_v4, %s10416_s13  ;;  %5753 = vrot.lane.b32.xlu2 %v5743_v7, %s10416_s13 }
 0xc0c   : > { %v13391_v34 = vpop.permute.xlu1 %5673  ;;  %v13393_v20 = vpop.permute.xlu0 %5671 }
 0xc0d   : > { %v5684_v62 = vsel %vm358_vm0, %v5670_v14, %v13393_v20 }
 0xc0e   : > { %v5700_v29 = vsel %vm484_vm3, %v13308_v56, %v5684_v62  ;;  %v5727_v62 = vunpack.c.l.b16 %v5697_v50 }
 0xc0f   : > { %v13389_v47 = vpop.permute.xlu2 %5675  ;;  %v5737_v44 = vunpack.c.h.b16 %v5700_v29  ;;  %v5728_v28 = vunpack.c.l.b16 %v5700_v29 }
 0xc11   : > { %v5749_v61 = vpack.c.b16 %v5737_v44, %v5736_v1 }
 0xc17   : > { %v5849_v46 = vpop.permute.xlu2 %5848 }
 0xc1f   : > { %v13403_v27 = vpop.permute.xlu2 %5854 }
 0xc26   : > { %v13395_v45 = vpop.permute.xlu1 %5679  ;;  %v13397_v36 = vpop.permute.xlu0 %5677 }
 0xc27   : > { %v13418_v58 = vpop.permute.xlu2 %5860 }
 0xc2e   : > { %v5847_v6 = vpop.permute.xlu1 %5846  ;;  %v5845_v55 = vpop.permute.xlu0 %5844 }
 0xc2f   : > { %v5863_v17 = vsel %vm1917_vm14, %v5847_v6, %v5849_v46  ;;  %v5862_v37 = vsel %vm1917_vm14, %v5845_v55, %v5847_v6  ;;  %v6028_v19 = vpop.permute.xlu2 %6027 }
 0xc30   : > { %v5875_v11 = vsel %vm484_vm3, %v13294_v0, %v5863_v17  ;;  %v5872_v2 = vsel %vm484_vm3, %v13296_v5, %v5862_v37 }
 0xc31   : > { %v5907_v33 = vunpack.c.l.b16 %v5875_v11  ;;  %v5916_v48 = vunpack.c.h.b16 %v5875_v11  ;;  %v5906_v51 = vunpack.c.l.b16 %v5872_v2  ;;  %v5915_v25 = vunpack.c.h.b16 %v5872_v2 }
 0xc33   : > { %v5924_v57 = vpack.c.b16 %v5907_v33, %v5906_v51  ;;  %v5929_v3 = vpack.c.b16 %v5916_v48, %v5915_v25  ;;  %v5744_v33 = vpack.c.b16 %v5728_v28, %v5727_v62  ;;  %v5715_v25 = vsel %vm484_vm3, %v13329_v32, %v13395_v45 }
 0xc34   : > { %v5742_v50 = vunpack.c.h.b16 %v5715_v25  ;;  %v5896_v32 = vsel %vm484_vm3, %v13353_v22, %v13418_v58  ;;  %v5685_v22 = vsel %vm358_vm0, %v13393_v20, %v13391_v34 }
 0xc35   : > { %5944 = vrot.lane.b32.xlu2 %v5929_v3, %s10417_s14  ;;  %5934 = vrot.lane.b32.xlu0 %v5924_v57, %s10417_s14 }
 0xc36   : > { %v13416_v54 = vpop.permute.xlu1 %5852  ;;  %v5851_v24 = vpop.permute.xlu0 %5850 }
 0xc37   : > { %v5864_v21 = vsel %vm1917_vm14, %v5849_v46, %v5851_v24  ;;  %v5865_v23 = vsel %vm1917_vm14, %v5851_v24, %v13416_v54  ;;  %v13440_v9 = vpop.permute.xlu2 %6033 }
 0xc38   : > { %v5878_v39 = vsel %vm484_vm3, %v13306_v8, %v5864_v21  ;;  %v5881_v60 = vsel %vm484_vm3, %v13308_v56, %v5865_v23  ;;  %v5688_v21 = vsel %vm358_vm0, %v13397_v36, %v13395_v45 }
 0xc39   : > { %v5908_v7 = vunpack.c.l.b16 %v5878_v39  ;;  %v5909_v14 = vunpack.c.l.b16 %v5881_v60  ;;  %v5917_v41 = vunpack.c.h.b16 %v5878_v39  ;;  %v5918_v57 = vunpack.c.h.b16 %v5881_v60 }
 0xc3a   : > { %v5712_v20 = vsel %vm484_vm3, %v13331_v59, %v5688_v21  ;;  %v5866_v60 = vsel %vm1917_vm14, %v13416_v54, %v13403_v27 }
 0xc3b   : > { %v5925_v48 = vpack.c.b16 %v5909_v14, %v5908_v7  ;;  %v5930_v44 = vpack.c.b16 %v5918_v57, %v5917_v41 }
 0xc3d   : > { %5765 = vrot.lane.b32.xlu2 %v5749_v61, %s10416_s13  ;;  %v5752_v61 = vpack.c.b16 %v5742_v50, %v5742_v50 }
 0xc3e   : > { %v13421_v53 = vpop.permute.xlu1 %5858  ;;  %v13423_v30 = vpop.permute.xlu0 %5856 }
 0xc3f   : > { %v5868_v54 = vsel %vm1917_vm14, %v13423_v30, %v13421_v53 }
 0xc46   : > { %v6026_v63 = vpop.permute.xlu1 %6025  ;;  %v6030_v10 = vpop.permute.xlu0 %6029 }
 0xc47   : > { %v6043_v26 = vsel %vm358_vm0, %v6026_v63, %v6028_v19  ;;  %v6044_v16 = vsel %vm358_vm0, %v6028_v19, %v6030_v10  ;;  %v5733_v63 = vunpack.c.l.b16 %v5715_v25 }
 0xc48   : > { %v6053_v40 = vsel %vm484_vm3, %v13296_v5, %v6043_v26  ;;  %v6056_v49 = vsel %vm484_vm3, %v13294_v0, %v6044_v16  ;;  %v5686_v16 = vsel %vm358_vm0, %v13391_v34, %v13389_v47 }
 0xc49   : > { %v6087_v31 = vunpack.c.l.b16 %v6053_v40  ;;  %v6096_v13 = vunpack.c.h.b16 %v6053_v40  ;;  %v6088_v43 = vunpack.c.l.b16 %v6056_v49  ;;  %v6097_v18 = vunpack.c.h.b16 %v6056_v49 }
 0xc4a   : > { %v5747_v23 = vpack.c.b16 %v5733_v63, %v5733_v63  ;;  %v5706_v49 = vsel %vm484_vm3, %v13318_v15, %v5686_v16 }
 0xc4b   : > { %v6110_v35 = vpack.c.b16 %v6097_v18, %v6096_v13  ;;  %v6105_v12 = vpack.c.b16 %v6088_v43, %v6087_v31  ;;  %v5703_v31 = vsel %vm484_vm3, %v13320_v52, %v5685_v22  ;;  %v5732_v18 = vunpack.c.l.b16 %v5712_v20 }
 0xc4c   : > { %v5729_v45 = vunpack.c.l.b16 %v5703_v31  ;;  %v5739_v7 = vunpack.c.h.b16 %v5706_v49  ;;  %v5738_v14 = vunpack.c.h.b16 %v5703_v31 }
 0xc4d   : > { %6125 = vrot.lane.b32.xlu0 %v6110_v35, %s10418_s15  ;;  %6115 = vrot.lane.b32.xlu1 %v6105_v12, %s10418_s15  ;;  %v5867_v35 = vsel %vm1917_vm14, %v13403_v27, %v13423_v30  ;;  %v5869_v27 = vsel %vm1917_vm14, %v13421_v53, %v13418_v58 }
 0xc4e   : > { %v6032_v4 = vpop.permute.xlu1 %6031  ;;  %v13449_v37 = vpop.permute.xlu0 %6035 }
 0xc4f   : > { %v6045_v46 = vsel %vm358_vm0, %v6030_v10, %v6032_v4  ;;  %v6046_v6 = vsel %vm358_vm0, %v6032_v4, %v13440_v9  ;;  %v5914_v10 = vunpack.c.l.b16 %v5896_v32  ;;  %v5887_v4 = vsel %vm484_vm3, %v13318_v15, %v5867_v35 }
 0xc50   : > { %v6059_v55 = vsel %vm484_vm3, %v13306_v8, %v6045_v46  ;;  %v6062_v17 = vsel %vm484_vm3, %v13308_v56, %v6046_v6  ;;  %v5741_v6 = vunpack.c.h.b16 %v5712_v20  ;;  %v5920_v53 = vunpack.c.h.b16 %v5887_v4 }
 0xc51   : > { %v6089_v11 = vunpack.c.l.b16 %v6059_v55  ;;  %v6090_v2 = vunpack.c.l.b16 %v6062_v17  ;;  %v6098_v3 = vunpack.c.h.b16 %v6059_v55  ;;  %v6099_v29 = vunpack.c.h.b16 %v6062_v17 }
 0xc52   : > { %v5928_v40 = vpack.c.b16 %v5914_v10, %v5914_v10  ;;  %v5884_v55 = vsel %vm484_vm3, %v13320_v52, %v5866_v60  ;;  %v5911_v17 = vunpack.c.l.b16 %v5887_v4  ;;  %v6182_v4 = vld [vmem:[#allocation4 + $0x20] sm:$0xf] }
 0xc53   : > { %v6106_v51 = vpack.c.b16 %v6090_v2, %v6089_v11  ;;  %v6111_v1 = vpack.c.b16 %v6099_v29, %v6098_v3  ;;  %v5910_v62 = vunpack.c.l.b16 %v5884_v55  ;;  %v5750_v11 = vpack.c.b16 %v5739_v7, %v5738_v14  ;;  %v6040_v3 = vpop.permute.xlu2 %6039 }
 0xc54   : > { %v5919_v29 = vunpack.c.h.b16 %v5884_v55  ;;  %v6196_v7 = vunpack.c.l.b16 %v6182_v4 }
 0xc55   : > { %5755 = vrot.lane.b32.xlu0 %v5744_v33, %s10416_s13  ;;  %5936 = vrot.lane.b32.xlu1 %v5925_v48, %s10417_s14  ;;  %v5893_v33 = vsel %vm484_vm3, %v13331_v59, %v5869_v27  ;;  %v5890_v48 = vsel %vm484_vm3, %v13333_v38, %v5868_v54 }
 0xc56   : > { %6117 = vrot.lane.b32.xlu2 %v6106_v51, %s10418_s15  ;;  %v13457_v24 = vpop.permute.xlu0 %6041  ;;  %v5926_v51 = vpack.c.b16 %v5911_v17, %v5910_v62  ;;  %v6038_v25 = vpop.permute.xlu1 %6037  ;;  %v5913_v58 = vunpack.c.l.b16 %v5893_v33  ;;  %v5912_v41 = vunpack.c.l.b16 %v5890_v48  ;;  %v5922_v30 = vunpack.c.h.b16 %v5893_v33 }
 0xc57   : > { %v13465_v19 = vsel %vm484_vm3, %v13373_v42, %v13457_v24  ;;  %v5687_v42 = vsel %vm358_vm0, %v13389_v47, %v13397_v36  ;;  %v5730_v47 = vunpack.c.l.b16 %v5706_v49  ;;  %v5923_v36 = vunpack.c.h.b16 %v5896_v32 }
 0xc58   : > { %v6095_v26 = vunpack.c.l.b16 %v13465_v19  ;;  %v5709_v34 = vsel %vm484_vm3, %v13333_v38, %v5687_v42  ;;  %v5921_v57 = vunpack.c.h.b16 %v5890_v48  ;;  %v6048_v50 = vsel %vm358_vm0, %v13449_v37, %v6038_v25 }
 0xc59   : > { %v5731_v43 = vunpack.c.l.b16 %v5709_v34  ;;  %v5933_v12 = vpack.c.b16 %v5923_v36, %v5923_v36  ;;  %v5745_v39 = vpack.c.b16 %v5730_v47, %v5729_v45  ;;  %v5740_v46 = vunpack.c.h.b16 %v5709_v34 }
 0xc5a   : > { %v6109_v13 = vpack.c.b16 %v6095_v26, %v6095_v26  ;;  %v5927_v32 = vpack.c.b16 %v5913_v58, %v5912_v41  ;;  %v5931_v63 = vpack.c.b16 %v5920_v53, %v5919_v29  ;;  %v6068_v10 = vsel %vm484_vm3, %v13318_v15, %v6048_v50 }
 0xc5b   : > { %v5746_v28 = vpack.c.b16 %v5732_v18, %v5731_v43  ;;  %v5751_v2 = vpack.c.b16 %v5741_v6, %v5740_v46  ;;  %v5932_v22 = vpack.c.b16 %v5922_v30, %v5921_v57  ;;  %v6101_v21 = vunpack.c.h.b16 %v6068_v10  ;;  %v5754_v34 = vpop.permute.xlu2 %5753 }
 0xc5c   : > { %v6104_v45 = vunpack.c.h.b16 %v13465_v19  ;;  %v13566_v14 = vpack.c.b16 %v6196_v7, %v6196_v7  ;;  %v5773_v48 = vrot.slane %v5754_v34, 4 }
 0xc5d   : > { %5946 = vrot.lane.b32.xlu0 %v5930_v44, %s10417_s14  ;;  %6127 = vrot.lane.b32.xlu1 %v6111_v1, %s10418_s15  ;;  %v6049_v44 = vsel %vm358_vm0, %v6038_v25, %v6040_v3  ;;  %v6050_v1 = vsel %vm358_vm0, %v6040_v3, %v13457_v24 }
 0xc5e   : > { %5771 = vrot.lane.b32.xlu2 %v5752_v61, %s10416_s13  ;;  %v6047_v61 = vsel %vm358_vm0, %v13440_v9, %v13449_v37  ;;  %v6071_v26 = vsel %vm484_vm3, %v13333_v38, %v6049_v44  ;;  %v6074_v16 = vsel %vm484_vm3, %v13331_v59, %v6050_v1  ;;  %v6092_v9 = vunpack.c.l.b16 %v6068_v10 }
 0xc5f   : > { %v6065_v24 = vsel %vm484_vm3, %v13320_v52, %v6047_v61  ;;  %v6093_v37 = vunpack.c.l.b16 %v6071_v26  ;;  %v6094_v42 = vunpack.c.l.b16 %v6074_v16  ;;  %v6102_v20 = vunpack.c.h.b16 %v6071_v26 }
 0xc60   : > { %v6103_v47 = vunpack.c.h.b16 %v6074_v16  ;;  %v6114_v36 = vpack.c.b16 %v6104_v45, %v6104_v45 }
 0xc61   : > { %v6108_v31 = vpack.c.b16 %v6094_v42, %v6093_v37 }
 0xc62   : > { %v6113_v43 = vpack.c.b16 %v6103_v47, %v6102_v20 }
 0xc65   : > { %5761 = vrot.lane.b32.xlu0 %v5747_v23, %s10416_s13  ;;  %5942 = vrot.lane.b32.xlu1 %v5928_v40, %s10417_s14  ;;  %v6091_v23 = vunpack.c.l.b16 %v6065_v24  ;;  %v6100_v40 = vunpack.c.h.b16 %v6065_v24 }
 0xc66   : > { %6123 = vrot.lane.b32.xlu2 %v6109_v13, %s10418_s15 }
 0xc67   : > { %v6107_v49 = vpack.c.b16 %v6092_v9, %v6091_v23  ;;  %v6112_v13 = vpack.c.b16 %v6101_v21, %v6100_v40  ;;  %v5764_v35 = vpop.permute.xlu1 %5763 }
 0xc6d   : > { %5952 = vrot.lane.b32.xlu0 %v5933_v12, %s10417_s14  ;;  %5757 = vrot.lane.b32.xlu1 %v5745_v39, %s10416_s13  ;;  %v5778_v12 = vrot.slane %v5764_v35, 4 }
 0xc6e   : > { %5759 = vrot.lane.b32.xlu2 %v5746_v28, %s10416_s13 }
 0xc75   : > { %5767 = vrot.lane.b32.xlu0 %v5750_v11, %s10416_s13  ;;  %5769 = vrot.lane.b32.xlu1 %v5751_v2, %s10416_s13 }
 0xc76   : > { %5938 = vrot.lane.b32.xlu2 %v5926_v51, %s10417_s14 }
 0xc7d   : > { %5940 = vrot.lane.b32.xlu0 %v5927_v32, %s10417_s14  ;;  %5948 = vrot.lane.b32.xlu1 %v5931_v63, %s10417_s14 }
 0xc7e   : > { %5950 = vrot.lane.b32.xlu2 %v5932_v22, %s10417_s14 }
 0xc85   : > { %6119 = vrot.lane.b32.xlu0 %v6107_v49, %s10418_s15  ;;  %6121 = vrot.lane.b32.xlu1 %v6108_v31, %s10418_s15 }
 0xc86   : > { %6129 = vrot.lane.b32.xlu2 %v6112_v13, %s10418_s15 }
 0xc8d   : > { %6131 = vrot.lane.b32.xlu0 %v6113_v43, %s10418_s15  ;;  %6133 = vrot.lane.b32.xlu1 %v6114_v36, %s10418_s15 }
 0xc8e   : > { %6206 = vrot.lane.b32.xlu2 %v13296_v5, %s10400_s30 }
 0xc8f   : > { %v5945_v18 = vpop.permute.xlu2 %5944 }
 0xc90   : > { %v5959_v61 = vrot.slane %v5945_v18, 4 }
 0xc95   : > { %6208 = vrot.lane.b32.xlu0 %v13294_v0, %s10400_s30  ;;  %6210 = vrot.lane.b32.xlu1 %v13306_v8, %s10400_s30 }
 0xc96   : > { %6212 = vrot.lane.b32.xlu2 %v13308_v56, %s10400_s30 }
 0xc97   : > { %v13553_v19 = vpop.permute.xlu2 %5765 }
 0xc98   : > { %v5779_v39 = vrot.slane %v13553_v19, 4 }
 0xc9a   : > { %v5792_v60 = vsel %vm484_vm3, %v5778_v12, %v5779_v39 }
 0xc9b   : > { %v5793_v28 = vsel %vm5784_vm12, %v5764_v35, %v5792_v60 }
 0xc9c   : > { %5812 = vst [vmem:[#allocation3 + $0x20] sm:$0xff] %v5793_v28 }
 0xc9d   : > { %6214 = vrot.lane.b32.xlu0 %v13320_v52, %s10400_s30  ;;  %6216 = vrot.lane.b32.xlu1 %v13318_v15, %s10400_s30 }
 0xc9e   : > { %6218 = vrot.lane.b32.xlu2 %v13333_v38, %s10400_s30 }
 0xca5   : > { %6220 = vrot.lane.b32.xlu0 %v13331_v59, %s10400_s30  ;;  %6222 = vrot.lane.b32.xlu1 %v13566_v14, %s10400_s30 }
 0xca7   : > { %v5935_v6 = vpop.permute.xlu0 %5934 }
 0xca8   : > { %v5954_v58 = vrot.slane %v5935_v6, 4 }
 0xcb0   : > { %v13572_v46 = vpop.permute.xlu2 %6117 }
 0xcb1   : > { %v6136_v54 = vrot.slane %v13572_v46, 4 }
 0xcb8   : > { %v13574_v55 = vpop.permute.xlu2 %5771 }
 0xcbf   : > { %v6126_v17 = vpop.permute.xlu0 %6125  ;;  %v6116_v27 = vpop.permute.xlu1 %6115 }
 0xcc0   : > { %v6135_v62 = vrot.slane %v6116_v27, 4  ;;  %v13577_v11 = vpop.permute.xlu2 %6123  ;;  %v6140_v32 = vrot.slane %v6126_v17, 4 }
 0xcc2   : > { %v6145_v2 = vsel %vm484_vm3, %v6135_v62, %v6136_v54 }
 0xcc3   : > { %v6147_v33 = vsel %vm6146_vm1, %v6116_v27, %v6145_v2 }
 0xcc4   : > { %6170 = vst [vmem:[#allocation3 + $0x80] sm:$0xff] %v6147_v33 }
 0xcc7   : > { %v5756_v51 = vpop.permute.xlu0 %5755  ;;  %v5937_v25 = vpop.permute.xlu1 %5936 }
 0xcc8   : > { %v5774_v41 = vrot.slane %v5756_v51, 4  ;;  %v5955_v53 = vrot.slane %v5937_v25, 4  ;;  %v5760_v30 = vpop.permute.xlu2 %5759 }
 0xcc9   : > { %v5776_v49 = vrot.slane %v5760_v30, 4 }
 0xcca   : > { %v5783_v57 = vsel %vm484_vm3, %v5773_v48, %v5774_v41  ;;  %v5964_v3 = vsel %vm484_vm3, %v5954_v58, %v5955_v53  ;;  %v5782_v48 = vrot.slane %v13574_v55, 4 }
 0xccb   : > { %v5785_v29 = vsel %vm5784_vm12, %v5754_v34, %v5783_v57  ;;  %v5966_v50 = vsel %vm5965_vm15, %v5935_v6, %v5964_v3 }
 0xccc   : > { %5808 = vst [vmem:[#allocation3] sm:$0xff] %v5785_v29 }
 0xccd   : > { %5989 = vst [vmem:[#allocation3 + $0x40] sm:$0xff] %v5966_v50 }
 0xccf   : > { %v13587_v44 = vpop.permute.xlu0 %5946  ;;  %v6128_v1 = vpop.permute.xlu1 %6127 }
 0xcd0   : > { %v5960_v63 = vrot.slane %v13587_v44, 4  ;;  %v6141_v10 = vrot.slane %v6128_v1, 4  ;;  %v5939_v26 = vpop.permute.xlu2 %5938 }
 0xcd1   : > { %v5956_v16 = vrot.slane %v5939_v26, 4 }
 0xcd2   : > { %v5973_v22 = vsel %vm484_vm3, %v5959_v61, %v5960_v63  ;;  %v6154_v24 = vsel %vm484_vm3, %v6140_v32, %v6141_v10 }
 0xcd3   : > { %v5974_v9 = vsel %vm5965_vm15, %v5945_v18, %v5973_v22  ;;  %v6155_v37 = vsel %vm6146_vm1, %v6126_v17, %v6154_v24  ;;  %v5967_v42 = vsel %vm484_vm3, %v5955_v53, %v5956_v16 }
 0xcd4   : > { %5993 = vst [vmem:[#allocation3 + $0x60] sm:$0xff] %v5974_v9  ;;  %v5968_v21 = vsel %vm5965_vm15, %v5937_v25, %v5967_v42 }
 0xcd5   : > { %6174 = vst [vmem:[#allocation3 + $0xa0] sm:$0xff] %v6155_v37 }
 0xcd6   : > { %5990 = vst [vmem:[#allocation3 + $0x48] sm:$0xff] %v5968_v21  ;;  %v6139_v21 = vrot.slane %v13577_v11, 4 }
 0xcd7   : > { %v5762_v23 = vpop.permute.xlu0 %5761  ;;  %v5943_v40 = vpop.permute.xlu1 %5942 }
 0xcd8   : > { %v5777_v31 = vrot.slane %v5762_v23, 4  ;;  %v5951_v13 = vpop.permute.xlu2 %5950  ;;  %v5958_v50 = vrot.slane %v5943_v40, 4 }
 0xcd9   : > { %v5962_v36 = vrot.slane %v5951_v13, 4 }
 0xcda   : > { %v5790_v34 = vsel %vm484_vm3, %v5776_v49, %v5777_v31 }
 0xcdb   : > { %v5791_v20 = vsel %vm5784_vm12, %v5760_v30, %v5790_v34 }
 0xcdc   : > { %5811 = vst [vmem:[#allocation3 + $0x18] sm:$0xff] %v5791_v20 }
 0xcdf   : > { %v5953_v47 = vpop.permute.xlu0 %5952  ;;  %v5758_v45 = vpop.permute.xlu1 %5757 }
 0xce0   : > { %v5963_v43 = vrot.slane %v5953_v47, 4  ;;  %v5775_v18 = vrot.slane %v5758_v45, 4  ;;  %v13598_v35 = vpop.permute.xlu2 %6129 }
 0xce1   : > { %v6142_v12 = vrot.slane %v13598_v35, 4 }
 0xce2   : > { %v5979_v60 = vsel %vm484_vm3, %v5962_v36, %v5963_v43  ;;  %v5786_v28 = vsel %vm484_vm3, %v5774_v41, %v5775_v18  ;;  %v5788_v4 = vsel %vm484_vm3, %v5775_v18, %v5776_v49 }
 0xce3   : > { %v5980_v7 = vsel %vm5965_vm15, %v5951_v13, %v5979_v60  ;;  %v5787_v6 = vsel %vm5784_vm12, %v5756_v51, %v5786_v28  ;;  %v5789_v17 = vsel %vm5784_vm12, %v5758_v45, %v5788_v4  ;;  %v6156_v27 = vsel %vm484_vm3, %v6141_v10, %v6142_v12 }
 0xce4   : > { %5996 = vst [vmem:[#allocation3 + $0x78] sm:$0xff] %v5980_v7  ;;  %v6157_v62 = vsel %vm6146_vm1, %v6128_v1, %v6156_v27 }
 0xce5   : > { %5809 = vst [vmem:[#allocation3 + $0x8] sm:$0xff] %v5787_v6 }
 0xce6   : > { %5810 = vst [vmem:[#allocation3 + $0x10] sm:$0xff] %v5789_v17 }
 0xce7   : > { %6175 = vst [vmem:[#allocation3 + $0xa8] sm:$0xff] %v6157_v62  ;;  %v5768_v2 = vpop.permute.xlu0 %5767  ;;  %v5770_v33 = vpop.permute.xlu1 %5769 }
 0xce8   : > { %v5780_v25 = vrot.slane %v5768_v2, 4  ;;  %v5781_v58 = vrot.slane %v5770_v33, 4  ;;  %v6207_v40 = vpop.permute.xlu2 %6206 }
 0xcea   : > { %v5794_v51 = vsel %vm484_vm3, %v5779_v39, %v5780_v25  ;;  %v5796_v41 = vsel %vm484_vm3, %v5780_v25, %v5781_v58  ;;  %v5798_v53 = vsel %vm484_vm3, %v5781_v58, %v5782_v48 }
 0xceb   : > { %v5795_v30 = vsel %vm5784_vm12, %v13553_v19, %v5794_v51  ;;  %v5797_v57 = vsel %vm5784_vm12, %v5768_v2, %v5796_v41  ;;  %v5799_v3 = vsel %vm5784_vm12, %v5770_v33, %v5798_v53 }
 0xcec   : > { %5813 = vst [vmem:[#allocation3 + $0x28] sm:$0xff] %v5795_v30 }
 0xced   : > { %5814 = vst [vmem:[#allocation3 + $0x30] sm:$0xff] %v5797_v57 }
 0xcee   : > { %5815 = vst [vmem:[#allocation3 + $0x38] sm:$0xff] %v5799_v3 }
 0xcef   : > { %v5941_v55 = vpop.permute.xlu0 %5940  ;;  %v5949_v29 = vpop.permute.xlu1 %5948 }
 0xcf0   : > { %v5957_v1 = vrot.slane %v5941_v55, 4  ;;  %v5961_v61 = vrot.slane %v5949_v29, 4  ;;  %v6213_v18 = vpop.permute.xlu2 %6212 }
 0xcf2   : > { %v5969_v39 = vsel %vm484_vm3, %v5956_v16, %v5957_v1  ;;  %v5971_v32 = vsel %vm484_vm3, %v5957_v1, %v5958_v50  ;;  %v5975_v10 = vsel %vm484_vm3, %v5960_v63, %v5961_v61  ;;  %v5977_v19 = vsel %vm484_vm3, %v5961_v61, %v5962_v36 }
 0xcf3   : > { %v5970_v22 = vsel %vm5965_vm15, %v5939_v26, %v5969_v39  ;;  %v5972_v24 = vsel %vm5965_vm15, %v5941_v55, %v5971_v32  ;;  %v5976_v9 = vsel %vm5965_vm15, %v13587_v44, %v5975_v10  ;;  %v5978_v37 = vsel %vm5965_vm15, %v5949_v29, %v5977_v19 }
 0xcf4   : > { %5991 = vst [vmem:[#allocation3 + $0x50] sm:$0xff] %v5970_v22 }
 0xcf5   : > { %5992 = vst [vmem:[#allocation3 + $0x58] sm:$0xff] %v5972_v24 }
 0xcf6   : > { %5994 = vst [vmem:[#allocation3 + $0x68] sm:$0xff] %v5976_v9 }
 0xcf7   : > { %5995 = vst [vmem:[#allocation3 + $0x70] sm:$0xff] %v5978_v37  ;;  %v6120_v16 = vpop.permute.xlu0 %6119  ;;  %v6122_v42 = vpop.permute.xlu1 %6121 }
 0xcf8   : > { %v6137_v63 = vrot.slane %v6120_v16, 4  ;;  %v6138_v23 = vrot.slane %v6122_v42, 4  ;;  %v6219_v2 = vpop.permute.xlu2 %6218 }
 0xcfa   : > { %v6148_v26 = vsel %vm484_vm3, %v6136_v54, %v6137_v63  ;;  %v6150_v49 = vsel %vm484_vm3, %v6137_v63, %v6138_v23  ;;  %v6152_v44 = vsel %vm484_vm3, %v6138_v23, %v6139_v21 }
 0xcfb   : > { %v6149_v31 = vsel %vm6146_vm1, %v13572_v46, %v6148_v26  ;;  %v6151_v13 = vsel %vm6146_vm1, %v6120_v16, %v6150_v49  ;;  %v6153_v34 = vsel %vm6146_vm1, %v6122_v42, %v6152_v44  ;;  %v6359_v49 = vld [vmem:[#allocation4] sm:$0xff] }
 0xcfc   : > { %6171 = vst [vmem:[#allocation3 + $0x88] sm:$0xff] %v6149_v31  ;;  %v6369_v31 = vunpack.c.l.b16 %v6359_v49 }
 0xcfd   : > { %6172 = vst [vmem:[#allocation3 + $0x90] sm:$0xff] %v6151_v13  ;;  %v6370_v13 = vunpack.c.h.b16 %v6359_v49 }
 0xcfe   : > { %6173 = vst [vmem:[#allocation3 + $0x98] sm:$0xff] %v6153_v34 }
 0xcff   : > { %v6132_v11 = vpop.permute.xlu0 %6131  ;;  %v6134_v20 = vpop.permute.xlu1 %6133 }
 0xd00   : > { %v6143_v47 = vrot.slane %v6132_v11, 4  ;;  %v6144_v45 = vrot.slane %v6134_v20, 4  ;;  %v13684_v20 = vpack.c.b16 %v6370_v13, %v6370_v13 }
 0xd02   : > { %v6158_v54 = vsel %vm484_vm3, %v6142_v12, %v6143_v47  ;;  %v6160_v36 = vsel %vm484_vm3, %v6143_v47, %v6144_v45  ;;  %v6360_v47 = vld [vmem:[#allocation4 + $0x8] sm:$0xff]  ;;  %v6361_v45 = vld [vmem:[#allocation4 + $0x10] sm:$0xff] }
 0xd03   : > { %v6159_v46 = vsel %vm6146_vm1, %v13598_v35, %v6158_v54  ;;  %v6161_v43 = vsel %vm6146_vm1, %v6132_v11, %v6160_v36  ;;  %v13682_v11 = vpack.c.b16 %v6369_v31, %v6369_v31  ;;  %v6371_v54 = vunpack.c.l.b16 %v6360_v47 }
 0xd04   : > { %6176 = vst [vmem:[#allocation3 + $0xb0] sm:$0xff] %v6159_v46  ;;  %v6372_v36 = vunpack.c.h.b16 %v6360_v47  ;;  %v6373_v46 = vunpack.c.l.b16 %v6361_v45 }
 0xd05   : > { %6177 = vst [vmem:[#allocation3 + $0xb8] sm:$0xff] %v6161_v43  ;;  %v13691_v43 = vpack.c.b16 %v6371_v54, %v6371_v54 }
 0xd07   : > { %v6209_v60 = vpop.permute.xlu0 %6208  ;;  %v6211_v28 = vpop.permute.xlu1 %6210 }
 0xd08   : > { %v6224_v4 = vsel %vm358_vm0, %v6207_v40, %v6209_v60  ;;  %v6225_v7 = vsel %vm358_vm0, %v6209_v60, %v6211_v28  ;;  %v6226_v35 = vsel %vm358_vm0, %v6211_v28, %v6213_v18  ;;  %v13695_v60 = vpack.c.b16 %v6373_v46, %v6373_v46  ;;  %v6362_v28 = vld [vmem:[#allocation4 + $0x18] sm:$0xff] }
 0xd09   : > { %v6234_v6 = vsel %vm484_vm3, %v13296_v5, %v6224_v4  ;;  %v6237_v12 = vsel %vm484_vm3, %v13294_v0, %v6225_v7  ;;  %v6240_v33 = vsel %vm484_vm3, %v13306_v8, %v6226_v35  ;;  %v6374_v4 = vunpack.c.h.b16 %v6361_v45  ;;  %v6363_v35 = vld [vmem:[#allocation4 + $0x20] sm:$0xf] }
 0xd0a   : > { %v6268_v17 = vunpack.c.l.b16 %v6234_v6  ;;  %v6269_v27 = vunpack.c.l.b16 %v6237_v12  ;;  %v6270_v30 = vunpack.c.l.b16 %v6240_v33  ;;  %v6277_v61 = vunpack.c.h.b16 %v6234_v6 }
 0xd0b   : > { %v6278_v39 = vunpack.c.h.b16 %v6237_v12  ;;  %v6279_v23 = vunpack.c.h.b16 %v6240_v33  ;;  %v6375_v7 = vunpack.c.l.b16 %v6362_v28  ;;  %v6376_v6 = vunpack.c.h.b16 %v6362_v28 }
 0xd0c   : > { %v6286_v62 = vpack.c.b16 %v6269_v27, %v6268_v17  ;;  %v13703_v12 = vpack.c.b16 %v6374_v4, %v6374_v4 }
 0xd0d   : > { %v6291_v16 = vpack.c.b16 %v6278_v39, %v6277_v61  ;;  %v13705_v17 = vpack.c.b16 %v6375_v7, %v6375_v7  ;;  %v13707_v27 = vpack.c.b16 %v6376_v6, %v6376_v6 }
 0xd0e   : > { %6296 = vrot.lane.b32.xlu2 %v6286_v62, %s10419_s16  ;;  %v6377_v62 = vunpack.c.l.b16 %v6363_v35 }
 0xd0f   : > { %v6215_v48 = vpop.permute.xlu0 %6214  ;;  %v6217_v25 = vpop.permute.xlu1 %6216 }
 0xd10   : > { %v6227_v58 = vsel %vm358_vm0, %v6213_v18, %v6215_v48  ;;  %v6228_v5 = vsel %vm358_vm0, %v6215_v48, %v6217_v25  ;;  %v6229_v0 = vsel %vm358_vm0, %v6217_v25, %v6219_v2  ;;  %v13693_v18 = vpack.c.b16 %v6372_v36, %v6372_v36 }
 0xd11   : > { %v6243_v51 = vsel %vm484_vm3, %v13308_v56, %v6227_v58  ;;  %v6246_v41 = vsel %vm484_vm3, %v13320_v52, %v6228_v5  ;;  %v6249_v53 = vsel %vm484_vm3, %v13318_v15, %v6229_v0 }
 0xd12   : > { %v6271_v57 = vunpack.c.l.b16 %v6243_v51  ;;  %v6272_v8 = vunpack.c.l.b16 %v6246_v41  ;;  %v6273_v3 = vunpack.c.l.b16 %v6249_v53  ;;  %v6281_v42 = vunpack.c.h.b16 %v6246_v41 }
 0xd13   : > { %v6282_v21 = vunpack.c.h.b16 %v6249_v53 }
 0xd14   : > { %v6287_v55 = vpack.c.b16 %v6271_v57, %v6270_v30  ;;  %v6288_v29 = vpack.c.b16 %v6273_v3, %v6272_v8 }
 0xd16   : > { %6298 = vrot.lane.b32.xlu0 %v6287_v55, %s10419_s16  ;;  %6300 = vrot.lane.b32.xlu1 %v6288_v29, %s10419_s16 }
 0xd17   : > { %v6221_v50 = vpop.permute.xlu0 %6220  ;;  %v6223_v1 = vpop.permute.xlu1 %6222 }
 0xd18   : > { %v6230_v56 = vsel %vm358_vm0, %v6219_v2, %v6221_v50  ;;  %v6231_v52 = vsel %vm358_vm0, %v6221_v50, %v6223_v1  ;;  %v6258_v15 = vsel %vm484_vm3, %v13566_v14, %v6223_v1  ;;  %v6280_v14 = vunpack.c.h.b16 %v6243_v51 }
 0xd19   : > { %v6252_v32 = vsel %vm484_vm3, %v13333_v38, %v6230_v56  ;;  %v6255_v10 = vsel %vm484_vm3, %v13331_v59, %v6231_v52  ;;  %v6276_v19 = vunpack.c.l.b16 %v6258_v15  ;;  %v6293_v59 = vpack.c.b16 %v6282_v21, %v6281_v42 }
 0xd1a   : > { %v6274_v22 = vunpack.c.l.b16 %v6252_v32  ;;  %v6275_v24 = vunpack.c.l.b16 %v6255_v10  ;;  %v6283_v63 = vunpack.c.h.b16 %v6252_v32  ;;  %v6284_v38 = vunpack.c.h.b16 %v6255_v10 }
 0xd1b   : > { %v6290_v9 = vpack.c.b16 %v6276_v19, %v6276_v19  ;;  %v6292_v40 = vpack.c.b16 %v6280_v14, %v6279_v23  ;;  %v6285_v44 = vunpack.c.h.b16 %v6258_v15  ;;  %v13715_v2 = vpack.c.b16 %v6377_v62, %v6377_v62 }
 0xd1c   : > { %v6289_v37 = vpack.c.b16 %v6275_v24, %v6274_v22  ;;  %v6294_v26 = vpack.c.b16 %v6284_v38, %v6283_v63 }
 0xd1d   : > { %v6295_v34 = vpack.c.b16 %v6285_v44, %v6285_v44 }
 0xd1e   : > { %6304 = vrot.lane.b32.xlu0 %v6290_v9, %s10419_s16  ;;  %6302 = vrot.lane.b32.xlu2 %v6289_v37, %s10419_s16 }
 0xd1f   : > { %6306 = vrot.lane.b32.xlu1 %v6291_v16, %s10419_s16 }
 0xd26   : > { %6308 = vrot.lane.b32.xlu2 %v6292_v40, %s10419_s16  ;;  %6310 = vrot.lane.b32.xlu0 %v6293_v59, %s10419_s16 }
 0xd27   : > { %6312 = vrot.lane.b32.xlu1 %v6294_v26, %s10419_s16 }
 0xd2e   : > { %6314 = vrot.lane.b32.xlu2 %v6295_v34, %s10419_s16  ;;  %6387 = vrot.lane.b32.xlu0 %v13682_v11, %s10404_s11 }
 0xd2f   : > { %6389 = vrot.lane.b32.xlu1 %v13684_v20, %s10404_s11 }
 0xd36   : > { %6391 = vrot.lane.b32.xlu2 %v13691_v43, %s10404_s11  ;;  %6393 = vrot.lane.b32.xlu0 %v13693_v18, %s10404_s11 }
 0xd37   : > { %6395 = vrot.lane.b32.xlu1 %v13695_v60, %s10404_s11 }
 0xd3e   : > { %6397 = vrot.lane.b32.xlu2 %v13703_v12, %s10404_s11  ;;  %6399 = vrot.lane.b32.xlu0 %v13705_v17, %s10404_s11 }
 0xd3f   : > { %6401 = vrot.lane.b32.xlu1 %v13707_v27, %s10404_s11 }
 0xd46   : > { %6403 = vrot.lane.b32.xlu2 %v13715_v2, %s10404_s11  ;;  %s10420_s11 = smov 89  }
 0xd68   : > { %v6297_v33 = vpop.permute.xlu2 %6296 }
 0xd69   : > { %v6316_v0 = vrot.slane %v6297_v33, 4 }
 0xd78   : > { %v6303_v48 = vpop.permute.xlu2 %6302 }
 0xd79   : > { %v6319_v51 = vrot.slane %v6303_v48, 4 }
 0xd80   : > { %v6309_v25 = vpop.permute.xlu2 %6308 }
 0xd81   : > { %v6322_v52 = vrot.slane %v6309_v25, 4 }
 0xd88   : > { %v6299_v58 = vpop.permute.xlu0 %6298  ;;  %v6301_v5 = vpop.permute.xlu1 %6300 }
 0xd89   : > { %v6317_v41 = vrot.slane %v6299_v58, 4  ;;  %v6318_v53 = vrot.slane %v6301_v5, 4  ;;  %v6315_v50 = vpop.permute.xlu2 %6314 }
 0xd8a   : > { %v6325_v16 = vrot.slane %v6315_v50, 4 }
 0xd8b   : > { %v6326_v30 = vsel %vm484_vm3, %v6316_v0, %v6317_v41  ;;  %v6329_v57 = vsel %vm484_vm3, %v6317_v41, %v6318_v53  ;;  %v6331_v8 = vsel %vm484_vm3, %v6318_v53, %v6319_v51 }
 0xd8c   : > { %v6328_v3 = vsel %vm6327_vm13, %v6297_v33, %v6326_v30  ;;  %v6330_v55 = vsel %vm6327_vm13, %v6299_v58, %v6329_v57  ;;  %v6332_v29 = vsel %vm6327_vm13, %v6301_v5, %v6331_v8 }
 0xd8d   : > { %6351 = vst [vmem:[#allocation3 + $0xc0] sm:$0xff] %v6328_v3 }
 0xd8e   : > { %6352 = vst [vmem:[#allocation3 + $0xc8] sm:$0xff] %v6330_v55 }
 0xd8f   : > { %6353 = vst [vmem:[#allocation3 + $0xd0] sm:$0xff] %v6332_v29 }
 0xd90   : > { %v6305_v1 = vpop.permute.xlu0 %6304 }
 0xd91   : > { %v6320_v61 = vrot.slane %v6305_v1, 4  ;;  %v6307_v56 = vpop.permute.xlu1 %6306  ;;  %v6392_v22 = vpop.permute.xlu2 %6391 }
 0xd92   : > { %v6321_v15 = vrot.slane %v6307_v56, 4 }
 0xd93   : > { %v6333_v39 = vsel %vm484_vm3, %v6319_v51, %v6320_v61 }
 0xd94   : > { %v6334_v32 = vsel %vm6327_vm13, %v6303_v48, %v6333_v39  ;;  %v6335_v10 = vsel %vm484_vm3, %v6321_v15, %v6322_v52 }
 0xd95   : > { %6354 = vst [vmem:[#allocation3 + $0xd8] sm:$0xff] %v6334_v32  ;;  %v6336_v19 = vsel %vm6327_vm13, %v6307_v56, %v6335_v10 }
 0xd96   : > { %6355 = vst [vmem:[#allocation3 + $0xe0] sm:$0xff] %v6336_v19 }
 0xd98   : > { %v6311_v24 = vpop.permute.xlu0 %6310 }
 0xd99   : > { %v6323_v9 = vrot.slane %v6311_v24, 4  ;;  %v6313_v37 = vpop.permute.xlu1 %6312  ;;  %v6398_v49 = vpop.permute.xlu2 %6397 }
 0xd9a   : > { %v6324_v14 = vrot.slane %v6313_v37, 4 }
 0xd9b   : > { %v6337_v42 = vsel %vm484_vm3, %v6322_v52, %v6323_v9 }
 0xd9c   : > { %v6338_v21 = vsel %vm6327_vm13, %v6309_v25, %v6337_v42  ;;  %v6339_v63 = vsel %vm484_vm3, %v6323_v9, %v6324_v14  ;;  %v6341_v38 = vsel %vm484_vm3, %v6324_v14, %v6325_v16 }
 0xd9d   : > { %6356 = vst [vmem:[#allocation3 + $0xe8] sm:$0xff] %v6338_v21  ;;  %v6340_v23 = vsel %vm6327_vm13, %v6311_v24, %v6339_v63  ;;  %v6342_v40 = vsel %vm6327_vm13, %v6313_v37, %v6341_v38  ;;  %v6544_v38 = vld [vmem:[#allocation4 + $0x20] sm:$0xf] }
 0xd9e   : > { %6357 = vst [vmem:[#allocation3 + $0xf0] sm:$0xff] %v6340_v23  ;;  %v6558_v23 = vunpack.c.l.b16 %v6544_v38 }
 0xd9f   : > { %6358 = vst [vmem:[#allocation3 + $0xf8] sm:$0xff] %v6342_v40 }
 0xda0   : > { %v6388_v59 = vpop.permute.xlu0 %6387  ;;  %v13785_v40 = vpack.c.b16 %v6558_v23, %v6558_v23 }
 0xda1   : > { %v6390_v26 = vpop.permute.xlu1 %6389  ;;  %v6404_v62 = vpop.permute.xlu2 %6403 }
 0xda2   : > { %v6405_v44 = vsel %vm948_vm7, %v6388_v59, %v6390_v26  ;;  %v6406_v31 = vsel %vm948_vm7, %v6390_v26, %v6392_v22  ;;  %v6439_v58 = vsel %vm484_vm3, %v13715_v2, %v6404_v62 }
 0xda3   : > { %v6415_v13 = vsel %vm484_vm3, %v13682_v11, %v6405_v44  ;;  %v6418_v34 = vsel %vm484_vm3, %v13684_v20, %v6406_v31  ;;  %v6457_v53 = vunpack.c.l.b16 %v6439_v58  ;;  %v6466_v42 = vunpack.c.h.b16 %v6439_v58 }
 0xda4   : > { %v6449_v47 = vunpack.c.l.b16 %v6415_v13  ;;  %v6450_v45 = vunpack.c.l.b16 %v6418_v34  ;;  %v6458_v15 = vunpack.c.h.b16 %v6415_v13  ;;  %v6459_v39 = vunpack.c.h.b16 %v6418_v34 }
 0xda5   : > { %v6471_v56 = vpack.c.b16 %v6457_v53, %v6457_v53  ;;  %v6476_v63 = vpack.c.b16 %v6466_v42, %v6466_v42 }
 0xda6   : > { %v6467_v54 = vpack.c.b16 %v6450_v45, %v6449_v47  ;;  %v6472_v24 = vpack.c.b16 %v6459_v39, %v6458_v15 }
 0xda8   : > { %6477 = vrot.lane.b32.xlu0 %v6467_v54, %s10420_s11  ;;  %v6394_v36 = vpop.permute.xlu0 %6393 }
 0xda9   : > { %v6407_v46 = vsel %vm948_vm7, %v6392_v22, %v6394_v36  ;;  %v6396_v28 = vpop.permute.xlu1 %6395 }
 0xdaa   : > { %v6421_v4 = vsel %vm484_vm3, %v13691_v43, %v6407_v46  ;;  %v6408_v7 = vsel %vm948_vm7, %v6394_v36, %v6396_v28  ;;  %v6409_v48 = vsel %vm948_vm7, %v6396_v28, %v6398_v49 }
 0xdab   : > { %v6451_v6 = vunpack.c.l.b16 %v6421_v4  ;;  %v6424_v35 = vsel %vm484_vm3, %v13693_v18, %v6408_v7  ;;  %v6427_v5 = vsel %vm484_vm3, %v13695_v60, %v6409_v48  ;;  %v6460_v32 = vunpack.c.h.b16 %v6421_v4 }
 0xdac   : > { %v6452_v33 = vunpack.c.l.b16 %v6424_v35  ;;  %v6453_v3 = vunpack.c.l.b16 %v6427_v5  ;;  %v6461_v10 = vunpack.c.h.b16 %v6424_v35  ;;  %v6462_v22 = vunpack.c.h.b16 %v6427_v5 }
 0xdae   : > { %v6468_v25 = vpack.c.b16 %v6452_v33, %v6451_v6  ;;  %v6473_v37 = vpack.c.b16 %v6461_v10, %v6460_v32 }
 0xdb0   : > { %6479 = vrot.lane.b32.xlu1 %v6468_v25, %s10420_s11  ;;  %v6400_v0 = vpop.permute.xlu0 %6399 }
 0xdb1   : > { %v6410_v51 = vsel %vm948_vm7, %v6398_v49, %v6400_v0  ;;  %v6402_v41 = vpop.permute.xlu1 %6401 }
 0xdb2   : > { %v6430_v30 = vsel %vm484_vm3, %v13703_v12, %v6410_v51  ;;  %v6411_v57 = vsel %vm948_vm7, %v6400_v0, %v6402_v41  ;;  %v6412_v8 = vsel %vm948_vm7, %v6402_v41, %v6404_v62  ;;  %vm6508_vm7 = vcmask 728064  }
 0xdb3   : > { %v6454_v55 = vunpack.c.l.b16 %v6430_v30  ;;  %v6433_v2 = vsel %vm484_vm3, %v13705_v17, %v6411_v57  ;;  %v6436_v29 = vsel %vm484_vm3, %v13707_v27, %v6412_v8  ;;  %v6463_v19 = vunpack.c.h.b16 %v6430_v30 }
 0xdb4   : > { %v6455_v50 = vunpack.c.l.b16 %v6433_v2  ;;  %v6456_v1 = vunpack.c.l.b16 %v6436_v29  ;;  %v6464_v16 = vunpack.c.h.b16 %v6433_v2  ;;  %v6465_v14 = vunpack.c.h.b16 %v6436_v29 }
 0xdb5   : > { %v6469_v61 = vpack.c.b16 %v6454_v55, %v6453_v3  ;;  %v6474_v9 = vpack.c.b16 %v6463_v19, %v6462_v22 }
 0xdb6   : > { %v6470_v52 = vpack.c.b16 %v6456_v1, %v6455_v50  ;;  %v6475_v21 = vpack.c.b16 %v6465_v14, %v6464_v16 }
 0xdb7   : > { %6481 = vrot.lane.b32.xlu2 %v6469_v61, %s10420_s11 }
 0xdb8   : > { %6485 = vrot.lane.b32.xlu1 %v6471_v56, %s10420_s11  ;;  %6483 = vrot.lane.b32.xlu0 %v6470_v52, %s10420_s11 }
 0xdbf   : > { %6487 = vrot.lane.b32.xlu2 %v6472_v24, %s10420_s11 }
 0xdc0   : > { %6491 = vrot.lane.b32.xlu1 %v6474_v9, %s10420_s11  ;;  %6489 = vrot.lane.b32.xlu0 %v6473_v37, %s10420_s11 }
 0xdc7   : > { %6493 = vrot.lane.b32.xlu2 %v6475_v21, %s10420_s11 }
 0xdc8   : > { %6568 = vrot.lane.b32.xlu1 %v13682_v11, %s10400_s30  ;;  %6495 = vrot.lane.b32.xlu0 %v6476_v63, %s10420_s11 }
 0xdcf   : > { %6570 = vrot.lane.b32.xlu2 %v13684_v20, %s10400_s30 }
 0xdd0   : > { %6574 = vrot.lane.b32.xlu1 %v13693_v18, %s10400_s30  ;;  %6572 = vrot.lane.b32.xlu0 %v13691_v43, %s10400_s30 }
 0xdd7   : > { %6576 = vrot.lane.b32.xlu2 %v13695_v60, %s10400_s30 }
 0xdd8   : > { %6580 = vrot.lane.b32.xlu1 %v13705_v17, %s10400_s30  ;;  %6578 = vrot.lane.b32.xlu0 %v13703_v12, %s10400_s30 }
 0xddf   : > { %6582 = vrot.lane.b32.xlu2 %v13707_v27, %s10400_s30 }
 0xde0   : > { %6584 = vrot.lane.b32.xlu0 %v13785_v40, %s10400_s30 }
 0xe11   : > { %v6482_v59 = vpop.permute.xlu2 %6481 }
 0xe12   : > { %v6499_v44 = vrot.slane %v6482_v59, 4 }
 0xe19   : > { %v6488_v13 = vpop.permute.xlu2 %6487 }
 0xe1a   : > { %v6478_v26 = vpop.permute.xlu0 %6477  ;;  %v6502_v5 = vrot.slane %v6488_v13, 4 }
 0xe1b   : > { %v6497_v31 = vrot.slane %v6478_v26, 4 }
 0xe21   : > { %v6494_v6 = vpop.permute.xlu2 %6493 }
 0xe22   : > { %v6480_v49 = vpop.permute.xlu1 %6479  ;;  %v6505_v0 = vrot.slane %v6494_v6, 4 }
 0xe23   : > { %v6498_v34 = vrot.slane %v6480_v49, 4 }
 0xe25   : > { %v6507_v47 = vsel %vm484_vm3, %v6497_v31, %v6498_v34  ;;  %v6510_v45 = vsel %vm484_vm3, %v6498_v34, %v6499_v44 }
 0xe26   : > { %v6509_v54 = vsel %vm6508_vm7, %v6478_v26, %v6507_v47  ;;  %v6511_v36 = vsel %vm6508_vm7, %v6480_v49, %v6510_v45 }
 0xe27   : > { %6532 = vst [vmem:[#allocation3 + $0x100] sm:$0xff] %v6509_v54 }
 0xe28   : > { %6533 = vst [vmem:[#allocation3 + $0x108] sm:$0xff] %v6511_v36 }
 0xe29   : > { %v6571_v2 = vpop.permute.xlu2 %6570 }
 0xe2a   : > { %v6486_v46 = vpop.permute.xlu1 %6485  ;;  %v6484_v28 = vpop.permute.xlu0 %6483 }
 0xe2b   : > { %v6501_v4 = vrot.slane %v6486_v46, 4  ;;  %v6500_v7 = vrot.slane %v6484_v28, 4 }
 0xe2d   : > { %v6512_v35 = vsel %vm484_vm3, %v6499_v44, %v6500_v7  ;;  %v6514_v62 = vsel %vm484_vm3, %v6500_v7, %v6501_v4 }
 0xe2e   : > { %v6513_v33 = vsel %vm6508_vm7, %v6482_v59, %v6512_v35  ;;  %v6515_v48 = vsel %vm6508_vm7, %v6484_v28, %v6514_v62 }
 0xe2f   : > { %6534 = vst [vmem:[#allocation3 + $0x110] sm:$0xff] %v6513_v33 }
 0xe30   : > { %6535 = vst [vmem:[#allocation3 + $0x118] sm:$0xff] %v6515_v48 }
 0xe31   : > { %v6577_v15 = vpop.permute.xlu2 %6576 }
 0xe32   : > { %v6492_v25 = vpop.permute.xlu1 %6491  ;;  %v6490_v58 = vpop.permute.xlu0 %6489 }
 0xe33   : > { %v6504_v51 = vrot.slane %v6492_v25, 4  ;;  %v6503_v41 = vrot.slane %v6490_v58, 4 }
 0xe35   : > { %v6520_v53 = vsel %vm484_vm3, %v6504_v51, %v6505_v0  ;;  %v6516_v30 = vsel %vm484_vm3, %v6502_v5, %v6503_v41  ;;  %v6518_v57 = vsel %vm484_vm3, %v6503_v41, %v6504_v51 }
 0xe36   : > { %v6521_v8 = vsel %vm6508_vm7, %v6492_v25, %v6520_v53  ;;  %v6517_v3 = vsel %vm6508_vm7, %v6488_v13, %v6516_v30  ;;  %v6519_v55 = vsel %vm6508_vm7, %v6490_v58, %v6518_v57 }
 0xe37   : > { %6538 = vst [vmem:[#allocation3 + $0x130] sm:$0xff] %v6521_v8 }
 0xe38   : > { %6536 = vst [vmem:[#allocation3 + $0x120] sm:$0xff] %v6517_v3 }
 0xe39   : > { %6537 = vst [vmem:[#allocation3 + $0x128] sm:$0xff] %v6519_v55  ;;  %v6583_v45 = vpop.permute.xlu2 %6582 }
 0xe3a   : > { %v6569_v29 = vpop.permute.xlu1 %6568  ;;  %v6496_v50 = vpop.permute.xlu0 %6495 }
 0xe3b   : > { %v6506_v1 = vrot.slane %v6496_v50, 4  ;;  %v6586_v52 = vsel %vm358_vm0, %v6569_v29, %v6571_v2 }
 0xe3c   : > { %v6596_v39 = vsel %vm484_vm3, %v13682_v11, %v6586_v52 }
 0xe3d   : > { %v6522_v61 = vsel %vm484_vm3, %v6505_v0, %v6506_v1  ;;  %v6630_v14 = vunpack.c.l.b16 %v6596_v39  ;;  %v6639_v33 = vunpack.c.h.b16 %v6596_v39  ;;  %v6728_v39 = vld [vmem:[#allocation4 + $0x14] sm:$0xff] }
 0xe3e   : > { %v6523_v56 = vsel %vm6508_vm7, %v6494_v6, %v6522_v61 }
 0xe3f   : > { %6539 = vst [vmem:[#allocation3 + $0x138] sm:$0xff] %v6523_v56 }
 0xe42   : > { %v6575_v32 = vpop.permute.xlu1 %6574  ;;  %v6573_v10 = vpop.permute.xlu0 %6572 }
 0xe43   : > { %v6589_v19 = vsel %vm358_vm0, %v6575_v32, %v6577_v15  ;;  %v6587_v22 = vsel %vm358_vm0, %v6571_v2, %v6573_v10  ;;  %v6588_v24 = vsel %vm358_vm0, %v6573_v10, %v6575_v32  ;;  %v6726_v2 = vld [vmem:[#allocation4 + $0x4] sm:$0xff]  ;;  %v6761_v10 = vunpack.c.l.b16 %v6728_v39 }
 0xe44   : > { %v6605_v9 = vsel %vm484_vm3, %v13693_v18, %v6589_v19  ;;  %v6599_v37 = vsel %vm484_vm3, %v13684_v20, %v6587_v22  ;;  %v6602_v16 = vsel %vm484_vm3, %v13691_v43, %v6588_v24  ;;  %v6757_v29 = vunpack.c.l.b16 %v6726_v2 }
 0xe45   : > { %v6633_v42 = vunpack.c.l.b16 %v6605_v9  ;;  %v6631_v21 = vunpack.c.l.b16 %v6599_v37  ;;  %v6632_v63 = vunpack.c.l.b16 %v6602_v16  ;;  %v6640_v4 = vunpack.c.h.b16 %v6599_v37  ;;  %v6729_v37 = vld [vmem:[#allocation4 + $0x1c] sm:$0xff] }
 0xe46   : > { %v6642_v53 = vunpack.c.h.b16 %v6605_v9  ;;  %v6758_v1 = vunpack.c.h.b16 %v6726_v2  ;;  %v13842_v61 = vpack.c.b16 %v6757_v29, %v6757_v29  ;;  %v13853_v24 = vpack.c.b16 %v6761_v10, %v6761_v10 }
 0xe47   : > { %v6648_v38 = vpack.c.b16 %v6631_v21, %v6630_v14  ;;  %v6649_v23 = vpack.c.b16 %v6633_v42, %v6632_v63  ;;  %v6653_v5 = vpack.c.b16 %v6640_v4, %v6639_v33  ;;  %v6764_v14 = vunpack.c.h.b16 %v6729_v37 }
 0xe48   : > { %v13844_v52 = vpack.c.b16 %v6758_v1, %v6758_v1  ;;  %v6762_v42 = vunpack.c.h.b16 %v6728_v39 }
 0xe49   : > { %6658 = vrot.lane.b32.xlu1 %v6648_v38, %s10421_s17  ;;  %6660 = vrot.lane.b32.xlu2 %v6649_v23, %s10421_s17  ;;  %v13865_v63 = vpack.c.b16 %v6764_v14, %v6764_v14  ;;  %v6725_v14 = vld [vmem:[#allocation4 + $0x20] sm:$0xff]  }
 0xe4a   : > { %v6581_v59 = vpop.permute.xlu1 %6580  ;;  %v6579_v26 = vpop.permute.xlu0 %6578  ;;  %v13867_v38 = vpack.c.b16 %v6762_v42, %v6762_v42 }
 0xe4b   : > { %v6590_v49 = vsel %vm358_vm0, %v6577_v15, %v6579_v26  ;;  %v6591_v44 = vsel %vm358_vm0, %v6579_v26, %v6581_v59  ;;  %v6592_v54 = vsel %vm358_vm0, %v6581_v59, %v6583_v45  ;;  %v6727_v15 = vld [vmem:[#allocation4 + $0xc] sm:$0xff] }
 0xe4c   : > { %v6608_v31 = vsel %vm484_vm3, %v13695_v60, %v6590_v49  ;;  %v6611_v13 = vsel %vm484_vm3, %v13703_v12, %v6591_v44  ;;  %v6614_v46 = vsel %vm484_vm3, %v13705_v17, %v6592_v54  ;;  %v6760_v32 = vunpack.c.h.b16 %v6727_v15 }
 0xe4d   : > { %v6634_v34 = vunpack.c.l.b16 %v6608_v31  ;;  %v6635_v47 = vunpack.c.l.b16 %v6611_v13  ;;  %v6636_v48 = vunpack.c.l.b16 %v6614_v46  ;;  %v6643_v51 = vunpack.c.h.b16 %v6608_v31 }
 0xe4e   : > { %v6644_v41 = vunpack.c.h.b16 %v6611_v13  ;;  %v6645_v57 = vunpack.c.h.b16 %v6614_v46  ;;  %v6759_v19 = vunpack.c.l.b16 %v6727_v15  ;;  %v13851_v22 = vpack.c.b16 %v6760_v32, %v6760_v32 }
 0xe4f   : > { %v6650_v36 = vpack.c.b16 %v6635_v47, %v6634_v34 }
 0xe50   : > { %v6655_v8 = vpack.c.b16 %v6644_v41, %v6643_v51  ;;  %v13855_v9 = vpack.c.b16 %v6759_v19, %v6759_v19 }
 0xe51   : > { %6662 = vrot.lane.b32.xlu0 %v6650_v36, %s10421_s17 }
 0xe52   : > { %v6585_v28 = vpop.permute.xlu0 %6584 }
 0xe53   : > { %v6593_v7 = vsel %vm358_vm0, %v6583_v45, %v6585_v28  ;;  %v6620_v6 = vsel %vm484_vm3, %v13785_v40, %v6585_v28  ;;  %v6641_v40 = vunpack.c.h.b16 %v6602_v16  ;;  %v6763_v16 = vunpack.c.l.b16 %v6729_v37 }
 0xe54   : > { %v6617_v35 = vsel %vm484_vm3, %v13707_v27, %v6593_v7  ;;  %v6638_v62 = vunpack.c.l.b16 %v6620_v6  ;;  %v6647_v50 = vunpack.c.h.b16 %v6620_v6 }
 0xe55   : > { %v6637_v25 = vunpack.c.l.b16 %v6617_v35  ;;  %v6646_v30 = vunpack.c.h.b16 %v6617_v35  ;;  %v6654_v55 = vpack.c.b16 %v6642_v53, %v6641_v40  ;;  %v13863_v21 = vpack.c.b16 %v6763_v16, %v6763_v16 }
 0xe56   : > { %v6652_v58 = vpack.c.b16 %v6638_v62, %v6638_v62  ;;  %v6657_v56 = vpack.c.b16 %v6647_v50, %v6647_v50 }
 0xe57   : > { %v6651_v0 = vpack.c.b16 %v6637_v25, %v6636_v48  ;;  %v6656_v3 = vpack.c.b16 %v6646_v30, %v6645_v57 }
 0xe58   : > { %6666 = vrot.lane.b32.xlu2 %v6652_v58, %s10421_s17 }
 0xe59   : > { %6668 = vrot.lane.b32.xlu0 %v6653_v5, %s10421_s17  ;;  %6664 = vrot.lane.b32.xlu1 %v6651_v0, %s10421_s17 }
 0xe60   : > { %6672 = vrot.lane.b32.xlu2 %v6655_v8, %s10421_s17 }
 0xe61   : > { %6674 = vrot.lane.b32.xlu0 %v6656_v3, %s10421_s17  ;;  %6670 = vrot.lane.b32.xlu1 %v6654_v55, %s10421_s17 }
 0xe68   : > { %6773 = vrot.lane.b32.xlu2 %v13842_v61, %s10400_s30 }
 0xe69   : > { %6775 = vrot.lane.b32.xlu0 %v13844_v52, %s10400_s30  ;;  %6676 = vrot.lane.b32.xlu1 %v6657_v56, %s10421_s17 }
 0xe70   : > { %6779 = vrot.lane.b32.xlu2 %v13851_v22, %s10400_s30 }
 0xe71   : > { %6781 = vrot.lane.b32.xlu0 %v13853_v24, %s10400_s30  ;;  %6777 = vrot.lane.b32.xlu1 %v13855_v9, %s10400_s30 }
 0xe78   : > { %6785 = vrot.lane.b32.xlu2 %v13863_v21, %s10400_s30 }
 0xe79   : > { %6787 = vrot.lane.b32.xlu0 %v13865_v63, %s10400_s30  ;;  %6783 = vrot.lane.b32.xlu1 %v13867_v38, %s10400_s30 }
 0xea3   : > { %v6661_v23 = vpop.permute.xlu2 %6660 }
 0xea4   : > { %v6679_v26 = vrot.slane %v6661_v23, 4 }
 0xeb2   : > { %v6667_v13 = vpop.permute.xlu2 %6666 }
 0xeb3   : > { %v6682_v28 = vrot.slane %v6667_v13, 4 }
 0xeba   : > { %v6673_v4 = vpop.permute.xlu2 %6672 }
 0xebb   : > { %v6659_v59 = vpop.permute.xlu1 %6658  ;;  %v6685_v58 = vrot.slane %v6673_v4, 4 }
 0xebc   : > { %v6678_v49 = vrot.slane %v6659_v59, 4 }
 0xebe   : > { %v6688_v44 = vsel %vm484_vm3, %v6678_v49, %v6679_v26 }
 0xebf   : > { %v6690_v31 = vsel %vm6689_vm6, %v6659_v59, %v6688_v44  ;;  %v6743_v44 = vunpack.c.l.b16 %v6725_v14 }
 0xec0   : > { %6713 = vst [vmem:[#allocation3 + $0x140] sm:$0xff] %v6690_v31 }
 0xec2   : > { %v6774_v41 = vpop.permute.xlu2 %6773 }
 0xec3   : > { %v6663_v34 = vpop.permute.xlu0 %6662  ;;  %v6798_v55 = vsel %vm484_vm3, %v13682_v11, %v6774_v41 }
 0xec4   : > { %v6680_v47 = vrot.slane %v6663_v34, 4  ;;  %v6832_v15 = vunpack.c.l.b16 %v6798_v55 }
 0xec6   : > { %v6691_v45 = vsel %vm484_vm3, %v6679_v26, %v6680_v47 }
 0xec7   : > { %v6692_v54 = vsel %vm6689_vm6, %v6661_v23, %v6691_v45 }
 0xec8   : > { %6714 = vst [vmem:[#allocation3 + $0x148] sm:$0xff] %v6692_v54 }
 0xeca   : > { %v6780_v19 = vpop.permute.xlu2 %6779 }
 0xecb   : > { %v6669_v36 = vpop.permute.xlu0 %6668  ;;  %v6665_v46 = vpop.permute.xlu1 %6664 }
 0xecc   : > { %v6681_v7 = vrot.slane %v6665_v46, 4  ;;  %v6683_v5 = vrot.slane %v6669_v36, 4 }
 0xece   : > { %v6693_v6 = vsel %vm484_vm3, %v6680_v47, %v6681_v7  ;;  %v6695_v35 = vsel %vm484_vm3, %v6681_v7, %v6682_v28  ;;  %v6752_v47 = vpack.c.b16 %v6743_v44, %v6743_v44 }
 0xecf   : > { %v6694_v62 = vsel %vm6689_vm6, %v6663_v34, %v6693_v6  ;;  %v6696_v33 = vsel %vm6689_vm6, %v6665_v46, %v6695_v35 }
 0xed0   : > { %6715 = vst [vmem:[#allocation3 + $0x150] sm:$0xff] %v6694_v62 }
 0xed1   : > { %6716 = vst [vmem:[#allocation3 + $0x158] sm:$0xff] %v6696_v33 }
 0xed2   : > { %v6786_v34 = vpop.permute.xlu2 %6785 }
 0xed3   : > { %v6675_v48 = vpop.permute.xlu0 %6674  ;;  %v6671_v25 = vpop.permute.xlu1 %6670 }
 0xed4   : > { %v6686_v0 = vrot.slane %v6675_v48, 4  ;;  %v6684_v51 = vrot.slane %v6671_v25, 4 }
 0xed6   : > { %v6701_v53 = vsel %vm484_vm3, %v6685_v58, %v6686_v0  ;;  %v6697_v40 = vsel %vm484_vm3, %v6683_v5, %v6684_v51  ;;  %v6699_v30 = vsel %vm484_vm3, %v6684_v51, %v6685_v58 }
 0xed7   : > { %v6702_v57 = vsel %vm6689_vm6, %v6673_v4, %v6701_v53  ;;  %v6698_v8 = vsel %vm6689_vm6, %v6669_v36, %v6697_v40  ;;  %v6700_v3 = vsel %vm6689_vm6, %v6671_v25, %v6699_v30 }
 0xed8   : > { %6719 = vst [vmem:[#allocation3 + $0x170] sm:$0xff] %v6702_v57 }
 0xed9   : > { %6717 = vst [vmem:[#allocation3 + $0x160] sm:$0xff] %v6698_v8 }
 0xeda   : > { %6718 = vst [vmem:[#allocation3 + $0x168] sm:$0xff] %v6700_v3 }
 0xedb   : > { %v6776_v2 = vpop.permute.xlu0 %6775  ;;  %v6677_v29 = vpop.permute.xlu1 %6676 }
 0xedc   : > { %v6789_v50 = vsel %vm358_vm0, %v6774_v41, %v6776_v2  ;;  %v6687_v1 = vrot.slane %v6677_v29, 4  ;;  %v6841_v41 = vunpack.c.h.b16 %v6798_v55  ;;  %v6941_v55 = vunpack.c.h.b16 %v6725_v14 }
 0xedd   : > { %v6801_v56 = vsel %vm484_vm3, %v13684_v20, %v6789_v50 }
 0xede   : > { %v6833_v39 = vunpack.c.l.b16 %v6801_v56  ;;  %v6703_v32 = vsel %vm484_vm3, %v6686_v0, %v6687_v1  ;;  %v13939_v50 = vpack.c.b16 %v6941_v55, %v6941_v55 }
 0xedf   : > { %v6704_v10 = vsel %vm6689_vm6, %v6675_v48, %v6703_v32 }
 0xee0   : > { %6720 = vst [vmem:[#allocation3 + $0x178] sm:$0xff] %v6704_v10  ;;  %v6850_v37 = vpack.c.b16 %v6833_v39, %v6832_v15 }
 0xee2   : > { %6860 = vrot.lane.b32.xlu1 %v6850_v37, %s10422_s19 }
 0xee3   : > { %v6782_v11 = vpop.permute.xlu0 %6781  ;;  %v6778_v16 = vpop.permute.xlu1 %6777 }
 0xee4   : > { %v6790_v42 = vsel %vm358_vm0, %v6776_v2, %v6778_v16  ;;  %v6791_v23 = vsel %vm358_vm0, %v6778_v16, %v6780_v19  ;;  %v6792_v31 = vsel %vm358_vm0, %v6780_v19, %v6782_v11 }
 0xee5   : > { %v6804_v20 = vsel %vm484_vm3, %v13691_v43, %v6790_v42  ;;  %v6807_v59 = vsel %vm484_vm3, %v13693_v18, %v6791_v23  ;;  %v6810_v45 = vsel %vm484_vm3, %v13695_v60, %v6792_v31 }
 0xee6   : > { %v6834_v26 = vunpack.c.l.b16 %v6804_v20  ;;  %v6835_v49 = vunpack.c.l.b16 %v6807_v59  ;;  %v6836_v35 = vunpack.c.l.b16 %v6810_v45  ;;  %v6843_v51 = vunpack.c.h.b16 %v6804_v20 }
 0xee7   : > { %v6845_v53 = vunpack.c.h.b16 %v6810_v45 }
 0xee8   : > { %v6851_v13 = vpack.c.b16 %v6835_v49, %v6834_v26 }
 0xeea   : > { %6862 = vrot.lane.b32.xlu2 %v6851_v13, %s10422_s19 }
 0xeeb   : > { %v6788_v54 = vpop.permute.xlu0 %6787  ;;  %v6784_v36 = vpop.permute.xlu1 %6783 }
 0xeec   : > { %v6795_v43 = vsel %vm358_vm0, %v6786_v34, %v6788_v54  ;;  %v6822_v46 = vsel %vm484_vm3, %v6752_v47, %v6788_v54  ;;  %v6793_v18 = vsel %vm358_vm0, %v6782_v11, %v6784_v36  ;;  %v6794_v28 = vsel %vm358_vm0, %v6784_v36, %v6786_v34 }
 0xeed   : > { %v6819_v4 = vsel %vm484_vm3, %v13707_v27, %v6795_v43  ;;  %v6840_v7 = vunpack.c.l.b16 %v6822_v46  ;;  %v6813_v6 = vsel %vm484_vm3, %v13703_v12, %v6793_v18  ;;  %v6816_v60 = vsel %vm484_vm3, %v13705_v17, %v6794_v28 }
 0xeee   : > { %v6839_v62 = vunpack.c.l.b16 %v6819_v4  ;;  %v6837_v33 = vunpack.c.l.b16 %v6813_v6  ;;  %v6838_v25 = vunpack.c.l.b16 %v6816_v60  ;;  %v6842_v27 = vunpack.c.h.b16 %v6801_v56 }
 0xeef   : > { %v6854_v48 = vpack.c.b16 %v6840_v7, %v6840_v7  ;;  %v6846_v0 = vunpack.c.h.b16 %v6813_v6  ;;  %v6844_v12 = vunpack.c.h.b16 %v6807_v59  ;;  %v6848_v57 = vunpack.c.h.b16 %v6819_v4 }
 0xef0   : > { %v6852_v58 = vpack.c.b16 %v6837_v33, %v6836_v35  ;;  %v6853_v5 = vpack.c.b16 %v6839_v62, %v6838_v25  ;;  %v6855_v30 = vpack.c.b16 %v6842_v27, %v6841_v41  ;;  %v6847_v8 = vunpack.c.h.b16 %v6816_v60 }
 0xef1   : > { %v6857_v40 = vpack.c.b16 %v6846_v0, %v6845_v53  ;;  %v6856_v17 = vpack.c.b16 %v6844_v12, %v6843_v51  ;;  %v6849_v3 = vunpack.c.h.b16 %v6822_v46 }
 0xef2   : > { %6864 = vrot.lane.b32.xlu0 %v6852_v58, %s10422_s19  ;;  %6868 = vrot.lane.b32.xlu2 %v6854_v48, %s10422_s19  ;;  %v6858_v2 = vpack.c.b16 %v6848_v57, %v6847_v8 }
 0xef3   : > { %6866 = vrot.lane.b32.xlu1 %v6853_v5, %s10422_s19  ;;  %v6859_v29 = vpack.c.b16 %v6849_v3, %v6849_v3 }
 0xefa   : > { %6870 = vrot.lane.b32.xlu0 %v6855_v30, %s10422_s19  ;;  %6874 = vrot.lane.b32.xlu2 %v6857_v40, %s10422_s19 }
 0xefb   : > { %6872 = vrot.lane.b32.xlu1 %v6856_v17, %s10422_s19 }
 0xf02   : > { %6951 = vrot.lane.b32.xlu2 %v13842_v61, %s10411_s18  ;;  %6876 = vrot.lane.b32.xlu0 %v6858_v2, %s10422_s19 }
 0xf03   : > { %6878 = vrot.lane.b32.xlu1 %v6859_v29, %s10422_s19 }
 0xf0a   : > { %6957 = vrot.lane.b32.xlu2 %v13851_v22, %s10411_s18  ;;  %6953 = vrot.lane.b32.xlu0 %v13844_v52, %s10411_s18 }
 0xf0b   : > { %6955 = vrot.lane.b32.xlu1 %v13855_v9, %s10411_s18 }
 0xf12   : > { %6963 = vrot.lane.b32.xlu2 %v13863_v21, %s10411_s18  ;;  %6959 = vrot.lane.b32.xlu0 %v13853_v24, %s10411_s18 }
 0xf13   : > { %6961 = vrot.lane.b32.xlu1 %v13867_v38, %s10411_s18 }
 0xf1a   : > { %6965 = vrot.lane.b32.xlu0 %v13865_v63, %s10411_s18 }
 0xf1b   : > { %6967 = vrot.lane.b32.xlu1 %v13939_v50, %s10411_s18 }
 0xf44   : > { %v6863_v1 = vpop.permute.xlu2 %6862 }
 0xf45   : > { %v6881_v15 = vrot.slane %v6863_v1, 4 }
 0xf4c   : > { %v6869_v19 = vpop.permute.xlu2 %6868 }
 0xf4d   : > { %v6884_v14 = vrot.slane %v6869_v19, 4 }
 0xf54   : > { %v6861_v56 = vpop.permute.xlu1 %6860  ;;  %v6875_v23 = vpop.permute.xlu2 %6874 }
 0xf55   : > { %v6880_v39 = vrot.slane %v6861_v56, 4  ;;  %v6887_v45 = vrot.slane %v6875_v23, 4 }
 0xf57   : > { %v6890_v32 = vsel %vm484_vm3, %v6880_v39, %v6881_v15 }
 0xf58   : > { %v6892_v10 = vsel %vm6891_vm8, %v6861_v56, %v6890_v32 }
 0xf59   : > { %6915 = vst [vmem:[#allocation3 + $0x180] sm:$0xff] %v6892_v10 }
 0xf5c   : > { %v6952_v46 = vpop.permute.xlu2 %6951 }
 0xf64   : > { %v6865_v37 = vpop.permute.xlu0 %6864  ;;  %v6958_v25 = vpop.permute.xlu2 %6957 }
 0xf65   : > { %v6882_v11 = vrot.slane %v6865_v37, 4  ;;  %v6867_v16 = vpop.permute.xlu1 %6866 }
 0xf66   : > { %v6883_v42 = vrot.slane %v6867_v16, 4 }
 0xf67   : > { %v6893_v20 = vsel %vm484_vm3, %v6881_v15, %v6882_v11 }
 0xf68   : > { %v6894_v59 = vsel %vm6891_vm8, %v6863_v1, %v6893_v20  ;;  %v6895_v26 = vsel %vm484_vm3, %v6882_v11, %v6883_v42  ;;  %v6897_v49 = vsel %vm484_vm3, %v6883_v42, %v6884_v14 }
 0xf69   : > { %6916 = vst [vmem:[#allocation3 + $0x188] sm:$0xff] %v6894_v59  ;;  %v6896_v44 = vsel %vm6891_vm8, %v6865_v37, %v6895_v26  ;;  %v6898_v31 = vsel %vm6891_vm8, %v6867_v16, %v6897_v49 }
 0xf6a   : > { %6917 = vst [vmem:[#allocation3 + $0x190] sm:$0xff] %v6896_v44 }
 0xf6b   : > { %6918 = vst [vmem:[#allocation3 + $0x198] sm:$0xff] %v6898_v31 }
 0xf6c   : > { %v6871_v13 = vpop.permute.xlu0 %6870  ;;  %v6964_v8 = vpop.permute.xlu2 %6963 }
 0xf6d   : > { %v6885_v34 = vrot.slane %v6871_v13, 4  ;;  %v6873_v47 = vpop.permute.xlu1 %6872 }
 0xf6e   : > { %v6886_v54 = vrot.slane %v6873_v47, 4 }
 0xf70   : > { %v6899_v36 = vsel %vm484_vm3, %v6885_v34, %v6886_v54  ;;  %v6901_v43 = vsel %vm484_vm3, %v6886_v54, %v6887_v45 }
 0xf71   : > { %v6900_v18 = vsel %vm6891_vm8, %v6871_v13, %v6899_v36  ;;  %v6902_v28 = vsel %vm6891_vm8, %v6873_v47, %v6901_v43 }
 0xf72   : > { %6919 = vst [vmem:[#allocation3 + $0x1a0] sm:$0xff] %v6900_v18 }
 0xf73   : > { %6920 = vst [vmem:[#allocation3 + $0x1a8] sm:$0xff] %v6902_v28 }
 0xf74   : > { %v6877_v4 = vpop.permute.xlu0 %6876 }
 0xf75   : > { %v6888_v7 = vrot.slane %v6877_v4, 4  ;;  %v6879_v6 = vpop.permute.xlu1 %6878 }
 0xf76   : > { %v6889_v35 = vrot.slane %v6879_v6, 4 }
 0xf77   : > { %v6903_v62 = vsel %vm484_vm3, %v6887_v45, %v6888_v7 }
 0xf78   : > { %v6904_v60 = vsel %vm6891_vm8, %v6875_v23, %v6903_v62  ;;  %v6905_v33 = vsel %vm484_vm3, %v6888_v7, %v6889_v35 }
 0xf79   : > { %6921 = vst [vmem:[#allocation3 + $0x1b0] sm:$0xff] %v6904_v60  ;;  %v6906_v48 = vsel %vm6891_vm8, %v6877_v4, %v6905_v33  ;;  %v7107_v60 = vld [vmem:[#allocation4 + $0x24] sm:$0xf] }
 0xf7a   : > { %6922 = vst [vmem:[#allocation3 + $0x1b8] sm:$0xff] %v6906_v48  ;;  %v7121_v33 = vunpack.c.l.b16 %v7107_v60 }
 0xf7c   : > { %v6954_v58 = vpop.permute.xlu0 %6953  ;;  %v14013_v48 = vpack.c.b16 %v7121_v33, %v7121_v33 }
 0xf7d   : > { %v6969_v5 = vsel %vm1917_vm14, %v6952_v46, %v6954_v58  ;;  %v6956_v27 = vpop.permute.xlu1 %6955 }
 0xf7e   : > { %v6979_v0 = vsel %vm484_vm3, %v13842_v61, %v6969_v5  ;;  %v6970_v51 = vsel %vm1917_vm14, %v6954_v58, %v6956_v27  ;;  %v6971_v40 = vsel %vm1917_vm14, %v6956_v27, %v6958_v25 }
 0xf7f   : > { %v7013_v12 = vunpack.c.l.b16 %v6979_v0  ;;  %v6982_v41 = vsel %vm484_vm3, %v13844_v52, %v6970_v51  ;;  %v6985_v17 = vsel %vm484_vm3, %v13855_v9, %v6971_v40  ;;  %v7022_v14 = vunpack.c.h.b16 %v6979_v0 }
 0xf80   : > { %v7014_v53 = vunpack.c.l.b16 %v6982_v41  ;;  %v7015_v56 = vunpack.c.l.b16 %v6985_v17  ;;  %v7023_v20 = vunpack.c.h.b16 %v6982_v41  ;;  %v7024_v28 = vunpack.c.h.b16 %v6985_v17 }
 0xf82   : > { %v7031_v30 = vpack.c.b16 %v7014_v53, %v7013_v12  ;;  %v7036_v45 = vpack.c.b16 %v7023_v20, %v7022_v14 }
 0xf84   : > { %7041 = vrot.lane.b32.xlu2 %v7031_v30, %s10400_s30  ;;  %v6960_v57 = vpop.permute.xlu0 %6959 }
 0xf85   : > { %v6972_v3 = vsel %vm1917_vm14, %v6958_v25, %v6960_v57  ;;  %v6962_v2 = vpop.permute.xlu1 %6961 }
 0xf86   : > { %v6988_v29 = vsel %vm484_vm3, %v13851_v22, %v6972_v3  ;;  %v6973_v55 = vsel %vm1917_vm14, %v6960_v57, %v6962_v2  ;;  %v6974_v1 = vsel %vm1917_vm14, %v6962_v2, %v6964_v8 }
 0xf87   : > { %v7016_v15 = vunpack.c.l.b16 %v6988_v29  ;;  %v6991_v39 = vsel %vm484_vm3, %v13853_v24, %v6973_v55  ;;  %v6994_v32 = vsel %vm484_vm3, %v13867_v38, %v6974_v1  ;;  %v7025_v46 = vunpack.c.h.b16 %v6988_v29 }
 0xf88   : > { %v7017_v10 = vunpack.c.l.b16 %v6991_v39  ;;  %v7018_v19 = vunpack.c.l.b16 %v6994_v32  ;;  %v7026_v36 = vunpack.c.h.b16 %v6991_v39  ;;  %v7027_v43 = vunpack.c.h.b16 %v6994_v32 }
 0xf89   : > { %v7032_v37 = vpack.c.b16 %v7016_v15, %v7015_v56  ;;  %v7037_v7 = vpack.c.b16 %v7025_v46, %v7024_v28  ;;  %v9865_v46 = vld [vmem:[#allocation3 + $0x1a0] sm:$0xf0]  ;;  %v9863_v28 = vld [vmem:[#allocation3 + $0x180] sm:$0xf] }
 0xf8a   : > { %v7033_v11 = vpack.c.b16 %v7018_v19, %v7017_v10  ;;  %v7038_v4 = vpack.c.b16 %v7027_v43, %v7026_v36  ;;  %v10292_v43 = vld [vmem:[#allocation3 + $0x19c] sm:$0xf0] }
 0xf8b   : > { %7043 = vrot.lane.b32.xlu0 %v7032_v37, %s10400_s30 }
 0xf8c   : > { %7045 = vrot.lane.b32.xlu1 %v7033_v11, %s10400_s30  ;;  %v6966_v16 = vpop.permute.xlu0 %6965 }
 0xf8d   : > { %v6975_v42 = vsel %vm1917_vm14, %v6964_v8, %v6966_v16  ;;  %v6968_v23 = vpop.permute.xlu1 %6967 }
 0xf8e   : > { %v6997_v59 = vsel %vm484_vm3, %v13863_v21, %v6975_v42  ;;  %v6976_v26 = vsel %vm1917_vm14, %v6966_v16, %v6968_v23  ;;  %v7003_v49 = vsel %vm484_vm3, %v13939_v50, %v6968_v23 }
 0xf8f   : > { %v7019_v44 = vunpack.c.l.b16 %v6997_v59  ;;  %v7000_v31 = vsel %vm484_vm3, %v13865_v63, %v6976_v26  ;;  %v7021_v13 = vunpack.c.l.b16 %v7003_v49  ;;  %v7028_v18 = vunpack.c.h.b16 %v6997_v59 }
 0xf90   : > { %v7020_v34 = vunpack.c.l.b16 %v7000_v31  ;;  %v7029_v50 = vunpack.c.h.b16 %v7000_v31  ;;  %v7030_v35 = vunpack.c.h.b16 %v7003_v49 }
 0xf91   : > { %v7035_v47 = vpack.c.b16 %v7021_v13, %v7021_v13 }
 0xf92   : > { %v7034_v54 = vpack.c.b16 %v7020_v34, %v7019_v44  ;;  %v7039_v6 = vpack.c.b16 %v7029_v50, %v7028_v18  ;;  %v7040_v62 = vpack.c.b16 %v7030_v35, %v7030_v35  ;;  %v9864_v35 = vor.u32 %v10292_v43, %v9863_v28 }
 0xf93   : > { %7049 = vrot.lane.b32.xlu0 %v7035_v47, %s10400_s30 }
 0xf94   : > { %7047 = vrot.lane.b32.xlu2 %v7034_v54, %s10400_s30  ;;  %7051 = vrot.lane.b32.xlu1 %v7036_v45, %s10400_s30 }
 0xf9b   : > { %7055 = vrot.lane.b32.xlu0 %v7038_v4, %s10400_s30  ;;  %v10288_v4 = vld [vmem:[#allocation3 + $0x184] sm:$0xf] }
 0xf9c   : > { %7053 = vrot.lane.b32.xlu2 %v7037_v7, %s10400_s30  ;;  %7057 = vrot.lane.b32.xlu1 %v7039_v6, %s10400_s30 }
 0xfa3   : > { %7131 = vrot.lane.b32.xlu0 %v13842_v61, %s10400_s30 }
 0xfa4   : > { %7059 = vrot.lane.b32.xlu2 %v7040_v62, %s10400_s30  ;;  %7133 = vrot.lane.b32.xlu1 %v13844_v52, %s10400_s30  ;;  %v9868_v62 = vor.u32 %v10288_v4, %v9865_v46 }
 0xfab   : > { %7137 = vrot.lane.b32.xlu0 %v13851_v22, %s10400_s30 }
 0xfac   : > { %7135 = vrot.lane.b32.xlu2 %v13855_v9, %s10400_s30  ;;  %7139 = vrot.lane.b32.xlu1 %v13853_v24, %s10400_s30 }
 0xfb3   : > { %7143 = vrot.lane.b32.xlu0 %v13863_v21, %s10400_s30 }
 0xfb4   : > { %7141 = vrot.lane.b32.xlu2 %v13867_v38, %s10400_s30  ;;  %7145 = vrot.lane.b32.xlu1 %v13865_v63, %s10400_s30 }
 0xfbc   : > { %7147 = vrot.lane.b32.xlu2 %v14013_v48, %s10400_s30 }
 0xfde   : > { %v7042_v25 = vpop.permute.xlu2 %7041 }
 0xfdf   : > { %v7061_v0 = vrot.slane %v7042_v25, 4 }
 0xfee   : > { %v7048_v58 = vpop.permute.xlu2 %7047 }
 0xfef   : > { %v7064_v41 = vrot.slane %v7048_v58, 4 }
 0xff6   : > { %v7054_v5 = vpop.permute.xlu2 %7053 }
 0xff7   : > { %v7067_v56 = vrot.slane %v7054_v5, 4 }
 0xffd   : > { %v7044_v27 = vpop.permute.xlu0 %7043 }
 0xffe   : > { %v7062_v51 = vrot.slane %v7044_v27, 4  ;;  %v7046_v12 = vpop.permute.xlu1 %7045  ;;  %v7060_v2 = vpop.permute.xlu2 %7059 }
 0xfff   : > { %v7063_v53 = vrot.slane %v7046_v12, 4  ;;  %v7070_v42 = vrot.slane %v7060_v2, 4  ;;  %v9799_v2 = vld [vmem:[#allocation3 + $0x100] sm:$0xf] }
0x1000   : > { %v7071_v40 = vsel %vm484_vm3, %v7061_v0, %v7062_v51 }
0x1001   : > { %v7072_v30 = vsel %vm358_vm0, %v7042_v25, %v7071_v40  ;;  %v7073_v17 = vsel %vm484_vm3, %v7062_v51, %v7063_v53  ;;  %v7075_v57 = vsel %vm484_vm3, %v7063_v53, %v7064_v41  ;;  %v9831_v51 = vld [vmem:[#allocation3 + $0x140] sm:$0xf] }
0x1002   : > { %7095 = vst [vmem:[#allocation3 + $0x1c0] sm:$0xff] %v7072_v30  ;;  %v7074_v8 = vsel %vm358_vm0, %v7044_v27, %v7073_v17  ;;  %v7076_v3 = vsel %vm358_vm0, %v7046_v12, %v7075_v57  ;;  %v10280_v12 = vld [vmem:[#allocation3 + $0x144] sm:$0xf]  ;;  %v10276_v30 = vld [vmem:[#allocation3 + $0x11c] sm:$0xf0] }
0x1003   : > { %7096 = vst [vmem:[#allocation3 + $0x1c8] sm:$0xff] %v7074_v8  ;;  %v9801_v17 = vld [vmem:[#allocation3 + $0x120] sm:$0xf0] }
0x1004   : > { %7097 = vst [vmem:[#allocation3 + $0x1d0] sm:$0xff] %v7076_v3 }
0x1005   : > { %v7050_v29 = vpop.permute.xlu0 %7049 }
0x1006   : > { %v7065_v55 = vrot.slane %v7050_v29, 4  ;;  %v7052_v1 = vpop.permute.xlu1 %7051  ;;  %v7136_v11 = vpop.permute.xlu2 %7135  ;;  %v10272_v29 = vld [vmem:[#allocation3 + $0x104] sm:$0xf] }
0x1007   : > { %v7066_v15 = vrot.slane %v7052_v1, 4 }
0x1008   : > { %v7077_v39 = vsel %vm484_vm3, %v7064_v41, %v7065_v55 }
0x1009   : > { %v7078_v32 = vsel %vm358_vm0, %v7048_v58, %v7077_v39  ;;  %v7079_v10 = vsel %vm484_vm3, %v7066_v15, %v7067_v56  ;;  %v9895_v44 = vld [vmem:[#allocation3 + $0x1c0] sm:$0xf]  ;;  %v10296_v31 = vld [vmem:[#allocation3 + $0x1c4] sm:$0xf]  ;;  %v9804_v15 = vor.u32 %v10272_v29, %v9801_v17 }
0x100a   : > { %7098 = vst [vmem:[#allocation3 + $0x1d8] sm:$0xff] %v7078_v32  ;;  %v7080_v19 = vsel %vm358_vm0, %v7052_v1, %v7079_v10  ;;  %v10284_v58 = vld [vmem:[#allocation3 + $0x15c] sm:$0xf0]  ;;  %v9769_v32 = vld [vmem:[#allocation3 + $0xe0] sm:$0xf0] }
0x100b   : > { %7099 = vst [vmem:[#allocation3 + $0x1e0] sm:$0xff] %v7080_v19  ;;  %v9832_v53 = vor.u32 %v10284_v58, %v9831_v51  ;;  %v10268_v39 = vld [vmem:[#allocation3 + $0xdc] sm:$0xf0]  ;;  %v9705_v58 = vld [vmem:[#allocation3 + $0x60] sm:$0xf0] }
0x100d   : > { %v7056_v37 = vpop.permute.xlu0 %7055 }
0x100e   : > { %v7068_v16 = vrot.slane %v7056_v37, 4  ;;  %v7058_v14 = vpop.permute.xlu1 %7057  ;;  %v7142_v60 = vpop.permute.xlu2 %7141 }
0x100f   : > { %v7069_v23 = vrot.slane %v7058_v14, 4 }
0x1010   : > { %v7081_v20 = vsel %vm484_vm3, %v7067_v56, %v7068_v16  ;;  %v9800_v56 = vor.u32 %v10276_v30, %v9799_v2 }
0x1011   : > { %v7082_v59 = vsel %vm358_vm0, %v7054_v5, %v7081_v20  ;;  %v7083_v26 = vsel %vm484_vm3, %v7068_v16, %v7069_v23  ;;  %v7085_v49 = vsel %vm484_vm3, %v7069_v23, %v7070_v42  ;;  %v9833_v5 = vld [vmem:[#allocation3 + $0x160] sm:$0xf0]  ;;  %v9767_v23 = vld [vmem:[#allocation3 + $0xc0] sm:$0xf] }
0x1012   : > { %7100 = vst [vmem:[#allocation3 + $0x1e8] sm:$0xff] %v7082_v59  ;;  %v7084_v13 = vsel %vm358_vm0, %v7056_v37, %v7083_v26  ;;  %v7086_v34 = vsel %vm358_vm0, %v7058_v14, %v7085_v49  ;;  %v10300_v47 = vld [vmem:[#allocation3 + $0x1dc] sm:$0xf0]  ;;  %v9897_v45 = vld [vmem:[#allocation3 + $0x1e0] sm:$0xf0]  ;;  %v9836_v40 = vor.u32 %v10280_v12, %v9833_v5  ;;  %v9768_v20 = vor.u32 %v10268_v39, %v9767_v23 }
0x1013   : > { %7101 = vst [vmem:[#allocation3 + $0x1f0] sm:$0xff] %v7084_v13  ;;  %v9896_v54 = vor.u32 %v10300_v47, %v9895_v44  ;;  %v9900_v36 = vor.u32 %v10296_v31, %v9897_v45  ;;  %v10260_v26 = vld [vmem:[#allocation3 + $0x9c] sm:$0xf0] }
0x1014   : > { %7102 = vst [vmem:[#allocation3 + $0x1f8] sm:$0xff] %v7086_v34  ;;  %v9735_v34 = vld [vmem:[#allocation3 + $0x80] sm:$0xf] }
0x1015   : > { %8897 = vmatpush.bf16.msra.mxu3 %v9896_v54  ;;  %8923 = vmatpush.bf16.msra.mxu2 %v9900_v36  ;;  %v7132_v18 = vpop.permute.xlu0 %7131  ;;  %v9736_v45 = vor.u32 %v10260_v26, %v9735_v34  ;;  %v10256_v54 = vld [vmem:[#allocation3 + $0x84] sm:$0xf] }
0x1016   : > { %v7134_v50 = vpop.permute.xlu1 %7133 }
0x1017   : > { %v7149_v7 = vsel %vm358_vm0, %v7132_v18, %v7134_v50  ;;  %v7150_v6 = vsel %vm358_vm0, %v7134_v50, %v7136_v11 }
0x1018   : > { %v14037_v33 = vsel %vm484_vm3, %v13842_v61, %v7149_v7  ;;  %v14041_v25 = vsel %vm484_vm3, %v13844_v52, %v7150_v6 }
0x1019   : > { %v7193_v27 = vunpack.c.l.b16 %v14037_v33  ;;  %v7194_v0 = vunpack.c.l.b16 %v14041_v25  ;;  %8898 = vmatpush.bf16.msra.mxu3 %v9864_v35  ;;  %8924 = vmatpush.bf16.msra.mxu2 %v9868_v62  ;;  %v7202_v2 = vunpack.c.h.b16 %v14037_v33  ;;  %v7203_v29 = vunpack.c.h.b16 %v14041_v25 }
0x101b   : > { %v7211_v41 = vpack.c.b16 %v7194_v0, %v7193_v27 }
0x101d   : > { %8899 = vmatpush.bf16.msra.mxu3 %v9832_v53  ;;  %8925 = vmatpush.bf16.msra.mxu2 %v9836_v40  ;;  %v7138_v57 = vpop.permute.xlu0 %7137  ;;  %v9703_v53 = vld [vmem:[#allocation3 + $0x40] sm:$0xf]  ;;  %v10248_v40 = vld [vmem:[#allocation3 + $0x44] sm:$0xf] }
0x101e   : > { %7221 = vrot.lane.b32.xlu0 %v7211_v41, %s10402_s9  ;;  %v7151_v8 = vsel %vm358_vm0, %v7136_v11, %v7138_v57  ;;  %v7140_v3 = vpop.permute.xlu1 %7139  ;;  %v7148_v11 = vpop.permute.xlu2 %7147 }
0x101f   : > { %v7165_v55 = vsel %vm484_vm3, %v13855_v9, %v7151_v8  ;;  %v7152_v1 = vsel %vm358_vm0, %v7138_v57, %v7140_v3  ;;  %v7153_v37 = vsel %vm358_vm0, %v7140_v3, %v7142_v60  ;;  %v10264_v9 = vld [vmem:[#allocation3 + $0xc4] sm:$0xf]  ;;  %v14059_v13 = vsel %vm484_vm3, %v14013_v48, %v7148_v11 }
0x1020   : > { %v7195_v10 = vunpack.c.l.b16 %v7165_v55  ;;  %v7204_v19 = vunpack.c.h.b16 %v7165_v55  ;;  %v7168_v16 = vsel %vm484_vm3, %v13851_v22, %v7152_v1  ;;  %v9772_v59 = vor.u32 %v10264_v9, %v9769_v32  ;;  %v9737_v22 = vld [vmem:[#allocation3 + $0xa0] sm:$0xf0]  ;;  %v10244_v55 = vld [vmem:[#allocation3 + $0x1c] sm:$0xf0] }
0x1021   : > { %v7196_v14 = vunpack.c.l.b16 %v7168_v16  ;;  %v7205_v42 = vunpack.c.h.b16 %v7168_v16  ;;  %8900 = vmatpush.bf16.msra.mxu3 %v9800_v56  ;;  %8926 = vmatpush.bf16.msra.mxu2 %v9804_v15  ;;  %v7171_v49 = vsel %vm484_vm3, %v13853_v24, %v7153_v37  ;;  %v7201_v46 = vunpack.c.l.b16 %v14059_v13  ;;  %v10240_v8 = vld [vmem:[#allocation3 + $0x4] sm:$0xf] }
0x1022   : > { %v7197_v36 = vunpack.c.l.b16 %v7171_v49  ;;  %v9740_v18 = vor.u32 %v10256_v54, %v9737_v22  ;;  %v7206_v50 = vunpack.c.h.b16 %v7171_v49  ;;  %v9708_v57 = vor.u32 %v10248_v40, %v9705_v58  ;;  %v8012_v3 = vld [vmem:[#allocation4] sm:$0xff] }
0x1023   : > { %v7212_v44 = vpack.c.b16 %v7196_v14, %v7195_v10  ;;  %v14055_v31 = vpack.c.b16 %v7205_v42, %v7204_v19  ;;  %v7215_v41 = vpack.c.b16 %v7201_v46, %v7201_v46  ;;  %v9673_v1 = vld [vmem:[#allocation3 + $0x20] sm:$0xf0]  ;;  %v8044_v39 = vunpack.c.h.b16 %v8012_v3  ;;  %v8013_v19 = vld [vmem:[#allocation4 + $0x8] sm:$0xff] }
0x1024   : > { %v9676_v15 = vor.u32 %v10240_v8, %v9673_v1  ;;  %v8043_v32 = vunpack.c.l.b16 %v8012_v3  ;;  %v7216_v10 = vpack.c.b16 %v7203_v29, %v7202_v2  ;;  %v8045_v25 = vunpack.c.l.b16 %v8013_v19  ;;  %v7827_v42 = vld [vmem:[#allocation4 + $0xc] sm:$0xff]  ;;  %v7645_v49 = vld [vmem:[#allocation4 + $0x4] sm:$0xff] }
0x1025   : > { %8901 = vmatpush.bf16.msra.mxu3 %v9768_v20  ;;  %8927 = vmatpush.bf16.msra.mxu2 %v9772_v59  ;;  %v7144_v47 = vpop.permute.xlu0 %7143  ;;  %v8052_v37 = vpack.c.b16 %v8044_v39, %v8044_v39  ;;  %v8046_v16 = vunpack.c.h.b16 %v8013_v19  ;;  %v7839_v23 = vunpack.c.h.b16 %v7827_v42  ;;  %v7838_v9 = vunpack.c.l.b16 %v7827_v42  ;;  %v7828_v20 = vld [vmem:[#allocation4 + $0x14] sm:$0xff]  ;;  %v7468_v29 = vld [vmem:[#allocation4 + $0x24] sm:$0xf] }
0x1026   : > { %7223 = vrot.lane.b32.xlu1 %v7212_v44, %s10402_s9  ;;  %v7154_v43 = vsel %vm358_vm0, %v7142_v60, %v7144_v47  ;;  %v7146_v24 = vpop.permute.xlu1 %7145  ;;  %v10252_v60 = vld [vmem:[#allocation3 + $0x5c] sm:$0xf0]  ;;  %v8051_v33 = vpack.c.b16 %v8043_v32, %v8043_v32  ;;  %v7840_v44 = vunpack.c.l.b16 %v7828_v20  ;;  %v7656_v22 = vunpack.c.h.b16 %v7645_v49 }
0x1027   : > { %v7174_v48 = vsel %vm484_vm3, %v13867_v38, %v7154_v43  ;;  %v7155_v28 = vsel %vm358_vm0, %v7144_v47, %v7146_v24  ;;  %v7156_v4 = vsel %vm358_vm0, %v7146_v24, %v7148_v11  ;;  %v8053_v11 = vpack.c.b16 %v8045_v25, %v8045_v25 }
0x1028   : > { %v7198_v7 = vunpack.c.l.b16 %v7174_v48  ;;  %v7207_v6 = vunpack.c.h.b16 %v7174_v48  ;;  %v7177_v35 = vsel %vm484_vm3, %v13863_v21, %v7155_v28  ;;  %v7180_v62 = vsel %vm484_vm3, %v13865_v63, %v7156_v4  ;;  %v9671_v63 = vld [vmem:[#allocation3] sm:$0xf] }
0x1029   : > { %v7199_v5 = vunpack.c.l.b16 %v7177_v35  ;;  %v7208_v27 = vunpack.c.h.b16 %v7177_v35  ;;  %v7200_v0 = vunpack.c.l.b16 %v7180_v62  ;;  %v7209_v51 = vunpack.c.h.b16 %v7180_v62  ;;  %8902 = vmatpush.bf16.msra.mxu3 %v9736_v45  ;;  %8928 = vmatpush.bf16.msra.mxu2 %v9740_v18 }
0x102a   : > { %v7213_v38 = vpack.c.b16 %v7198_v7, %v7197_v36  ;;  %v14072_v12 = vpack.c.b16 %v7207_v6, %v7206_v50  ;;  %v9704_v21 = vor.u32 %v10252_v60, %v9703_v53  ;;  %v9672_v56 = vor.u32 %v10244_v55, %v9671_v63  ;;  %v8014_v36 = vld [vmem:[#allocation4 + $0x10] sm:$0xff]  ;;  %v7829_v50 = vld [vmem:[#allocation4 + $0x1c] sm:$0xff]  ;;  %v7830_v60 = vld [vmem:[#allocation4 + $0x24] sm:$0xf] }
0x102b   : > { %v7214_v30 = vpack.c.b16 %v7200_v0, %v7199_v5  ;;  %v14074_v17 = vpack.c.b16 %v7209_v51, %v7208_v27  ;;  %v8054_v14 = vpack.c.b16 %v8046_v16, %v8046_v16  ;;  %v14090_v59 = vpack.c.b16 %v7839_v23, %v7839_v23  ;;  %v8015_v6 = vld [vmem:[#allocation4 + $0x18] sm:$0xff]  ;;  %v7649_v53 = vld [vmem:[#allocation4 + $0x24] sm:$0xf] }
0x102c   : > { %7225 = vrot.lane.b32.xlu2 %v7213_v38, %s10402_s9  ;;  %v14092_v26 = vpack.c.b16 %v7838_v9, %v7838_v9  ;;  %v7655_v34 = vunpack.c.l.b16 %v7645_v49  ;;  %v14098_v47 = vpack.c.b16 %v7840_v44, %v7840_v44  ;;  %v14102_v45 = vpack.c.b16 %v7656_v22, %v7656_v22 }
0x102d   : > { %8903 = vmatpush.bf16.msra.mxu3 %v9704_v21  ;;  %8929 = vmatpush.bf16.msra.mxu2 %v9708_v57  ;;  %v8047_v43 = vunpack.c.l.b16 %v8014_v36  ;;  %v8048_v24 = vunpack.c.h.b16 %v8014_v36  ;;  %v7842_v48 = vunpack.c.l.b16 %v7829_v50  ;;  %v7841_v28 = vunpack.c.h.b16 %v7828_v20 }
0x102e   : > { %7229 = vrot.lane.b32.xlu1 %v7215_v41, %s10402_s9  ;;  %7227 = vrot.lane.b32.xlu0 %v7214_v30, %s10402_s9  ;;  %v14104_v54 = vpack.c.b16 %v7655_v34, %v7655_v34  ;;  %v8049_v62 = vunpack.c.l.b16 %v8015_v6  ;;  %v8050_v27 = vunpack.c.h.b16 %v8015_v6  ;;  %v7844_v0 = vunpack.c.l.b16 %v7830_v60 }
0x102f   : > { %v8055_v46 = vpack.c.b16 %v8047_v43, %v8047_v43  ;;  %v8056_v18 = vpack.c.b16 %v8048_v24, %v8048_v24  ;;  %v14128_v4 = vpack.c.b16 %v7842_v48, %v7842_v48  ;;  %v14130_v7 = vpack.c.b16 %v7841_v28, %v7841_v28 }
0x1030   : > { %v8057_v58 = vpack.c.b16 %v8049_v62, %v8049_v62  ;;  %v7843_v51 = vunpack.c.h.b16 %v7829_v50  ;;  %v8058_v38 = vpack.c.b16 %v8050_v27, %v8050_v27  ;;  %v14161_v41 = vpack.c.b16 %v7844_v0, %v7844_v0 }
0x1031   : > { %8904 = vmatpush.bf16.msra.mxu3 %v9672_v56  ;;  %8930 = vmatpush.bf16.msra.mxu2 %v9676_v15  ;;  %v7663_v57 = vunpack.c.l.b16 %v7649_v53  ;;  %v7482_v32 = vunpack.c.l.b16 %v7468_v29 }
0x1032   : > { %v14164_v40 = vpack.c.b16 %v7843_v51, %v7843_v51 }
0x1033   : > { %v14170_v55 = vpack.c.b16 %v7663_v57, %v7663_v57 }
0x1034   : > { %7231 = vrot.lane.b32.xlu2 %v7216_v10, %s10402_s9 }
0x1036   : > { %8061 = vrot.lane.b32.xlu1 %v8052_v37, %s10416_s13  ;;  %8059 = vrot.lane.b32.xlu0 %v8051_v33, %s10416_s13  ;;  %v14182_v33 = vpack.c.b16 %v7482_v32, %v7482_v32 }
0x103c   : > { %8063 = vrot.lane.b32.xlu2 %v8053_v11, %s10416_s13 }
0x103e   : > { %7854 = vrot.lane.b32.xlu1 %v13842_v61, %s10400_s30  ;;  %8065 = vrot.lane.b32.xlu0 %v8054_v14, %s10416_s13 }
0x1044   : > { %7856 = vrot.lane.b32.xlu2 %v13844_v52, %s10400_s30 }
0x1046   : > { %7860 = vrot.lane.b32.xlu1 %v14090_v59, %s10400_s30  ;;  %7858 = vrot.lane.b32.xlu0 %v14092_v26, %s10400_s30 }
0x104c   : > { %7862 = vrot.lane.b32.xlu2 %v14098_v47, %s10400_s30 }
0x104e   : > { %7675 = vrot.lane.b32.xlu1 %v14102_v45, %s10400_s30  ;;  %7673 = vrot.lane.b32.xlu0 %v14104_v54, %s10400_s30 }
0x1054   : > { %7677 = vrot.lane.b32.xlu2 %v14092_v26, %s10400_s30 }
0x1056   : > { %7681 = vrot.lane.b32.xlu1 %v14098_v47, %s10400_s30  ;;  %7679 = vrot.lane.b32.xlu0 %v14090_v59, %s10400_s30 }
0x105c   : > { %8067 = vrot.lane.b32.xlu2 %v8055_v46, %s10416_s13 }
0x105e   : > { %7492 = vrot.lane.b32.xlu1 %v14104_v54, %s10411_s18  ;;  %8069 = vrot.lane.b32.xlu0 %v8056_v18, %s10416_s13  ;;  %v7287_v18 = vld [vmem:[#allocation4 + $0x24] sm:$0xf] }
0x1064   : > { %7494 = vrot.lane.b32.xlu2 %v14102_v45, %s10411_s18 }
0x1066   : > { %7498 = vrot.lane.b32.xlu1 %v14090_v59, %s10411_s18  ;;  %7496 = vrot.lane.b32.xlu0 %v14092_v26, %s10411_s18 }
0x106c   : > { %7500 = vrot.lane.b32.xlu2 %v14098_v47, %s10411_s18 }
0x106e   : > { %7866 = vrot.lane.b32.xlu1 %v14128_v4, %s10400_s30  ;;  %7864 = vrot.lane.b32.xlu0 %v14130_v7, %s10400_s30 }
0x1074   : > { %7311 = vrot.lane.b32.xlu2 %v14104_v54, %s10400_s30 }
0x1076   : > { %7315 = vrot.lane.b32.xlu1 %v14092_v26, %s10400_s30  ;;  %7313 = vrot.lane.b32.xlu0 %v14102_v45, %s10400_s30 }
0x107c   : > { %7317 = vrot.lane.b32.xlu2 %v14090_v59, %s10400_s30 }
0x107e   : > { %7683 = vrot.lane.b32.xlu1 %v14130_v7, %s10400_s30  ;;  %7319 = vrot.lane.b32.xlu0 %v14098_v47, %s10400_s30 }
0x1084   : > { %7685 = vrot.lane.b32.xlu2 %v14128_v4, %s10400_s30 }
0x1086   : > { %7504 = vrot.lane.b32.xlu1 %v14128_v4, %s10411_s18  ;;  %7502 = vrot.lane.b32.xlu0 %v14130_v7, %s10411_s18  ;;  %v7226_v35 = vpop.permute.xlu2 %7225 }
0x1087   : > { %v7243_v8 = vrot.slane %v7226_v35, 4 }
0x108c   : > { %7321 = vrot.lane.b32.xlu2 %v14130_v7, %s10400_s30 }
0x108e   : > { %8071 = vrot.lane.b32.xlu1 %v8057_v58, %s10416_s13  ;;  %7323 = vrot.lane.b32.xlu0 %v14128_v4, %s10400_s30  ;;  %v14159_v5 = vpop.permute.xlu2 %7231 }
0x1090   : > { %v7222_v30 = vpop.permute.xlu0 %7221 }
0x1091   : > { %v7241_v3 = vrot.slane %v7222_v30, 4 }
0x1094   : > { %8073 = vrot.lane.b32.xlu2 %v8058_v38, %s10416_s13 }
0x1096   : > { %7870 = vrot.lane.b32.xlu1 %v14161_v41, %s10400_s30  ;;  %7868 = vrot.lane.b32.xlu0 %v14164_v40, %s10400_s30  ;;  %v8064_v21 = vpop.permute.xlu2 %8063 }
0x1098   : > { %v7224_v63 = vpop.permute.xlu1 %7223 }
0x1099   : > { %v7242_v2 = vrot.slane %v7224_v63, 4 }
0x109b   : > { %v7251_v1 = vsel %vm484_vm3, %v7241_v3, %v7242_v2  ;;  %v7253_v56 = vsel %vm484_vm3, %v7242_v2, %v7243_v8 }
0x109c   : > { %v7252_v15 = vsel %vm458_vm4, %v7222_v30, %v7251_v1  ;;  %v7254_v39 = vsel %vm458_vm4, %v7224_v63, %v7253_v56  ;;  %7687 = vrot.lane.b32.xlu2 %v14164_v40, %s10400_s30 }
0x109d   : > { %7275 = vst [vmem:[#allocation3 + $0x200] sm:$0xff] %v7252_v15 }
0x109e   : > { %7276 = vst [vmem:[#allocation3 + $0x208] sm:$0xff] %v7254_v39  ;;  %7506 = vrot.lane.b32.xlu1 %v14164_v40, %s10411_s18  ;;  %7689 = vrot.lane.b32.xlu0 %v14170_v55, %s10400_s30  ;;  %v7857_v10 = vpop.permute.xlu2 %7856 }
0x10a0   : > { %v7230_v19 = vpop.permute.xlu1 %7229  ;;  %v7228_v37 = vpop.permute.xlu0 %7227 }
0x10a1   : > { %v7245_v25 = vrot.slane %v7230_v19, 4  ;;  %v7244_v16 = vrot.slane %v7228_v37, 4 }
0x10a3   : > { %v7255_v11 = vsel %vm484_vm3, %v7243_v8, %v7244_v16  ;;  %v7257_v14 = vsel %vm484_vm3, %v7244_v16, %v7245_v25 }
0x10a4   : > { %v7256_v42 = vsel %vm458_vm4, %v7226_v35, %v7255_v11  ;;  %v7258_v23 = vsel %vm458_vm4, %v7228_v37, %v7257_v14  ;;  %7508 = vrot.lane.b32.xlu2 %v14182_v33, %s10411_s18  ;;  %v7301_v35 = vunpack.c.l.b16 %v7287_v18  ;;  %s10423_s18 = smov 17  }
0x10a5   : > { %7277 = vst [vmem:[#allocation3 + $0x210] sm:$0xff] %v7256_v42 }
0x10a6   : > { %7278 = vst [vmem:[#allocation3 + $0x218] sm:$0xff] %v7258_v23  ;;  %v14190_v9 = vpop.permute.xlu2 %7862  ;;  %v14208_v51 = vpack.c.b16 %v7301_v35, %v7301_v35 }
0x10a8   : > { %v8062_v20 = vpop.permute.xlu1 %8061  ;;  %v8060_v49 = vpop.permute.xlu0 %8059 }
0x10a9   : > { %v8075_v44 = vsel %vm5784_vm12, %v8060_v49, %v8062_v20  ;;  %v8084_v22 = vsel %vm484_vm3, %v14104_v54, %v8060_v49  ;;  %v8076_v50 = vsel %vm5784_vm12, %v8062_v20, %v8064_v21 }
0x10aa   : > { %v8087_v34 = vsel %vm484_vm3, %v14102_v45, %v8075_v44  ;;  %v8118_v36 = vunpack.c.l.b16 %v8084_v22  ;;  %v8127_v43 = vunpack.c.h.b16 %v8084_v22  ;;  %v8090_v62 = vsel %vm484_vm3, %v14092_v26, %v8076_v50 }
0x10ab   : > { %v8119_v24 = vunpack.c.l.b16 %v8087_v34  ;;  %v8128_v46 = vunpack.c.h.b16 %v8087_v34  ;;  %v8120_v38 = vunpack.c.l.b16 %v8090_v62  ;;  %v8129_v53 = vunpack.c.h.b16 %v8090_v62 }
0x10ad   : > { %v8136_v48 = vpack.c.b16 %v8119_v24, %v8118_v36  ;;  %v8141_v28 = vpack.c.b16 %v8128_v46, %v8127_v43 }
0x10ae   : > { %v7678_v6 = vpop.permute.xlu2 %7677 }
0x10af   : > { %8156 = vrot.lane.b32.xlu2 %v8141_v28, %s10423_s18  ;;  %8146 = vrot.lane.b32.xlu0 %v8136_v48, %s10423_s18 }
0x10b0   : > { %v7855_v60 = vpop.permute.xlu1 %7854  ;;  %v14202_v58 = vpop.permute.xlu0 %8065 }
0x10b1   : > { %v8077_v27 = vsel %vm5784_vm12, %v8064_v21, %v14202_v58  ;;  %v7872_v63 = vsel %vm358_vm0, %v7855_v60, %v7857_v10 }
0x10b2   : > { %v8093_v0 = vsel %vm484_vm3, %v14090_v59, %v8077_v27  ;;  %v7882_v21 = vsel %vm484_vm3, %v13842_v61, %v7872_v63 }
0x10b3   : > { %v8121_v30 = vunpack.c.l.b16 %v8093_v0  ;;  %v8130_v57 = vunpack.c.h.b16 %v8093_v0  ;;  %v7916_v39 = vunpack.c.l.b16 %v7882_v21  ;;  %v7925_v25 = vunpack.c.h.b16 %v7882_v21 }
0x10b5   : > { %v8137_v8 = vpack.c.b16 %v8121_v30, %v8120_v38  ;;  %v8142_v3 = vpack.c.b16 %v8130_v57, %v8129_v53 }
0x10b6   : > { %v14211_v2 = vpop.permute.xlu2 %8067 }
0x10b7   : > { %7327 = vrot.lane.b32.xlu2 %v14208_v51, %s10400_s30  ;;  %8158 = vrot.lane.b32.xlu0 %v8142_v3, %s10423_s18 }
0x10b8   : > { %8148 = vrot.lane.b32.xlu1 %v8137_v8, %s10423_s18  ;;  %v7861_v29 = vpop.permute.xlu1 %7860  ;;  %v7859_v1 = vpop.permute.xlu0 %7858  ;;  %v8078_v8 = vsel %vm5784_vm12, %v14202_v58, %v14211_v2 }
0x10b9   : > { %v7873_v56 = vsel %vm358_vm0, %v7857_v10, %v7859_v1  ;;  %v7875_v32 = vsel %vm358_vm0, %v7861_v29, %v14190_v9  ;;  %v7874_v19 = vsel %vm358_vm0, %v7859_v1, %v7861_v29  ;;  %v8096_v1 = vsel %vm484_vm3, %v14098_v47, %v8078_v8 }
0x10ba   : > { %v7885_v15 = vsel %vm484_vm3, %v13844_v52, %v7873_v56  ;;  %v7891_v61 = vsel %vm484_vm3, %v14090_v59, %v7875_v32  ;;  %v7888_v14 = vsel %vm484_vm3, %v14092_v26, %v7874_v19 }
0x10bb   : > { %v7917_v37 = vunpack.c.l.b16 %v7885_v15  ;;  %v7926_v16 = vunpack.c.h.b16 %v7885_v15  ;;  %v7928_v20 = vunpack.c.h.b16 %v7891_v61  ;;  %v7927_v49 = vunpack.c.h.b16 %v7888_v14 }
0x10bc   : > { %v7919_v44 = vunpack.c.l.b16 %v7891_v61  ;;  %v7918_v22 = vunpack.c.l.b16 %v7888_v14 }
0x10bd   : > { %v7934_v11 = vpack.c.b16 %v7917_v37, %v7916_v39  ;;  %v7939_v10 = vpack.c.b16 %v7926_v16, %v7925_v25  ;;  %v7940_v43 = vpack.c.b16 %v7928_v20, %v7927_v49  ;;  %v8122_v37 = vunpack.c.l.b16 %v8096_v1 }
0x10be   : > { %v14229_v42 = vpop.permute.xlu2 %7494  ;;  %v7935_v24 = vpack.c.b16 %v7919_v44, %v7918_v22  ;;  %v8131_v25 = vunpack.c.h.b16 %v8096_v1 }
0x10bf   : > { %7944 = vrot.lane.b32.xlu0 %v7934_v11, %s10424_s20  ;;  %7954 = vrot.lane.b32.xlu2 %v7939_v10, %s10424_s20 }
0x10c0   : > { %7325 = vrot.lane.b32.xlu1 %v14164_v40, %s10400_s30  ;;  %v7676_v52 = vpop.permute.xlu1 %7675  ;;  %v7674_v23 = vpop.permute.xlu0 %7673  ;;  %s10425_s30 = smov 28  }
0x10c1   : > { %v7692_v34 = vsel %vm358_vm0, %v7676_v52, %v7678_v6  ;;  %v7691_v36 = vsel %vm358_vm0, %v7674_v23, %v7676_v52 }
0x10c2   : > { %v7704_v46 = vsel %vm484_vm3, %v14102_v45, %v7692_v34  ;;  %v7701_v18 = vsel %vm484_vm3, %v14104_v54, %v7691_v36 }
0x10c3   : > { %v7745_v35 = vunpack.c.h.b16 %v7704_v46  ;;  %v7744_v62 = vunpack.c.h.b16 %v7701_v18  ;;  %v7736_v0 = vunpack.c.l.b16 %v7704_v46  ;;  %v7735_v38 = vunpack.c.l.b16 %v7701_v18 }
0x10c5   : > { %v7758_v3 = vpack.c.b16 %v7745_v35, %v7744_v62 }
0x10c6   : > { %v14241_v50 = vpop.permute.xlu2 %7500 }
0x10c7   : > { %7956 = vrot.lane.b32.xlu0 %v7940_v43, %s10424_s20 }
0x10c8   : > { %7946 = vrot.lane.b32.xlu1 %v7935_v24, %s10424_s20  ;;  %v14245_v48 = vpop.permute.xlu1 %7681  ;;  %v7680_v28 = vpop.permute.xlu0 %7679 }
0x10c9   : > { %v7693_v60 = vsel %vm358_vm0, %v7678_v6, %v7680_v28  ;;  %v7694_v27 = vsel %vm358_vm0, %v7680_v28, %v14245_v48  ;;  %v7753_v6 = vpack.c.b16 %v7736_v0, %v7735_v38 }
0x10ca   : > { %v7707_v53 = vsel %vm484_vm3, %v14092_v26, %v7693_v60  ;;  %v7710_v30 = vsel %vm484_vm3, %v14090_v59, %v7694_v27 }
0x10cb   : > { %v7737_v57 = vunpack.c.l.b16 %v7707_v53  ;;  %v7738_v63 = vunpack.c.l.b16 %v7710_v30  ;;  %v7746_v39 = vunpack.c.h.b16 %v7707_v53  ;;  %v7747_v32 = vunpack.c.h.b16 %v7710_v30 }
0x10cd   : > { %v7754_v21 = vpack.c.b16 %v7738_v63, %v7737_v57  ;;  %v7759_v52 = vpack.c.b16 %v7747_v32, %v7746_v39 }
0x10ce   : > { %v14257_v29 = vpop.permute.xlu2 %7311 }
0x10cf   : > { %7765 = vrot.lane.b32.xlu2 %v7754_v21, %s10425_s30  ;;  %7773 = vrot.lane.b32.xlu0 %v7758_v3, %s10425_s30 }
0x10d0   : > { %7763 = vrot.lane.b32.xlu1 %v7753_v6, %s10425_s30  ;;  %v7493_v56 = vpop.permute.xlu1 %7492  ;;  %v14264_v15 = vpop.permute.xlu0 %8069 }
0x10d1   : > { %v8079_v58 = vsel %vm5784_vm12, %v14211_v2, %v14264_v15  ;;  %v7510_v61 = vsel %vm1917_vm14, %v7493_v56, %v14229_v42 }
0x10d2   : > { %v8099_v19 = vsel %vm484_vm3, %v14130_v7, %v8079_v58  ;;  %v7520_v2 = vsel %vm484_vm3, %v14104_v54, %v7510_v61 }
0x10d3   : > { %v8123_v16 = vunpack.c.l.b16 %v8099_v19  ;;  %v8132_v11 = vunpack.c.h.b16 %v8099_v19  ;;  %v7554_v46 = vunpack.c.l.b16 %v7520_v2  ;;  %v7563_v62 = vunpack.c.h.b16 %v7520_v2 }
0x10d5   : > { %v8138_v14 = vpack.c.b16 %v8123_v16, %v8122_v37  ;;  %v8143_v10 = vpack.c.b16 %v8132_v11, %v8131_v25 }
0x10d6   : > { %v14273_v23 = vpop.permute.xlu2 %7317 }
0x10d7   : > { %8160 = vrot.lane.b32.xlu0 %v8143_v10, %s10423_s18  ;;  %8150 = vrot.lane.b32.xlu2 %v8138_v14, %s10423_s18 }
0x10d8   : > { %7775 = vrot.lane.b32.xlu1 %v7759_v52, %s10425_s30  ;;  %v7499_v20 = vpop.permute.xlu1 %7498  ;;  %v7497_v49 = vpop.permute.xlu0 %7496 }
0x10d9   : > { %v7513_v44 = vsel %vm1917_vm14, %v7499_v20, %v14241_v50  ;;  %v7511_v22 = vsel %vm1917_vm14, %v14229_v42, %v7497_v49  ;;  %v7512_v34 = vsel %vm1917_vm14, %v7497_v49, %v7499_v20 }
0x10da   : > { %v7529_v36 = vsel %vm484_vm3, %v14090_v59, %v7513_v44  ;;  %v7523_v43 = vsel %vm484_vm3, %v14102_v45, %v7511_v22  ;;  %v7526_v24 = vsel %vm484_vm3, %v14092_v26, %v7512_v34 }
0x10db   : > { %v7557_v18 = vunpack.c.l.b16 %v7529_v36  ;;  %v7555_v28 = vunpack.c.l.b16 %v7523_v43  ;;  %v7556_v35 = vunpack.c.l.b16 %v7526_v24  ;;  %v7564_v60 = vunpack.c.h.b16 %v7523_v43 }
0x10dc   : > { %v7566_v8 = vunpack.c.h.b16 %v7529_v36  ;;  %v7565_v3 = vunpack.c.h.b16 %v7526_v24 }
0x10dd   : > { %v7572_v27 = vpack.c.b16 %v7555_v28, %v7554_v46  ;;  %v7573_v0 = vpack.c.b16 %v7557_v18, %v7556_v35  ;;  %v7577_v42 = vpack.c.b16 %v7564_v60, %v7563_v62 }
0x10de   : > { %v14291_v38 = vpop.permute.xlu2 %7685  ;;  %v7578_v37 = vpack.c.b16 %v7566_v8, %v7565_v3 }
0x10df   : > { %7584 = vrot.lane.b32.xlu2 %v7573_v0, %s10426_s21  ;;  %7592 = vrot.lane.b32.xlu0 %v7577_v42, %s10426_s21 }
0x10e0   : > { %7582 = vrot.lane.b32.xlu1 %v7572_v27, %s10426_s21  ;;  %v14296_v53 = vpop.permute.xlu1 %7866  ;;  %v7865_v30 = vpop.permute.xlu0 %7864 }
0x10e1   : > { %v7876_v57 = vsel %vm358_vm0, %v14190_v9, %v7865_v30  ;;  %v7877_v63 = vsel %vm358_vm0, %v7865_v30, %v14296_v53 }
0x10e2   : > { %v7894_v21 = vsel %vm484_vm3, %v14098_v47, %v7876_v57  ;;  %v7897_v6 = vsel %vm484_vm3, %v14130_v7, %v7877_v63 }
0x10e3   : > { %v7920_v1 = vunpack.c.l.b16 %v7894_v21  ;;  %v7921_v56 = vunpack.c.l.b16 %v7897_v6  ;;  %v7929_v58 = vunpack.c.h.b16 %v7894_v21  ;;  %v7930_v39 = vunpack.c.h.b16 %v7897_v6 }
0x10e5   : > { %v7936_v32 = vpack.c.b16 %v7921_v56, %v7920_v1  ;;  %v7941_v19 = vpack.c.b16 %v7930_v39, %v7929_v58 }
0x10e6   : > { %v14306_v25 = vpop.permute.xlu2 %7321 }
0x10e7   : > { %7948 = vrot.lane.b32.xlu2 %v7936_v32, %s10424_s20  ;;  %7958 = vrot.lane.b32.xlu0 %v7941_v19, %s10424_s20 }
0x10e8   : > { %7594 = vrot.lane.b32.xlu1 %v7578_v37, %s10426_s21  ;;  %v7316_v9 = vpop.permute.xlu1 %7315  ;;  %v7314_v16 = vpop.permute.xlu0 %7313 }
0x10e9   : > { %v7329_v11 = vsel %vm358_vm0, %v14257_v29, %v7314_v16  ;;  %v7330_v61 = vsel %vm358_vm0, %v7314_v16, %v7316_v9  ;;  %v7331_v22 = vsel %vm358_vm0, %v7316_v9, %v14273_v23 }
0x10ea   : > { %v7339_v14 = vsel %vm484_vm3, %v14104_v54, %v7329_v11  ;;  %v7342_v10 = vsel %vm484_vm3, %v14102_v45, %v7330_v61  ;;  %v7345_v45 = vsel %vm484_vm3, %v14092_v26, %v7331_v22 }
0x10eb   : > { %v7373_v52 = vunpack.c.l.b16 %v7339_v14  ;;  %v7374_v2 = vunpack.c.l.b16 %v7342_v10  ;;  %v7382_v20 = vunpack.c.h.b16 %v7339_v14  ;;  %v7383_v49 = vunpack.c.h.b16 %v7342_v10 }
0x10ec   : > { %v7375_v60 = vunpack.c.l.b16 %v7345_v45  ;;  %v7384_v27 = vunpack.c.h.b16 %v7345_v45 }
0x10ed   : > { %v7391_v44 = vpack.c.b16 %v7374_v2, %v7373_v52  ;;  %v7396_v34 = vpack.c.b16 %v7383_v49, %v7382_v20 }
0x10ee   : > { %v14320_v36 = vpop.permute.xlu2 %8073 }
0x10ef   : > { %7411 = vrot.lane.b32.xlu0 %v7396_v34, %s10427_s22 }
0x10f0   : > { %7401 = vrot.lane.b32.xlu1 %v7391_v44, %s10427_s22  ;;  %v7684_v54 = vpop.permute.xlu1 %7683  ;;  %v7320_v29 = vpop.permute.xlu0 %7319 }
0x10f1   : > { %v7695_v43 = vsel %vm358_vm0, %v14245_v48, %v7684_v54  ;;  %v7696_v24 = vsel %vm358_vm0, %v7684_v54, %v14291_v38  ;;  %v7332_v46 = vsel %vm358_vm0, %v14273_v23, %v7320_v29  ;;  %v7333_v37 = vsel %vm358_vm0, %v7320_v29, %v14306_v25 }
0x10f2   : > { %v7713_v18 = vsel %vm484_vm3, %v14098_v47, %v7695_v43  ;;  %v7716_v28 = vsel %vm484_vm3, %v14130_v7, %v7696_v24  ;;  %v7348_v35 = vsel %vm484_vm3, %v14090_v59, %v7332_v46  ;;  %v7351_v16 = vsel %vm484_vm3, %v14098_v47, %v7333_v37 }
0x10f3   : > { %v7748_v62 = vunpack.c.h.b16 %v7713_v18  ;;  %v7749_v26 = vunpack.c.h.b16 %v7716_v28  ;;  %v7376_v48 = vunpack.c.l.b16 %v7348_v35  ;;  %v7385_v0 = vunpack.c.h.b16 %v7348_v35 }
0x10f4   : > { %v7739_v21 = vunpack.c.l.b16 %v7713_v18  ;;  %v7740_v6 = vunpack.c.l.b16 %v7716_v28  ;;  %v7377_v2 = vunpack.c.l.b16 %v7351_v16  ;;  %v7386_v35 = vunpack.c.h.b16 %v7351_v16 }
0x10f5   : > { %v7760_v42 = vpack.c.b16 %v7749_v26, %v7748_v62  ;;  %v7392_v30 = vpack.c.b16 %v7376_v48, %v7375_v60  ;;  %v7397_v57 = vpack.c.b16 %v7385_v0, %v7384_v27  ;;  %v8011_v62 = vld [vmem:[#allocation4 + $0x24] sm:$0xf] }
0x10f6   : > { %v7688_v3 = vpop.permute.xlu2 %7687  ;;  %v7755_v19 = vpack.c.b16 %v7740_v6, %v7739_v21  ;;  %v8029_v48 = vunpack.c.l.b16 %v8011_v62 }
0x10f7   : > { %7403 = vrot.lane.b32.xlu2 %v7392_v30, %s10427_s22  ;;  %7777 = vrot.lane.b32.xlu0 %v7760_v42, %s10425_s30 }
0x10f8   : > { %7413 = vrot.lane.b32.xlu1 %v7397_v57, %s10427_s22  ;;  %v14340_v23 = vpop.permute.xlu1 %7504  ;;  %v7503_v63 = vpop.permute.xlu0 %7502  ;;  %v8038_v6 = vpack.c.b16 %v8029_v48, %v8029_v48 }
0x10f9   : > { %v7514_v59 = vsel %vm1917_vm14, %v14241_v50, %v7503_v63  ;;  %v7515_v8 = vsel %vm1917_vm14, %v7503_v63, %v14340_v23 }
0x10fa   : > { %v7532_v1 = vsel %vm484_vm3, %v14098_v47, %v7514_v59  ;;  %v7535_v56 = vsel %vm484_vm3, %v14130_v7, %v7515_v8 }
0x10fb   : > { %v7567_v58 = vunpack.c.h.b16 %v7532_v1  ;;  %v7568_v39 = vunpack.c.h.b16 %v7535_v56  ;;  %v7558_v61 = vunpack.c.l.b16 %v7532_v1  ;;  %v7559_v14 = vunpack.c.l.b16 %v7535_v56 }
0x10fd   : > { %v7579_v32 = vpack.c.b16 %v7568_v39, %v7567_v58  ;;  %v7574_v49 = vpack.c.b16 %v7559_v14, %v7558_v61 }
0x10fe   : > { %v14368_v52 = vpop.permute.xlu2 %7508 }
0x10ff   : > { %7767 = vrot.lane.b32.xlu2 %v7755_v19, %s10425_s30  ;;  %7596 = vrot.lane.b32.xlu0 %v7579_v32, %s10426_s21 }
0x1100   : > { %7233 = vrot.lane.b32.xlu1 %v14055_v31, %s10402_s9  ;;  %v8072_v50 = vpop.permute.xlu1 %8071  ;;  %v14356_v9 = vpop.permute.xlu0 %7323 }
0x1101   : > { %v7334_v11 = vsel %vm358_vm0, %v14306_v25, %v14356_v9  ;;  %v8080_v31 = vsel %vm5784_vm12, %v14264_v15, %v8072_v50  ;;  %v8081_v47 = vsel %vm5784_vm12, %v8072_v50, %v14320_v36 }
0x1102   : > { %v7354_v10 = vsel %vm484_vm3, %v14130_v7, %v7334_v11  ;;  %v8102_v44 = vsel %vm484_vm3, %v14128_v4, %v8080_v31  ;;  %v8105_v22 = vsel %vm484_vm3, %v14164_v40, %v8081_v47 }
0x1103   : > { %v7378_v20 = vunpack.c.l.b16 %v7354_v10  ;;  %v8124_v34 = vunpack.c.l.b16 %v8102_v44  ;;  %v8125_v45 = vunpack.c.l.b16 %v8105_v22  ;;  %v7387_v43 = vunpack.c.h.b16 %v7354_v10 }
0x1104   : > { %v8133_v30 = vunpack.c.h.b16 %v8102_v44  ;;  %v8134_v63 = vunpack.c.h.b16 %v8105_v22 }
0x1105   : > { %v7393_v25 = vpack.c.b16 %v7378_v20, %v7377_v2  ;;  %v7398_v27 = vpack.c.b16 %v7387_v43, %v7386_v35 }
0x1106   : > { %v8144_v32 = vpack.c.b16 %v8134_v63, %v8133_v30 }
0x1107   : > { %7586 = vrot.lane.b32.xlu2 %v7574_v49, %s10426_s21  ;;  %7235 = vrot.lane.b32.xlu0 %v14072_v12, %s10402_s9  ;;  %v7697_v12 = vsel %vm358_vm0, %v14291_v38, %v7688_v3 }
0x1108   : > { %7405 = vrot.lane.b32.xlu1 %v7393_v25, %s10427_s22  ;;  %v7871_v7 = vpop.permute.xlu1 %7870  ;;  %v7869_v15 = vpop.permute.xlu0 %7868  ;;  %v7719_v42 = vsel %vm484_vm3, %v14128_v4, %v7697_v12 }
0x1109   : > { %v7878_v54 = vsel %vm358_vm0, %v14296_v53, %v7869_v15  ;;  %v7879_v29 = vsel %vm358_vm0, %v7869_v15, %v7871_v7  ;;  %v14387_v60 = vpop.permute.xlu2 %8156  ;;  %v8139_v53 = vpack.c.b16 %v8125_v45, %v8124_v34  ;;  %v7750_v1 = vunpack.c.h.b16 %v7719_v42 }
0x110a   : > { %v7900_v24 = vsel %vm484_vm3, %v14128_v4, %v7878_v54  ;;  %v7903_v46 = vsel %vm484_vm3, %v14164_v40, %v7879_v29  ;;  %v7741_v31 = vunpack.c.l.b16 %v7719_v42  ;;  %v7906_v20 = vsel %vm484_vm3, %v14161_v41, %v7871_v7 }
0x110b   : > { %v7922_v18 = vunpack.c.l.b16 %v7900_v24  ;;  %v7923_v28 = vunpack.c.l.b16 %v7903_v46  ;;  %v7931_v59 = vunpack.c.h.b16 %v7900_v24  ;;  %v7932_v8 = vunpack.c.h.b16 %v7903_v46 }
0x110c   : > { %v7933_v34 = vunpack.c.h.b16 %v7906_v20  ;;  %v7924_v24 = vunpack.c.l.b16 %v7906_v20  ;;  %v8171_v46 = vrot.slane %v14387_v60, 4 }
0x110d   : > { %v7937_v26 = vpack.c.b16 %v7923_v28, %v7922_v18  ;;  %v7942_v19 = vpack.c.b16 %v7932_v8, %v7931_v59 }
0x110e   : > { %v7943_v45 = vpack.c.b16 %v7933_v34, %v7933_v34 }
0x110f   : > { %7415 = vrot.lane.b32.xlu2 %v7398_v27, %s10427_s22  ;;  %7950 = vrot.lane.b32.xlu0 %v7937_v26, %s10424_s20  ;;  %v7938_v27 = vpack.c.b16 %v7924_v24, %v7924_v24 }
0x1110   : > { %8152 = vrot.lane.b32.xlu1 %v8139_v53, %s10423_s18  ;;  %v7690_v0 = vpop.permute.xlu0 %7689  ;;  %v7507_v38 = vpop.permute.xlu1 %7506 }
0x1111   : > { %v7698_v57 = vsel %vm358_vm0, %v7688_v3, %v7690_v0  ;;  %v7516_v58 = vsel %vm1917_vm14, %v14340_v23, %v7507_v38  ;;  %v7517_v39 = vsel %vm1917_vm14, %v7507_v38, %v14368_v52  ;;  %v8108_v3 = vsel %vm484_vm3, %v8038_v6, %v14320_v36  ;;  %v14405_v50 = vpop.permute.xlu2 %7327 }
0x1112   : > { %v7722_v21 = vsel %vm484_vm3, %v14164_v40, %v7698_v57  ;;  %v7538_v16 = vsel %vm484_vm3, %v14128_v4, %v7516_v58  ;;  %v7541_v11 = vsel %vm484_vm3, %v14164_v40, %v7517_v39  ;;  %v8126_v23 = vunpack.c.l.b16 %v8108_v3 }
0x1113   : > { %v7751_v56 = vunpack.c.h.b16 %v7722_v21  ;;  %v7742_v61 = vunpack.c.l.b16 %v7722_v21  ;;  %v7560_v14 = vunpack.c.l.b16 %v7538_v16  ;;  %v7561_v10 = vunpack.c.l.b16 %v7541_v11 }
0x1114   : > { %v8140_v36 = vpack.c.b16 %v8126_v23, %v8126_v23  ;;  %v8135_v25 = vunpack.c.h.b16 %v8108_v3  ;;  %v7569_v22 = vunpack.c.h.b16 %v7538_v16  ;;  %v7570_v15 = vunpack.c.h.b16 %v7541_v11 }
0x1115   : > { %v7761_v37 = vpack.c.b16 %v7751_v56, %v7750_v1  ;;  %v7756_v2 = vpack.c.b16 %v7742_v61, %v7741_v31  ;;  %v7575_v47 = vpack.c.b16 %v7561_v10, %v7560_v14  ;;  %v14423_v43 = vsel %vm484_vm3, %v14170_v55, %v7690_v0 }
0x1116   : > { %v8145_v54 = vpack.c.b16 %v8135_v25, %v8135_v25  ;;  %v7580_v29 = vpack.c.b16 %v7570_v15, %v7569_v22  ;;  %vm8177_vm14 = vcmask 138240   ;;  %v7743_v55 = vunpack.c.l.b16 %v14423_v43 }
0x1117   : > { %8162 = vrot.lane.b32.xlu2 %v8144_v32, %s10423_s18  ;;  %7779 = vrot.lane.b32.xlu0 %v7761_v37, %s10425_s30  ;;  %v14445_v0 = vsel %vm484_vm3, %v14182_v33, %v14368_v52  ;;  %v7363_v23 = vsel %vm484_vm3, %v14208_v51, %v14405_v50  ;;  %v7752_v20 = vunpack.c.h.b16 %v14423_v43 }
0x1118   : > { %7960 = vrot.lane.b32.xlu1 %v7942_v19, %s10424_s20  ;;  %v7757_v42 = vpack.c.b16 %v7743_v55, %v7743_v55  ;;  %v7571_v55 = vunpack.c.h.b16 %v14445_v0 }
0x1119   : > { %v14418_v49 = vpop.permute.xlu2 %7954  ;;  %v7762_v34 = vpack.c.b16 %v7752_v20, %v7752_v20 }
0x111a   : > { %v7969_v10 = vrot.slane %v14418_v49, 4 }
0x111f   : > { %7769 = vrot.lane.b32.xlu2 %v7756_v2, %s10425_s30  ;;  %7588 = vrot.lane.b32.xlu0 %v7575_v47, %s10426_s21  ;;  %v7390_v2 = vunpack.c.h.b16 %v7363_v23 }
0x1120   : > { %8154 = vrot.lane.b32.xlu1 %v8140_v36, %s10423_s18 }
0x1121   : > { %v8147_v44 = vpop.permute.xlu0 %8146  ;;  %v7400_v15 = vpack.c.b16 %v7390_v2, %v7390_v2 }
0x1122   : > { %v8166_v35 = vrot.slane %v8147_v44, 4 }
0x1127   : > { %8164 = vrot.lane.b32.xlu2 %v8145_v54, %s10423_s18  ;;  %7962 = vrot.lane.b32.xlu0 %v7943_v45, %s10424_s20 }
0x1128   : > { %7598 = vrot.lane.b32.xlu1 %v7580_v29, %s10426_s21 }
0x1129   : > { %v14428_v41 = vpop.permute.xlu0 %8158  ;;  %v14430_v7 = vpop.permute.xlu2 %7765 }
0x112a   : > { %v8172_v18 = vrot.slane %v14428_v41, 4  ;;  %v8149_v28 = vpop.permute.xlu1 %8148 }
0x112b   : > { %v8167_v62 = vrot.slane %v8149_v28, 4 }
0x112c   : > { %v8185_v26 = vsel %vm484_vm3, %v8171_v46, %v8172_v18  ;;  %v7381_v46 = vunpack.c.l.b16 %v7363_v23 }
0x112d   : > { %v8186_v12 = vsel %vm8177_vm14, %v14387_v60, %v8185_v26  ;;  %v8176_v53 = vsel %vm484_vm3, %v8166_v35, %v8167_v62  ;;  %v7562_v60 = vunpack.c.l.b16 %v14445_v0 }
0x112e   : > { %8205 = vst [vmem:[#allocation3 + $0x360] sm:$0xff] %v8186_v12  ;;  %v8178_v48 = vsel %vm8177_vm14, %v8147_v44, %v8176_v53 }
0x112f   : > { %8201 = vst [vmem:[#allocation3 + $0x340] sm:$0xff] %v8178_v48  ;;  %7952 = vrot.lane.b32.xlu2 %v7938_v27, %s10424_s20  ;;  %7771 = vrot.lane.b32.xlu0 %v7757_v42, %s10425_s30 }
0x1131   : > { %v7945_v30 = vpop.permute.xlu0 %7944  ;;  %v14449_v57 = vpop.permute.xlu2 %8150 }
0x1132   : > { %v7326_v63 = vpop.permute.xlu1 %7325  ;;  %v8168_v59 = vrot.slane %v14449_v57, 4  ;;  %v7964_v47 = vrot.slane %v7945_v30, 4 }
0x1133   : > { %v7335_v8 = vsel %vm358_vm0, %v14356_v9, %v7326_v63  ;;  %v7336_v33 = vsel %vm358_vm0, %v7326_v63, %v14405_v50  ;;  %v7576_v9 = vpack.c.b16 %v7562_v60, %v7562_v60  ;;  %vm7975_vm0 = vcmask 154624  }
0x1134   : > { %v7357_v52 = vsel %vm484_vm3, %v14128_v4, %v7335_v8  ;;  %v7360_v38 = vsel %vm484_vm3, %v14164_v40, %v7336_v33  ;;  %v8179_v21 = vsel %vm484_vm3, %v8167_v62, %v8168_v59  ;;  %v7581_v60 = vpack.c.b16 %v7571_v55, %v7571_v55 }
0x1135   : > { %v7379_v6 = vunpack.c.l.b16 %v7357_v52  ;;  %v7380_v1 = vunpack.c.l.b16 %v7360_v38  ;;  %v7388_v56 = vunpack.c.h.b16 %v7357_v52  ;;  %v7389_v58 = vunpack.c.h.b16 %v7360_v38  ;;  %v10348_v39 = vld [vmem:[#allocation3 + $0x35c] sm:$0xf0]  ;;  %v10089_v32 = vld [vmem:[#allocation3 + $0x360] sm:$0xf0] }
0x1136   : > { %v8180_v19 = vsel %vm8177_vm14, %v8149_v28, %v8179_v21  ;;  %v10087_v37 = vld [vmem:[#allocation3 + $0x340] sm:$0xf]  ;;  %v10344_v3 = vld [vmem:[#allocation3 + $0x344] sm:$0xf]  ;;  %v7210_v21 = vunpack.c.h.b16 %v14059_v13 }
0x1137   : > { %v7394_v16 = vpack.c.b16 %v7380_v1, %v7379_v6  ;;  %v7399_v4 = vpack.c.b16 %v7389_v58, %v7388_v56  ;;  %8202 = vst [vmem:[#allocation3 + $0x348] sm:$0xff] %v8180_v19  ;;  %v10088_v11 = vor.u32 %v10348_v39, %v10087_v37  ;;  %v10092_v40 = vor.u32 %v10344_v3, %v10089_v32 }
0x1138   : > { %7590 = vrot.lane.b32.xlu0 %v7576_v9, %s10426_s21  ;;  %v7220_v58 = vpack.c.b16 %v7210_v21, %v7210_v21 }
0x1139   : > { %8912 = vmatpush.bf16.msra.mxu1 %v10088_v11  ;;  %v14469_v61 = vpop.permute.xlu0 %7956  ;;  %v14471_v14 = vpop.permute.xlu2 %7584  ;;  %8938 = vmatpush.bf16.msra.mxu0 %v10092_v40 }
0x113a   : > { %7417 = vrot.lane.b32.xlu2 %v7399_v4, %s10427_s22  ;;  %v7970_v31 = vrot.slane %v14469_v61, 4  ;;  %v7947_v36 = vpop.permute.xlu1 %7946  ;;  %7407 = vrot.lane.b32.xlu1 %v7394_v16, %s10427_s22  ;;  %v7603_v9 = vrot.slane %v14471_v14, 4 }
0x113b   : > { %v7965_v51 = vrot.slane %v7947_v36, 4 }
0x113c   : > { %v7983_v50 = vsel %vm484_vm3, %v7969_v10, %v7970_v31 }
0x113d   : > { %v7984_v44 = vsel %vm7975_vm0, %v14418_v49, %v7983_v50  ;;  %v7974_v25 = vsel %vm484_vm3, %v7964_v47, %v7965_v51  ;;  %v7784_v49 = vrot.slane %v14430_v7, 4 }
0x113e   : > { %8003 = vst [vmem:[#allocation3 + $0x320] sm:$0xff] %v7984_v44  ;;  %v7976_v22 = vsel %vm7975_vm0, %v7945_v30, %v7974_v25  ;;  %v7395_v30 = vpack.c.b16 %v7381_v46, %v7381_v46  ;;  %v10095_v19 = vld [vmem:[#allocation3 + $0x348] sm:$0xf]  ;;  %v10345_v37 = vld [vmem:[#allocation3 + $0x34c] sm:$0xf] }
0x113f   : > { %7999 = vst [vmem:[#allocation3 + $0x300] sm:$0xff] %v7976_v22 }
0x1140   : > { %7419 = vrot.lane.b32.xlu0 %v7400_v15, %s10427_s22 }
0x1141   : > { %v7774_v54 = vpop.permute.xlu0 %7773  ;;  %v14486_v29 = vpop.permute.xlu2 %7948 }
0x1142   : > { %7237 = vrot.lane.b32.xlu2 %v14074_v17, %s10402_s9  ;;  %v7764_v45 = vpop.permute.xlu1 %7763  ;;  %v7966_v43 = vrot.slane %v14486_v29, 4  ;;  %7781 = vrot.lane.b32.xlu1 %v7762_v34, %s10425_s30  ;;  %v7788_v33 = vrot.slane %v7774_v54, 4 }
0x1143   : > { %v7783_v24 = vrot.slane %v7764_v45, 4 }
0x1144   : > { %v7977_v28 = vsel %vm484_vm3, %v7965_v51, %v7966_v43 }
0x1145   : > { %v7793_v17 = vsel %vm484_vm3, %v7783_v24, %v7784_v49  ;;  %v7978_v35 = vsel %vm7975_vm0, %v7947_v36, %v7977_v28  ;;  %v10340_v62 = vld [vmem:[#allocation3 + $0x31c] sm:$0xf0]  ;;  %v10057_v26 = vld [vmem:[#allocation3 + $0x320] sm:$0xf0] }
0x1146   : > { %v7795_v12 = vsel %vm7794_vm9, %v7764_v45, %v7793_v17  ;;  %8000 = vst [vmem:[#allocation3 + $0x308] sm:$0xff] %v7978_v35  ;;  %v10055_v53 = vld [vmem:[#allocation3 + $0x300] sm:$0xf]  ;;  %v10336_v27 = vld [vmem:[#allocation3 + $0x304] sm:$0xf] }
0x1147   : > { %7818 = vst [vmem:[#allocation3 + $0x2c0] sm:$0xff] %v7795_v12  ;;  %v10056_v48 = vor.u32 %v10340_v62, %v10055_v53  ;;  %v10060_v42 = vor.u32 %v10336_v27, %v10057_v26 }
0x1149   : > { %8913 = vmatpush.bf16.msra.mxu1 %v10056_v48  ;;  %8939 = vmatpush.bf16.msra.mxu0 %v10060_v42  ;;  %v14502_v0 = vpop.permute.xlu0 %8160 }
0x114a   : > { %7409 = vrot.lane.b32.xlu2 %v7395_v30, %s10427_s22  ;;  %v14505_v63 = vpop.permute.xlu1 %7775  ;;  %v8173_v8 = vrot.slane %v14502_v0, 4  ;;  %7600 = vrot.lane.b32.xlu1 %v7581_v60, %s10426_s21 }
0x114b   : > { %v7789_v52 = vrot.slane %v14505_v63, 4 }
0x114c   : > { %v8187_v38 = vsel %vm484_vm3, %v8172_v18, %v8173_v8 }
0x114d   : > { %v7802_v6 = vsel %vm484_vm3, %v7788_v33, %v7789_v52  ;;  %v8188_v1 = vsel %vm8177_vm14, %v14428_v41, %v8187_v38  ;;  %v10063_v53 = vld [vmem:[#allocation3 + $0x308] sm:$0xf]  ;;  %v10337_v27 = vld [vmem:[#allocation3 + $0x30c] sm:$0xf] }
0x114e   : > { %v7803_v56 = vsel %vm7794_vm9, %v7774_v54, %v7802_v6  ;;  %8206 = vst [vmem:[#allocation3 + $0x368] sm:$0xff] %v8188_v1  ;;  %v10023_v41 = vld [vmem:[#allocation3 + $0x2c0] sm:$0xf]  ;;  %v10328_v23 = vld [vmem:[#allocation3 + $0x2c4] sm:$0xf] }
0x114f   : > { %7822 = vst [vmem:[#allocation3 + $0x2e0] sm:$0xff] %v7803_v56 }
0x1151   : > { %v7593_v39 = vpop.permute.xlu0 %7592  ;;  %v14524_v18 = vpop.permute.xlu2 %7403 }
0x1152   : > { %v7583_v32 = vpop.permute.xlu1 %7582  ;;  %7239 = vrot.lane.b32.xlu1 %v7220_v58, %s10402_s9  ;;  %v7607_v44 = vrot.slane %v7593_v39, 4  ;;  %v7422_v35 = vrot.slane %v14524_v18, 4 }
0x1153   : > { %v7602_v13 = vrot.slane %v7583_v32, 4 }
0x1155   : > { %v7612_v3 = vsel %vm484_vm3, %v7602_v13, %v7603_v9  ;;  %v10349_v16 = vld [vmem:[#allocation3 + $0x364] sm:$0xf0]  ;;  %v10097_v4 = vld [vmem:[#allocation3 + $0x368] sm:$0xf0] }
0x1156   : > { %v7614_v11 = vsel %vm7613_vm10, %v7583_v32, %v7612_v3  ;;  %v10332_v40 = vld [vmem:[#allocation3 + $0x2dc] sm:$0xf0]  ;;  %v10025_v10 = vld [vmem:[#allocation3 + $0x2e0] sm:$0xf0]  ;;  %v10096_v36 = vor.u32 %v10349_v16, %v10095_v19  ;;  %v10100_v2 = vor.u32 %v10345_v37, %v10097_v4 }
0x1157   : > { %7637 = vst [vmem:[#allocation3 + $0x280] sm:$0xff] %v7614_v11  ;;  %v10024_v47 = vor.u32 %v10332_v40, %v10023_v41  ;;  %v10028_v51 = vor.u32 %v10328_v23, %v10025_v10  ;;  %v14578_v41 = vld [vmem:[%s14834_s4] sm:$0xff] }
0x1158   : > { %8964 = vmatpush.bf16.msrb.mxu3 %v10096_v36  ;;  %8990 = vmatpush.bf16.msrb.mxu2 %v10100_v2  ;;  %v8329_v40 = vunpack.c.l.b16 %v14578_v41 }
0x1159   : > { %8914 = vmatpush.bf16.msra.mxu1 %v10024_v47  ;;  %8940 = vmatpush.bf16.msra.mxu0 %v10028_v51  ;;  %v14528_v50 = vpop.permute.xlu0 %7958  ;;  %v14534_v15 = vpop.permute.xlu2 %7767 }
0x115a   : > { %v14530_v20 = vpop.permute.xlu1 %7594  ;;  %v7971_v25 = vrot.slane %v14528_v50, 4  ;;  %v7785_v34 = vrot.slane %v14534_v15, 4  ;;  %v14593_v36 = vpack.c.b16 %v8329_v40, %v8329_v40 }
0x115b   : > { %v7608_v22 = vrot.slane %v14530_v20, 4 }
0x115c   : > { %v7985_v54 = vsel %vm484_vm3, %v7970_v31, %v7971_v25  ;;  %v7796_v28 = vsel %vm484_vm3, %v7784_v49, %v7785_v34  ;;  %8905 = vmatmul.bf16.vlgmr.msra.gmra.mxu3 %v14593_v36  ;;  %8931 = vmatmul.bf16.vlgmr.msra.gmra.mxu2 %v14593_v36 }
0x115d   : > { %v7621_v45 = vsel %vm484_vm3, %v7607_v44, %v7608_v22  ;;  %v7986_v24 = vsel %vm7975_vm0, %v14469_v61, %v7985_v54  ;;  %v7797_v55 = vsel %vm7794_vm9, %v14430_v7, %v7796_v28 }
0x115e   : > { %v7622_v46 = vsel %vm7613_vm10, %v7593_v39, %v7621_v45  ;;  %8004 = vst [vmem:[#allocation3 + $0x328] sm:$0xff] %v7986_v24  ;;  %v9991_v12 = vld [vmem:[#allocation3 + $0x280] sm:$0xf]  ;;  %v10320_v42 = vld [vmem:[#allocation3 + $0x284] sm:$0xf] }
0x115f   : > { %7641 = vst [vmem:[#allocation3 + $0x2a0] sm:$0xff] %v7622_v46 }
0x1160   : > { %7819 = vst [vmem:[#allocation3 + $0x2c8] sm:$0xff] %v7797_v55 }
0x1161   : > { %v7412_v31 = vpop.permute.xlu0 %7411  ;;  %v14556_v62 = vpop.permute.xlu2 %7586 }
0x1162   : > { %v7402_v17 = vpop.permute.xlu1 %7401  ;;  %v7604_v26 = vrot.slane %v14556_v62, 4  ;;  %v7426_v32 = vrot.slane %v7412_v31, 4 }
0x1163   : > { %v7421_v61 = vrot.slane %v7402_v17, 4 }
0x1164   : > { %v7615_v48 = vsel %vm484_vm3, %v7603_v9, %v7604_v26 }
0x1165   : > { %v7431_v49 = vsel %vm484_vm3, %v7421_v61, %v7422_v35  ;;  %v10341_v30 = vld [vmem:[#allocation3 + $0x324] sm:$0xf0]  ;;  %v10065_v60 = vld [vmem:[#allocation3 + $0x328] sm:$0xf0]  ;;  %v7616_v33 = vsel %vm7613_vm10, %v14471_v14, %v7615_v48 }
0x1166   : > { %v7433_v7 = vsel %vm7432_vm11, %v7402_v17, %v7431_v49  ;;  %v10324_v38 = vld [vmem:[#allocation3 + $0x29c] sm:$0xf0]  ;;  %v9993_v21 = vld [vmem:[#allocation3 + $0x2a0] sm:$0xf0]  ;;  %v10064_v6 = vor.u32 %v10341_v30, %v10063_v53  ;;  %v10068_v1 = vor.u32 %v10337_v27, %v10065_v60  ;;  %7638 = vst [vmem:[#allocation3 + $0x288] sm:$0xff] %v7616_v33 }
0x1167   : > { %7456 = vst [vmem:[#allocation3 + $0x240] sm:$0xff] %v7433_v7  ;;  %v9992_v56 = vor.u32 %v10324_v38, %v9991_v12  ;;  %v9996_v58 = vor.u32 %v10320_v42, %v9993_v21  ;;  %v10031_v46 = vld [vmem:[#allocation3 + $0x2c8] sm:$0xf]  ;;  %v10329_v28 = vld [vmem:[#allocation3 + $0x2cc] sm:$0xf] }
0x1168   : > { %8965 = vmatpush.bf16.msrb.mxu3 %v10064_v6  ;;  %8991 = vmatpush.bf16.msrb.mxu2 %v10068_v1  ;;  %v10301_v21 = vld [vmem:[#allocation3 + $0x1e4] sm:$0xf0]  ;;  %v9905_v6 = vld [vmem:[#allocation3 + $0x1e8] sm:$0xf0] }
0x1169   : > { %8915 = vmatpush.bf16.msra.mxu1 %v9992_v56  ;;  %8941 = vmatpush.bf16.msra.mxu0 %v9996_v58  ;;  %v14568_v13 = vpop.permute.xlu0 %7777  ;;  %v14570_v19 = vpop.permute.xlu2 %7415  ;;  %v9927_v56 = vld [vmem:[#allocation3 + $0x200] sm:$0xf]  ;;  %v10304_v58 = vld [vmem:[#allocation3 + $0x204] sm:$0xf] }
0x116a   : > { %v7414_v39 = vpop.permute.xlu1 %7413  ;;  %v7790_v14 = vrot.slane %v14568_v13, 4  ;;  %v7428_v37 = vrot.slane %v14570_v19, 4 }
0x116b   : > { %v7427_v9 = vrot.slane %v7414_v39, 4 }
0x116c   : > { %v7804_v4 = vsel %vm484_vm3, %v7789_v52, %v7790_v14  ;;  %v7246_v52 = vrot.slane %v14159_v5, 4 }
0x116d   : > { %v7440_v3 = vsel %vm484_vm3, %v7426_v32, %v7427_v9  ;;  %v7442_v11 = vsel %vm484_vm3, %v7427_v9, %v7428_v37  ;;  %v7805_v23 = vsel %vm7794_vm9, %v14505_v63, %v7804_v4 }
0x116e   : > { %v7441_v16 = vsel %vm7432_vm11, %v7412_v31, %v7440_v3  ;;  %v7443_v10 = vsel %vm7432_vm11, %v7414_v39, %v7442_v11  ;;  %7823 = vst [vmem:[#allocation3 + $0x2e8] sm:$0xff] %v7805_v23  ;;  %v9959_v24 = vld [vmem:[#allocation3 + $0x240] sm:$0xf]  ;;  %v10312_v49 = vld [vmem:[#allocation3 + $0x244] sm:$0xf] }
0x116f   : > { %7460 = vst [vmem:[#allocation3 + $0x260] sm:$0xff] %v7441_v16  ;;  %v9999_v39 = vld [vmem:[#allocation3 + $0x288] sm:$0xf]  ;;  %v10321_v11 = vld [vmem:[#allocation3 + $0x28c] sm:$0xf] }
0x1170   : > { %7461 = vst [vmem:[#allocation3 + $0x268] sm:$0xff] %v7443_v10 }
0x1171   : > { %v14598_v51 = vpop.permute.xlu0 %7596  ;;  %v14600_v44 = vpop.permute.xlu2 %8162 }
0x1172   : > { %v7234_v2 = vpop.permute.xlu1 %7233  ;;  %v7609_v63 = vrot.slane %v14598_v51, 4  ;;  %v8174_v54 = vrot.slane %v14600_v44, 4 }
0x1173   : > { %v7247_v47 = vrot.slane %v7234_v2, 4 }
0x1174   : > { %v7623_v31 = vsel %vm484_vm3, %v7608_v22, %v7609_v63  ;;  %v8189_v17 = vsel %vm484_vm3, %v8173_v8, %v8174_v54 }
0x1175   : > { %v7259_v45 = vsel %vm484_vm3, %v7246_v52, %v7247_v47  ;;  %v7624_v53 = vsel %vm7613_vm10, %v14530_v20, %v7623_v31  ;;  %v10333_v48 = vld [vmem:[#allocation3 + $0x2e4] sm:$0xf0]  ;;  %v10033_v22 = vld [vmem:[#allocation3 + $0x2e8] sm:$0xf0] }
0x1176   : > { %v7260_v55 = vsel %vm458_vm4, %v14159_v5, %v7259_v45  ;;  %v10316_v61 = vld [vmem:[#allocation3 + $0x25c] sm:$0xf0]  ;;  %v9961_v12 = vld [vmem:[#allocation3 + $0x260] sm:$0xf0]  ;;  %v8190_v5 = vsel %vm8177_vm14, %v14502_v0, %v8189_v17  ;;  %7642 = vst [vmem:[#allocation3 + $0x2a8] sm:$0xff] %v7624_v53  ;;  %v10032_v42 = vor.u32 %v10333_v48, %v10031_v46  ;;  %v10036_v30 = vor.u32 %v10329_v28, %v10033_v22 }
0x1177   : > { %7279 = vst [vmem:[#allocation3 + $0x220] sm:$0xff] %v7260_v55  ;;  %v9960_v27 = vor.u32 %v10316_v61, %v9959_v24  ;;  %v9964_v7 = vor.u32 %v10312_v49, %v9961_v12  ;;  %v9903_v24 = vld [vmem:[#allocation3 + $0x1c8] sm:$0xf]  ;;  %v10297_v46 = vld [vmem:[#allocation3 + $0x1cc] sm:$0xf] }
0x1178   : > { %8207 = vst [vmem:[#allocation3 + $0x370] sm:$0xff] %v8190_v5  ;;  %8966 = vmatpush.bf16.msrb.mxu3 %v10032_v42  ;;  %8992 = vmatpush.bf16.msrb.mxu2 %v10036_v30  ;;  %v9904_v28 = vor.u32 %v10301_v21, %v9903_v24  ;;  %v9873_v31 = vld [vmem:[#allocation3 + $0x1a8] sm:$0xf0]  ;;  %v9871_v5 = vld [vmem:[#allocation3 + $0x188] sm:$0xf] }
0x1179   : > { %8916 = vmatpush.bf16.msra.mxu1 %v9960_v27  ;;  %8942 = vmatpush.bf16.msra.mxu0 %v9964_v7  ;;  %v14623_v60 = vpop.permute.xlu0 %7235  ;;  %v14626_v33 = vpop.permute.xlu2 %7769  ;;  %v10289_v27 = vld [vmem:[#allocation3 + $0x18c] sm:$0xf]  ;;  %v10285_v42 = vld [vmem:[#allocation3 + $0x164] sm:$0xf0] }
0x117a   : > { %v14621_v8 = vpop.permute.xlu1 %7405  ;;  %v7248_v0 = vrot.slane %v14623_v60, 4  ;;  %v7786_v38 = vrot.slane %v14626_v33, 4  ;;  %v9876_v22 = vor.u32 %v10289_v27, %v9873_v31  ;;  %v9841_v30 = vld [vmem:[#allocation3 + $0x168] sm:$0xf0] }
0x117b   : > { %v7423_v20 = vrot.slane %v14621_v8, 4 }
0x117c   : > { %v7261_v32 = vsel %vm484_vm3, %v7247_v47, %v7248_v0  ;;  %v7798_v3 = vsel %vm484_vm3, %v7785_v34, %v7786_v38  ;;  %v8330_v34 = vunpack.c.h.b16 %v14578_v41 }
0x117d   : > { %v7434_v1 = vsel %vm484_vm3, %v7422_v35, %v7423_v20  ;;  %v7262_v35 = vsel %vm458_vm4, %v7234_v2, %v7261_v32  ;;  %v7799_v40 = vsel %vm7794_vm9, %v14534_v15, %v7798_v3  ;;  %v10325_v52 = vld [vmem:[#allocation3 + $0x2a4] sm:$0xf0]  ;;  %v10001_v47 = vld [vmem:[#allocation3 + $0x2a8] sm:$0xf0]  ;;  %v9908_v2 = vor.u32 %v10297_v46, %v9905_v6 }
0x117e   : > { %v7435_v9 = vsel %vm7432_vm11, %v14524_v18, %v7434_v1  ;;  %v10308_v16 = vld [vmem:[#allocation3 + $0x21c] sm:$0xf0]  ;;  %v9929_v4 = vld [vmem:[#allocation3 + $0x220] sm:$0xf0]  ;;  %7280 = vst [vmem:[#allocation3 + $0x228] sm:$0xff] %v7262_v35  ;;  %v10000_v18 = vor.u32 %v10325_v52, %v9999_v39  ;;  %v10004_v45 = vor.u32 %v10321_v11, %v10001_v47  ;;  %v14651_v17 = vpack.c.b16 %v8330_v34, %v8330_v34 }
0x117f   : > { %7457 = vst [vmem:[#allocation3 + $0x248] sm:$0xff] %v7435_v9  ;;  %v9928_v23 = vor.u32 %v10308_v16, %v9927_v56  ;;  %v9932_v10 = vor.u32 %v10304_v58, %v9929_v4  ;;  %v10293_v15 = vld [vmem:[#allocation3 + $0x1a4] sm:$0xf0]  ;;  %v9969_v9 = vld [vmem:[#allocation3 + $0x268] sm:$0xf0] }
0x1180   : > { %7820 = vst [vmem:[#allocation3 + $0x2d0] sm:$0xff] %v7799_v40  ;;  %8967 = vmatpush.bf16.msrb.mxu3 %v10000_v18  ;;  %8993 = vmatpush.bf16.msrb.mxu2 %v10004_v45  ;;  %v9872_v48 = vor.u32 %v10293_v15, %v9871_v5  ;;  %v10317_v58 = vld [vmem:[#allocation3 + $0x264] sm:$0xf0]  ;;  %v10281_v16 = vld [vmem:[#allocation3 + $0x14c] sm:$0xf] }
0x1181   : > { %8917 = vmatpush.bf16.msra.mxu1 %v9928_v23  ;;  %8943 = vmatpush.bf16.msra.mxu0 %v9932_v10  ;;  %v14653_v61 = vpop.permute.xlu0 %7950  ;;  %v8165_v41 = vpop.permute.xlu2 %8164  ;;  %v9839_v3 = vld [vmem:[#allocation3 + $0x148] sm:$0xf]  ;;  %v9844_v35 = vor.u32 %v10281_v16, %v9841_v30  ;;  %v9809_v52 = vld [vmem:[#allocation3 + $0x128] sm:$0xf0]  ;;  %v9913_v47 = vld [vmem:[#allocation3 + $0x1f0] sm:$0xf0] }
0x1182   : > { %v14649_v55 = vpop.permute.xlu1 %8152  ;;  %v7967_v12 = vrot.slane %v14653_v61, 4  ;;  %v8175_v53 = vrot.slane %v8165_v41, 4  ;;  %v9840_v11 = vor.u32 %v10285_v42, %v9839_v3  ;;  %v9807_v10 = vld [vmem:[#allocation3 + $0x108] sm:$0xf]  ;;  %v10305_v34 = vld [vmem:[#allocation3 + $0x20c] sm:$0xf] }
0x1183   : > { %v8169_v49 = vrot.slane %v14649_v55, 4  ;;  %v10273_v41 = vld [vmem:[#allocation3 + $0x10c] sm:$0xf]  ;;  %v10298_v5 = vld [vmem:[#allocation3 + $0x1d4] sm:$0xf] }
0x1184   : > { %10117 = vmatmul.msk.bf16.vlgmr.msra.gmra.mxu1 %vm5360_vm5, %v14651_v17  ;;  %10118 = vmatmul.msk.bf16.vlgmr.msra.gmra.mxu0 %vm5360_vm5, %v14651_v17  ;;  %v7979_v21 = vsel %vm484_vm3, %v7966_v43, %v7967_v12  ;;  %v8191_v1 = vsel %vm484_vm3, %v8174_v54, %v8175_v53  ;;  %v10277_v54 = vld [vmem:[#allocation3 + $0x124] sm:$0xf0]  ;;  %v10294_v42 = vld [vmem:[#allocation3 + $0x1ac] sm:$0xf0]  ;;  %v10257_v16 = vld [vmem:[#allocation3 + $0x8c] sm:$0xf] }
0x1185   : > { %8949 = vmatpush.bf16.msrb.mxu1 %v9904_v28  ;;  %8975 = vmatpush.bf16.msrb.mxu0 %v9908_v2  ;;  %v8181_v7 = vsel %vm484_vm3, %v8168_v59, %v8169_v49  ;;  %v7980_v39 = vsel %vm7975_vm0, %v14486_v29, %v7979_v21  ;;  %v8192_v32 = vsel %vm8177_vm14, %v14600_v44, %v8191_v1  ;;  %v10309_v4 = vld [vmem:[#allocation3 + $0x224] sm:$0xf0]  ;;  %v9937_v40 = vld [vmem:[#allocation3 + $0x228] sm:$0xf0]  ;;  %v10302_v29 = vld [vmem:[#allocation3 + $0x1ec] sm:$0xf0] }
0x1186   : > { %v8182_v6 = vsel %vm8177_vm14, %v14449_v57, %v8181_v7  ;;  %v9967_v56 = vld [vmem:[#allocation3 + $0x248] sm:$0xf]  ;;  %v10313_v59 = vld [vmem:[#allocation3 + $0x24c] sm:$0xf]  ;;  %8001 = vst [vmem:[#allocation3 + $0x310] sm:$0xff] %v7980_v39  ;;  %v9940_v31 = vor.u32 %v10305_v34, %v9937_v40  ;;  %v9808_v7 = vor.u32 %v10277_v54, %v9807_v10 }
0x1187   : > { %8203 = vst [vmem:[#allocation3 + $0x350] sm:$0xff] %v8182_v6  ;;  %v9968_v43 = vor.u32 %v10317_v58, %v9967_v56  ;;  %v9972_v57 = vor.u32 %v10313_v59, %v9969_v9  ;;  %v9935_v44 = vld [vmem:[#allocation3 + $0x208] sm:$0xf]  ;;  %v9911_v28 = vld [vmem:[#allocation3 + $0x1d0] sm:$0xf] }
0x1188   : > { %8208 = vst [vmem:[#allocation3 + $0x378] sm:$0xff] %v8192_v32  ;;  %v9936_v46 = vor.u32 %v10309_v4, %v9935_v44  ;;  %v9912_v53 = vor.u32 %v10302_v29, %v9911_v28  ;;  %v9777_v1 = vld [vmem:[#allocation3 + $0xe8] sm:$0xf0]  ;;  %v9879_v58 = vld [vmem:[#allocation3 + $0x190] sm:$0xf] }
0x1189   : > { %8950 = vmatpush.bf16.msrb.mxu1 %v9872_v48  ;;  %8976 = vmatpush.bf16.msrb.mxu0 %v9876_v22  ;;  %v14683_v45 = vpop.permute.xlu0 %7779  ;;  %v7953_v24 = vpop.permute.xlu2 %7952  ;;  %v9812_v48 = vor.u32 %v10273_v41, %v9809_v52  ;;  %v9916_v22 = vor.u32 %v10298_v5, %v9913_v47  ;;  %v9881_v59 = vld [vmem:[#allocation3 + $0x1b0] sm:$0xf0]  ;;  %v10265_v39 = vld [vmem:[#allocation3 + $0xcc] sm:$0xf]  ;;  %v10261_v44 = vld [vmem:[#allocation3 + $0xa4] sm:$0xf0] }
0x118a   : > { %8968 = vmatpush.bf16.msrb.mxu3 %v9968_v43  ;;  %8994 = vmatpush.bf16.msrb.mxu2 %v9972_v57  ;;  %v14680_v23 = vpop.permute.xlu1 %7960  ;;  %v7791_v2 = vrot.slane %v14683_v45, 4  ;;  %v7968_v15 = vrot.slane %v7953_v24, 4  ;;  %v9780_v43 = vor.u32 %v10265_v39, %v9777_v1  ;;  %v10290_v9 = vld [vmem:[#allocation3 + $0x194] sm:$0xf]  ;;  %v9743_v57 = vld [vmem:[#allocation3 + $0x88] sm:$0xf] }
0x118b   : > { %v7972_v18 = vrot.slane %v14680_v23, 4  ;;  %v9884_v3 = vor.u32 %v10290_v9, %v9881_v59  ;;  %v9745_v10 = vld [vmem:[#allocation3 + $0xa8] sm:$0xf0]  ;;  %v10282_v28 = vld [vmem:[#allocation3 + $0x154] sm:$0xf] }
0x118c   : > { %v7806_v21 = vsel %vm484_vm3, %v7790_v14, %v7791_v2  ;;  %v7981_v6 = vsel %vm484_vm3, %v7967_v12, %v7968_v15  ;;  %v9775_v14 = vld [vmem:[#allocation3 + $0xc8] sm:$0xf]  ;;  %v9880_v12 = vor.u32 %v10294_v42, %v9879_v58  ;;  %v9748_v34 = vor.u32 %v10257_v16, %v9745_v10  ;;  %v10278_v15 = vld [vmem:[#allocation3 + $0x12c] sm:$0xf0]  ;;  %v10249_v42 = vld [vmem:[#allocation3 + $0x4c] sm:$0xf] }
0x118d   : > { %8951 = vmatpush.bf16.msrb.mxu1 %v9840_v11  ;;  %8977 = vmatpush.bf16.msrb.mxu0 %v9844_v35  ;;  %v7987_v27 = vsel %vm484_vm3, %v7971_v25, %v7972_v18  ;;  %v10269_v25 = vld [vmem:[#allocation3 + $0xe4] sm:$0xf0]  ;;  %v7807_v56 = vsel %vm7794_vm9, %v14568_v13, %v7806_v21  ;;  %v10286_v13 = vld [vmem:[#allocation3 + $0x16c] sm:$0xf0]  ;;  %v9849_v35 = vld [vmem:[#allocation3 + $0x170] sm:$0xf0] }
0x118e   : > { %8969 = vmatpush.bf16.msrb.mxu3 %v9936_v46  ;;  %v7988_v30 = vsel %vm7975_vm0, %v14528_v50, %v7987_v27  ;;  %8995 = vmatpush.bf16.msrb.mxu2 %v9940_v31  ;;  %v7982_v50 = vsel %vm7975_vm0, %v14653_v61, %v7981_v6  ;;  %7824 = vst [vmem:[#allocation3 + $0x2f0] sm:$0xff] %v7807_v56  ;;  %v9847_v11 = vld [vmem:[#allocation3 + $0x150] sm:$0xf]  ;;  %v10253_v5 = vld [vmem:[#allocation3 + $0x64] sm:$0xf0] }
0x118f   : > { %8005 = vst [vmem:[#allocation3 + $0x330] sm:$0xff] %v7988_v30  ;;  %v9776_v32 = vor.u32 %v10269_v25, %v9775_v14  ;;  %v9848_v52 = vor.u32 %v10286_v13, %v9847_v11  ;;  %v9744_v46 = vor.u32 %v10261_v44, %v9743_v57  ;;  %v9713_v27 = vld [vmem:[#allocation3 + $0x68] sm:$0xf0]  ;;  %v10274_v6 = vld [vmem:[#allocation3 + $0x114] sm:$0xf] }
0x1190   : > { %8002 = vst [vmem:[#allocation3 + $0x318] sm:$0xff] %v7982_v50  ;;  %v9716_v21 = vor.u32 %v10249_v42, %v9713_v27  ;;  %v10270_v25 = vld [vmem:[#allocation3 + $0xec] sm:$0xf0]  ;;  %v9679_v56 = vld [vmem:[#allocation3 + $0x8] sm:$0xf] }
0x1191   : > { %8952 = vmatpush.bf16.msrb.mxu1 %v9808_v7  ;;  %8978 = vmatpush.bf16.msrb.mxu0 %v9812_v48  ;;  %v14709_v54 = vpop.permute.xlu0 %7588  ;;  %v9815_v7 = vld [vmem:[#allocation3 + $0x110] sm:$0xf]  ;;  %v9817_v48 = vld [vmem:[#allocation3 + $0x130] sm:$0xf0]  ;;  %v10245_v50 = vld [vmem:[#allocation3 + $0x24] sm:$0xf0] }
0x1192   : > { %9001 = vmatpush.bf16.msra.mxu3 %v9912_v53  ;;  %9027 = vmatpush.bf16.msra.mxu2 %v9916_v22  ;;  %v8155_v61 = vpop.permute.xlu1 %8154  ;;  %v7605_v40 = vrot.slane %v14709_v54, 4  ;;  %v9852_v53 = vor.u32 %v10282_v28, %v9849_v35  ;;  %v9711_v22 = vld [vmem:[#allocation3 + $0x48] sm:$0xf]  ;;  %v9816_v30 = vor.u32 %v10278_v15, %v9815_v7  ;;  %v10241_v58 = vld [vmem:[#allocation3 + $0xc] sm:$0xf] }
0x1193   : > { %10119 = vmatmul.msk.bf16.vlgmr.msrb.gmra.mxu3 %vm5360_vm5, %v14651_v17  ;;  %10120 = vmatmul.msk.bf16.vlgmr.msrb.gmra.mxu2 %vm5360_vm5, %v14651_v17  ;;  %v8170_v4 = vrot.slane %v8155_v61, 4  ;;  %v9681_v59 = vld [vmem:[#allocation3 + $0x28] sm:$0xf0]  ;;  %v9783_v14 = vld [vmem:[#allocation3 + $0xd0] sm:$0xf] }
0x1194   : > { %v14712_v29 = vpop.permute.xlu2 %7417  ;;  %v7617_v41 = vsel %vm484_vm3, %v7604_v26, %v7605_v40  ;;  %v9784_v13 = vor.u32 %v10270_v25, %v9783_v14  ;;  %v10346_v61 = vld [vmem:[#allocation3 + $0x354] sm:$0xf]  ;;  %v9684_v11 = vor.u32 %v10241_v58, %v9681_v59  ;;  %v10350_v44 = vld [vmem:[#allocation3 + $0x36c] sm:$0xf0] }
0x1195   : > { %8953 = vmatpush.bf16.msrb.mxu1 %v9776_v32  ;;  %8979 = vmatpush.bf16.msrb.mxu0 %v9780_v43  ;;  %v8183_v47 = vsel %vm484_vm3, %v8169_v49, %v8170_v4  ;;  %v7429_v24 = vrot.slane %v14712_v29, 4  ;;  %v7618_v49 = vsel %vm7613_vm10, %v14556_v62, %v7617_v41  ;;  %v9712_v62 = vor.u32 %v10253_v5, %v9711_v22  ;;  %v10103_v32 = vld [vmem:[#allocation3 + $0x350] sm:$0xf]  ;;  %v10266_v35 = vld [vmem:[#allocation3 + $0xd4] sm:$0xf] }
0x1196   : > { %9002 = vmatpush.bf16.msra.mxu3 %v9880_v12  ;;  %9028 = vmatpush.bf16.msra.mxu2 %v9884_v3  ;;  %v8184_v31 = vsel %vm8177_vm14, %v14649_v55, %v8183_v47  ;;  %7639 = vst [vmem:[#allocation3 + $0x290] sm:$0xff] %v7618_v49  ;;  %v9785_v12 = vld [vmem:[#allocation3 + $0xf0] sm:$0xf0]  ;;  %v10262_v3 = vld [vmem:[#allocation3 + $0xac] sm:$0xf0]  ;;  %v9680_v4 = vor.u32 %v10245_v50, %v9679_v56 }
0x1197   : > { %8204 = vst [vmem:[#allocation3 + $0x358] sm:$0xff] %v8184_v31  ;;  %v7444_v55 = vsel %vm484_vm3, %v7428_v37, %v7429_v24  ;;  %v9820_v37 = vor.u32 %v10274_v6, %v9817_v48  ;;  %v9788_v47 = vor.u32 %v10266_v35, %v9785_v12  ;;  %v9751_v28 = vld [vmem:[#allocation3 + $0x90] sm:$0xf]  ;;  %v9753_v31 = vld [vmem:[#allocation3 + $0xb0] sm:$0xf0] }
0x1198   : > { %v7445_v26 = vsel %vm7432_vm11, %v14570_v19, %v7444_v55  ;;  %v9719_v41 = vld [vmem:[#allocation3 + $0x50] sm:$0xf]  ;;  %v9752_v5 = vor.u32 %v10262_v3, %v9751_v28  ;;  %v10258_v49 = vld [vmem:[#allocation3 + $0x94] sm:$0xf] }
0x1199   : > { %8954 = vmatpush.bf16.msrb.mxu1 %v9744_v46  ;;  %8980 = vmatpush.bf16.msrb.mxu0 %v9748_v34  ;;  %7462 = vst [vmem:[#allocation3 + $0x270] sm:$0xff] %v7445_v26  ;;  %v7963_v39 = vpop.permute.xlu0 %7962  ;;  %v10104_v46 = vor.u32 %v10350_v44, %v10103_v32  ;;  %v10105_v34 = vld [vmem:[#allocation3 + $0x370] sm:$0xf0]  ;;  %v10254_v27 = vld [vmem:[#allocation3 + $0x6c] sm:$0xf0] }
0x119a   : > { %9003 = vmatpush.bf16.msra.mxu3 %v9848_v52  ;;  %9029 = vmatpush.bf16.msra.mxu2 %v9852_v53  ;;  %v14734_v1 = vpop.permute.xlu1 %7598  ;;  %v7973_v43 = vrot.slane %v7963_v39, 4  ;;  %v10071_v55 = vld [vmem:[#allocation3 + $0x310] sm:$0xf]  ;;  %v10338_v48 = vld [vmem:[#allocation3 + $0x314] sm:$0xf] }
0x119b   : > { %v7610_v19 = vrot.slane %v14734_v1, 4  ;;  %v10250_v42 = vld [vmem:[#allocation3 + $0x54] sm:$0xf]  ;;  %v10039_v25 = vld [vmem:[#allocation3 + $0x2d0] sm:$0xf] }
0x119c   : > { %v14737_v9 = vpop.permute.xlu2 %7237  ;;  %v7989_v52 = vsel %vm484_vm3, %v7972_v18, %v7973_v43  ;;  %v10342_v18 = vld [vmem:[#allocation3 + $0x32c] sm:$0xf0]  ;;  %v10041_v6 = vld [vmem:[#allocation3 + $0x2f0] sm:$0xf0]  ;;  %v10113_v44 = vld [vmem:[#allocation3 + $0x378] sm:$0xf0] }
0x119d   : > { %8955 = vmatpush.bf16.msrb.mxu1 %v9712_v62  ;;  %8981 = vmatpush.bf16.msrb.mxu0 %v9716_v21  ;;  %v7625_v57 = vsel %vm484_vm3, %v7609_v63, %v7610_v19  ;;  %v7249_v16 = vrot.slane %v14737_v9, 4  ;;  %v7990_v63 = vsel %vm7975_vm0, %v14680_v23, %v7989_v52  ;;  %v10073_v23 = vld [vmem:[#allocation3 + $0x330] sm:$0xf0]  ;;  %v10072_v7 = vor.u32 %v10342_v18, %v10071_v55  ;;  %v9687_v14 = vld [vmem:[#allocation3 + $0x10] sm:$0xf] }
0x119e   : > { %9004 = vmatpush.bf16.msra.mxu3 %v9816_v30  ;;  %9030 = vmatpush.bf16.msra.mxu2 %v9820_v37  ;;  %v7626_v10 = vsel %vm7613_vm10, %v14598_v51, %v7625_v57  ;;  %v10108_v51 = vor.u32 %v10346_v61, %v10105_v34  ;;  %8006 = vst [vmem:[#allocation3 + $0x338] sm:$0xff] %v7990_v63  ;;  %v9721_v30 = vld [vmem:[#allocation3 + $0x70] sm:$0xf0]  ;;  %v10246_v37 = vld [vmem:[#allocation3 + $0x2c] sm:$0xf0] }
0x119f   : > { %7643 = vst [vmem:[#allocation3 + $0x2b0] sm:$0xff] %v7626_v10  ;;  %v7263_v15 = vsel %vm484_vm3, %v7248_v0, %v7249_v16  ;;  %v9756_v0 = vor.u32 %v10258_v49, %v9753_v31  ;;  %v10076_v22 = vor.u32 %v10338_v48, %v10073_v23  ;;  %v9720_v21 = vor.u32 %v10254_v27, %v9719_v41  ;;  %v10330_v59 = vld [vmem:[#allocation3 + $0x2d4] sm:$0xf]  ;;  %v10111_v39 = vld [vmem:[#allocation3 + $0x358] sm:$0xf] }
0x11a0   : > { %v7264_v53 = vsel %vm458_vm4, %v14623_v60, %v7263_v15  ;;  %v10334_v60 = vld [vmem:[#allocation3 + $0x2ec] sm:$0xf0]  ;;  %v9724_v50 = vor.u32 %v10250_v42, %v9721_v30  ;;  %v10044_v32 = vor.u32 %v10330_v59, %v10041_v6  ;;  %v9689_v43 = vld [vmem:[#allocation3 + $0x30] sm:$0xf0]  ;;  %v10351_v61 = vld [vmem:[#allocation3 + $0x374] sm:$0xf0]  ;;  %v9688_v3 = vor.u32 %v10246_v37, %v9687_v14 }
0x11a1   : > { %8956 = vmatpush.bf16.msrb.mxu1 %v9680_v4  ;;  %8982 = vmatpush.bf16.msrb.mxu0 %v9684_v11  ;;  %7281 = vst [vmem:[#allocation3 + $0x230] sm:$0xff] %v7264_v53  ;;  %v7772_v26 = vpop.permute.xlu0 %7771  ;;  %v10040_v58 = vor.u32 %v10334_v60, %v10039_v25  ;;  %v10347_v4 = vld [vmem:[#allocation3 + $0x35c] sm:$0xf]  ;;  %v10007_v11 = vld [vmem:[#allocation3 + $0x290] sm:$0xf]  ;;  %v10112_v35 = vor.u32 %v10351_v61, %v10111_v39 }
0x11a2   : > { %9005 = vmatpush.bf16.msra.mxu3 %v9784_v13  ;;  %9031 = vmatpush.bf16.msra.mxu2 %v9788_v47  ;;  %v7787_v62 = vrot.slane %v7772_v26, 4  ;;  %v10322_v47 = vld [vmem:[#allocation3 + $0x294] sm:$0xf]  ;;  %v10116_v15 = vor.u32 %v10347_v4, %v10113_v44  ;;  %v10079_v31 = vld [vmem:[#allocation3 + $0x318] sm:$0xf] }
0x11a3   : > { %v10339_v49 = vld [vmem:[#allocation3 + $0x31c] sm:$0xf]  ;;  %v9977_v37 = vld [vmem:[#allocation3 + $0x270] sm:$0xf0]  ;;  %v9943_v39 = vld [vmem:[#allocation3 + $0x210] sm:$0xf] }
0x11a4   : > { %8957 = vmatmul.bf16.vlgmr.msrb.gmra.mxu1 %v14593_v36  ;;  %8983 = vmatmul.bf16.vlgmr.msrb.gmra.mxu0 %v14593_v36  ;;  %v7800_v56 = vsel %vm484_vm3, %v7786_v38, %v7787_v62  ;;  %v10242_v38 = vld [vmem:[#allocation3 + $0x14] sm:$0xf]  ;;  %v7410_v34 = vpop.permute.xlu2 %7409  ;;  %v10318_v62 = vld [vmem:[#allocation3 + $0x26c] sm:$0xf0]  ;;  %v9921_v59 = vld [vmem:[#allocation3 + $0x1f8] sm:$0xf0] }
0x11a5   : > { %9016 = vmatpush.bf16.msra.mxu1 %v10104_v46  ;;  %9042 = vmatpush.bf16.msra.mxu0 %v10108_v51  ;;  %v7801_v12 = vsel %vm7794_vm9, %v14626_v33, %v7800_v56  ;;  %v9692_v10 = vor.u32 %v10242_v38, %v9689_v43  ;;  %v10343_v33 = vld [vmem:[#allocation3 + $0x334] sm:$0xf0]  ;;  %v10081_v18 = vld [vmem:[#allocation3 + $0x338] sm:$0xf0] }
0x11a6   : > { %9006 = vmatpush.bf16.msra.mxu3 %v9752_v5  ;;  %9032 = vmatpush.bf16.msra.mxu2 %v9756_v0  ;;  %v10326_v13 = vld [vmem:[#allocation3 + $0x2ac] sm:$0xf0]  ;;  %7821 = vst [vmem:[#allocation3 + $0x2d8] sm:$0xff] %v7801_v12  ;;  %v10009_v57 = vld [vmem:[#allocation3 + $0x2b0] sm:$0xf0]  ;;  %v8322_v46 = vld [vmem:[%s14835_s5] sm:$0xff]  ;;  %v10080_v53 = vor.u32 %v10343_v33, %v10079_v31  ;;  %v10084_v0 = vor.u32 %v10339_v49, %v10081_v18 }
0x11a7   : > { %v10008_v52 = vor.u32 %v10326_v13, %v10007_v11  ;;  %v10012_v63 = vor.u32 %v10322_v47, %v10009_v57  ;;  %8325 = vperm.xlu2 %10390, %v8322_v46   ;;  %v7425_v5 = vrot.slane %v7410_v34, 4  ;;  %v10306_v12 = vld [vmem:[#allocation3 + $0x214] sm:$0xf]  ;;  %v9919_v13 = vld [vmem:[#allocation3 + $0x1d8] sm:$0xf] }
0x11a8   : > { %v10295_v38 = vld [vmem:[#allocation3 + $0x1b4] sm:$0xf0]  ;;  %v9889_v11 = vld [vmem:[#allocation3 + $0x1b8] sm:$0xf0] }
0x11a9   : > { %9017 = vmatpush.bf16.msra.mxu1 %v10072_v7  ;;  %9043 = vmatpush.bf16.msra.mxu0 %v10076_v22  ;;  %v9887_v46 = vld [vmem:[#allocation3 + $0x198] sm:$0xf]  ;;  %v10291_v34 = vld [vmem:[#allocation3 + $0x19c] sm:$0xf] }
0x11aa   : > { %9007 = vmatpush.bf16.msra.mxu3 %v9720_v21  ;;  %9033 = vmatpush.bf16.msra.mxu2 %v9724_v50  ;;  %v7591_v28 = vpop.permute.xlu0 %7590  ;;  %v9855_v31 = vld [vmem:[#allocation3 + $0x158] sm:$0xf]  ;;  %v10283_v18 = vld [vmem:[#allocation3 + $0x15c] sm:$0xf] }
0x11ab   : > { %v7606_v51 = vrot.slane %v7591_v28, 4  ;;  %v9888_v28 = vor.u32 %v10295_v38, %v9887_v46  ;;  %v9825_v49 = vld [vmem:[#allocation3 + $0x138] sm:$0xf0] }
0x11ac   : > { %v7408_v41 = vpop.permute.xlu1 %7407 }
0x11ad   : > { %9018 = vmatpush.bf16.msra.mxu1 %v10040_v58  ;;  %9044 = vmatpush.bf16.msra.mxu0 %v10044_v32  ;;  %v7619_v23 = vsel %vm484_vm3, %v7605_v40, %v7606_v51  ;;  %v7424_v27 = vrot.slane %v7408_v41, 4  ;;  %v9945_v58 = vld [vmem:[#allocation3 + $0x230] sm:$0xf0]  ;;  %v10047_v4 = vld [vmem:[#allocation3 + $0x2d8] sm:$0xf] }
0x11ae   : > { %9008 = vmatpush.bf16.msra.mxu3 %v9688_v3  ;;  %9034 = vmatpush.bf16.msra.mxu2 %v9692_v10  ;;  %v7620_v55 = vsel %vm7613_vm10, %v14709_v54, %v7619_v23  ;;  %v9948_v43 = vor.u32 %v10306_v12, %v9945_v58  ;;  %v10331_v10 = vld [vmem:[#allocation3 + $0x2dc] sm:$0xf]  ;;  %v10263_v58 = vld [vmem:[#allocation3 + $0xb4] sm:$0xf0] }
0x11af   : > { %7640 = vst [vmem:[#allocation3 + $0x298] sm:$0xff] %v7620_v55  ;;  %v7436_v7 = vsel %vm484_vm3, %v7423_v20, %v7424_v27  ;;  %v7438_v48 = vsel %vm484_vm3, %v7424_v27, %v7425_v5  ;;  %v10279_v27 = vld [vmem:[#allocation3 + $0x134] sm:$0xf0] }
0x11b0   : > { %v7437_v40 = vsel %vm7432_vm11, %v14621_v8, %v7436_v7  ;;  %v7439_v26 = vsel %vm7432_vm11, %v7408_v41, %v7438_v48 }
0x11b1   : > { %9019 = vmatpush.bf16.msra.mxu1 %v10008_v52  ;;  %9045 = vmatpush.bf16.msra.mxu0 %v10012_v63  ;;  %7458 = vst [vmem:[#allocation3 + $0x250] sm:$0xff] %v7437_v40  ;;  %v9857_v63 = vld [vmem:[#allocation3 + $0x178] sm:$0xf0] }
0x11b2   : > { %9068 = vmatpush.bf16.msrb.mxu3 %v10112_v35  ;;  %9094 = vmatpush.bf16.msrb.mxu2 %v10116_v15  ;;  %7459 = vst [vmem:[#allocation3 + $0x258] sm:$0xff] %v7439_v26  ;;  %v7420_v54 = vpop.permute.xlu0 %7419 }
0x11b3   : > { %9009 = vmatmul.bf16.vlgmr.msra.gmra.mxu3 %v14593_v36  ;;  %9035 = vmatmul.bf16.vlgmr.msra.gmra.mxu2 %v14593_v36  ;;  %v7430_v22 = vrot.slane %v7420_v54, 4  ;;  %v9823_v54 = vld [vmem:[#allocation3 + $0x118] sm:$0xf] }
0x11b4   : > { %v7782_v42 = vpop.permute.xlu1 %7781 }
0x11b5   : > { %v7446_v30 = vsel %vm484_vm3, %v7429_v24, %v7430_v22  ;;  %v7792_v60 = vrot.slane %v7782_v42, 4  ;;  %v10310_v24 = vld [vmem:[#allocation3 + $0x22c] sm:$0xf0]  ;;  %v10275_v22 = vld [vmem:[#allocation3 + $0x11c] sm:$0xf]  ;;  %v9824_v42 = vor.u32 %v10279_v27, %v9823_v54 }
0x11b6   : > { %9069 = vmatpush.bf16.msrb.mxu3 %v10080_v53  ;;  %9095 = vmatpush.bf16.msrb.mxu2 %v10084_v0  ;;  %v7447_v20 = vsel %vm7432_vm11, %v14712_v29, %v7446_v30  ;;  %v10303_v29 = vld [vmem:[#allocation3 + $0x1f4] sm:$0xf0]  ;;  %v9944_v32 = vor.u32 %v10310_v24, %v9943_v39  ;;  %v9860_v53 = vor.u32 %v10283_v18, %v9857_v63  ;;  %v10323_v7 = vld [vmem:[#allocation3 + $0x29c] sm:$0xf] }
0x11b7   : > { %7463 = vst [vmem:[#allocation3 + $0x278] sm:$0xff] %v7447_v20  ;;  %v7808_v8 = vsel %vm484_vm3, %v7791_v2, %v7792_v60  ;;  %v9920_v61 = vor.u32 %v10303_v29, %v9919_v13  ;;  %v10015_v23 = vld [vmem:[#allocation3 + $0x298] sm:$0xf]  ;;  %v9828_v30 = vor.u32 %v10275_v22, %v9825_v49  ;;  %v9761_v29 = vld [vmem:[#allocation3 + $0xb8] sm:$0xf0] }
0x11b8   : > { %v7809_v21 = vsel %vm7794_vm9, %v14683_v45, %v7808_v8  ;;  %v9975_v6 = vld [vmem:[#allocation3 + $0x250] sm:$0xf]  ;;  %v10314_v25 = vld [vmem:[#allocation3 + $0x254] sm:$0xf]  ;;  %v10299_v45 = vld [vmem:[#allocation3 + $0x1dc] sm:$0xf] }
0x11b9   : > { %7825 = vst [vmem:[#allocation3 + $0x2f8] sm:$0xff] %v7809_v21  ;;  %v9976_v56 = vor.u32 %v10318_v62, %v9975_v6  ;;  %v9980_v50 = vor.u32 %v10314_v25, %v9977_v37  ;;  %v9924_v3 = vor.u32 %v10299_v45, %v9921_v59  ;;  %v10271_v20 = vld [vmem:[#allocation3 + $0xf4] sm:$0xf0]  ;;  %v9793_v8 = vld [vmem:[#allocation3 + $0xf8] sm:$0xf0] }
0x11ba   : > { %v10315_v62 = vld [vmem:[#allocation3 + $0x25c] sm:$0xf]  ;;  %v9791_v25 = vld [vmem:[#allocation3 + $0xd8] sm:$0xf] }
0x11bb   : > { %9020 = vmatpush.bf16.msra.mxu1 %v9976_v56  ;;  %9046 = vmatpush.bf16.msra.mxu0 %v9980_v50  ;;  %v10267_v37 = vld [vmem:[#allocation3 + $0xdc] sm:$0xf]  ;;  %v9792_v56 = vor.u32 %v10271_v20, %v9791_v25  ;;  %v9951_v24 = vld [vmem:[#allocation3 + $0x218] sm:$0xf] }
0x11bc   : > { %v7601_v14 = vpop.permute.xlu1 %7600  ;;  %v9796_v50 = vor.u32 %v10267_v37, %v9793_v8 }
0x11bd   : > { %v7611_v2 = vrot.slane %v7601_v14, 4  ;;  %v10307_v14 = vld [vmem:[#allocation3 + $0x21c] sm:$0xf] }
0x11be   : > { %v10319_v60 = vld [vmem:[#allocation3 + $0x274] sm:$0xf0] }
0x11bf   : > { %v7627_v57 = vsel %vm484_vm3, %v7610_v19, %v7611_v2  ;;  %9021 = vmatpush.bf16.msra.mxu1 %v9944_v32  ;;  %9047 = vmatpush.bf16.msra.mxu0 %v9948_v43  ;;  %v9892_v19 = vor.u32 %v10291_v34, %v9889_v11  ;;  %v9759_v32 = vld [vmem:[#allocation3 + $0x98] sm:$0xf]  ;;  %v10259_v43 = vld [vmem:[#allocation3 + $0x9c] sm:$0xf] }
0x11c0   : > { %v7628_v35 = vsel %vm7613_vm10, %v14734_v1, %v7627_v57  ;;  %v10335_v44 = vld [vmem:[#allocation3 + $0x2f4] sm:$0xf0]  ;;  %v10049_v52 = vld [vmem:[#allocation3 + $0x2f8] sm:$0xf0]  ;;  %v9760_v13 = vor.u32 %v10263_v58, %v9759_v32  ;;  %v9764_v45 = vor.u32 %v10259_v43, %v9761_v29 }
0x11c1   : > { %7644 = vst [vmem:[#allocation3 + $0x2b8] sm:$0xff] %v7628_v35  ;;  %v10048_v47 = vor.u32 %v10335_v44, %v10047_v4  ;;  %v10052_v33 = vor.u32 %v10331_v10, %v10049_v52  ;;  %v10287_v1 = vld [vmem:[#allocation3 + $0x174] sm:$0xf0]  ;;  %v9729_v4 = vld [vmem:[#allocation3 + $0x78] sm:$0xf0] }
0x11c2   : > { %10121 = vmatmul.msk.bf16.vlgmr.msra.gmra.mxu1 %vm5360_vm5, %v14651_v17  ;;  %10122 = vmatmul.msk.bf16.vlgmr.msra.gmra.mxu0 %vm5360_vm5, %v14651_v17  ;;  %v9856_v41 = vor.u32 %v10287_v1, %v9855_v31  ;;  %v10255_v57 = vld [vmem:[#allocation3 + $0x74] sm:$0xf0]  ;;  %v9697_v44 = vld [vmem:[#allocation3 + $0x38] sm:$0xf0] }
0x11c3   : > { %9053 = vmatpush.bf16.msrb.mxu1 %v9920_v61  ;;  %9079 = vmatpush.bf16.msrb.mxu0 %v9924_v3  ;;  %v9727_v61 = vld [vmem:[#allocation3 + $0x58] sm:$0xf]  ;;  %v10251_v3 = vld [vmem:[#allocation3 + $0x5c] sm:$0xf] }
0x11c4   : > { %9070 = vmatpush.bf16.msrb.mxu3 %v10048_v47  ;;  %9096 = vmatpush.bf16.msrb.mxu2 %v10052_v33  ;;  %v7240_v15 = vpop.permute.xlu1 %7239  ;;  %v9728_v38 = vor.u32 %v10255_v57, %v9727_v61  ;;  %v9732_v11 = vor.u32 %v10251_v3, %v9729_v4  ;;  %v10247_v35 = vld [vmem:[#allocation3 + $0x34] sm:$0xf0]  ;;  %v10243_v52 = vld [vmem:[#allocation3 + $0x1c] sm:$0xf] }
0x11c5   : > { %v7250_v51 = vrot.slane %v7240_v15, 4  ;;  %v9695_v10 = vld [vmem:[#allocation3 + $0x18] sm:$0xf]  ;;  %v9700_v33 = vor.u32 %v10243_v52, %v9697_v44 }
0x11c6   : > { %v9696_v47 = vor.u32 %v10247_v35, %v9695_v10 }
0x11c7   : > { %9054 = vmatpush.bf16.msrb.mxu1 %v9888_v28  ;;  %9080 = vmatpush.bf16.msrb.mxu0 %v9892_v19  ;;  %v7265_v5 = vsel %vm484_vm3, %v7249_v16, %v7250_v51  ;;  %v9985_v16 = vld [vmem:[#allocation3 + $0x278] sm:$0xf0] }
0x11c8   : > { %v7266_v55 = vsel %vm458_vm4, %v14737_v9, %v7265_v5  ;;  %v10327_v0 = vld [vmem:[#allocation3 + $0x2b4] sm:$0xf0]  ;;  %v10017_v48 = vld [vmem:[#allocation3 + $0x2b8] sm:$0xf0]  ;;  %v9988_v6 = vor.u32 %v10315_v62, %v9985_v16 }
0x11c9   : > { %7282 = vst [vmem:[#allocation3 + $0x238] sm:$0xff] %v7266_v55  ;;  %v10016_v40 = vor.u32 %v10327_v0, %v10015_v23  ;;  %v10020_v26 = vor.u32 %v10323_v7, %v10017_v48  ;;  %v9983_v9 = vld [vmem:[#allocation3 + $0x258] sm:$0xf] }
0x11ca   : > { %v9984_v21 = vor.u32 %v10319_v60, %v9983_v9 }
0x11cb   : > { %9055 = vmatpush.bf16.msrb.mxu1 %v9856_v41  ;;  %9081 = vmatpush.bf16.msrb.mxu0 %v9860_v53 }
0x11cc   : > { %9071 = vmatpush.bf16.msrb.mxu3 %v10016_v40  ;;  %9097 = vmatpush.bf16.msrb.mxu2 %v10020_v26 }
0x11cf   : > { %9056 = vmatpush.bf16.msrb.mxu1 %v9824_v42  ;;  %9082 = vmatpush.bf16.msrb.mxu0 %v9828_v30 }
0x11d0   : > { %9072 = vmatpush.bf16.msrb.mxu3 %v9984_v21  ;;  %9098 = vmatpush.bf16.msrb.mxu2 %v9988_v6  ;;  %v10311_v59 = vld [vmem:[#allocation3 + $0x234] sm:$0xf0]  ;;  %v9953_v39 = vld [vmem:[#allocation3 + $0x238] sm:$0xf0] }
0x11d1   : > { %v9952_v12 = vor.u32 %v10311_v59, %v9951_v24  ;;  %v9956_v2 = vor.u32 %v10307_v14, %v9953_v39 }
0x11d3   : > { %9057 = vmatpush.bf16.msrb.mxu1 %v9792_v56  ;;  %9083 = vmatpush.bf16.msrb.mxu0 %v9796_v50 }
0x11d4   : > { %9073 = vmatpush.bf16.msrb.mxu3 %v9952_v12  ;;  %9099 = vmatpush.bf16.msrb.mxu2 %v9956_v2 }
0x11d7   : > { %9058 = vmatpush.bf16.msrb.mxu1 %v9760_v13  ;;  %9084 = vmatpush.bf16.msrb.mxu0 %v9764_v45 }
0x11d8   : > { %10123 = vmatmul.msk.bf16.vlgmr.msrb.gmra.mxu3 %vm5360_vm5, %v14651_v17  ;;  %10124 = vmatmul.msk.bf16.vlgmr.msrb.gmra.mxu2 %vm5360_vm5, %v14651_v17 }
0x11db   : > { %9059 = vmatpush.bf16.msrb.mxu1 %v9728_v38  ;;  %9085 = vmatpush.bf16.msrb.mxu0 %v9732_v11 }
0x11df   : > { %9060 = vmatpush.bf16.msrb.mxu1 %v9696_v47  ;;  %9086 = vmatpush.bf16.msrb.mxu0 %v9700_v33  ;;  %v8906_v46 = vpop.f32.mrf.mxu3  ;;  %v8932_v34 = vpop.f32.mrf.mxu2 }
0x11e2   : > { %9061 = vmatmul.bf16.vlgmr.msrb.gmra.mxu1 %v14593_v36  ;;  %9087 = vmatmul.bf16.vlgmr.msrb.gmra.mxu0 %v14593_v36 }
0x11e7   : > { %v8908_v17 = vpop.f32.mrf.mxu3  ;;  %v8934_v28 = vpop.f32.mrf.mxu2 }
0x1201   : > { %v8919_v19 = vpop.f32.mrf.mxu1  ;;  %v8945_v1 = vpop.f32.mrf.mxu0 }
0x1202   : > { %v8326_v63 = vpop.permute.xlu2 %8325 }
0x1203   : > { %v8907_v15 = vadd.f32 %v8906_v46, %v8326_v63  ;;  %v8933_v51 = vadd.f32 %v8932_v34, %v8326_v63 }
0x1205   : > { %v8920_v31 = vadd.f32 %v8919_v19, %v8907_v15  ;;  %v8946_v18 = vadd.f32 %v8945_v1, %v8933_v51 }
0x1207   : > { %vm9105_vm3 = vcmp.ge.f32.partialorder %v8920_v31, 0.0  ;;  %vm9106_vm4 = vcmp.ge.f32.partialorder %v8946_v18, 0.0  ;;  %v9113_v5 = vmul.f32 0.01, %v8920_v31  ;;  %v9114_v23 = vmul.f32 0.01, %v8946_v18 }
0x1209   : > { %v8921_v41 = vpop.f32.mrf.mxu1  ;;  %v8947_v53 = vpop.f32.mrf.mxu0  ;;  %v9121_v36 = vsel %vm9105_vm3, %v8920_v31, %v9113_v5  ;;  %v9122_v27 = vsel %vm9106_vm4, %v8946_v18, %v9114_v23 }
0x120a   : > { %9129 = vst [vmem:[%s14817_s10] sm:$0xff] %v9121_v36 }
0x120b   : > { %9130 = vst [vmem:[%s14817_s10 + $0x8] sm:$0xff] %v9122_v27 }
0x1216   : > { %v8971_v49 = vpop.f32.mrf.mxu3  ;;  %v8997_v55 = vpop.f32.mrf.mxu2 }
0x121e   : > { %v8973_v0 = vpop.f32.mrf.mxu3  ;;  %v8999_v7 = vpop.f32.mrf.mxu2 }
0x1221   : > { %v8958_v48 = vpop.f32.mrf.mxu1  ;;  %v8984_v26 = vpop.f32.mrf.mxu0 }
0x1222   : > { %v8959_v40 = vadd.f32 %v8958_v48, %v8326_v63  ;;  %v8985_v54 = vadd.f32 %v8984_v26, %v8326_v63 }
0x1224   : > { %v8972_v22 = vadd.f32 %v8971_v49, %v8959_v40  ;;  %v8998_v42 = vadd.f32 %v8997_v55, %v8985_v54 }
0x1226   : > { %vm9107_vm5 = vcmp.ge.f32.partialorder %v8972_v22, 0.0  ;;  %v9115_v30 = vmul.f32 0.01, %v8972_v22  ;;  %vm9108_vm2 = vcmp.ge.f32.partialorder %v8998_v42, 0.0  ;;  %v9116_v60 = vmul.f32 0.01, %v8998_v42 }
0x1228   : > { %v9123_v16 = vsel %vm9107_vm5, %v8972_v22, %v9115_v30  ;;  %v9124_v20 = vsel %vm9108_vm2, %v8998_v42, %v9116_v60 }
0x1229   : > { %9131 = vst [vmem:[%s14817_s10 + $0x10] sm:$0xff] %v9123_v16  ;;  %v8960_v8 = vpop.f32.mrf.mxu1  ;;  %v8986_v9 = vpop.f32.mrf.mxu0 }
0x122a   : > { %9132 = vst [vmem:[%s14817_s10 + $0x18] sm:$0xff] %v9124_v20 }
0x1236   : > { %v9010_v62 = vpop.f32.mrf.mxu3  ;;  %v9036_v21 = vpop.f32.mrf.mxu2 }
0x1237   : > { %v9011_v37 = vadd.f32 %v9010_v62, %v8326_v63  ;;  %v9037_v56 = vadd.f32 %v9036_v21, %v8326_v63 }
0x123e   : > { %v9012_v6 = vpop.f32.mrf.mxu3  ;;  %v9038_v25 = vpop.f32.mrf.mxu2 }
0x123f   : > { %v9023_v50 = vpop.f32.mrf.mxu1  ;;  %v9049_v24 = vpop.f32.mrf.mxu0 }
0x1240   : > { %v9024_v58 = vadd.f32 %v9023_v50, %v9011_v37  ;;  %v9050_v29 = vadd.f32 %v9049_v24, %v9037_v56 }
0x1242   : > { %vm9109_vm12 = vcmp.ge.f32.partialorder %v9024_v58, 0.0  ;;  %v9117_v59 = vmul.f32 0.01, %v9024_v58  ;;  %vm9110_vm1 = vcmp.ge.f32.partialorder %v9050_v29, 0.0  ;;  %v9118_v14 = vmul.f32 0.01, %v9050_v29 }
0x1244   : > { %v9125_v39 = vsel %vm9109_vm12, %v9024_v58, %v9117_v59  ;;  %v9126_v12 = vsel %vm9110_vm1, %v9050_v29, %v9118_v14 }
0x1245   : > { %9133 = vst [vmem:[%s14817_s10 + $0x20] sm:$0xff] %v9125_v39 }
0x1246   : > { %9134 = vst [vmem:[%s14817_s10 + $0x28] sm:$0xff] %v9126_v12 }
0x1247   : > { %v9025_v2 = vpop.f32.mrf.mxu1  ;;  %v9051_v32 = vpop.f32.mrf.mxu0 }
0x125b   : > { %v9075_v43 = vpop.f32.mrf.mxu3  ;;  %v9101_v13 = vpop.f32.mrf.mxu2 }
0x125f   : > { %v9062_v45 = vpop.f32.mrf.mxu1  ;;  %v9088_v61 = vpop.f32.mrf.mxu0 }
0x1260   : > { %v9063_v3 = vadd.f32 %v9062_v45, %v8326_v63  ;;  %v9089_v57 = vadd.f32 %v9088_v61, %v8326_v63 }
0x1262   : > { %v9076_v4 = vadd.f32 %v9075_v43, %v9063_v3  ;;  %v9102_v38 = vadd.f32 %v9101_v13, %v9089_v57 }
0x1263   : > { %v9077_v44 = vpop.f32.mrf.mxu3  ;;  %v9103_v10 = vpop.f32.mrf.mxu2 }
0x1264   : > { %vm9111_vm15 = vcmp.ge.f32.partialorder %v9076_v4, 0.0  ;;  %v9119_v11 = vmul.f32 0.01, %v9076_v4  ;;  %vm9112_vm13 = vcmp.ge.f32.partialorder %v9102_v38, 0.0  ;;  %v9120_v35 = vmul.f32 0.01, %v9102_v38 }
0x1266   : > { %v9127_v52 = vsel %vm9111_vm15, %v9076_v4, %v9119_v11  ;;  %v9128_v47 = vsel %vm9112_vm13, %v9102_v38, %v9120_v35 }
0x1267   : > { %9135 = vst [vmem:[%s14817_s10 + $0x30] sm:$0xff] %v9127_v52  ;;  %v9064_v33 = vpop.f32.mrf.mxu1  ;;  %v9090_v46 = vpop.f32.mrf.mxu0 }
0x1268   : > { %9136 = vst [vmem:[%s14817_s10 + $0x38] sm:$0xff] %v9128_v47 }
0x1269 PF: > { %s17_s24 = sadd.s32 1, %s10398_s24  }
0x126a   : > { %p14_p4 = scmp.ge.s32.totalorder %s17_s24, 4  }
0x126c   :  { %16 = sbr.rel (!%p14_p4) target bundleno = 1 (0x1), region = 179 }

</bundles_post_ra>
